<compile_context>
chip_gen: v7x
topology: tpu7x:2x2x1
jax: 0.10.0
libtpu: 0.0.40
codegen_flags: <defaults>
</compile_context>

<pallas_src>
import functools

import jax
import jax.numpy as jnp
from jax import lax
from jax.experimental import pallas as pl
from jax.experimental.pallas import tpu as pltpu

# ---- constants matching the PyTorch module defaults ----
W_NLLLOSS = 4.0
W_GIOU = 1.0
GIOU_LOWER = -1.0
GIOU_UPPER = 10.0
GIOU_EPS = 1e-9          # eps used for xyhw->xyxy and GIoU denominators
NLL_EPS = 1e-6           # F.gaussian_nll_loss default eps (var clamp)

BOX_DIM = 4
LANE_BLOCK = 512         # 128 boxes * 4 interleaved coords per row (lane-dense)
SUB_R = 8                # rows per inner sub-tile -> every temp is a handful of (8,128) vregs
MAX_BLOCK_ROWS = 1024    # 1024 rows * 512 lanes * 4 B = 2 MiB per input per buffer


def _detect_num_splits():
    """2-way 'parallel' split only where a second TensorCore exists (megacore / v7x)."""
    try:
        kind = jax.devices()[0].device_kind.lower()
    except Exception:
        return 2
    if "lite" in kind or "v5e" in kind or "v6e" in kind:   # single-TC generations
        return 1
    return 2


NUM_SPLITS = _detect_num_splits()


def _hybrid_loss_kernel(m_ref, g_ref, v_ref, nll_ref, giou_ref, *, block_rows):
    """m/g/v_ref: (block_rows, 512) interleaved xyhw planes. Outputs: (8,512) partial sums."""
    i = pl.program_id(1)          # reduction axis (accumulator pattern)

    @pl.when(i == 0)
    def _():
        nll_ref[...] = jnp.zeros_like(nll_ref)
        giou_ref[...] = jnp.zeros_like(giou_ref)

    # Lane layout: lane l holds coordinate (l % 4) of box (l // 4):
    #   class0 = x1, class1 = y1, class2 = w, class3 = h.
    lane = lax.broadcasted_iota(jnp.int32, (SUB_R, LANE_BLOCK), 1)
    is_c2 = (lane & 3) == 2       # lanes that carry the per-box GIoU result (hoisted)

    def roll2(a):                 # lane l <- lane l-2 : class2/3 pick up x1 / y1
        return pltpu.roll(a, 2, axis=1)

    def roll_up1(a):              # lane l <- lane l+1 : class2 picks up class3 partner
        return pltpu.roll(a, LANE_BLOCK - 1, axis=1)

    n_sub = block_rows // SUB_R

    def body(j, carry):
        nll_acc, giou_acc = carry
        r0 = pl.multiple_of(j * SUB_R, SUB_R)
        m = m_ref[pl.ds(r0, SUB_R), :]
        g = g_ref[pl.ds(r0, SUB_R), :]
        v = v_ref[pl.ds(r0, SUB_R), :]

        # -------- Gaussian NLL: purely elementwise, valid on every lane --------
        vcl = jnp.maximum(v, NLL_EPS)
        d = m - g
        nll_acc = nll_acc + 0.5 * (jnp.log(vcl) + d * d * pl.reciprocal(vcl))

        # -------- bounded GIoU on the interleaved lanes (XLU rolls align coords) ----
        m2 = roll2(m)                               # class2/3: x1 / y1 (mean)
        g2 = roll2(g)                               # class2/3: x1 / y1 (gt)
        p2m = m2 + jnp.maximum(m, GIOU_EPS)         # class2/3: x2 / y2 (= max(x1+w, x1+eps))
        p2g = g2 + jnp.maximum(g, GIOU_EPS)
        sm = p2m - m2                               # class2/3: x2-x1 / y2-y1 (mean box sides)
        sg = p2g - g2

        kis1 = jnp.maximum(m2, g2)                  # class2/3: xkis1 / ykis1
        kis2 = jnp.minimum(p2m, p2g)                # class2/3: xkis2 / ykis2
        dk = jnp.maximum(kis2 - kis1, 0.0)          # relu of overlap side lengths

        intsct = dk * roll_up1(dk)                  # class2: intersection area
        union = sm * roll_up1(sm) + sg * roll_up1(sg) - intsct
        # NOTE: keep reciprocals exact (approx=True would break 1e-5 parity with torch).
        iou = intsct * pl.reciprocal(union + GIOU_EPS)

        c1 = jnp.minimum(m2, g2)                    # class2/3: xc1 / yc1
        c2 = jnp.maximum(p2m, p2g)                  # class2/3: xc2 / yc2
        sc = c2 - c1                                # enclosing box sides
        area_c = sc * roll_up1(sc)                  # class2

        miou = iou - (area_c - union) * pl.reciprocal(area_c + GIOU_EPS)
        gl = jnp.clip(1.0 - miou, GIOU_LOWER, GIOU_UPPER)
        # Lanes of other classes hold garbage (possibly inf/nan) -> select, don't multiply.
        giou_acc = giou_acc + jnp.where(is_c2, gl, 0.0)
        return nll_acc, giou_acc

    zero = jnp.zeros((SUB_R, LANE_BLOCK), jnp.float32)
    nll_acc, giou_acc = lax.fori_loop(0, n_sub, body, (zero, zero),
                                      unroll=max(1, min(4, n_sub)))

    # outputs are accumulator-resident across the 'arbitrary' axis i
    nll_ref[...] += nll_acc
    giou_ref[...] += giou_acc


def _round_up(a, b):
    return ((a + b - 1) // b) * b


@jax.jit
def hybrid_gaussian_nll_giou(mean, gt, var):
    """mean/gt/var: (..., 4) xyhw boxes. Returns dict of scalars (reduction='mean')."""
    n_boxes = mean.size // BOX_DIM
    n_elems = BOX_DIM * n_boxes

    # static tiling (shapes are static under jit)
    rows_data = max(1, pl.cdiv(n_elems, LANE_BLOCK))
    rows_per_split = pl.cdiv(rows_data, NUM_SPLITS)
    block_rows = min(MAX_BLOCK_ROWS, _round_up(rows_per_split, SUB_R))
    steps = pl.cdiv(rows_per_split, block_rows)
    rows_total = NUM_SPLITS * steps * block_rows
    pad_len = rows_total * LANE_BLOCK - n_elems

    # Neutral pad boxes (mean == gt == (0,0,1,1), var == 1) contribute exactly 0 to both
    # partial sums in f32, so the kernel needs no per-element validity mask at all.
    if pad_len:
        box_pad = jnp.tile(jnp.array([0.0, 0.0, 1.0, 1.0], jnp.float32), pad_len // BOX_DIM)
        var_pad = jnp.ones((pad_len,), jnp.float32)
    else:
        box_pad = var_pad = None

    # TODO(synk): if upstream supplies bf16 tensors, keep them bf16 through HBM and cast
    # in-kernel to halve HBM bytes for this bandwidth-bound kernel.
    def prep(x, tail):
        flat = jnp.reshape(x, (-1,)).astype(jnp.float32)   # free reshape, no transpose
        if pad_len:
            flat = jnp.concatenate([flat, tail])            # single streaming copy, only if unaligned
        return flat.reshape(rows_total, LANE_BLOCK)

    m2d = prep(mean, box_pad)
    g2d = prep(gt, box_pad)
    v2d = prep(var, var_pad)

    kernel = functools.partial(_hybrid_loss_kernel, block_rows=block_rows)
    in_spec = pl.BlockSpec((block_rows, LANE_BLOCK), lambda c, i: (c * steps + i, 0))
    out_spec = pl.BlockSpec((SUB_R, LANE_BLOCK), lambda c, i: (c, 0))

    nll_part, giou_part = pl.pallas_call(
        kernel,
        out_shape=(jax.ShapeDtypeStruct((NUM_SPLITS * SUB_R, LANE_BLOCK), jnp.float32),
                   jax.ShapeDtypeStruct((NUM_SPLITS * SUB_R, LANE_BLOCK), jnp.float32)),
        grid=(NUM_SPLITS, steps),
        in_specs=[in_spec, in_spec, in_spec],
        out_specs=(out_spec, out_spec),
        compiler_params=pltpu.CompilerParams(
            dimension_semantics=("parallel", "arbitrary")),
    )(m2d, g2d, v2d)

    # tiny final reduction + normalization in XLA (lane-dense partial sums from the kernel)
    nll = jnp.sum(nll_part) / jnp.float32(BOX_DIM * n_boxes)
    giou = jnp.sum(giou_part) / jnp.float32(n_boxes)
    return {
        "loss": W_NLLLOSS * nll + W_GIOU * giou,
        "nllloss": nll,
        "giou": giou,
    }


# -------------------- pure-JAX reference (for sanity check) ------------------
def _ref_loss(mean, gt, var):
    v = jnp.maximum(var, NLL_EPS)
    nll = jnp.mean(0.5 * (jnp.log(v) + (mean - gt) ** 2 / v))

    def to_xyxy(b):
        b = jnp.reshape(b, (-1, 4))
        x1, y1, w, h = b[:, 0], b[:, 1], b[:, 2], b[:, 3]
        return (x1, y1,
                jnp.maximum(x1 + w, x1 + GIOU_EPS),
                jnp.maximum(y1 + h, y1 + GIOU_EPS))

    x1, y1, x2, y2 = to_xyxy(mean)
    x1g, y1g, x2g, y2g = to_xyxy(gt)
    xkis1 = jnp.maximum(x1, x1g); ykis1 = jnp.maximum(y1, y1g)
    xkis2 = jnp.minimum(x2, x2g); ykis2 = jnp.minimum(y2, y2g)
    intsct = jnp.where((ykis2 > ykis1) & (xkis2 > xkis1),
                       (xkis2 - xkis1) * (ykis2 - ykis1), 0.0)
    union = (x2 - x1) * (y2 - y1) + (x2g - x1g) * (y2g - y1g) - intsct
    iou = intsct / (union + GIOU_EPS)
    xc1 = jnp.minimum(x1, x1g); yc1 = jnp.minimum(y1, y1g)
    xc2 = jnp.maximum(x2, x2g); yc2 = jnp.maximum(y2, y2g)
    area_c = (xc2 - xc1) * (yc2 - yc1)
    giou = jnp.mean(jnp.clip(1.0 - (iou - (area_c - union) / (area_c + GIOU_EPS)),
                             GIOU_LOWER, GIOU_UPPER))
    return {"loss": W_NLLLOSS * nll + W_GIOU * giou, "nllloss": nll, "giou": giou}


if __name__ == "__main__":
    # deterministic small inputs: seq=8, batch=2, bbox dim=4 (xyhw format)
    key = jax.random.PRNGKey(0)
    k1, k2, k3 = jax.random.split(key, 3)
    seq, batch = 8, 2

    mean = jax.random.uniform(k1, (seq, batch, 4), jnp.float32, 0.1, 0.6)
    gt = mean + 0.05 * jax.random.normal(k2, (seq, batch, 4), jnp.float32)
    var = 0.01 + jax.random.uniform(k3, (seq, batch, 4), jnp.float32, 0.0, 0.1)

    out = hybrid_gaussian_nll_giou(mean, gt, var)
    jax.block_until_ready(out)

    ref = _ref_loss(mean, gt, var)
    for k in ("loss", "nllloss", "giou"):
        assert jnp.allclose(out[k], ref[k], rtol=1e-5, atol=1e-5), (k, out[k], ref[k])

    print("KERNEL_OK")
</pallas_src>

<mosaic_0001>
module attributes {stable_mosaic.version = 11 : i64} {
  func.func @_hybrid_loss_kernel(%arg0: i32, %arg1: i32, %arg2: memref<8x512xf32, #tpu.memory_space<vmem>>, %arg3: memref<8x512xf32, #tpu.memory_space<vmem>>, %arg4: memref<8x512xf32, #tpu.memory_space<vmem>>, %arg5: memref<8x512xf32, #tpu.memory_space<vmem>>, %arg6: memref<8x512xf32, #tpu.memory_space<vmem>>) attributes {dimension_semantics = [#tpu.dimension_semantics<parallel>, #tpu.dimension_semantics<arbitrary>], iteration_bounds = array<i64: 2, 1>, scalar_prefetch = 0 : i64, scratch_operands = 0 : i64, tpu.core_type = #tpu.core_type<tc>, window_params = [{transform_indices = @transform_0, window_bounds = array<i64: 8, 512>}, {transform_indices = @transform_1, window_bounds = array<i64: 8, 512>}, {transform_indices = @transform_2, window_bounds = array<i64: 8, 512>}, {transform_indices = @transform_3, window_bounds = array<i64: 8, 512>}, {transform_indices = @transform_4, window_bounds = array<i64: 8, 512>}]} {
    %c0_i32 = arith.constant 0 : i32
    %0 = arith.cmpi eq, %arg1, %c0_i32 : i32
    %1 = arith.extui %0 : i1 to i32
    %c0_i32_0 = arith.constant 0 : i32
    %2 = arith.cmpi ne, %1, %c0_i32_0 : i32
    scf.if %2 {
      %cst_28 = arith.constant 0.000000e+00 : f32
      %81 = vector.broadcast %cst_28 : f32 to vector<8x512xf32>
      %c0_29 = arith.constant 0 : index
      %c0_30 = arith.constant 0 : index
      %82 = vector.load %arg5[%c0_29, %c0_30] : memref<8x512xf32, #tpu.memory_space<vmem>>, vector<8x512xf32>
      tpu.vector_store %arg5[%c0_29, %c0_30], %81 {strides = array<i32>} : memref<8x512xf32, #tpu.memory_space<vmem>>, vector<8x512xf32>,
      %cst_31 = arith.constant 0.000000e+00 : f32
      %83 = vector.broadcast %cst_31 : f32 to vector<8x512xf32>
      %c0_32 = arith.constant 0 : index
      %c0_33 = arith.constant 0 : index
      %84 = vector.load %arg6[%c0_32, %c0_33] : memref<8x512xf32, #tpu.memory_space<vmem>>, vector<8x512xf32>
      tpu.vector_store %arg6[%c0_32, %c0_33], %83 {strides = array<i32>} : memref<8x512xf32, #tpu.memory_space<vmem>>, vector<8x512xf32>,
    } else {
    }
    %3 = tpu.iota {dimensions = array<i32: 1>} : vector<8x512xi32>
    %c3_i32 = arith.constant 3 : i32
    %4 = vector.broadcast %c3_i32 : i32 to vector<8x512xi32>
    %5 = arith.andi %3, %4 : vector<8x512xi32>
    %c2_i32 = arith.constant 2 : i32
    %6 = vector.broadcast %c2_i32 : i32 to vector<8x512xi32>
    %7 = arith.cmpi eq, %5, %6 : vector<8x512xi32>
    %cst = arith.constant 0.000000e+00 : f32
    %8 = vector.broadcast %cst : f32 to vector<8x512xf32>
    %c0_i32_1 = arith.constant 0 : i32
    %c8_i32 = arith.constant 8 : i32
    %9 = arith.muli %c0_i32_1, %c8_i32 : i32
    %10 = tpu.assume_multiple %9, 8 : i32
    %11 = arith.index_cast %10 : i32 to index
    %c0 = arith.constant 0 : index
    %12 = vector.load %arg2[%11, %c0] : memref<8x512xf32, #tpu.memory_space<vmem>>, vector<8x512xf32>
    %13 = arith.index_cast %10 : i32 to index
    %c0_2 = arith.constant 0 : index
    %14 = vector.load %arg3[%13, %c0_2] : memref<8x512xf32, #tpu.memory_space<vmem>>, vector<8x512xf32>
    %15 = arith.index_cast %10 : i32 to index
    %c0_3 = arith.constant 0 : index
    %16 = vector.load %arg4[%15, %c0_3] : memref<8x512xf32, #tpu.memory_space<vmem>>, vector<8x512xf32>
    %cst_4 = arith.constant 9.99999997E-7 : f32
    %17 = vector.broadcast %cst_4 : f32 to vector<8x512xf32>
    %18 = arith.maximumf %16, %17 : vector<8x512xf32>
    %19 = arith.subf %12, %14 : vector<8x512xf32>
    %20 = math.log %18 : vector<8x512xf32>
    %21 = arith.mulf %19, %19 : vector<8x512xf32>
    %22 = tpu.reciprocal %18 : vector<8x512xf32> -> vector<8x512xf32>
    %23 = arith.mulf %21, %22 : vector<8x512xf32>
    %24 = arith.addf %20, %23 : vector<8x512xf32>
    %cst_5 = arith.constant 5.000000e-01 : f32
    %25 = vector.broadcast %cst_5 : f32 to vector<8x512xf32>
    %26 = arith.mulf %25, %24 : vector<8x512xf32>
    %27 = arith.addf %8, %26 : vector<8x512xf32>
    %c2_i32_6 = arith.constant 2 : i32
    %28 = tpu.dynamic_rotate %12 by %c2_i32_6 dim 1 : vector<8x512xf32>, i32 -> vector<8x512xf32>
    %c2_i32_7 = arith.constant 2 : i32
    %29 = tpu.dynamic_rotate %14 by %c2_i32_7 dim 1 : vector<8x512xf32>, i32 -> vector<8x512xf32>
    %cst_8 = arith.constant 9.99999971E-10 : f32
    %30 = vector.broadcast %cst_8 : f32 to vector<8x512xf32>
    %31 = arith.maximumf %12, %30 : vector<8x512xf32>
    %32 = arith.addf %28, %31 : vector<8x512xf32>
    %cst_9 = arith.constant 9.99999971E-10 : f32
    %33 = vector.broadcast %cst_9 : f32 to vector<8x512xf32>
    %34 = arith.maximumf %14, %33 : vector<8x512xf32>
    %35 = arith.addf %29, %34 : vector<8x512xf32>
    %36 = arith.subf %32, %28 : vector<8x512xf32>
    %37 = arith.subf %35, %29 : vector<8x512xf32>
    %38 = arith.maximumf %28, %29 : vector<8x512xf32>
    %39 = arith.minimumf %32, %35 : vector<8x512xf32>
    %40 = arith.subf %39, %38 : vector<8x512xf32>
    %cst_10 = arith.constant 0.000000e+00 : f32
    %41 = vector.broadcast %cst_10 : f32 to vector<8x512xf32>
    %42 = arith.maximumf %40, %41 : vector<8x512xf32>
    %c511_i32 = arith.constant 511 : i32
    %43 = tpu.dynamic_rotate %42 by %c511_i32 dim 1 : vector<8x512xf32>, i32 -> vector<8x512xf32>
    %44 = arith.mulf %42, %43 : vector<8x512xf32>
    %c511_i32_11 = arith.constant 511 : i32
    %45 = tpu.dynamic_rotate %36 by %c511_i32_11 dim 1 : vector<8x512xf32>, i32 -> vector<8x512xf32>
    %46 = arith.mulf %36, %45 : vector<8x512xf32>
    %c511_i32_12 = arith.constant 511 : i32
    %47 = tpu.dynamic_rotate %37 by %c511_i32_12 dim 1 : vector<8x512xf32>, i32 -> vector<8x512xf32>
    %48 = arith.mulf %37, %47 : vector<8x512xf32>
    %49 = arith.addf %46, %48 : vector<8x512xf32>
    %50 = arith.subf %49, %44 : vector<8x512xf32>
    %cst_13 = arith.constant 9.99999971E-10 : f32
    %51 = vector.broadcast %cst_13 : f32 to vector<8x512xf32>
    %52 = arith.addf %50, %51 : vector<8x512xf32>
    %53 = tpu.reciprocal %52 : vector<8x512xf32> -> vector<8x512xf32>
    %54 = arith.mulf %44, %53 : vector<8x512xf32>
    %55 = arith.minimumf %28, %29 : vector<8x512xf32>
    %56 = arith.maximumf %32, %35 : vector<8x512xf32>
    %57 = arith.subf %56, %55 : vector<8x512xf32>
    %c511_i32_14 = arith.constant 511 : i32
    %58 = tpu.dynamic_rotate %57 by %c511_i32_14 dim 1 : vector<8x512xf32>, i32 -> vector<8x512xf32>
    %59 = arith.mulf %57, %58 : vector<8x512xf32>
    %60 = arith.subf %59, %50 : vector<8x512xf32>
    %cst_15 = arith.constant 9.99999971E-10 : f32
    %61 = vector.broadcast %cst_15 : f32 to vector<8x512xf32>
    %62 = arith.addf %59, %61 : vector<8x512xf32>
    %63 = tpu.reciprocal %62 : vector<8x512xf32> -> vector<8x512xf32>
    %64 = arith.mulf %60, %63 : vector<8x512xf32>
    %65 = arith.subf %54, %64 : vector<8x512xf32>
    %cst_16 = arith.constant 1.000000e+00 : f32
    %66 = vector.broadcast %cst_16 : f32 to vector<8x512xf32>
    %67 = arith.subf %66, %65 : vector<8x512xf32>
    %cst_17 = arith.constant -1.000000e+00 : f32
    %cst_18 = arith.constant 1.000000e+01 : f32
    %68 = vector.broadcast %cst_17 : f32 to vector<8x512xf32>
    %69 = arith.maximumf %68, %67 : vector<8x512xf32>
    %70 = vector.broadcast %cst_18 : f32 to vector<8x512xf32>
    %71 = arith.minimumf %70, %69 : vector<8x512xf32>
    %cst_19 = arith.constant 0.000000e+00 : f32
    %72 = vector.broadcast %cst_19 : f32 to vector<8x512xf32>
    %73 = arith.select %7, %71, %72 : vector<8x512xi1>, vector<8x512xf32>
    %74 = arith.addf %8, %73 : vector<8x512xf32>
    %c1_i32 = arith.constant 1 : i32
    %c0_20 = arith.constant 0 : index
    %c0_21 = arith.constant 0 : index
    %75 = vector.load %arg5[%c0_20, %c0_21] : memref<8x512xf32, #tpu.memory_space<vmem>>, vector<8x512xf32>
    %76 = arith.addf %75, %27 : vector<8x512xf32>
    %c0_22 = arith.constant 0 : index
    %c0_23 = arith.constant 0 : index
    %77 = vector.load %arg5[%c0_22, %c0_23] : memref<8x512xf32, #tpu.memory_space<vmem>>, vector<8x512xf32>
    tpu.vector_store %arg5[%c0_22, %c0_23], %76 {strides = array<i32>} : memref<8x512xf32, #tpu.memory_space<vmem>>, vector<8x512xf32>,
    %c0_24 = arith.constant 0 : index
    %c0_25 = arith.constant 0 : index
    %78 = vector.load %arg6[%c0_24, %c0_25] : memref<8x512xf32, #tpu.memory_space<vmem>>, vector<8x512xf32>
    %79 = arith.addf %78, %74 : vector<8x512xf32>
    %c0_26 = arith.constant 0 : index
    %c0_27 = arith.constant 0 : index
    %80 = vector.load %arg6[%c0_26, %c0_27] : memref<8x512xf32, #tpu.memory_space<vmem>>, vector<8x512xf32>
    tpu.vector_store %arg6[%c0_26, %c0_27], %79 {strides = array<i32>} : memref<8x512xf32, #tpu.memory_space<vmem>>, vector<8x512xf32>,
    return
  }
  func.func @transform_0(%arg0: i32, %arg1: i32) -> (i32, i32) {
    %c1_i32 = arith.constant 1 : i32
    %0 = arith.muli %arg0, %c1_i32 : i32
    %1 = arith.addi %0, %arg1 : i32
    %c0_i32 = arith.constant 0 : i32
    %c0_i32_0 = arith.constant 0 : i32
    return %1, %c0_i32 : i32, i32
  }
  func.func @transform_1(%arg0: i32, %arg1: i32) -> (i32, i32) {
    %c1_i32 = arith.constant 1 : i32
    %0 = arith.muli %arg0, %c1_i32 : i32
    %1 = arith.addi %0, %arg1 : i32
    %c0_i32 = arith.constant 0 : i32
    %c0_i32_0 = arith.constant 0 : i32
    return %1, %c0_i32 : i32, i32
  }
  func.func @transform_2(%arg0: i32, %arg1: i32) -> (i32, i32) {
    %c1_i32 = arith.constant 1 : i32
    %0 = arith.muli %arg0, %c1_i32 : i32
    %1 = arith.addi %0, %arg1 : i32
    %c0_i32 = arith.constant 0 : i32
    %c0_i32_0 = arith.constant 0 : i32
    return %1, %c0_i32 : i32, i32
  }
  func.func @transform_3(%arg0: i32, %arg1: i32) -> (i32, i32) {
    %c0_i32 = arith.constant 0 : i32
    %c0_i32_0 = arith.constant 0 : i32
    return %arg0, %c0_i32 : i32, i32
  }
  func.func @transform_4(%arg0: i32, %arg1: i32) -> (i32, i32) {
    %c0_i32 = arith.constant 0 : i32
    %c0_i32_0 = arith.constant 0 : i32
    return %arg0, %c0_i32 : i32, i32
  }
}

</mosaic_0001>

<bundles_post_ra>
// kernel: tile.6
= control target key start
LH: loop header
LB: loop body
LE: loop exit
PB: predicated region body
PF: predicated region fallthrough
CT: control target
= control target key end

     0   :  { %s1796_s0 = inlined_call_operand.vmem [shape: f32[4], index: 0, kind: input, shape index: {}]   ;;  %s1797_s1 = inlined_call_operand.vmem [shape: f32[2032,4], index: 1, kind: output, shape index: {}]  }
   0x1   :  { %v778_v0 = vld [vmem:[%s1796_s0] ss:$0 sm:$0xff] }
   0x2   :  { %5 = vst [vmem:[%s1797_s1] sm:$0xff] %v778_v0  ;;  %512 = vst [vmem:[%s1797_s1 + $0x8] sm:$0xff] %v778_v0 }
   0x3   :  { %513 = vst [vmem:[%s1797_s1 + $0x10] sm:$0xff] %v778_v0  ;;  %514 = vst [vmem:[%s1797_s1 + $0x18] sm:$0xff] %v778_v0 }
   0x4   :  { %515 = vst [vmem:[%s1797_s1 + $0x20] sm:$0xff] %v778_v0  ;;  %516 = vst [vmem:[%s1797_s1 + $0x28] sm:$0xff] %v778_v0 }
   0x5   :  { %517 = vst [vmem:[%s1797_s1 + $0x30] sm:$0xff] %v778_v0  ;;  %518 = vst [vmem:[%s1797_s1 + $0x38] sm:$0xff] %v778_v0 }
   0x6   :  { %519 = vst [vmem:[%s1797_s1 + $0x40] sm:$0xff] %v778_v0  ;;  %520 = vst [vmem:[%s1797_s1 + $0x48] sm:$0xff] %v778_v0 }
   0x7   :  { %521 = vst [vmem:[%s1797_s1 + $0x50] sm:$0xff] %v778_v0  ;;  %522 = vst [vmem:[%s1797_s1 + $0x58] sm:$0xff] %v778_v0 }
   0x8   :  { %523 = vst [vmem:[%s1797_s1 + $0x60] sm:$0xff] %v778_v0  ;;  %524 = vst [vmem:[%s1797_s1 + $0x68] sm:$0xff] %v778_v0 }
   0x9   :  { %525 = vst [vmem:[%s1797_s1 + $0x70] sm:$0xff] %v778_v0  ;;  %526 = vst [vmem:[%s1797_s1 + $0x78] sm:$0xff] %v778_v0 }
   0xa   :  { %527 = vst [vmem:[%s1797_s1 + $0x80] sm:$0xff] %v778_v0  ;;  %528 = vst [vmem:[%s1797_s1 + $0x88] sm:$0xff] %v778_v0 }
   0xb   :  { %529 = vst [vmem:[%s1797_s1 + $0x90] sm:$0xff] %v778_v0  ;;  %530 = vst [vmem:[%s1797_s1 + $0x98] sm:$0xff] %v778_v0 }
   0xc   :  { %531 = vst [vmem:[%s1797_s1 + $0xa0] sm:$0xff] %v778_v0  ;;  %532 = vst [vmem:[%s1797_s1 + $0xa8] sm:$0xff] %v778_v0 }
   0xd   :  { %533 = vst [vmem:[%s1797_s1 + $0xb0] sm:$0xff] %v778_v0  ;;  %534 = vst [vmem:[%s1797_s1 + $0xb8] sm:$0xff] %v778_v0 }
   0xe   :  { %535 = vst [vmem:[%s1797_s1 + $0xc0] sm:$0xff] %v778_v0  ;;  %536 = vst [vmem:[%s1797_s1 + $0xc8] sm:$0xff] %v778_v0 }
   0xf   :  { %537 = vst [vmem:[%s1797_s1 + $0xd0] sm:$0xff] %v778_v0  ;;  %538 = vst [vmem:[%s1797_s1 + $0xd8] sm:$0xff] %v778_v0 }
  0x10   :  { %539 = vst [vmem:[%s1797_s1 + $0xe0] sm:$0xff] %v778_v0  ;;  %540 = vst [vmem:[%s1797_s1 + $0xe8] sm:$0xff] %v778_v0 }
  0x11   :  { %541 = vst [vmem:[%s1797_s1 + $0xf0] sm:$0xff] %v778_v0  ;;  %542 = vst [vmem:[%s1797_s1 + $0xf8] sm:$0xff] %v778_v0 }
  0x12   :  { %543 = vst [vmem:[%s1797_s1 + $0x100] sm:$0xff] %v778_v0  ;;  %544 = vst [vmem:[%s1797_s1 + $0x108] sm:$0xff] %v778_v0 }
  0x13   :  { %545 = vst [vmem:[%s1797_s1 + $0x110] sm:$0xff] %v778_v0  ;;  %546 = vst [vmem:[%s1797_s1 + $0x118] sm:$0xff] %v778_v0 }
  0x14   :  { %547 = vst [vmem:[%s1797_s1 + $0x120] sm:$0xff] %v778_v0  ;;  %548 = vst [vmem:[%s1797_s1 + $0x128] sm:$0xff] %v778_v0 }
  0x15   :  { %549 = vst [vmem:[%s1797_s1 + $0x130] sm:$0xff] %v778_v0  ;;  %550 = vst [vmem:[%s1797_s1 + $0x138] sm:$0xff] %v778_v0 }
  0x16   :  { %551 = vst [vmem:[%s1797_s1 + $0x140] sm:$0xff] %v778_v0  ;;  %552 = vst [vmem:[%s1797_s1 + $0x148] sm:$0xff] %v778_v0 }
  0x17   :  { %553 = vst [vmem:[%s1797_s1 + $0x150] sm:$0xff] %v778_v0  ;;  %554 = vst [vmem:[%s1797_s1 + $0x158] sm:$0xff] %v778_v0 }
  0x18   :  { %555 = vst [vmem:[%s1797_s1 + $0x160] sm:$0xff] %v778_v0  ;;  %556 = vst [vmem:[%s1797_s1 + $0x168] sm:$0xff] %v778_v0 }
  0x19   :  { %557 = vst [vmem:[%s1797_s1 + $0x170] sm:$0xff] %v778_v0  ;;  %558 = vst [vmem:[%s1797_s1 + $0x178] sm:$0xff] %v778_v0 }
  0x1a   :  { %559 = vst [vmem:[%s1797_s1 + $0x180] sm:$0xff] %v778_v0  ;;  %560 = vst [vmem:[%s1797_s1 + $0x188] sm:$0xff] %v778_v0 }
  0x1b   :  { %561 = vst [vmem:[%s1797_s1 + $0x190] sm:$0xff] %v778_v0  ;;  %562 = vst [vmem:[%s1797_s1 + $0x198] sm:$0xff] %v778_v0 }
  0x1c   :  { %563 = vst [vmem:[%s1797_s1 + $0x1a0] sm:$0xff] %v778_v0  ;;  %564 = vst [vmem:[%s1797_s1 + $0x1a8] sm:$0xff] %v778_v0 }
  0x1d   :  { %565 = vst [vmem:[%s1797_s1 + $0x1b0] sm:$0xff] %v778_v0  ;;  %566 = vst [vmem:[%s1797_s1 + $0x1b8] sm:$0xff] %v778_v0 }
  0x1e   :  { %567 = vst [vmem:[%s1797_s1 + $0x1c0] sm:$0xff] %v778_v0  ;;  %568 = vst [vmem:[%s1797_s1 + $0x1c8] sm:$0xff] %v778_v0 }
  0x1f   :  { %569 = vst [vmem:[%s1797_s1 + $0x1d0] sm:$0xff] %v778_v0  ;;  %570 = vst [vmem:[%s1797_s1 + $0x1d8] sm:$0xff] %v778_v0 }
  0x20   :  { %571 = vst [vmem:[%s1797_s1 + $0x1e0] sm:$0xff] %v778_v0  ;;  %572 = vst [vmem:[%s1797_s1 + $0x1e8] sm:$0xff] %v778_v0 }
  0x21   :  { %573 = vst [vmem:[%s1797_s1 + $0x1f0] sm:$0xff] %v778_v0  ;;  %574 = vst [vmem:[%s1797_s1 + $0x1f8] sm:$0xff] %v778_v0 }
  0x22   :  { %575 = vst [vmem:[%s1797_s1 + $0x200] sm:$0xff] %v778_v0  ;;  %576 = vst [vmem:[%s1797_s1 + $0x208] sm:$0xff] %v778_v0 }
  0x23   :  { %577 = vst [vmem:[%s1797_s1 + $0x210] sm:$0xff] %v778_v0  ;;  %578 = vst [vmem:[%s1797_s1 + $0x218] sm:$0xff] %v778_v0 }
  0x24   :  { %579 = vst [vmem:[%s1797_s1 + $0x220] sm:$0xff] %v778_v0  ;;  %580 = vst [vmem:[%s1797_s1 + $0x228] sm:$0xff] %v778_v0 }
  0x25   :  { %581 = vst [vmem:[%s1797_s1 + $0x230] sm:$0xff] %v778_v0  ;;  %582 = vst [vmem:[%s1797_s1 + $0x238] sm:$0xff] %v778_v0 }
  0x26   :  { %583 = vst [vmem:[%s1797_s1 + $0x240] sm:$0xff] %v778_v0  ;;  %584 = vst [vmem:[%s1797_s1 + $0x248] sm:$0xff] %v778_v0 }
  0x27   :  { %585 = vst [vmem:[%s1797_s1 + $0x250] sm:$0xff] %v778_v0  ;;  %586 = vst [vmem:[%s1797_s1 + $0x258] sm:$0xff] %v778_v0 }
  0x28   :  { %587 = vst [vmem:[%s1797_s1 + $0x260] sm:$0xff] %v778_v0  ;;  %588 = vst [vmem:[%s1797_s1 + $0x268] sm:$0xff] %v778_v0 }
  0x29   :  { %589 = vst [vmem:[%s1797_s1 + $0x270] sm:$0xff] %v778_v0  ;;  %590 = vst [vmem:[%s1797_s1 + $0x278] sm:$0xff] %v778_v0 }
  0x2a   :  { %591 = vst [vmem:[%s1797_s1 + $0x280] sm:$0xff] %v778_v0  ;;  %592 = vst [vmem:[%s1797_s1 + $0x288] sm:$0xff] %v778_v0 }
  0x2b   :  { %593 = vst [vmem:[%s1797_s1 + $0x290] sm:$0xff] %v778_v0  ;;  %594 = vst [vmem:[%s1797_s1 + $0x298] sm:$0xff] %v778_v0 }
  0x2c   :  { %595 = vst [vmem:[%s1797_s1 + $0x2a0] sm:$0xff] %v778_v0  ;;  %596 = vst [vmem:[%s1797_s1 + $0x2a8] sm:$0xff] %v778_v0 }
  0x2d   :  { %597 = vst [vmem:[%s1797_s1 + $0x2b0] sm:$0xff] %v778_v0  ;;  %598 = vst [vmem:[%s1797_s1 + $0x2b8] sm:$0xff] %v778_v0 }
  0x2e   :  { %599 = vst [vmem:[%s1797_s1 + $0x2c0] sm:$0xff] %v778_v0  ;;  %600 = vst [vmem:[%s1797_s1 + $0x2c8] sm:$0xff] %v778_v0 }
  0x2f   :  { %601 = vst [vmem:[%s1797_s1 + $0x2d0] sm:$0xff] %v778_v0  ;;  %602 = vst [vmem:[%s1797_s1 + $0x2d8] sm:$0xff] %v778_v0 }
  0x30   :  { %603 = vst [vmem:[%s1797_s1 + $0x2e0] sm:$0xff] %v778_v0  ;;  %604 = vst [vmem:[%s1797_s1 + $0x2e8] sm:$0xff] %v778_v0 }
  0x31   :  { %605 = vst [vmem:[%s1797_s1 + $0x2f0] sm:$0xff] %v778_v0  ;;  %606 = vst [vmem:[%s1797_s1 + $0x2f8] sm:$0xff] %v778_v0 }
  0x32   :  { %607 = vst [vmem:[%s1797_s1 + $0x300] sm:$0xff] %v778_v0  ;;  %608 = vst [vmem:[%s1797_s1 + $0x308] sm:$0xff] %v778_v0 }
  0x33   :  { %609 = vst [vmem:[%s1797_s1 + $0x310] sm:$0xff] %v778_v0  ;;  %610 = vst [vmem:[%s1797_s1 + $0x318] sm:$0xff] %v778_v0 }
  0x34   :  { %611 = vst [vmem:[%s1797_s1 + $0x320] sm:$0xff] %v778_v0  ;;  %612 = vst [vmem:[%s1797_s1 + $0x328] sm:$0xff] %v778_v0 }
  0x35   :  { %613 = vst [vmem:[%s1797_s1 + $0x330] sm:$0xff] %v778_v0  ;;  %614 = vst [vmem:[%s1797_s1 + $0x338] sm:$0xff] %v778_v0 }
  0x36   :  { %615 = vst [vmem:[%s1797_s1 + $0x340] sm:$0xff] %v778_v0  ;;  %616 = vst [vmem:[%s1797_s1 + $0x348] sm:$0xff] %v778_v0 }
  0x37   :  { %617 = vst [vmem:[%s1797_s1 + $0x350] sm:$0xff] %v778_v0  ;;  %618 = vst [vmem:[%s1797_s1 + $0x358] sm:$0xff] %v778_v0 }
  0x38   :  { %619 = vst [vmem:[%s1797_s1 + $0x360] sm:$0xff] %v778_v0  ;;  %620 = vst [vmem:[%s1797_s1 + $0x368] sm:$0xff] %v778_v0 }
  0x39   :  { %621 = vst [vmem:[%s1797_s1 + $0x370] sm:$0xff] %v778_v0  ;;  %622 = vst [vmem:[%s1797_s1 + $0x378] sm:$0xff] %v778_v0 }
  0x3a   :  { %623 = vst [vmem:[%s1797_s1 + $0x380] sm:$0xff] %v778_v0  ;;  %624 = vst [vmem:[%s1797_s1 + $0x388] sm:$0xff] %v778_v0 }
  0x3b   :  { %625 = vst [vmem:[%s1797_s1 + $0x390] sm:$0xff] %v778_v0  ;;  %626 = vst [vmem:[%s1797_s1 + $0x398] sm:$0xff] %v778_v0 }
  0x3c   :  { %627 = vst [vmem:[%s1797_s1 + $0x3a0] sm:$0xff] %v778_v0  ;;  %628 = vst [vmem:[%s1797_s1 + $0x3a8] sm:$0xff] %v778_v0 }
  0x3d   :  { %629 = vst [vmem:[%s1797_s1 + $0x3b0] sm:$0xff] %v778_v0  ;;  %630 = vst [vmem:[%s1797_s1 + $0x3b8] sm:$0xff] %v778_v0 }
  0x3e   :  { %631 = vst [vmem:[%s1797_s1 + $0x3c0] sm:$0xff] %v778_v0  ;;  %632 = vst [vmem:[%s1797_s1 + $0x3c8] sm:$0xff] %v778_v0 }
  0x3f   :  { %633 = vst [vmem:[%s1797_s1 + $0x3d0] sm:$0xff] %v778_v0  ;;  %634 = vst [vmem:[%s1797_s1 + $0x3d8] sm:$0xff] %v778_v0 }
  0x40   :  { %635 = vst [vmem:[%s1797_s1 + $0x3e0] sm:$0xff] %v778_v0  ;;  %636 = vst [vmem:[%s1797_s1 + $0x3e8] sm:$0xff] %v778_v0 }
  0x41   :  { %637 = vst [vmem:[%s1797_s1 + $0x3f0] sm:$0xff] %v778_v0  ;;  %638 = vst [vmem:[%s1797_s1 + $0x3f8] sm:$0xff] %v778_v0 }
  0x42   :  { %639 = vst [vmem:[%s1797_s1 + $0x400] sm:$0xff] %v778_v0  ;;  %640 = vst [vmem:[%s1797_s1 + $0x408] sm:$0xff] %v778_v0 }
  0x43   :  { %641 = vst [vmem:[%s1797_s1 + $0x410] sm:$0xff] %v778_v0  ;;  %642 = vst [vmem:[%s1797_s1 + $0x418] sm:$0xff] %v778_v0 }
  0x44   :  { %643 = vst [vmem:[%s1797_s1 + $0x420] sm:$0xff] %v778_v0  ;;  %644 = vst [vmem:[%s1797_s1 + $0x428] sm:$0xff] %v778_v0 }
  0x45   :  { %645 = vst [vmem:[%s1797_s1 + $0x430] sm:$0xff] %v778_v0  ;;  %646 = vst [vmem:[%s1797_s1 + $0x438] sm:$0xff] %v778_v0 }
  0x46   :  { %647 = vst [vmem:[%s1797_s1 + $0x440] sm:$0xff] %v778_v0  ;;  %648 = vst [vmem:[%s1797_s1 + $0x448] sm:$0xff] %v778_v0 }
  0x47   :  { %649 = vst [vmem:[%s1797_s1 + $0x450] sm:$0xff] %v778_v0  ;;  %650 = vst [vmem:[%s1797_s1 + $0x458] sm:$0xff] %v778_v0 }
  0x48   :  { %651 = vst [vmem:[%s1797_s1 + $0x460] sm:$0xff] %v778_v0  ;;  %652 = vst [vmem:[%s1797_s1 + $0x468] sm:$0xff] %v778_v0 }
  0x49   :  { %653 = vst [vmem:[%s1797_s1 + $0x470] sm:$0xff] %v778_v0  ;;  %654 = vst [vmem:[%s1797_s1 + $0x478] sm:$0xff] %v778_v0 }
  0x4a   :  { %655 = vst [vmem:[%s1797_s1 + $0x480] sm:$0xff] %v778_v0  ;;  %656 = vst [vmem:[%s1797_s1 + $0x488] sm:$0xff] %v778_v0 }
  0x4b   :  { %657 = vst [vmem:[%s1797_s1 + $0x490] sm:$0xff] %v778_v0  ;;  %658 = vst [vmem:[%s1797_s1 + $0x498] sm:$0xff] %v778_v0 }
  0x4c   :  { %659 = vst [vmem:[%s1797_s1 + $0x4a0] sm:$0xff] %v778_v0  ;;  %660 = vst [vmem:[%s1797_s1 + $0x4a8] sm:$0xff] %v778_v0 }
  0x4d   :  { %661 = vst [vmem:[%s1797_s1 + $0x4b0] sm:$0xff] %v778_v0  ;;  %662 = vst [vmem:[%s1797_s1 + $0x4b8] sm:$0xff] %v778_v0 }
  0x4e   :  { %663 = vst [vmem:[%s1797_s1 + $0x4c0] sm:$0xff] %v778_v0  ;;  %664 = vst [vmem:[%s1797_s1 + $0x4c8] sm:$0xff] %v778_v0 }
  0x4f   :  { %665 = vst [vmem:[%s1797_s1 + $0x4d0] sm:$0xff] %v778_v0  ;;  %666 = vst [vmem:[%s1797_s1 + $0x4d8] sm:$0xff] %v778_v0 }
  0x50   :  { %667 = vst [vmem:[%s1797_s1 + $0x4e0] sm:$0xff] %v778_v0  ;;  %668 = vst [vmem:[%s1797_s1 + $0x4e8] sm:$0xff] %v778_v0 }
  0x51   :  { %669 = vst [vmem:[%s1797_s1 + $0x4f0] sm:$0xff] %v778_v0  ;;  %670 = vst [vmem:[%s1797_s1 + $0x4f8] sm:$0xff] %v778_v0 }
  0x52   :  { %671 = vst [vmem:[%s1797_s1 + $0x500] sm:$0xff] %v778_v0  ;;  %672 = vst [vmem:[%s1797_s1 + $0x508] sm:$0xff] %v778_v0 }
  0x53   :  { %673 = vst [vmem:[%s1797_s1 + $0x510] sm:$0xff] %v778_v0  ;;  %674 = vst [vmem:[%s1797_s1 + $0x518] sm:$0xff] %v778_v0 }
  0x54   :  { %675 = vst [vmem:[%s1797_s1 + $0x520] sm:$0xff] %v778_v0  ;;  %676 = vst [vmem:[%s1797_s1 + $0x528] sm:$0xff] %v778_v0 }
  0x55   :  { %677 = vst [vmem:[%s1797_s1 + $0x530] sm:$0xff] %v778_v0  ;;  %678 = vst [vmem:[%s1797_s1 + $0x538] sm:$0xff] %v778_v0 }
  0x56   :  { %679 = vst [vmem:[%s1797_s1 + $0x540] sm:$0xff] %v778_v0  ;;  %680 = vst [vmem:[%s1797_s1 + $0x548] sm:$0xff] %v778_v0 }
  0x57   :  { %681 = vst [vmem:[%s1797_s1 + $0x550] sm:$0xff] %v778_v0  ;;  %682 = vst [vmem:[%s1797_s1 + $0x558] sm:$0xff] %v778_v0 }
  0x58   :  { %683 = vst [vmem:[%s1797_s1 + $0x560] sm:$0xff] %v778_v0  ;;  %684 = vst [vmem:[%s1797_s1 + $0x568] sm:$0xff] %v778_v0 }
  0x59   :  { %685 = vst [vmem:[%s1797_s1 + $0x570] sm:$0xff] %v778_v0  ;;  %686 = vst [vmem:[%s1797_s1 + $0x578] sm:$0xff] %v778_v0 }
  0x5a   :  { %687 = vst [vmem:[%s1797_s1 + $0x580] sm:$0xff] %v778_v0  ;;  %688 = vst [vmem:[%s1797_s1 + $0x588] sm:$0xff] %v778_v0 }
  0x5b   :  { %689 = vst [vmem:[%s1797_s1 + $0x590] sm:$0xff] %v778_v0  ;;  %690 = vst [vmem:[%s1797_s1 + $0x598] sm:$0xff] %v778_v0 }
  0x5c   :  { %691 = vst [vmem:[%s1797_s1 + $0x5a0] sm:$0xff] %v778_v0  ;;  %692 = vst [vmem:[%s1797_s1 + $0x5a8] sm:$0xff] %v778_v0 }
  0x5d   :  { %693 = vst [vmem:[%s1797_s1 + $0x5b0] sm:$0xff] %v778_v0  ;;  %694 = vst [vmem:[%s1797_s1 + $0x5b8] sm:$0xff] %v778_v0 }
  0x5e   :  { %695 = vst [vmem:[%s1797_s1 + $0x5c0] sm:$0xff] %v778_v0  ;;  %696 = vst [vmem:[%s1797_s1 + $0x5c8] sm:$0xff] %v778_v0 }
  0x5f   :  { %697 = vst [vmem:[%s1797_s1 + $0x5d0] sm:$0xff] %v778_v0  ;;  %698 = vst [vmem:[%s1797_s1 + $0x5d8] sm:$0xff] %v778_v0 }
  0x60   :  { %699 = vst [vmem:[%s1797_s1 + $0x5e0] sm:$0xff] %v778_v0  ;;  %700 = vst [vmem:[%s1797_s1 + $0x5e8] sm:$0xff] %v778_v0 }
  0x61   :  { %701 = vst [vmem:[%s1797_s1 + $0x5f0] sm:$0xff] %v778_v0  ;;  %702 = vst [vmem:[%s1797_s1 + $0x5f8] sm:$0xff] %v778_v0 }
  0x62   :  { %703 = vst [vmem:[%s1797_s1 + $0x600] sm:$0xff] %v778_v0  ;;  %704 = vst [vmem:[%s1797_s1 + $0x608] sm:$0xff] %v778_v0 }
  0x63   :  { %705 = vst [vmem:[%s1797_s1 + $0x610] sm:$0xff] %v778_v0  ;;  %706 = vst [vmem:[%s1797_s1 + $0x618] sm:$0xff] %v778_v0 }
  0x64   :  { %707 = vst [vmem:[%s1797_s1 + $0x620] sm:$0xff] %v778_v0  ;;  %708 = vst [vmem:[%s1797_s1 + $0x628] sm:$0xff] %v778_v0 }
  0x65   :  { %709 = vst [vmem:[%s1797_s1 + $0x630] sm:$0xff] %v778_v0  ;;  %710 = vst [vmem:[%s1797_s1 + $0x638] sm:$0xff] %v778_v0 }
  0x66   :  { %711 = vst [vmem:[%s1797_s1 + $0x640] sm:$0xff] %v778_v0  ;;  %712 = vst [vmem:[%s1797_s1 + $0x648] sm:$0xff] %v778_v0 }
  0x67   :  { %713 = vst [vmem:[%s1797_s1 + $0x650] sm:$0xff] %v778_v0  ;;  %714 = vst [vmem:[%s1797_s1 + $0x658] sm:$0xff] %v778_v0 }
  0x68   :  { %715 = vst [vmem:[%s1797_s1 + $0x660] sm:$0xff] %v778_v0  ;;  %716 = vst [vmem:[%s1797_s1 + $0x668] sm:$0xff] %v778_v0 }
  0x69   :  { %717 = vst [vmem:[%s1797_s1 + $0x670] sm:$0xff] %v778_v0  ;;  %718 = vst [vmem:[%s1797_s1 + $0x678] sm:$0xff] %v778_v0 }
  0x6a   :  { %719 = vst [vmem:[%s1797_s1 + $0x680] sm:$0xff] %v778_v0  ;;  %720 = vst [vmem:[%s1797_s1 + $0x688] sm:$0xff] %v778_v0 }
  0x6b   :  { %721 = vst [vmem:[%s1797_s1 + $0x690] sm:$0xff] %v778_v0  ;;  %722 = vst [vmem:[%s1797_s1 + $0x698] sm:$0xff] %v778_v0 }
  0x6c   :  { %723 = vst [vmem:[%s1797_s1 + $0x6a0] sm:$0xff] %v778_v0  ;;  %724 = vst [vmem:[%s1797_s1 + $0x6a8] sm:$0xff] %v778_v0 }
  0x6d   :  { %725 = vst [vmem:[%s1797_s1 + $0x6b0] sm:$0xff] %v778_v0  ;;  %726 = vst [vmem:[%s1797_s1 + $0x6b8] sm:$0xff] %v778_v0 }
  0x6e   :  { %727 = vst [vmem:[%s1797_s1 + $0x6c0] sm:$0xff] %v778_v0  ;;  %728 = vst [vmem:[%s1797_s1 + $0x6c8] sm:$0xff] %v778_v0 }
  0x6f   :  { %729 = vst [vmem:[%s1797_s1 + $0x6d0] sm:$0xff] %v778_v0  ;;  %730 = vst [vmem:[%s1797_s1 + $0x6d8] sm:$0xff] %v778_v0 }
  0x70   :  { %731 = vst [vmem:[%s1797_s1 + $0x6e0] sm:$0xff] %v778_v0  ;;  %732 = vst [vmem:[%s1797_s1 + $0x6e8] sm:$0xff] %v778_v0 }
  0x71   :  { %733 = vst [vmem:[%s1797_s1 + $0x6f0] sm:$0xff] %v778_v0  ;;  %734 = vst [vmem:[%s1797_s1 + $0x6f8] sm:$0xff] %v778_v0 }
  0x72   :  { %735 = vst [vmem:[%s1797_s1 + $0x700] sm:$0xff] %v778_v0  ;;  %736 = vst [vmem:[%s1797_s1 + $0x708] sm:$0xff] %v778_v0 }
  0x73   :  { %737 = vst [vmem:[%s1797_s1 + $0x710] sm:$0xff] %v778_v0  ;;  %738 = vst [vmem:[%s1797_s1 + $0x718] sm:$0xff] %v778_v0 }
  0x74   :  { %739 = vst [vmem:[%s1797_s1 + $0x720] sm:$0xff] %v778_v0  ;;  %740 = vst [vmem:[%s1797_s1 + $0x728] sm:$0xff] %v778_v0 }
  0x75   :  { %741 = vst [vmem:[%s1797_s1 + $0x730] sm:$0xff] %v778_v0  ;;  %742 = vst [vmem:[%s1797_s1 + $0x738] sm:$0xff] %v778_v0 }
  0x76   :  { %743 = vst [vmem:[%s1797_s1 + $0x740] sm:$0xff] %v778_v0  ;;  %744 = vst [vmem:[%s1797_s1 + $0x748] sm:$0xff] %v778_v0 }
  0x77   :  { %745 = vst [vmem:[%s1797_s1 + $0x750] sm:$0xff] %v778_v0  ;;  %746 = vst [vmem:[%s1797_s1 + $0x758] sm:$0xff] %v778_v0 }
  0x78   :  { %747 = vst [vmem:[%s1797_s1 + $0x760] sm:$0xff] %v778_v0  ;;  %748 = vst [vmem:[%s1797_s1 + $0x768] sm:$0xff] %v778_v0 }
  0x79   :  { %749 = vst [vmem:[%s1797_s1 + $0x770] sm:$0xff] %v778_v0  ;;  %750 = vst [vmem:[%s1797_s1 + $0x778] sm:$0xff] %v778_v0 }
  0x7a   :  { %751 = vst [vmem:[%s1797_s1 + $0x780] sm:$0xff] %v778_v0  ;;  %752 = vst [vmem:[%s1797_s1 + $0x788] sm:$0xff] %v778_v0 }
  0x7b   :  { %753 = vst [vmem:[%s1797_s1 + $0x790] sm:$0xff] %v778_v0  ;;  %754 = vst [vmem:[%s1797_s1 + $0x798] sm:$0xff] %v778_v0 }
  0x7c   :  { %755 = vst [vmem:[%s1797_s1 + $0x7a0] sm:$0xff] %v778_v0  ;;  %756 = vst [vmem:[%s1797_s1 + $0x7a8] sm:$0xff] %v778_v0 }
  0x7d   :  { %757 = vst [vmem:[%s1797_s1 + $0x7b0] sm:$0xff] %v778_v0  ;;  %758 = vst [vmem:[%s1797_s1 + $0x7b8] sm:$0xff] %v778_v0 }
  0x7e   :  { %759 = vst [vmem:[%s1797_s1 + $0x7c0] sm:$0xff] %v778_v0  ;;  %760 = vst [vmem:[%s1797_s1 + $0x7c8] sm:$0xff] %v778_v0 }
  0x7f   :  { %761 = vst [vmem:[%s1797_s1 + $0x7d0] sm:$0xff] %v778_v0  ;;  %762 = vst [vmem:[%s1797_s1 + $0x7d8] sm:$0xff] %v778_v0 }
  0x80   :  { %763 = vst [vmem:[%s1797_s1 + $0x7e0] sm:$0xff] %v778_v0  ;;  %764 = vst [vmem:[%s1797_s1 + $0x7e8] sm:$0xff] %v778_v0 }

// kernel: tile.7
= control target key start
LH: loop header
LB: loop body
LE: loop exit
PB: predicated region body
PF: predicated region fallthrough
CT: control target
= control target key end

     0   :  { %vm5_vm0 = vcmask 1041409   ;;  %vm9_vm1 = vcmask 1042434   ;;  %vm13_vm2 = vcmask 1043459   ;;  %vm17_vm3 = vcmask 1044484   ;;  %s11135_s27 = smov 124   ;;  %s11136_s12 = smov 120   ;;  %s20803_s0 = inlined_call_operand.vmem [shape: f32[2032,4], index: 0, kind: input, shape index: {}]   ;;  %s20804_s1 = inlined_call_operand.vmem [shape: f32[8128], index: 1, kind: output, shape index: {}]  }
   0x1   :  { %vm21_vm4 = vcmask 1045509   ;;  %vm25_vm5 = vcmask 1046534   ;;  %vm29_vm6 = vcmask 1047559   ;;  %v8936_v0 = vld [vmem:[%s20803_s0 + $0x11f] sm:$0x1]   ;;  %s11137_s25 = smov 116  }
   0x2   :  { %v8937_v1 = vld [vmem:[%s20803_s0 + $0x13e] sm:$0x2]   ;;  %s11138_s8 = smov 112   ;;  %s11139_s22 = smov 108   ;;  %vm31_vm7 = vcmask 31744   ;;  %vm296_vm8 = vcmask 1048544  }
   0x3   :  { %v8938_v2 = vld [vmem:[%s20803_s0 + $0x15d] sm:$0x4]   ;;  %v338_v4 = vsel %vm5_vm0, %v8937_v1, %v8936_v0  ;;  %s11140_s5 = smov 104   ;;  %s11141_s19 = smov 100   ;;  %vm571_vm9 = vcmask 1015744   ;;  %vm846_vm10 = vcmask 982944  }
   0x4   :  { %v8939_v3 = vld [vmem:[%s20803_s0 + $0x17c] sm:$0x8]   ;;  %v342_v8 = vsel %vm9_vm1, %v8938_v2, %v338_v4  ;;  %s11142_s7 = smov 96   ;;  %s11144_s28 = smov 88   ;;  %vm1121_vm11 = vcmask 950144   ;;  %vm1396_vm12 = vcmask 917344  }
   0x5   :  { %v8940_v5 = vld [vmem:[%s20803_s0 + $0x19b] sm:$0x10]   ;;  %v346_v12 = vsel %vm13_vm2, %v8939_v3, %v342_v8  ;;  %s11145_s24 = smov 84   ;;  %vm1671_vm13 = vcmask 884544   ;;  %s11147_s2 = smov 76   ;;  %vm1946_vm14 = vcmask 851744  }
   0x6   :  { %v8941_v6 = vld [vmem:[%s20803_s0 + $0x1ba] sm:$0x20]   ;;  %v350_v17 = vsel %vm17_vm3, %v8940_v5, %v346_v12  ;;  %s11148_s29 = smov 72   ;;  %vm2221_vm15 = vcmask 818944   ;;  %s11151_s3 = smov 60  }
   0x7   :  { %v8942_v7 = vld [vmem:[%s20803_s0 + $0x1d9] sm:$0x40]   ;;  %v354_v22 = vsel %vm21_vm4, %v8941_v6, %v350_v17  ;;  %s11152_s9 = smov 56   ;;  %s11154_s13 = smov 48  }
   0x8   :  { %v8943_v9 = vld [vmem:[%s20803_s0 + $0x1f8] sm:$0x80]   ;;  %v358_v27 = vsel %vm25_vm5, %v8942_v7, %v354_v22  ;;  %s11155_s17 = smov 44   ;;  %s11157_s21 = smov 36  }
   0x9   :  { %v8919_v10 = vld [vmem:[%s20803_s0 + $0x1f] sm:$0x1]   ;;  %v362_v33 = vsel %vm29_vm6, %v8943_v9, %v358_v27  ;;  %s11160_s30 = smov 24   ;;  %s11164_s15 = smov 8  }
   0xa   :  { %v8920_v11 = vld [vmem:[%s20803_s0 + $0x3e] sm:$0x2]   ;;  %363 = vrot.lane.b32.xlu1 %v362_v33, %s11135_s27 }
   0xb   :  { %v269_v13 = vsel %vm5_vm0, %v8920_v11, %v8919_v10  ;;  %v8921_v14 = vld [vmem:[%s20803_s0 + $0x5d] sm:$0x4]  }
   0xc   :  { %v8922_v15 = vld [vmem:[%s20803_s0 + $0x7c] sm:$0x8]   ;;  %v273_v18 = vsel %vm9_vm1, %v8921_v14, %v269_v13 }
   0xd   :  { %v8923_v16 = vld [vmem:[%s20803_s0 + $0x9b] sm:$0x10]   ;;  %v277_v23 = vsel %vm13_vm2, %v8922_v15, %v273_v18 }
   0xe   :  { %v8924_v19 = vld [vmem:[%s20803_s0 + $0xba] sm:$0x20]   ;;  %v281_v28 = vsel %vm17_vm3, %v8923_v16, %v277_v23 }
   0xf   :  { %v8925_v20 = vld [vmem:[%s20803_s0 + $0xd9] sm:$0x40]   ;;  %v285_v34 = vsel %vm21_vm4, %v8924_v19, %v281_v28 }
  0x10   :  { %v8926_v21 = vld [vmem:[%s20803_s0 + $0xf8] sm:$0x80]   ;;  %v289_v39 = vsel %vm25_vm5, %v8925_v20, %v285_v34 }
  0x11   :  { %v8945_v24 = vld [vmem:[%s20803_s0 + $0x51f] sm:$0x1]   ;;  %v293_v44 = vsel %vm29_vm6, %v8926_v21, %v289_v39 }
  0x12   :  { %v8946_v25 = vld [vmem:[%s20803_s0 + $0x53e] sm:$0x2]   ;;  %294 = vrot.lane.b32.xlu0 %v293_v44, %s11135_s27 }
  0x13   :  { %v8947_v26 = vld [vmem:[%s20803_s0 + $0x55d] sm:$0x4]   ;;  %v373_v29 = vsel %vm5_vm0, %v8946_v25, %v8945_v24 }
  0x14   :  { %v8948_v30 = vld [vmem:[%s20803_s0 + $0x57c] sm:$0x8]   ;;  %v377_v35 = vsel %vm9_vm1, %v8947_v26, %v373_v29 }
  0x15   :  { %v8949_v31 = vld [vmem:[%s20803_s0 + $0x59b] sm:$0x10]   ;;  %v381_v40 = vsel %vm13_vm2, %v8948_v30, %v377_v35 }
  0x16   :  { %v8950_v32 = vld [vmem:[%s20803_s0 + $0x5ba] sm:$0x20]   ;;  %v385_v45 = vsel %vm17_vm3, %v8949_v31, %v381_v40 }
  0x17   :  { %v8951_v36 = vld [vmem:[%s20803_s0 + $0x5d9] sm:$0x40]   ;;  %v389_v50 = vsel %vm21_vm4, %v8950_v32, %v385_v45 }
  0x18   :  { %v8952_v37 = vld [vmem:[%s20803_s0 + $0x5f8] sm:$0x80]   ;;  %v393_v55 = vsel %vm25_vm5, %v8951_v36, %v389_v50  ;;  %v8998_v50 = vld [vmem:[%s20803_s0 + $0x43d] sm:$0x2]  }
  0x19   :  { %v8927_v38 = vld [vmem:[%s20803_s0 + $0x41f] sm:$0x1]   ;;  %v397_v61 = vsel %vm29_vm6, %v8952_v37, %v393_v55 }
  0x1a   :  { %v8928_v41 = vld [vmem:[%s20803_s0 + $0x43e] sm:$0x2]   ;;  %398 = vrot.lane.b32.xlu1 %v397_v61, %s11135_s27  ;;  %v9004_v61 = vld [vmem:[%s20803_s0 + $0x4f7] sm:$0x80]  }
  0x1b   :  { %v8929_v42 = vld [vmem:[%s20803_s0 + $0x45d] sm:$0x4]   ;;  %v303_v46 = vsel %vm5_vm0, %v8928_v41, %v8927_v38 }
  0x1c   :  { %v8930_v43 = vld [vmem:[%s20803_s0 + $0x47c] sm:$0x8]   ;;  %v307_v51 = vsel %vm9_vm1, %v8929_v42, %v303_v46 }
  0x1d   :  { %v8931_v47 = vld [vmem:[%s20803_s0 + $0x49b] sm:$0x10]   ;;  %v311_v56 = vsel %vm13_vm2, %v8930_v43, %v307_v51  ;;  %v8999_v51 = vld [vmem:[%s20803_s0 + $0x45c] sm:$0x4]  }
  0x1e   :  { %v8932_v48 = vld [vmem:[%s20803_s0 + $0x4ba] sm:$0x20]   ;;  %v315_v62 = vsel %vm17_vm3, %v8931_v47, %v311_v56  ;;  %v8997_v47 = vld [vmem:[%s20803_s0 + $0x41e] sm:$0x1]  }
  0x1f   :  { %v8933_v49 = vld [vmem:[%s20803_s0 + $0x4d9] sm:$0x40]   ;;  %v319_v3 = vsel %vm21_vm4, %v8932_v48, %v315_v62  ;;  %v578_v55 = vsel %vm5_vm0, %v8998_v50, %v8997_v47  ;;  %v9001_v56 = vld [vmem:[%s20803_s0 + $0x49a] sm:$0x10]  }
  0x20   :  { %v8934_v52 = vld [vmem:[%s20803_s0 + $0x4f8] sm:$0x80]   ;;  %v323_v8 = vsel %vm25_vm5, %v8933_v49, %v319_v3  ;;  %v8989_v62 = vld [vmem:[%s20803_s0 + $0x1e] sm:$0x1]  }
  0x21   :  { %v8963_v53 = vld [vmem:[%s20803_s0 + $0x61f] sm:$0x1]   ;;  %v327_v14 = vsel %vm29_vm6, %v8934_v52, %v323_v8  ;;  %v9000_v52 = vld [vmem:[%s20803_s0 + $0x47b] sm:$0x8]  }
  0x22   :  { %v8964_v54 = vld [vmem:[%s20803_s0 + $0x63e] sm:$0x2]   ;;  %328 = vrot.lane.b32.xlu0 %v327_v14, %s11135_s27  ;;  %v8991_v3 = vld [vmem:[%s20803_s0 + $0x5c] sm:$0x4]  }
  0x23   :  { %v443_v57 = vsel %vm5_vm0, %v8964_v54, %v8963_v53  ;;  %v8965_v58 = vld [vmem:[%s20803_s0 + $0x65d] sm:$0x4]   ;;  %v9015_v14 = vld [vmem:[%s20803_s0 + $0x51e] sm:$0x1]  }
  0x24   :  { %v8966_v59 = vld [vmem:[%s20803_s0 + $0x67c] sm:$0x8]   ;;  %v447_v63 = vsel %vm9_vm1, %v8965_v58, %v443_v57  ;;  %v9002_v57 = vld [vmem:[%s20803_s0 + $0x4b9] sm:$0x20]  }
  0x25   :  { %v8967_v60 = vld [vmem:[%s20803_s0 + $0x69b] sm:$0x10]   ;;  %v451_v4 = vsel %vm13_vm2, %v8966_v59, %v447_v63  ;;  %v9003_v58 = vld [vmem:[%s20803_s0 + $0x4d8] sm:$0x40]  }
  0x26   :  { %v8968_v0 = vld [vmem:[%s20803_s0 + $0x6ba] sm:$0x20]   ;;  %v455_v9 = vsel %vm17_vm3, %v8967_v60, %v451_v4  ;;  %v582_v60 = vsel %vm9_vm1, %v8999_v51, %v578_v55  ;;  %v8990_v63 = vld [vmem:[%s20803_s0 + $0x3d] sm:$0x2]  }
  0x27   :  { %v8969_v1 = vld [vmem:[%s20803_s0 + $0x6d9] sm:$0x40]   ;;  %v459_v15 = vsel %vm21_vm4, %v8968_v0, %v455_v9  ;;  %v8992_v4 = vld [vmem:[%s20803_s0 + $0x7b] sm:$0x8]  }
  0x28   :  { %v8970_v2 = vld [vmem:[%s20803_s0 + $0x6f8] sm:$0x80]   ;;  %v463_v20 = vsel %vm25_vm5, %v8969_v1, %v459_v15  ;;  %v586_v1 = vsel %vm13_vm2, %v9000_v52, %v582_v60  ;;  %v8994_v9 = vld [vmem:[%s20803_s0 + $0xb9] sm:$0x20]  }
  0x29   :  { %v8954_v5 = vld [vmem:[%s20803_s0 + $0x21f] sm:$0x1]   ;;  %v467_v25 = vsel %vm29_vm6, %v8970_v2, %v463_v20  ;;  %v544_v2 = vsel %vm5_vm0, %v8990_v63, %v8989_v62  ;;  %v9016_v15 = vld [vmem:[%s20803_s0 + $0x53d] sm:$0x2]  }
  0x2a   :  { %v8955_v6 = vld [vmem:[%s20803_s0 + $0x23e] sm:$0x2]   ;;  %468 = vrot.lane.b32.xlu1 %v467_v25, %s11135_s27  ;;  %v548_v8 = vsel %vm9_vm1, %v8991_v3, %v544_v2  ;;  %v9018_v20 = vld [vmem:[%s20803_s0 + $0x57b] sm:$0x8]  }
  0x2b   :  { %v8956_v7 = vld [vmem:[%s20803_s0 + $0x25d] sm:$0x4]   ;;  %v408_v10 = vsel %vm5_vm0, %v8955_v6, %v8954_v5  ;;  %v8993_v5 = vld [vmem:[%s20803_s0 + $0x9a] sm:$0x10]  }
  0x2c   :  { %v8957_v11 = vld [vmem:[%s20803_s0 + $0x27c] sm:$0x8]   ;;  %v412_v16 = vsel %vm9_vm1, %v8956_v7, %v408_v10  ;;  %v590_v7 = vsel %vm17_vm3, %v9001_v56, %v586_v1  ;;  %v8995_v10 = vld [vmem:[%s20803_s0 + $0xd8] sm:$0x40]  }
  0x2d   :  { %v8958_v12 = vld [vmem:[%s20803_s0 + $0x29b] sm:$0x10]   ;;  %v416_v21 = vsel %vm13_vm2, %v8957_v11, %v412_v16  ;;  %v8996_v11 = vld [vmem:[%s20803_s0 + $0xf7] sm:$0x80]  }
  0x2e   :  { %v8959_v13 = vld [vmem:[%s20803_s0 + $0x2ba] sm:$0x20]   ;;  %v420_v26 = vsel %vm17_vm3, %v8958_v12, %v416_v21  ;;  %v594_v12 = vsel %vm21_vm4, %v9002_v57, %v590_v7  ;;  %v9017_v16 = vld [vmem:[%s20803_s0 + $0x55c] sm:$0x4]  }
  0x2f   :  { %v8960_v17 = vld [vmem:[%s20803_s0 + $0x2d9] sm:$0x40]   ;;  %v424_v31 = vsel %vm21_vm4, %v8959_v13, %v420_v26  ;;  %v552_v13 = vsel %vm13_vm2, %v8992_v4, %v548_v8  ;;  %v9019_v21 = vld [vmem:[%s20803_s0 + $0x59a] sm:$0x10]  }
  0x30   :  { %v8961_v18 = vld [vmem:[%s20803_s0 + $0x2f8] sm:$0x80]   ;;  %v428_v36 = vsel %vm25_vm5, %v8960_v17, %v424_v31  ;;  %v598_v17 = vsel %vm25_vm5, %v9003_v58, %v594_v12  ;;  %v9021_v26 = vld [vmem:[%s20803_s0 + $0x5d8] sm:$0x40]  }
  0x31   :  { %v8981_v19 = vld [vmem:[%s20803_s0 + $0x71f] sm:$0x1]   ;;  %v432_v42 = vsel %vm29_vm6, %v8961_v18, %v428_v36  ;;  %v556_v18 = vsel %vm17_vm3, %v8993_v5, %v552_v13  ;;  %v9007_v31 = vld [vmem:[%s20803_s0 + $0x13d] sm:$0x2]  }
  0x32   :  { %v8982_v22 = vld [vmem:[%s20803_s0 + $0x73e] sm:$0x2]   ;;  %433 = vrot.lane.b32.xlu0 %v432_v42, %s11135_s27  ;;  %v9013_v42 = vld [vmem:[%s20803_s0 + $0x1f7] sm:$0x80]  }
  0x33   :  { %v8983_v23 = vld [vmem:[%s20803_s0 + $0x75d] sm:$0x4]   ;;  %v513_v27 = vsel %vm5_vm0, %v8982_v22, %v8981_v19  ;;  %v648_v19 = vsel %vm5_vm0, %v9016_v15, %v9015_v14  ;;  %v9020_v22 = vld [vmem:[%s20803_s0 + $0x5b9] sm:$0x20]  }
  0x34   :  { %v8984_v24 = vld [vmem:[%s20803_s0 + $0x77c] sm:$0x8]   ;;  %v517_v32 = vsel %vm9_vm1, %v8983_v23, %v513_v27  ;;  %v602_v23 = vsel %vm29_vm6, %v9004_v61, %v598_v17  ;;  %v652_v25 = vsel %vm9_vm1, %v9017_v16, %v648_v19  ;;  %v9022_v27 = vld [vmem:[%s20803_s0 + $0x5f7] sm:$0x80]  }
  0x35   :  { %v8985_v28 = vld [vmem:[%s20803_s0 + $0x79b] sm:$0x10]   ;;  %v521_v37 = vsel %vm13_vm2, %v8984_v24, %v517_v32  ;;  %v560_v24 = vsel %vm21_vm4, %v8994_v9, %v556_v18  ;;  %v9008_v32 = vld [vmem:[%s20803_s0 + $0x15c] sm:$0x4]  }
  0x36   :  { %v8986_v29 = vld [vmem:[%s20803_s0 + $0x7ba] sm:$0x20]   ;;  %v525_v43 = vsel %vm17_vm3, %v8985_v28, %v521_v37  ;;  %v9006_v28 = vld [vmem:[%s20803_s0 + $0x11e] sm:$0x1]  }
  0x37   :  { %v8987_v30 = vld [vmem:[%s20803_s0 + $0x7d9] sm:$0x40]   ;;  %v529_v48 = vsel %vm21_vm4, %v8986_v29, %v525_v43  ;;  %v564_v29 = vsel %vm25_vm5, %v8995_v10, %v560_v24  ;;  %v613_v36 = vsel %vm5_vm0, %v9007_v31, %v9006_v28  ;;  %v9010_v37 = vld [vmem:[%s20803_s0 + $0x19a] sm:$0x10]  }
  0x38   :  { %v8972_v33 = vld [vmem:[%s20803_s0 + $0x31f] sm:$0x1]   ;;  %v533_v53 = vsel %vm25_vm5, %v8987_v30, %v529_v48  ;;  %v656_v30 = vsel %vm13_vm2, %v9018_v20, %v652_v25  ;;  %v9033_v43 = vld [vmem:[%s20803_s0 + $0x61e] sm:$0x1]  }
  0x39   :  { %v8973_v34 = vld [vmem:[%s20803_s0 + $0x33e] sm:$0x2]   ;;  %534 = vrot.lane.b32.xlu1 %v533_v53, %s11135_s27  ;;  %v9035_v48 = vld [vmem:[%s20803_s0 + $0x65c] sm:$0x4]  }
  0x3a   :  { %v8974_v35 = vld [vmem:[%s20803_s0 + $0x35d] sm:$0x4]   ;;  %v478_v38 = vsel %vm5_vm0, %v8973_v34, %v8972_v33  ;;  %v9009_v33 = vld [vmem:[%s20803_s0 + $0x17b] sm:$0x8]   ;;  %v568_v34 = vsel %vm29_vm6, %v8996_v11, %v564_v29 }
  0x3b   :  { %v8975_v39 = vld [vmem:[%s20803_s0 + $0x37c] sm:$0x8]   ;;  %v482_v44 = vsel %vm9_vm1, %v8974_v35, %v478_v38  ;;  %v660_v35 = vsel %vm17_vm3, %v9019_v21, %v656_v30  ;;  %v9011_v38 = vld [vmem:[%s20803_s0 + $0x1b9] sm:$0x20]  }
  0x3c   :  { %v8976_v40 = vld [vmem:[%s20803_s0 + $0x39b] sm:$0x10]   ;;  %v486_v49 = vsel %vm13_vm2, %v8975_v39, %v482_v44  ;;  %v9012_v39 = vld [vmem:[%s20803_s0 + $0x1d8] sm:$0x40]  }
  0x3d   :  { %v8977_v41 = vld [vmem:[%s20803_s0 + $0x3ba] sm:$0x20]   ;;  %v490_v54 = vsel %vm17_vm3, %v8976_v40, %v486_v49  ;;  %603 = vrot.lane.b32.xlu1 %v602_v23, %s11136_s12  ;;  %v664_v40 = vsel %vm21_vm4, %v9020_v22, %v660_v35  ;;  %v9034_v44 = vld [vmem:[%s20803_s0 + $0x63d] sm:$0x2]  }
  0x3e   :  { %v8978_v45 = vld [vmem:[%s20803_s0 + $0x3d9] sm:$0x40]   ;;  %v494_v59 = vsel %vm21_vm4, %v8977_v41, %v490_v54  ;;  %v617_v41 = vsel %vm9_vm1, %v9008_v32, %v613_v36  ;;  %v718_v47 = vsel %vm5_vm0, %v9034_v44, %v9033_v43  ;;  %v9036_v49 = vld [vmem:[%s20803_s0 + $0x67b] sm:$0x8]  }
  0x3f   :  { %v8979_v46 = vld [vmem:[%s20803_s0 + $0x3f8] sm:$0x80]   ;;  %v498_v0 = vsel %vm25_vm5, %v8978_v45, %v494_v59  ;;  %v668_v45 = vsel %vm25_vm5, %v9021_v26, %v664_v40  ;;  %v9037_v50 = vld [vmem:[%s20803_s0 + $0x69a] sm:$0x10]   ;;  %v722_v53 = vsel %vm9_vm1, %v9035_v48, %v718_v47  ;;  %v9068_v40 = vld [vmem:[%s20803_s0 + $0x43c] sm:$0x2]  }
  0x40   :  { %v502_v6 = vsel %vm29_vm6, %v8979_v46, %v498_v0  ;;  %v621_v46 = vsel %vm13_vm2, %v9009_v33, %v617_v41  ;;  %v672_v51 = vsel %vm29_vm6, %v9022_v27, %v668_v45  ;;  %v9038_v54 = vld [vmem:[%s20803_s0 + $0x6b9] sm:$0x20]   ;;  %v726_v58 = vsel %vm13_vm2, %v9036_v49, %v722_v53  ;;  %v9069_v41 = vld [vmem:[%s20803_s0 + $0x45b] sm:$0x4]  }
  0x41   :  { %503 = vrot.lane.b32.xlu0 %v502_v6, %s11135_s27  ;;  %v625_v52 = vsel %vm17_vm3, %v9010_v37, %v621_v46  ;;  %v9039_v55 = vld [vmem:[%s20803_s0 + $0x6d8] sm:$0x40]   ;;  %673 = vrot.lane.b32.xlu1 %v672_v51, %s11136_s12  ;;  %v730_v63 = vsel %vm17_vm3, %v9037_v50, %v726_v58  ;;  %v9067_v37 = vld [vmem:[%s20803_s0 + $0x41d] sm:$0x1]  }
  0x42   :  { %v9040_v56 = vld [vmem:[%s20803_s0 + $0x6f7] sm:$0x80]   ;;  %v629_v57 = vsel %vm21_vm4, %v9011_v38, %v625_v52  ;;  %v734_v5 = vsel %vm21_vm4, %v9038_v54, %v730_v63  ;;  %v853_v45 = vsel %vm5_vm0, %v9068_v40, %v9067_v37  ;;  %v9071_v46 = vld [vmem:[%s20803_s0 + $0x499] sm:$0x10]  }
  0x43   :  { %v9024_v59 = vld [vmem:[%s20803_s0 + $0x21e] sm:$0x1]   ;;  %v633_v62 = vsel %vm25_vm5, %v9012_v39, %v629_v57  ;;  %v738_v10 = vsel %vm25_vm5, %v9039_v55, %v734_v5  ;;  %v9072_v47 = vld [vmem:[%s20803_s0 + $0x4b8] sm:$0x20]   ;;  %v857_v50 = vsel %vm9_vm1, %v9069_v41, %v853_v45 }
  0x44   :  { %v9025_v60 = vld [vmem:[%s20803_s0 + $0x23d] sm:$0x2]   ;;  %v637_v4 = vsel %vm29_vm6, %v9013_v42, %v633_v62  ;;  %v742_v15 = vsel %vm29_vm6, %v9040_v56, %v738_v10  ;;  %v9070_v42 = vld [vmem:[%s20803_s0 + $0x47a] sm:$0x8]  }
  0x45   :  { %569 = vrot.lane.b32.xlu0 %v568_v34, %s11136_s12  ;;  %v9026_v61 = vld [vmem:[%s20803_s0 + $0x25c] sm:$0x4]   ;;  %v683_v0 = vsel %vm5_vm0, %v9025_v60, %v9024_v59  ;;  %743 = vrot.lane.b32.xlu1 %v742_v15, %s11136_s12  ;;  %v9073_v48 = vld [vmem:[%s20803_s0 + $0x4d7] sm:$0x40]   ;;  %v861_v55 = vsel %vm13_vm2, %v9070_v42, %v857_v50 }
  0x46   :  { %v9027_v1 = vld [vmem:[%s20803_s0 + $0x27b] sm:$0x8]   ;;  %v687_v6 = vsel %vm9_vm1, %v9026_v61, %v683_v0  ;;  %v9074_v51 = vld [vmem:[%s20803_s0 + $0x4f6] sm:$0x80]   ;;  %v865_v61 = vsel %vm17_vm3, %v9071_v46, %v861_v55 }
  0x47   :  { %v9028_v2 = vld [vmem:[%s20803_s0 + $0x29a] sm:$0x10]   ;;  %v691_v11 = vsel %vm13_vm2, %v9027_v1, %v687_v6  ;;  %v9059_v52 = vld [vmem:[%s20803_s0 + $0x1d] sm:$0x1]  }
  0x48   :  { %v9029_v3 = vld [vmem:[%s20803_s0 + $0x2b9] sm:$0x20]   ;;  %v695_v16 = vsel %vm17_vm3, %v9028_v2, %v691_v11  ;;  %v9060_v53 = vld [vmem:[%s20803_s0 + $0x3c] sm:$0x2]   ;;  %v869_v2 = vsel %vm21_vm4, %v9072_v47, %v865_v61 }
  0x49   :  { %v9030_v7 = vld [vmem:[%s20803_s0 + $0x2d8] sm:$0x40]   ;;  %638 = vrot.lane.b32.xlu0 %v637_v4, %s11136_s12  ;;  %v699_v21 = vsel %vm21_vm4, %v9029_v3, %v695_v16  ;;  %v819_v56 = vsel %vm5_vm0, %v9060_v53, %v9059_v52  ;;  %v9061_v57 = vld [vmem:[%s20803_s0 + $0x5b] sm:$0x4]  }
  0x4a   :  { %v9031_v8 = vld [vmem:[%s20803_s0 + $0x2f7] sm:$0x80]   ;;  %v703_v26 = vsel %vm25_vm5, %v9030_v7, %v699_v21  ;;  %v9062_v58 = vld [vmem:[%s20803_s0 + $0x7a] sm:$0x8]   ;;  %v823_v62 = vsel %vm9_vm1, %v9061_v57, %v819_v56  ;;  %v873_v7 = vsel %vm25_vm5, %v9073_v48, %v869_v2 }
  0x4b   :  { %v9051_v9 = vld [vmem:[%s20803_s0 + $0x71e] sm:$0x1]   ;;  %v707_v32 = vsel %vm29_vm6, %v9031_v8, %v703_v26  ;;  %v9063_v59 = vld [vmem:[%s20803_s0 + $0x99] sm:$0x10]   ;;  %v827_v3 = vsel %vm13_vm2, %v9062_v58, %v823_v62 }
  0x4c   :  { %v9052_v12 = vld [vmem:[%s20803_s0 + $0x73d] sm:$0x2]   ;;  %v9064_v63 = vld [vmem:[%s20803_s0 + $0xb8] sm:$0x20]   ;;  %v831_v8 = vsel %vm17_vm3, %v9063_v59, %v827_v3 }
  0x4d   :  { %v9053_v13 = vld [vmem:[%s20803_s0 + $0x75c] sm:$0x4]   ;;  %v788_v17 = vsel %vm5_vm0, %v9052_v12, %v9051_v9  ;;  %708 = vrot.lane.b32.xlu0 %v707_v32, %s11136_s12  ;;  %v9065_v0 = vld [vmem:[%s20803_s0 + $0xd7] sm:$0x40]  }
  0x4e   :  { %v9054_v14 = vld [vmem:[%s20803_s0 + $0x77b] sm:$0x8]   ;;  %v792_v22 = vsel %vm9_vm1, %v9053_v13, %v788_v17  ;;  %v9066_v1 = vld [vmem:[%s20803_s0 + $0xf6] sm:$0x80]   ;;  %v877_v13 = vsel %vm29_vm6, %v9074_v51, %v873_v7 }
  0x4f   :  { %v9055_v18 = vld [vmem:[%s20803_s0 + $0x79a] sm:$0x10]   ;;  %v796_v27 = vsel %vm13_vm2, %v9054_v14, %v792_v22  ;;  %v9085_v4 = vld [vmem:[%s20803_s0 + $0x51d] sm:$0x1]   ;;  %v835_v14 = vsel %vm21_vm4, %v9064_v63, %v831_v8 }
  0x50   :  { %v9056_v19 = vld [vmem:[%s20803_s0 + $0x7b9] sm:$0x20]   ;;  %v800_v33 = vsel %vm17_vm3, %v9055_v18, %v796_v27  ;;  %v9086_v5 = vld [vmem:[%s20803_s0 + $0x53c] sm:$0x2]  }
  0x51   :  { %v9057_v20 = vld [vmem:[%s20803_s0 + $0x7d8] sm:$0x40]   ;;  %v804_v38 = vsel %vm21_vm4, %v9056_v19, %v800_v33  ;;  %v9087_v6 = vld [vmem:[%s20803_s0 + $0x55b] sm:$0x4]   ;;  %v923_v9 = vsel %vm5_vm0, %v9086_v5, %v9085_v4  ;;  %v839_v19 = vsel %vm25_vm5, %v9065_v0, %v835_v14 }
  0x52   :  { %v9042_v23 = vld [vmem:[%s20803_s0 + $0x31e] sm:$0x1]   ;;  %v808_v43 = vsel %vm25_vm5, %v9057_v20, %v804_v38  ;;  %v9088_v10 = vld [vmem:[%s20803_s0 + $0x57a] sm:$0x8]   ;;  %v927_v15 = vsel %vm9_vm1, %v9087_v6, %v923_v9 }
  0x53   :  { %v9043_v24 = vld [vmem:[%s20803_s0 + $0x33d] sm:$0x2]   ;;  %809 = vrot.lane.b32.xlu1 %v808_v43, %s11136_s12  ;;  %v9089_v11 = vld [vmem:[%s20803_s0 + $0x599] sm:$0x10]   ;;  %v931_v20 = vsel %vm13_vm2, %v9088_v10, %v927_v15 }
  0x54   :  { %v9044_v25 = vld [vmem:[%s20803_s0 + $0x35c] sm:$0x4]   ;;  %v753_v28 = vsel %vm5_vm0, %v9043_v24, %v9042_v23  ;;  %v9090_v12 = vld [vmem:[%s20803_s0 + $0x5b8] sm:$0x20]   ;;  %v843_v24 = vsel %vm29_vm6, %v9066_v1, %v839_v19 }
  0x55   :  { %v9045_v29 = vld [vmem:[%s20803_s0 + $0x37b] sm:$0x8]   ;;  %v757_v34 = vsel %vm9_vm1, %v9044_v25, %v753_v28  ;;  %v9091_v16 = vld [vmem:[%s20803_s0 + $0x5d7] sm:$0x40]   ;;  %v935_v25 = vsel %vm17_vm3, %v9089_v11, %v931_v20 }
  0x56   :  { %v9046_v30 = vld [vmem:[%s20803_s0 + $0x39a] sm:$0x10]   ;;  %v761_v39 = vsel %vm13_vm2, %v9045_v29, %v757_v34  ;;  %v9092_v17 = vld [vmem:[%s20803_s0 + $0x5f6] sm:$0x80]  }
  0x57   :  { %v9047_v31 = vld [vmem:[%s20803_s0 + $0x3b9] sm:$0x20]   ;;  %v765_v44 = vsel %vm17_vm3, %v9046_v30, %v761_v39  ;;  %v9076_v18 = vld [vmem:[%s20803_s0 + $0x11d] sm:$0x1]   ;;  %878 = vrot.lane.b32.xlu1 %v877_v13, %s11137_s25  ;;  %v939_v30 = vsel %vm21_vm4, %v9090_v12, %v935_v25 }
  0x58   :  { %v9048_v35 = vld [vmem:[%s20803_s0 + $0x3d8] sm:$0x40]   ;;  %v769_v49 = vsel %vm21_vm4, %v9047_v31, %v765_v44  ;;  %v9077_v21 = vld [vmem:[%s20803_s0 + $0x13c] sm:$0x2]  }
  0x59   :  { %v9049_v36 = vld [vmem:[%s20803_s0 + $0x3f7] sm:$0x80]   ;;  %v773_v54 = vsel %vm25_vm5, %v9048_v35, %v769_v49  ;;  %v9078_v22 = vld [vmem:[%s20803_s0 + $0x15b] sm:$0x4]   ;;  %v888_v26 = vsel %vm5_vm0, %v9077_v21, %v9076_v18  ;;  %v943_v35 = vsel %vm25_vm5, %v9091_v16, %v939_v30  ;;  %v9138_v30 = vld [vmem:[%s20803_s0 + $0x43b] sm:$0x2]  }
  0x5a   :  { %v777_v60 = vsel %vm29_vm6, %v9049_v36, %v773_v54  ;;  %v9079_v23 = vld [vmem:[%s20803_s0 + $0x17a] sm:$0x8]   ;;  %v892_v31 = vsel %vm9_vm1, %v9078_v22, %v888_v26  ;;  %v947_v41 = vsel %vm29_vm6, %v9092_v17, %v943_v35  ;;  %v9140_v35 = vld [vmem:[%s20803_s0 + $0x479] sm:$0x8]  }
  0x5b   :  { %778 = vrot.lane.b32.xlu0 %v777_v60, %s11136_s12  ;;  %v9080_v27 = vld [vmem:[%s20803_s0 + $0x199] sm:$0x10]   ;;  %v896_v36 = vsel %vm13_vm2, %v9079_v23, %v892_v31  ;;  %948 = vrot.lane.b32.xlu1 %v947_v41, %s11137_s25  ;;  %v9139_v31 = vld [vmem:[%s20803_s0 + $0x45a] sm:$0x4]   ;;  %s11153_s12 = smov 52  }
  0x5c   :  { %v9081_v28 = vld [vmem:[%s20803_s0 + $0x1b8] sm:$0x20]   ;;  %v900_v42 = vsel %vm17_vm3, %v9080_v27, %v896_v36  ;;  %v9141_v36 = vld [vmem:[%s20803_s0 + $0x498] sm:$0x10]  }
  0x5d   :  { %v9082_v29 = vld [vmem:[%s20803_s0 + $0x1d7] sm:$0x40]   ;;  %v904_v47 = vsel %vm21_vm4, %v9081_v28, %v900_v42  ;;  %v9144_v41 = vld [vmem:[%s20803_s0 + $0x4f5] sm:$0x80]  }
  0x5e   :  { %v9083_v32 = vld [vmem:[%s20803_s0 + $0x1f6] sm:$0x80]   ;;  %v908_v52 = vsel %vm25_vm5, %v9082_v29, %v904_v47  ;;  %v9137_v29 = vld [vmem:[%s20803_s0 + $0x41c] sm:$0x1]  }
  0x5f   :  { %844 = vrot.lane.b32.xlu0 %v843_v24, %s11137_s25  ;;  %v9103_v33 = vld [vmem:[%s20803_s0 + $0x61d] sm:$0x1]   ;;  %v912_v58 = vsel %vm29_vm6, %v9083_v32, %v908_v52  ;;  %v9129_v42 = vld [vmem:[%s20803_s0 + $0x1c] sm:$0x1]  }
  0x60   :  { %v9104_v34 = vld [vmem:[%s20803_s0 + $0x63c] sm:$0x2]   ;;  %v9132_v47 = vld [vmem:[%s20803_s0 + $0x79] sm:$0x8]  }
  0x61   :  { %v993_v37 = vsel %vm5_vm0, %v9104_v34, %v9103_v33  ;;  %v9105_v38 = vld [vmem:[%s20803_s0 + $0x65b] sm:$0x4]   ;;  %v1128_v34 = vsel %vm5_vm0, %v9138_v30, %v9137_v29  ;;  %v9134_v52 = vld [vmem:[%s20803_s0 + $0xb7] sm:$0x20]  }
  0x62   :  { %v9106_v39 = vld [vmem:[%s20803_s0 + $0x67a] sm:$0x8]   ;;  %v997_v43 = vsel %vm9_vm1, %v9105_v38, %v993_v37  ;;  %v9142_v37 = vld [vmem:[%s20803_s0 + $0x4b7] sm:$0x20]  }
  0x63   :  { %v9107_v40 = vld [vmem:[%s20803_s0 + $0x699] sm:$0x10]   ;;  %v1001_v48 = vsel %vm13_vm2, %v9106_v39, %v997_v43  ;;  %913 = vrot.lane.b32.xlu0 %v912_v58, %s11137_s25  ;;  %v1132_v39 = vsel %vm9_vm1, %v9139_v31, %v1128_v34  ;;  %v9156_v58 = vld [vmem:[%s20803_s0 + $0x53b] sm:$0x2]  }
  0x64   :  { %v9108_v44 = vld [vmem:[%s20803_s0 + $0x6b8] sm:$0x20]   ;;  %v1005_v53 = vsel %vm17_vm3, %v9107_v40, %v1001_v48  ;;  %v9143_v40 = vld [vmem:[%s20803_s0 + $0x4d6] sm:$0x40]  }
  0x65   :  { %v9109_v45 = vld [vmem:[%s20803_s0 + $0x6d7] sm:$0x40]   ;;  %v1009_v59 = vsel %vm21_vm4, %v9108_v44, %v1005_v53  ;;  %v1136_v44 = vsel %vm13_vm2, %v9140_v35, %v1132_v39  ;;  %v9135_v53 = vld [vmem:[%s20803_s0 + $0xd6] sm:$0x40]  }
  0x66   :  { %v9110_v46 = vld [vmem:[%s20803_s0 + $0x6f6] sm:$0x80]   ;;  %v1013_v0 = vsel %vm25_vm5, %v9109_v45, %v1009_v59  ;;  %v9130_v45 = vld [vmem:[%s20803_s0 + $0x3b] sm:$0x2]  }
  0x67   :  { %v9094_v49 = vld [vmem:[%s20803_s0 + $0x21d] sm:$0x1]   ;;  %v1017_v5 = vsel %vm29_vm6, %v9110_v46, %v1013_v0  ;;  %v9131_v46 = vld [vmem:[%s20803_s0 + $0x5a] sm:$0x4]  }
  0x68   :  { %v9095_v50 = vld [vmem:[%s20803_s0 + $0x23c] sm:$0x2]   ;;  %1018 = vrot.lane.b32.xlu1 %v1017_v5, %s11137_s25  ;;  %v9159_v0 = vld [vmem:[%s20803_s0 + $0x598] sm:$0x10]  }
  0x69   :  { %v9096_v51 = vld [vmem:[%s20803_s0 + $0x25b] sm:$0x4]   ;;  %v958_v54 = vsel %vm5_vm0, %v9095_v50, %v9094_v49  ;;  %v1140_v49 = vsel %vm17_vm3, %v9141_v36, %v1136_v44  ;;  %v1094_v50 = vsel %vm5_vm0, %v9130_v45, %v9129_v42  ;;  %v9161_v5 = vld [vmem:[%s20803_s0 + $0x5d6] sm:$0x40]  }
  0x6a   :  { %v9097_v55 = vld [vmem:[%s20803_s0 + $0x27a] sm:$0x8]   ;;  %v962_v60 = vsel %vm9_vm1, %v9096_v51, %v958_v54  ;;  %v9133_v51 = vld [vmem:[%s20803_s0 + $0x98] sm:$0x10]   ;;  %v1144_v54 = vsel %vm21_vm4, %v9142_v37, %v1140_v49 }
  0x6b   :  { %v9098_v56 = vld [vmem:[%s20803_s0 + $0x299] sm:$0x10]   ;;  %v966_v1 = vsel %vm13_vm2, %v9097_v55, %v962_v60  ;;  %v1098_v55 = vsel %vm9_vm1, %v9131_v46, %v1094_v50  ;;  %v1148_v59 = vsel %vm25_vm5, %v9143_v40, %v1144_v54  ;;  %v9179_v34 = vld [vmem:[%s20803_s0 + $0x6d6] sm:$0x40]  }
  0x6c   :  { %v9099_v57 = vld [vmem:[%s20803_s0 + $0x2b8] sm:$0x20]   ;;  %v970_v6 = vsel %vm17_vm3, %v9098_v56, %v966_v1  ;;  %v9136_v56 = vld [vmem:[%s20803_s0 + $0xf5] sm:$0x80]   ;;  %v1102_v60 = vsel %vm13_vm2, %v9132_v47, %v1098_v55  ;;  %v1152_v1 = vsel %vm29_vm6, %v9144_v41, %v1148_v59 }
  0x6d   :  { %v9100_v61 = vld [vmem:[%s20803_s0 + $0x2d7] sm:$0x40]   ;;  %v974_v11 = vsel %vm21_vm4, %v9099_v57, %v970_v6  ;;  %v9155_v57 = vld [vmem:[%s20803_s0 + $0x51c] sm:$0x1]  }
  0x6e   :  { %v9101_v62 = vld [vmem:[%s20803_s0 + $0x2f6] sm:$0x80]   ;;  %v978_v16 = vsel %vm25_vm5, %v9100_v61, %v974_v11  ;;  %v1198_v61 = vsel %vm5_vm0, %v9156_v58, %v9155_v57  ;;  %v9162_v6 = vld [vmem:[%s20803_s0 + $0x5f5] sm:$0x80]  }
  0x6f   :  { %v9121_v63 = vld [vmem:[%s20803_s0 + $0x71d] sm:$0x1]   ;;  %v982_v22 = vsel %vm29_vm6, %v9101_v62, %v978_v16  ;;  %v9157_v62 = vld [vmem:[%s20803_s0 + $0x55a] sm:$0x4]  }
  0x70   :  { %v9122_v2 = vld [vmem:[%s20803_s0 + $0x73c] sm:$0x2]   ;;  %983 = vrot.lane.b32.xlu0 %v982_v22, %s11137_s25  ;;  %v9148_v11 = vld [vmem:[%s20803_s0 + $0x15a] sm:$0x4]  }
  0x71   :  { %v9123_v3 = vld [vmem:[%s20803_s0 + $0x75b] sm:$0x4]   ;;  %v1063_v7 = vsel %vm5_vm0, %v9122_v2, %v9121_v63  ;;  %v9158_v63 = vld [vmem:[%s20803_s0 + $0x579] sm:$0x8]   ;;  %v1106_v2 = vsel %vm17_vm3, %v9133_v51, %v1102_v60 }
  0x72   :  { %v9124_v4 = vld [vmem:[%s20803_s0 + $0x77a] sm:$0x8]   ;;  %v1067_v12 = vsel %vm9_vm1, %v9123_v3, %v1063_v7  ;;  %v1202_v3 = vsel %vm9_vm1, %v9157_v62, %v1198_v61  ;;  %v1110_v7 = vsel %vm21_vm4, %v9134_v52, %v1106_v2  ;;  %v9150_v16 = vld [vmem:[%s20803_s0 + $0x198] sm:$0x10]  }
  0x73   :  { %v9125_v8 = vld [vmem:[%s20803_s0 + $0x799] sm:$0x10]   ;;  %v1071_v17 = vsel %vm13_vm2, %v9124_v4, %v1067_v12  ;;  %v9160_v4 = vld [vmem:[%s20803_s0 + $0x5b7] sm:$0x20]   ;;  %v1114_v12 = vsel %vm25_vm5, %v9135_v53, %v1110_v7 }
  0x74   :  { %v9126_v9 = vld [vmem:[%s20803_s0 + $0x7b8] sm:$0x20]   ;;  %v1075_v23 = vsel %vm17_vm3, %v9125_v8, %v1071_v17  ;;  %v1206_v8 = vsel %vm13_vm2, %v9158_v63, %v1202_v3  ;;  %v9151_v17 = vld [vmem:[%s20803_s0 + $0x1b7] sm:$0x20]  }
  0x75   :  { %v9127_v10 = vld [vmem:[%s20803_s0 + $0x7d7] sm:$0x40]   ;;  %v1079_v27 = vsel %vm21_vm4, %v9126_v9, %v1075_v23  ;;  %v9146_v9 = vld [vmem:[%s20803_s0 + $0x11c] sm:$0x1]  }
  0x76   :  { %v9112_v13 = vld [vmem:[%s20803_s0 + $0x31d] sm:$0x1]   ;;  %v1083_v32 = vsel %vm25_vm5, %v9127_v10, %v1079_v27  ;;  %v9147_v10 = vld [vmem:[%s20803_s0 + $0x13b] sm:$0x2]  }
  0x77   :  { %v9113_v14 = vld [vmem:[%s20803_s0 + $0x33c] sm:$0x2]   ;;  %1084 = vrot.lane.b32.xlu1 %v1083_v32, %s11137_s25  ;;  %v9153_v22 = vld [vmem:[%s20803_s0 + $0x1f5] sm:$0x80]  }
  0x78   :  { %v9114_v15 = vld [vmem:[%s20803_s0 + $0x35b] sm:$0x4]   ;;  %v1028_v18 = vsel %vm5_vm0, %v9113_v14, %v9112_v13  ;;  %v1210_v13 = vsel %vm17_vm3, %v9159_v0, %v1206_v8  ;;  %v1163_v14 = vsel %vm5_vm0, %v9147_v10, %v9146_v9  ;;  %v9173_v23 = vld [vmem:[%s20803_s0 + $0x61c] sm:$0x1]  }
  0x79   :  { %v9115_v19 = vld [vmem:[%s20803_s0 + $0x37a] sm:$0x8]   ;;  %v1032_v24 = vsel %vm9_vm1, %v9114_v15, %v1028_v18  ;;  %v9149_v15 = vld [vmem:[%s20803_s0 + $0x179] sm:$0x8]   ;;  %v1118_v18 = vsel %vm29_vm6, %v9136_v56, %v1114_v12 }
  0x7a   :  { %v9116_v20 = vld [vmem:[%s20803_s0 + $0x399] sm:$0x10]   ;;  %v1036_v28 = vsel %vm13_vm2, %v9115_v19, %v1032_v24  ;;  %v1214_v19 = vsel %vm21_vm4, %v9160_v4, %v1210_v13  ;;  %v9175_v27 = vld [vmem:[%s20803_s0 + $0x65a] sm:$0x4]  }
  0x7b   :  { %v9117_v21 = vld [vmem:[%s20803_s0 + $0x3b8] sm:$0x20]   ;;  %v1040_v33 = vsel %vm17_vm3, %v9116_v20, %v1036_v28  ;;  %1153 = vrot.lane.b32.xlu1 %v1152_v1, %s11138_s8  ;;  %v1167_v20 = vsel %vm9_vm1, %v9148_v11, %v1163_v14  ;;  %v1218_v24 = vsel %vm25_vm5, %v9161_v5, %v1214_v19  ;;  %v9176_v28 = vld [vmem:[%s20803_s0 + $0x679] sm:$0x8]   ;;  %v9207_v19 = vld [vmem:[%s20803_s0 + $0x41b] sm:$0x1]  }
  0x7c   :  { %v9118_v25 = vld [vmem:[%s20803_s0 + $0x3d7] sm:$0x40]   ;;  %v1044_v38 = vsel %vm21_vm4, %v9117_v21, %v1040_v33  ;;  %v9152_v21 = vld [vmem:[%s20803_s0 + $0x1d6] sm:$0x40]   ;;  %v1222_v29 = vsel %vm29_vm6, %v9162_v6, %v1218_v24 }
  0x7d   :  { %v9119_v26 = vld [vmem:[%s20803_s0 + $0x3f6] sm:$0x80]   ;;  %v1048_v43 = vsel %vm25_vm5, %v9118_v25, %v1044_v38  ;;  %v1171_v25 = vsel %vm13_vm2, %v9149_v15, %v1167_v20  ;;  %v9177_v32 = vld [vmem:[%s20803_s0 + $0x698] sm:$0x10]   ;;  %v9208_v20 = vld [vmem:[%s20803_s0 + $0x43a] sm:$0x2]  }
  0x7e   :  { %v1052_v48 = vsel %vm29_vm6, %v9119_v26, %v1048_v43  ;;  %v9174_v26 = vld [vmem:[%s20803_s0 + $0x63b] sm:$0x2]   ;;  %v1175_v30 = vsel %vm17_vm3, %v9150_v16, %v1171_v25  ;;  %v1403_v24 = vsel %vm5_vm0, %v9208_v20, %v9207_v19  ;;  %v9210_v25 = vld [vmem:[%s20803_s0 + $0x478] sm:$0x8]  }
  0x7f   :  { %1053 = vrot.lane.b32.xlu0 %v1052_v48, %s11137_s25  ;;  %v1268_v31 = vsel %vm5_vm0, %v9174_v26, %v9173_v23  ;;  %v9178_v33 = vld [vmem:[%s20803_s0 + $0x6b7] sm:$0x20]   ;;  %1223 = vrot.lane.b32.xlu1 %v1222_v29, %s11138_s8  ;;  %v1179_v35 = vsel %vm21_vm4, %v9151_v17, %v1175_v30  ;;  %v9211_v26 = vld [vmem:[%s20803_s0 + $0x497] sm:$0x10]   ;;  %s11143_s25 = smov 92  }
  0x80   :  { %v1272_v36 = vsel %vm9_vm1, %v9175_v27, %v1268_v31  ;;  %v9180_v37 = vld [vmem:[%s20803_s0 + $0x6f5] sm:$0x80]   ;;  %v1183_v40 = vsel %vm25_vm5, %v9152_v21, %v1179_v35  ;;  %v9209_v21 = vld [vmem:[%s20803_s0 + $0x459] sm:$0x4]  }
  0x81   :  { %v9164_v38 = vld [vmem:[%s20803_s0 + $0x21c] sm:$0x1]   ;;  %v1276_v41 = vsel %vm13_vm2, %v9176_v28, %v1272_v36  ;;  %v1187_v46 = vsel %vm29_vm6, %v9153_v22, %v1183_v40  ;;  %v9212_v27 = vld [vmem:[%s20803_s0 + $0x4b6] sm:$0x20]   ;;  %v1407_v29 = vsel %vm9_vm1, %v9209_v21, %v1403_v24 }
  0x82   :  { %v9165_v39 = vld [vmem:[%s20803_s0 + $0x23b] sm:$0x2]   ;;  %v1280_v47 = vsel %vm17_vm3, %v9177_v32, %v1276_v41  ;;  %v9213_v30 = vld [vmem:[%s20803_s0 + $0x4d5] sm:$0x40]  }
  0x83   :  { %1119 = vrot.lane.b32.xlu0 %v1118_v18, %s11138_s8  ;;  %v1233_v42 = vsel %vm5_vm0, %v9165_v39, %v9164_v38  ;;  %v9166_v43 = vld [vmem:[%s20803_s0 + $0x25a] sm:$0x4]   ;;  %v1284_v52 = vsel %vm21_vm4, %v9178_v33, %v1280_v47  ;;  %v9214_v31 = vld [vmem:[%s20803_s0 + $0x4f4] sm:$0x80]  }
  0x84   :  { %v9167_v44 = vld [vmem:[%s20803_s0 + $0x279] sm:$0x8]   ;;  %v1237_v48 = vsel %vm9_vm1, %v9166_v43, %v1233_v42  ;;  %v1288_v57 = vsel %vm25_vm5, %v9179_v34, %v1284_v52  ;;  %v9199_v32 = vld [vmem:[%s20803_s0 + $0x1b] sm:$0x1]   ;;  %v1411_v34 = vsel %vm13_vm2, %v9210_v25, %v1407_v29 }
  0x85   :  { %v9168_v45 = vld [vmem:[%s20803_s0 + $0x298] sm:$0x10]   ;;  %v1241_v53 = vsel %vm13_vm2, %v9167_v44, %v1237_v48  ;;  %v1292_v63 = vsel %vm29_vm6, %v9180_v37, %v1288_v57  ;;  %v9200_v35 = vld [vmem:[%s20803_s0 + $0x3a] sm:$0x2]   ;;  %v1415_v39 = vsel %vm17_vm3, %v9211_v26, %v1411_v34 }
  0x86   :  { %v9169_v49 = vld [vmem:[%s20803_s0 + $0x2b7] sm:$0x20]   ;;  %v1245_v58 = vsel %vm17_vm3, %v9168_v45, %v1241_v53  ;;  %1293 = vrot.lane.b32.xlu1 %v1292_v63, %s11138_s8  ;;  %v9201_v36 = vld [vmem:[%s20803_s0 + $0x59] sm:$0x4]   ;;  %v1369_v40 = vsel %vm5_vm0, %v9200_v35, %v9199_v32  ;;  %v1419_v44 = vsel %vm21_vm4, %v9212_v27, %v1415_v39 }
  0x87   :  { %v9170_v50 = vld [vmem:[%s20803_s0 + $0x2d6] sm:$0x40]   ;;  %1188 = vrot.lane.b32.xlu0 %v1187_v46, %s11138_s8  ;;  %v1249_v0 = vsel %vm21_vm4, %v9169_v49, %v1245_v58  ;;  %v9202_v37 = vld [vmem:[%s20803_s0 + $0x78] sm:$0x8]   ;;  %v1373_v45 = vsel %vm9_vm1, %v9201_v36, %v1369_v40  ;;  %v1423_v49 = vsel %vm25_vm5, %v9213_v30, %v1419_v44 }
  0x88   :  { %v9171_v51 = vld [vmem:[%s20803_s0 + $0x2f5] sm:$0x80]   ;;  %v1253_v5 = vsel %vm25_vm5, %v9170_v50, %v1249_v0  ;;  %v9203_v41 = vld [vmem:[%s20803_s0 + $0x97] sm:$0x10]   ;;  %v1377_v50 = vsel %vm13_vm2, %v9202_v37, %v1373_v45 }
  0x89   :  { %v9191_v54 = vld [vmem:[%s20803_s0 + $0x71c] sm:$0x1]   ;;  %v1257_v11 = vsel %vm29_vm6, %v9171_v51, %v1253_v5  ;;  %v9204_v42 = vld [vmem:[%s20803_s0 + $0xb6] sm:$0x20]  }
  0x8a   :  { %v9192_v55 = vld [vmem:[%s20803_s0 + $0x73b] sm:$0x2]   ;;  %v9205_v43 = vld [vmem:[%s20803_s0 + $0xd5] sm:$0x40]  }
  0x8b   :  { %v9193_v56 = vld [vmem:[%s20803_s0 + $0x75a] sm:$0x4]   ;;  %v1338_v59 = vsel %vm5_vm0, %v9192_v55, %v9191_v54  ;;  %1258 = vrot.lane.b32.xlu0 %v1257_v11, %s11138_s8  ;;  %v9206_v46 = vld [vmem:[%s20803_s0 + $0xf4] sm:$0x80]   ;;  %v1427_v55 = vsel %vm29_vm6, %v9214_v31, %v1423_v49 }
  0x8c   :  { %v9194_v60 = vld [vmem:[%s20803_s0 + $0x779] sm:$0x8]   ;;  %v1342_v1 = vsel %vm9_vm1, %v9193_v56, %v1338_v59  ;;  %v9225_v47 = vld [vmem:[%s20803_s0 + $0x51b] sm:$0x1]   ;;  %v1381_v56 = vsel %vm17_vm3, %v9203_v41, %v1377_v50 }
  0x8d   :  { %v9195_v61 = vld [vmem:[%s20803_s0 + $0x798] sm:$0x10]   ;;  %v1346_v6 = vsel %vm13_vm2, %v9194_v60, %v1342_v1  ;;  %v9226_v48 = vld [vmem:[%s20803_s0 + $0x53a] sm:$0x2]  }
  0x8e   :  { %v9196_v62 = vld [vmem:[%s20803_s0 + $0x7b7] sm:$0x20]   ;;  %v1350_v12 = vsel %vm17_vm3, %v9195_v61, %v1346_v6  ;;  %v1473_v51 = vsel %vm5_vm0, %v9226_v48, %v9225_v47  ;;  %v9227_v52 = vld [vmem:[%s20803_s0 + $0x559] sm:$0x4]   ;;  %v1385_v61 = vsel %vm21_vm4, %v9204_v42, %v1381_v56 }
  0x8f   :  { %v9197_v2 = vld [vmem:[%s20803_s0 + $0x7d6] sm:$0x40]   ;;  %v1354_v17 = vsel %vm21_vm4, %v9196_v62, %v1350_v12  ;;  %v9228_v53 = vld [vmem:[%s20803_s0 + $0x578] sm:$0x8]   ;;  %v1477_v57 = vsel %vm9_vm1, %v9227_v52, %v1473_v51 }
  0x90   :  { %v9182_v3 = vld [vmem:[%s20803_s0 + $0x31c] sm:$0x1]   ;;  %v1358_v22 = vsel %vm25_vm5, %v9197_v2, %v1354_v17  ;;  %v9229_v54 = vld [vmem:[%s20803_s0 + $0x597] sm:$0x10]   ;;  %v1481_v62 = vsel %vm13_vm2, %v9228_v53, %v1477_v57  ;;  %v1389_v2 = vsel %vm25_vm5, %v9205_v43, %v1385_v61 }
  0x91   :  { %v9183_v4 = vld [vmem:[%s20803_s0 + $0x33b] sm:$0x2]   ;;  %1359 = vrot.lane.b32.xlu1 %v1358_v22, %s11138_s8  ;;  %v9230_v58 = vld [vmem:[%s20803_s0 + $0x5b6] sm:$0x20]  }
  0x92   :  { %v1303_v7 = vsel %vm5_vm0, %v9183_v4, %v9182_v3  ;;  %v9184_v8 = vld [vmem:[%s20803_s0 + $0x35a] sm:$0x4]   ;;  %v9231_v59 = vld [vmem:[%s20803_s0 + $0x5d5] sm:$0x40]   ;;  %v1485_v3 = vsel %vm17_vm3, %v9229_v54, %v1481_v62 }
  0x93   :  { %v9185_v9 = vld [vmem:[%s20803_s0 + $0x379] sm:$0x8]   ;;  %v1307_v13 = vsel %vm9_vm1, %v9184_v8, %v1303_v7  ;;  %v9232_v60 = vld [vmem:[%s20803_s0 + $0x5f4] sm:$0x80]   ;;  %v1393_v8 = vsel %vm29_vm6, %v9206_v46, %v1389_v2 }
  0x94   :  { %v9186_v10 = vld [vmem:[%s20803_s0 + $0x398] sm:$0x10]   ;;  %v1311_v18 = vsel %vm13_vm2, %v9185_v9, %v1307_v13  ;;  %v9216_v63 = vld [vmem:[%s20803_s0 + $0x11b] sm:$0x1]   ;;  %v1489_v9 = vsel %vm21_vm4, %v9230_v58, %v1485_v3 }
  0x95   :  { %v9187_v14 = vld [vmem:[%s20803_s0 + $0x3b7] sm:$0x20]   ;;  %v1315_v23 = vsel %vm17_vm3, %v9186_v10, %v1311_v18  ;;  %1428 = vrot.lane.b32.xlu1 %v1427_v55, %s11139_s22  ;;  %v9217_v0 = vld [vmem:[%s20803_s0 + $0x13a] sm:$0x2]  }
  0x96   :  { %v9188_v15 = vld [vmem:[%s20803_s0 + $0x3d6] sm:$0x40]   ;;  %v1319_v28 = vsel %vm21_vm4, %v9187_v14, %v1315_v23  ;;  %v9218_v1 = vld [vmem:[%s20803_s0 + $0x159] sm:$0x4]   ;;  %v1438_v4 = vsel %vm5_vm0, %v9217_v0, %v9216_v63  ;;  %v1493_v14 = vsel %vm25_vm5, %v9231_v59, %v1489_v9  ;;  %v9277_v9 = vld [vmem:[%s20803_s0 + $0x41a] sm:$0x1]  }
  0x97   :  { %v9189_v16 = vld [vmem:[%s20803_s0 + $0x3f5] sm:$0x80]   ;;  %v1323_v33 = vsel %vm25_vm5, %v9188_v15, %v1319_v28  ;;  %v9219_v5 = vld [vmem:[%s20803_s0 + $0x178] sm:$0x8]   ;;  %v1442_v10 = vsel %vm9_vm1, %v9218_v1, %v1438_v4  ;;  %v1497_v19 = vsel %vm29_vm6, %v9232_v60, %v1493_v14  ;;  %v9279_v14 = vld [vmem:[%s20803_s0 + $0x458] sm:$0x4]  }
  0x98   :  { %v1327_v38 = vsel %vm29_vm6, %v9189_v16, %v1323_v33  ;;  %v9220_v6 = vld [vmem:[%s20803_s0 + $0x197] sm:$0x10]   ;;  %v1446_v15 = vsel %vm13_vm2, %v9219_v5, %v1442_v10  ;;  %v9278_v10 = vld [vmem:[%s20803_s0 + $0x439] sm:$0x2]  }
  0x99   :  { %1328 = vrot.lane.b32.xlu0 %v1327_v38, %s11138_s8  ;;  %v9221_v7 = vld [vmem:[%s20803_s0 + $0x1b6] sm:$0x20]   ;;  %v1450_v20 = vsel %vm17_vm3, %v9220_v6, %v1446_v15  ;;  %1498 = vrot.lane.b32.xlu1 %v1497_v19, %s11139_s22  ;;  %v9280_v15 = vld [vmem:[%s20803_s0 + $0x477] sm:$0x8]   ;;  %s11150_s8 = smov 64  }
  0x9a   :  { %v9222_v11 = vld [vmem:[%s20803_s0 + $0x1d5] sm:$0x40]   ;;  %v1454_v25 = vsel %vm21_vm4, %v9221_v7, %v1450_v20  ;;  %v9282_v19 = vld [vmem:[%s20803_s0 + $0x4b5] sm:$0x20]  }
  0x9b   :  { %v9223_v12 = vld [vmem:[%s20803_s0 + $0x1f4] sm:$0x80]   ;;  %v1458_v30 = vsel %vm25_vm5, %v9222_v11, %v1454_v25  ;;  %v9283_v20 = vld [vmem:[%s20803_s0 + $0x4d4] sm:$0x40]  }
  0x9c   :  { %v9243_v13 = vld [vmem:[%s20803_s0 + $0x61b] sm:$0x1]   ;;  %v1462_v36 = vsel %vm29_vm6, %v9223_v12, %v1458_v30  ;;  %v9270_v25 = vld [vmem:[%s20803_s0 + $0x39] sm:$0x2]  }
  0x9d   :  { %1394 = vrot.lane.b32.xlu0 %v1393_v8, %s11139_s22  ;;  %v9244_v16 = vld [vmem:[%s20803_s0 + $0x63a] sm:$0x2]   ;;  %v9272_v30 = vld [vmem:[%s20803_s0 + $0x77] sm:$0x8]  }
  0x9e   :  { %v9245_v17 = vld [vmem:[%s20803_s0 + $0x659] sm:$0x4]   ;;  %v1543_v21 = vsel %vm5_vm0, %v9244_v16, %v9243_v13  ;;  %v1678_v13 = vsel %vm5_vm0, %v9278_v10, %v9277_v9  ;;  %v9281_v16 = vld [vmem:[%s20803_s0 + $0x496] sm:$0x10]  }
  0x9f   :  { %v9246_v18 = vld [vmem:[%s20803_s0 + $0x678] sm:$0x8]   ;;  %v1547_v26 = vsel %vm9_vm1, %v9245_v17, %v1543_v21  ;;  %v9284_v21 = vld [vmem:[%s20803_s0 + $0x4f3] sm:$0x80]  }
  0xa0   :  { %v9247_v22 = vld [vmem:[%s20803_s0 + $0x697] sm:$0x10]   ;;  %v1551_v31 = vsel %vm13_vm2, %v9246_v18, %v1547_v26  ;;  %v1682_v18 = vsel %vm9_vm1, %v9279_v14, %v1678_v13  ;;  %v9271_v26 = vld [vmem:[%s20803_s0 + $0x58] sm:$0x4]  }
  0xa1   :  { %v9248_v23 = vld [vmem:[%s20803_s0 + $0x6b6] sm:$0x20]   ;;  %v1555_v37 = vsel %vm17_vm3, %v9247_v22, %v1551_v31  ;;  %1463 = vrot.lane.b32.xlu0 %v1462_v36, %s11139_s22  ;;  %v9273_v31 = vld [vmem:[%s20803_s0 + $0x96] sm:$0x10]  }
  0xa2   :  { %v9249_v24 = vld [vmem:[%s20803_s0 + $0x6d5] sm:$0x40]   ;;  %v1559_v42 = vsel %vm21_vm4, %v9248_v23, %v1555_v37  ;;  %v1686_v23 = vsel %vm13_vm2, %v9280_v15, %v1682_v18  ;;  %v9276_v36 = vld [vmem:[%s20803_s0 + $0xf3] sm:$0x80]  }
  0xa3   :  { %v9250_v27 = vld [vmem:[%s20803_s0 + $0x6f4] sm:$0x80]   ;;  %v1563_v47 = vsel %vm25_vm5, %v9249_v24, %v1559_v42  ;;  %v9269_v24 = vld [vmem:[%s20803_s0 + $0x1a] sm:$0x1]  }
  0xa4   :  { %v9234_v28 = vld [vmem:[%s20803_s0 + $0x21b] sm:$0x1]   ;;  %v1567_v53 = vsel %vm29_vm6, %v9250_v27, %v1563_v47  ;;  %v9295_v37 = vld [vmem:[%s20803_s0 + $0x51a] sm:$0x1]  }
  0xa5   :  { %v9235_v29 = vld [vmem:[%s20803_s0 + $0x23a] sm:$0x2]   ;;  %1568 = vrot.lane.b32.xlu1 %v1567_v53, %s11139_s22  ;;  %v9298_v42 = vld [vmem:[%s20803_s0 + $0x577] sm:$0x8]  }
  0xa6   :  { %v1508_v32 = vsel %vm5_vm0, %v9235_v29, %v9234_v28  ;;  %v9236_v33 = vld [vmem:[%s20803_s0 + $0x259] sm:$0x4]   ;;  %v1690_v28 = vsel %vm17_vm3, %v9281_v16, %v1686_v23  ;;  %v1644_v29 = vsel %vm5_vm0, %v9270_v25, %v9269_v24  ;;  %v9300_v47 = vld [vmem:[%s20803_s0 + $0x5b5] sm:$0x20]  }
  0xa7   :  { %v9237_v34 = vld [vmem:[%s20803_s0 + $0x278] sm:$0x8]   ;;  %v1512_v38 = vsel %vm9_vm1, %v9236_v33, %v1508_v32  ;;  %v9274_v32 = vld [vmem:[%s20803_s0 + $0xb5] sm:$0x20]   ;;  %v1694_v33 = vsel %vm21_vm4, %v9282_v19, %v1690_v28 }
  0xa8   :  { %v9238_v35 = vld [vmem:[%s20803_s0 + $0x297] sm:$0x10]   ;;  %v1516_v43 = vsel %vm13_vm2, %v9237_v34, %v1512_v38  ;;  %v1648_v34 = vsel %vm9_vm1, %v9271_v26, %v1644_v29  ;;  %v1698_v38 = vsel %vm25_vm5, %v9283_v20, %v1694_v33  ;;  %v9287_v53 = vld [vmem:[%s20803_s0 + $0x139] sm:$0x2]  }
  0xa9   :  { %v9239_v39 = vld [vmem:[%s20803_s0 + $0x2b6] sm:$0x20]   ;;  %v1520_v48 = vsel %vm17_vm3, %v9238_v35, %v1516_v43  ;;  %v9275_v35 = vld [vmem:[%s20803_s0 + $0xd4] sm:$0x40]   ;;  %v1702_v43 = vsel %vm29_vm6, %v9284_v21, %v1698_v38 }
  0xaa   :  { %v9240_v40 = vld [vmem:[%s20803_s0 + $0x2d5] sm:$0x40]   ;;  %v1524_v54 = vsel %vm21_vm4, %v9239_v39, %v1520_v48  ;;  %v1652_v39 = vsel %vm13_vm2, %v9272_v30, %v1648_v34  ;;  %v9301_v48 = vld [vmem:[%s20803_s0 + $0x5d4] sm:$0x40]  }
  0xab   :  { %v9241_v41 = vld [vmem:[%s20803_s0 + $0x2f4] sm:$0x80]   ;;  %v1528_v59 = vsel %vm25_vm5, %v9240_v40, %v1524_v54  ;;  %v9296_v40 = vld [vmem:[%s20803_s0 + $0x539] sm:$0x2]  }
  0xac   :  { %v9261_v44 = vld [vmem:[%s20803_s0 + $0x71b] sm:$0x1]   ;;  %v1532_v1 = vsel %vm29_vm6, %v9241_v41, %v1528_v59  ;;  %v9297_v41 = vld [vmem:[%s20803_s0 + $0x558] sm:$0x4]  }
  0xad   :  { %v9262_v45 = vld [vmem:[%s20803_s0 + $0x73a] sm:$0x2]   ;;  %1533 = vrot.lane.b32.xlu0 %v1532_v1, %s11139_s22  ;;  %v9290_v59 = vld [vmem:[%s20803_s0 + $0x196] sm:$0x10]  }
  0xae   :  { %v9263_v46 = vld [vmem:[%s20803_s0 + $0x759] sm:$0x4]   ;;  %v1613_v49 = vsel %vm5_vm0, %v9262_v45, %v9261_v44  ;;  %v1656_v44 = vsel %vm17_vm3, %v9273_v31, %v1652_v39  ;;  %v1748_v45 = vsel %vm5_vm0, %v9296_v40, %v9295_v37  ;;  %v9293_v1 = vld [vmem:[%s20803_s0 + $0x1f3] sm:$0x80]  }
  0xaf   :  { %v9264_v50 = vld [vmem:[%s20803_s0 + $0x778] sm:$0x8]   ;;  %v1617_v55 = vsel %vm9_vm1, %v9263_v46, %v1613_v49  ;;  %v9299_v46 = vld [vmem:[%s20803_s0 + $0x596] sm:$0x10]   ;;  %v1660_v49 = vsel %vm21_vm4, %v9274_v32, %v1656_v44 }
  0xb0   :  { %v9265_v51 = vld [vmem:[%s20803_s0 + $0x797] sm:$0x10]   ;;  %v1621_v60 = vsel %vm13_vm2, %v9264_v50, %v1617_v55  ;;  %v1752_v50 = vsel %vm9_vm1, %v9297_v41, %v1748_v45  ;;  %v1664_v54 = vsel %vm25_vm5, %v9275_v35, %v1660_v49  ;;  %v9316_v10 = vld [vmem:[%s20803_s0 + $0x677] sm:$0x8]   ;;  %v12637_v41 = vpop.permute.xlu1 %363  }
  0xb1   :  { %v9266_v52 = vld [vmem:[%s20803_s0 + $0x7b6] sm:$0x20]   ;;  %v1625_v2 = vsel %vm17_vm3, %v9265_v51, %v1621_v60  ;;  %v9302_v51 = vld [vmem:[%s20803_s0 + $0x5f3] sm:$0x80]   ;;  %v1756_v55 = vsel %vm13_vm2, %v9298_v42, %v1752_v50  ;;  %v1668_v60 = vsel %vm29_vm6, %v9276_v36, %v1664_v54 }
  0xb2   :  { %v9267_v56 = vld [vmem:[%s20803_s0 + $0x7d5] sm:$0x40]   ;;  %v1629_v7 = vsel %vm21_vm4, %v9266_v52, %v1625_v2  ;;  %v9286_v52 = vld [vmem:[%s20803_s0 + $0x11a] sm:$0x1]  }
  0xb3   :  { %v9252_v57 = vld [vmem:[%s20803_s0 + $0x31b] sm:$0x1]   ;;  %v1633_v11 = vsel %vm25_vm5, %v9267_v56, %v1629_v7  ;;  %v1713_v56 = vsel %vm5_vm0, %v9287_v53, %v9286_v52  ;;  %v9319_v16 = vld [vmem:[%s20803_s0 + $0x6d4] sm:$0x40]   ;;  %v12663_v53 = vpop.permute.xlu0 %294  }
  0xb4   :  { %v9253_v58 = vld [vmem:[%s20803_s0 + $0x33a] sm:$0x2]   ;;  %1634 = vrot.lane.b32.xlu1 %v1633_v11, %s11139_s22  ;;  %v9317_v11 = vld [vmem:[%s20803_s0 + $0x696] sm:$0x10]  }
  0xb5   :  { %v1578_v61 = vsel %vm5_vm0, %v9253_v58, %v9252_v57  ;;  %v9254_v62 = vld [vmem:[%s20803_s0 + $0x359] sm:$0x4]   ;;  %v9288_v57 = vld [vmem:[%s20803_s0 + $0x158] sm:$0x4]  }
  0xb6   :  { %v9255_v63 = vld [vmem:[%s20803_s0 + $0x378] sm:$0x8]   ;;  %v1582_v3 = vsel %vm9_vm1, %v9254_v62, %v1578_v61  ;;  %v9289_v58 = vld [vmem:[%s20803_s0 + $0x177] sm:$0x8]   ;;  %v1760_v61 = vsel %vm17_vm3, %v9299_v46, %v1756_v55  ;;  %v1717_v62 = vsel %vm9_vm1, %v9288_v57, %v1713_v56 }
  0xb7   :  { %v9256_v0 = vld [vmem:[%s20803_s0 + $0x397] sm:$0x10]   ;;  %v1586_v8 = vsel %vm13_vm2, %v9255_v63, %v1582_v3  ;;  %v9291_v63 = vld [vmem:[%s20803_s0 + $0x1b5] sm:$0x20]   ;;  %v1764_v2 = vsel %vm21_vm4, %v9300_v47, %v1760_v61  ;;  %v1721_v3 = vsel %vm13_vm2, %v9289_v58, %v1717_v62 }
  0xb8   :  { %v9257_v4 = vld [vmem:[%s20803_s0 + $0x3b6] sm:$0x20]   ;;  %v1590_v12 = vsel %vm17_vm3, %v9256_v0, %v1586_v8  ;;  %1703 = vrot.lane.b32.xlu1 %v1702_v43, %s11140_s5  ;;  %v9292_v0 = vld [vmem:[%s20803_s0 + $0x1d4] sm:$0x40]   ;;  %v1768_v7 = vsel %vm25_vm5, %v9301_v48, %v1764_v2  ;;  %v1725_v8 = vsel %vm17_vm3, %v9290_v59, %v1721_v3 }
  0xb9   :  { %v9258_v5 = vld [vmem:[%s20803_s0 + $0x3d5] sm:$0x40]   ;;  %v1594_v17 = vsel %vm21_vm4, %v9257_v4, %v1590_v12  ;;  %v9313_v4 = vld [vmem:[%s20803_s0 + $0x61a] sm:$0x1]   ;;  %v1772_v13 = vsel %vm29_vm6, %v9302_v51, %v1768_v7  ;;  %v1729_v14 = vsel %vm21_vm4, %v9291_v63, %v1725_v8  ;;  %v9351_v7 = vld [vmem:[%s20803_s0 + $0x495] sm:$0x10]   ;;  %v12702_v8 = vpop.permute.xlu1 %398  }
  0xba   :  { %v9259_v6 = vld [vmem:[%s20803_s0 + $0x3f4] sm:$0x80]   ;;  %v1598_v22 = vsel %vm25_vm5, %v9258_v5, %v1594_v17  ;;  %v9314_v5 = vld [vmem:[%s20803_s0 + $0x639] sm:$0x2]   ;;  %v1733_v19 = vsel %vm25_vm5, %v9292_v0, %v1729_v14  ;;  %v9347_v0 = vld [vmem:[%s20803_s0 + $0x419] sm:$0x1]  }
  0xbb   :  { %v1602_v27 = vsel %vm29_vm6, %v9259_v6, %v1598_v22  ;;  %v9315_v6 = vld [vmem:[%s20803_s0 + $0x658] sm:$0x4]   ;;  %v1818_v9 = vsel %vm5_vm0, %v9314_v5, %v9313_v4  ;;  %v1737_v24 = vsel %vm29_vm6, %v9293_v1, %v1733_v19  ;;  %v9348_v1 = vld [vmem:[%s20803_s0 + $0x438] sm:$0x2]  }
  0xbc   :  { %1603 = vrot.lane.b32.xlu0 %v1602_v27, %s11139_s22  ;;  %v9318_v12 = vld [vmem:[%s20803_s0 + $0x6b5] sm:$0x20]   ;;  %v1822_v15 = vsel %vm9_vm1, %v9315_v6, %v1818_v9  ;;  %1773 = vrot.lane.b32.xlu1 %v1772_v13, %s11140_s5  ;;  %v1953_v4 = vsel %vm5_vm0, %v9348_v1, %v9347_v0  ;;  %v9349_v5 = vld [vmem:[%s20803_s0 + $0x457] sm:$0x4]   ;;  %s11156_s22 = smov 40  }
  0xbd   :  { %v9320_v17 = vld [vmem:[%s20803_s0 + $0x6f3] sm:$0x80]   ;;  %v1826_v20 = vsel %vm13_vm2, %v9316_v10, %v1822_v15  ;;  %v9350_v6 = vld [vmem:[%s20803_s0 + $0x476] sm:$0x8]   ;;  %v1957_v10 = vsel %vm9_vm1, %v9349_v5, %v1953_v4 }
  0xbe   :  { %v9304_v18 = vld [vmem:[%s20803_s0 + $0x21a] sm:$0x1]   ;;  %v1830_v25 = vsel %vm17_vm3, %v9317_v11, %v1826_v20  ;;  %v9352_v11 = vld [vmem:[%s20803_s0 + $0x4b4] sm:$0x20]   ;;  %v1961_v15 = vsel %vm13_vm2, %v9350_v6, %v1957_v10 }
  0xbf   :  { %v9305_v21 = vld [vmem:[%s20803_s0 + $0x239] sm:$0x2]   ;;  %v1834_v30 = vsel %vm21_vm4, %v9318_v12, %v1830_v25  ;;  %v9353_v12 = vld [vmem:[%s20803_s0 + $0x4d3] sm:$0x40]   ;;  %v1965_v20 = vsel %vm17_vm3, %v9351_v7, %v1961_v15  ;;  %v12739_v25 = vpop.permute.xlu0 %328  }
  0xc0   :  { %1669 = vrot.lane.b32.xlu0 %v1668_v60, %s11140_s5  ;;  %v9306_v22 = vld [vmem:[%s20803_s0 + $0x258] sm:$0x4]   ;;  %v1783_v26 = vsel %vm5_vm0, %v9305_v21, %v9304_v18  ;;  %v1838_v35 = vsel %vm25_vm5, %v9319_v16, %v1834_v30  ;;  %v9354_v13 = vld [vmem:[%s20803_s0 + $0x4f2] sm:$0x80]  }
  0xc1   :  { %v9307_v23 = vld [vmem:[%s20803_s0 + $0x277] sm:$0x8]   ;;  %v1787_v31 = vsel %vm9_vm1, %v9306_v22, %v1783_v26  ;;  %v1842_v42 = vsel %vm29_vm6, %v9320_v17, %v1838_v35  ;;  %v9339_v16 = vld [vmem:[%s20803_s0 + $0x19] sm:$0x1]  }
  0xc2   :  { %v9308_v27 = vld [vmem:[%s20803_s0 + $0x296] sm:$0x10]   ;;  %v1791_v36 = vsel %vm13_vm2, %v9307_v23, %v1787_v31  ;;  %1843 = vrot.lane.b32.xlu1 %v1842_v42, %s11140_s5  ;;  %v9340_v17 = vld [vmem:[%s20803_s0 + $0x38] sm:$0x2]  }
  0xc3   :  { %v9309_v28 = vld [vmem:[%s20803_s0 + $0x2b5] sm:$0x20]   ;;  %v1795_v43 = vsel %vm17_vm3, %v9308_v27, %v1791_v36  ;;  %v9341_v18 = vld [vmem:[%s20803_s0 + $0x57] sm:$0x4]   ;;  %v1919_v21 = vsel %vm5_vm0, %v9340_v17, %v9339_v16  ;;  %v1969_v27 = vsel %vm21_vm4, %v9352_v11, %v1965_v20 }
  0xc4   :  { %v9310_v29 = vld [vmem:[%s20803_s0 + $0x2d4] sm:$0x40]   ;;  %1738 = vrot.lane.b32.xlu0 %v1737_v24, %s11140_s5  ;;  %v1799_v48 = vsel %vm21_vm4, %v9309_v28, %v1795_v43  ;;  %v9342_v22 = vld [vmem:[%s20803_s0 + $0x76] sm:$0x8]   ;;  %v1923_v28 = vsel %vm9_vm1, %v9341_v18, %v1919_v21 }
  0xc5   :  { %v9311_v32 = vld [vmem:[%s20803_s0 + $0x2f3] sm:$0x80]   ;;  %v1803_v54 = vsel %vm25_vm5, %v9310_v29, %v1799_v48  ;;  %v9343_v23 = vld [vmem:[%s20803_s0 + $0x95] sm:$0x10]  }
  0xc6   :  { %v9331_v33 = vld [vmem:[%s20803_s0 + $0x71a] sm:$0x1]   ;;  %v1807_v60 = vsel %vm29_vm6, %v9311_v32, %v1803_v54  ;;  %v9344_v24 = vld [vmem:[%s20803_s0 + $0xb4] sm:$0x20]   ;;  %v1973_v32 = vsel %vm25_vm5, %v9353_v12, %v1969_v27 }
  0xc7   :  { %v9332_v34 = vld [vmem:[%s20803_s0 + $0x739] sm:$0x2]   ;;  %v9345_v29 = vld [vmem:[%s20803_s0 + $0xd3] sm:$0x40]  }
  0xc8   :  { %v1888_v37 = vsel %vm5_vm0, %v9332_v34, %v9331_v33  ;;  %v9333_v38 = vld [vmem:[%s20803_s0 + $0x758] sm:$0x4]   ;;  %1808 = vrot.lane.b32.xlu0 %v1807_v60, %s11140_s5  ;;  %v9346_v30 = vld [vmem:[%s20803_s0 + $0xf2] sm:$0x80]   ;;  %v1927_v33 = vsel %vm13_vm2, %v9342_v22, %v1923_v28 }
  0xc9   :  { %v9334_v39 = vld [vmem:[%s20803_s0 + $0x777] sm:$0x8]   ;;  %v1892_v44 = vsel %vm9_vm1, %v9333_v38, %v1888_v37  ;;  %v9365_v31 = vld [vmem:[%s20803_s0 + $0x519] sm:$0x1]   ;;  %v12765_v37 = vpop.permute.xlu1 %468   ;;  %v1977_v38 = vsel %vm29_vm6, %v9354_v13, %v1973_v32 }
  0xca   :  { %v9335_v40 = vld [vmem:[%s20803_s0 + $0x796] sm:$0x10]   ;;  %v1896_v49 = vsel %vm13_vm2, %v9334_v39, %v1892_v44  ;;  %v9366_v34 = vld [vmem:[%s20803_s0 + $0x538] sm:$0x2]   ;;  %v1931_v39 = vsel %vm17_vm3, %v9343_v23, %v1927_v33 }
  0xcb   :  { %v9336_v45 = vld [vmem:[%s20803_s0 + $0x7b5] sm:$0x20]   ;;  %v1900_v55 = vsel %vm17_vm3, %v9335_v40, %v1896_v49  ;;  %v9367_v35 = vld [vmem:[%s20803_s0 + $0x557] sm:$0x4]   ;;  %v2023_v40 = vsel %vm5_vm0, %v9366_v34, %v9365_v31 }
  0xcc   :  { %v9337_v46 = vld [vmem:[%s20803_s0 + $0x7d4] sm:$0x40]   ;;  %v1904_v61 = vsel %vm21_vm4, %v9336_v45, %v1900_v55  ;;  %v9368_v36 = vld [vmem:[%s20803_s0 + $0x576] sm:$0x8]   ;;  %v1935_v45 = vsel %vm21_vm4, %v9344_v24, %v1931_v39 }
  0xcd   :  { %v9322_v47 = vld [vmem:[%s20803_s0 + $0x31a] sm:$0x1]   ;;  %v1908_v2 = vsel %vm25_vm5, %v9337_v46, %v1904_v61  ;;  %v9369_v42 = vld [vmem:[%s20803_s0 + $0x595] sm:$0x10]   ;;  %v2027_v46 = vsel %vm9_vm1, %v9367_v35, %v2023_v40  ;;  %v12829_v5 = vpop.permute.xlu1 %534  }
  0xce   :  { %v9323_v50 = vld [vmem:[%s20803_s0 + $0x339] sm:$0x2]   ;;  %1909 = vrot.lane.b32.xlu1 %v1908_v2, %s11140_s5  ;;  %v9370_v43 = vld [vmem:[%s20803_s0 + $0x5b4] sm:$0x20]  }
  0xcf   :  { %v9324_v51 = vld [vmem:[%s20803_s0 + $0x358] sm:$0x4]   ;;  %v1853_v56 = vsel %vm5_vm0, %v9323_v50, %v9322_v47  ;;  %v9371_v44 = vld [vmem:[%s20803_s0 + $0x5d3] sm:$0x40]   ;;  %v1939_v50 = vsel %vm25_vm5, %v9345_v29, %v1935_v45 }
  0xd0   :  { %v9325_v52 = vld [vmem:[%s20803_s0 + $0x377] sm:$0x8]   ;;  %v1857_v62 = vsel %vm9_vm1, %v9324_v51, %v1853_v56  ;;  %v9372_v47 = vld [vmem:[%s20803_s0 + $0x5f2] sm:$0x80]   ;;  %v2031_v51 = vsel %vm13_vm2, %v9368_v36, %v2027_v46 }
  0xd1   :  { %v9326_v57 = vld [vmem:[%s20803_s0 + $0x396] sm:$0x10]   ;;  %v1861_v3 = vsel %vm13_vm2, %v9325_v52, %v1857_v62  ;;  %v9356_v48 = vld [vmem:[%s20803_s0 + $0x119] sm:$0x1]   ;;  %v12905_v45 = vpop.permute.xlu1 %603  }
  0xd2   :  { %v9327_v58 = vld [vmem:[%s20803_s0 + $0x3b5] sm:$0x20]   ;;  %v1865_v9 = vsel %vm17_vm3, %v9326_v57, %v1861_v3  ;;  %1978 = vrot.lane.b32.xlu1 %v1977_v38, %s11141_s19  ;;  %v9357_v49 = vld [vmem:[%s20803_s0 + $0x138] sm:$0x2]   ;;  %v12803_v57 = vpop.permute.xlu0 %433  }
  0xd3   :  { %v9328_v59 = vld [vmem:[%s20803_s0 + $0x3d4] sm:$0x40]   ;;  %v1869_v14 = vsel %vm21_vm4, %v9327_v58, %v1865_v9  ;;  %v1988_v52 = vsel %vm5_vm0, %v9357_v49, %v9356_v48  ;;  %v9358_v54 = vld [vmem:[%s20803_s0 + $0x157] sm:$0x4]   ;;  %v1943_v58 = vsel %vm29_vm6, %v9346_v30, %v1939_v50 }
  0xd4   :  { %v9329_v63 = vld [vmem:[%s20803_s0 + $0x3f3] sm:$0x80]   ;;  %v1873_v19 = vsel %vm25_vm5, %v9328_v59, %v1869_v14  ;;  %v9359_v55 = vld [vmem:[%s20803_s0 + $0x176] sm:$0x8]   ;;  %v2035_v59 = vsel %vm17_vm3, %v9369_v42, %v2031_v51  ;;  %v1992_v60 = vsel %vm9_vm1, %v9358_v54, %v1988_v52 }
  0xd5   :  { %v1877_v26 = vsel %vm29_vm6, %v9329_v63, %v1873_v19  ;;  %v9360_v56 = vld [vmem:[%s20803_s0 + $0x195] sm:$0x10]   ;;  %v2039_v0 = vsel %vm21_vm4, %v9370_v43, %v2035_v59  ;;  %v1996_v1 = vsel %vm13_vm2, %v9359_v55, %v1992_v60 }
  0xd6   :  { %1878 = vrot.lane.b32.xlu0 %v1877_v26, %s11140_s5  ;;  %v9361_v61 = vld [vmem:[%s20803_s0 + $0x1b4] sm:$0x20]   ;;  %v2043_v6 = vsel %vm25_vm5, %v9371_v44, %v2039_v0  ;;  %v2000_v7 = vsel %vm17_vm3, %v9360_v56, %v1996_v1  ;;  %v12867_v24 = vpop.permute.xlu0 %503   ;;  %s11161_s5 = smov 20  }
  0xd7   :  { %v9362_v62 = vld [vmem:[%s20803_s0 + $0x1d3] sm:$0x40]   ;;  %v2047_v13 = vsel %vm29_vm6, %v9372_v47, %v2043_v6  ;;  %v2004_v14 = vsel %vm21_vm4, %v9361_v61, %v2000_v7  ;;  %v9417_v7 = vld [vmem:[%s20803_s0 + $0x418] sm:$0x1]  }
  0xd8   :  { %v9363_v63 = vld [vmem:[%s20803_s0 + $0x1f2] sm:$0x80]   ;;  %2048 = vrot.lane.b32.xlu1 %v2047_v13, %s11141_s19  ;;  %v2008_v19 = vsel %vm25_vm5, %v9362_v62, %v2004_v14  ;;  %v9420_v13 = vld [vmem:[%s20803_s0 + $0x475] sm:$0x8]   ;;  %v12966_v14 = vpop.permute.xlu1 %673  }
  0xd9   :  { %v9383_v2 = vld [vmem:[%s20803_s0 + $0x619] sm:$0x1]   ;;  %v2012_v26 = vsel %vm29_vm6, %v9363_v63, %v2008_v19  ;;  %v9423_v19 = vld [vmem:[%s20803_s0 + $0x4d2] sm:$0x40]  }
  0xda   :  { %1944 = vrot.lane.b32.xlu0 %v1943_v58, %s11141_s19  ;;  %v9384_v3 = vld [vmem:[%s20803_s0 + $0x638] sm:$0x2]   ;;  %v12931_v59 = vpop.permute.xlu0 %569  }
  0xdb   :  { %v9385_v4 = vld [vmem:[%s20803_s0 + $0x657] sm:$0x4]   ;;  %v2093_v9 = vsel %vm5_vm0, %v9384_v3, %v9383_v2 }
  0xdc   :  { %v9386_v10 = vld [vmem:[%s20803_s0 + $0x676] sm:$0x8]   ;;  %v2097_v15 = vsel %vm9_vm1, %v9385_v4, %v2093_v9 }
  0xdd   :  { %v9387_v11 = vld [vmem:[%s20803_s0 + $0x695] sm:$0x10]   ;;  %v2101_v20 = vsel %vm13_vm2, %v9386_v10, %v2097_v15 }
  0xde   :  { %v9388_v12 = vld [vmem:[%s20803_s0 + $0x6b4] sm:$0x20]   ;;  %v2105_v27 = vsel %vm17_vm3, %v9387_v11, %v2101_v20  ;;  %2013 = vrot.lane.b32.xlu0 %v2012_v26, %s11141_s19  ;;  %v9418_v11 = vld [vmem:[%s20803_s0 + $0x437] sm:$0x2]  }
  0xdf   :  { %v9389_v16 = vld [vmem:[%s20803_s0 + $0x6d3] sm:$0x40]   ;;  %v2109_v32 = vsel %vm21_vm4, %v9388_v12, %v2105_v27  ;;  %v9419_v12 = vld [vmem:[%s20803_s0 + $0x456] sm:$0x4]  }
  0xe0   :  { %v9390_v17 = vld [vmem:[%s20803_s0 + $0x6f2] sm:$0x80]   ;;  %v2113_v38 = vsel %vm25_vm5, %v9389_v16, %v2109_v32  ;;  %v2228_v16 = vsel %vm5_vm0, %v9418_v11, %v9417_v7  ;;  %v9410_v26 = vld [vmem:[%s20803_s0 + $0x37] sm:$0x2]   ;;  %v8852_v11 = vld [vmem:[%s20803_s0 + $0x7c] sm:$0x10]  }
  0xe1   :  { %v9374_v18 = vld [vmem:[%s20803_s0 + $0x219] sm:$0x1]   ;;  %v2117_v46 = vsel %vm29_vm6, %v9390_v17, %v2113_v38  ;;  %v9421_v17 = vld [vmem:[%s20803_s0 + $0x494] sm:$0x10]  }
  0xe2   :  { %v9375_v21 = vld [vmem:[%s20803_s0 + $0x238] sm:$0x2]   ;;  %2118 = vrot.lane.b32.xlu1 %v2117_v46, %s11141_s19  ;;  %v9413_v32 = vld [vmem:[%s20803_s0 + $0x94] sm:$0x10]   ;;  %v8857_v46 = vld [vmem:[%s20803_s0 + $0x11f] sm:$0x2]  }
  0xe3   :  { %v9376_v22 = vld [vmem:[%s20803_s0 + $0x257] sm:$0x4]   ;;  %v2058_v28 = vsel %vm5_vm0, %v9375_v21, %v9374_v18  ;;  %v9422_v18 = vld [vmem:[%s20803_s0 + $0x4b3] sm:$0x20]   ;;  %v2232_v21 = vsel %vm9_vm1, %v9419_v12, %v2228_v16  ;;  %v8853_v12 = vld [vmem:[%s20803_s0 + $0x9b] sm:$0x20]  }
  0xe4   :  { %v9377_v23 = vld [vmem:[%s20803_s0 + $0x276] sm:$0x8]   ;;  %v2062_v33 = vsel %vm9_vm1, %v9376_v22, %v2058_v28  ;;  %v9424_v22 = vld [vmem:[%s20803_s0 + $0x4f1] sm:$0x80]   ;;  %v2236_v28 = vsel %vm13_vm2, %v9420_v13, %v2232_v21  ;;  %v8854_v16 = vld [vmem:[%s20803_s0 + $0xba] sm:$0x40]  }
  0xe5   :  { %v9378_v29 = vld [vmem:[%s20803_s0 + $0x295] sm:$0x10]   ;;  %v2066_v39 = vsel %vm13_vm2, %v9377_v23, %v2062_v33  ;;  %v9409_v23 = vld [vmem:[%s20803_s0 + $0x18] sm:$0x1]   ;;  %v13003_v33 = vpop.permute.xlu0 %638  }
  0xe6   :  { %v9379_v30 = vld [vmem:[%s20803_s0 + $0x2b4] sm:$0x20]   ;;  %v2070_v47 = vsel %vm17_vm3, %v9378_v29, %v2066_v39  ;;  %v2194_v29 = vsel %vm5_vm0, %v9410_v26, %v9409_v23  ;;  %v9414_v38 = vld [vmem:[%s20803_s0 + $0xb3] sm:$0x20]  }
  0xe7   :  { %v9380_v31 = vld [vmem:[%s20803_s0 + $0x2d3] sm:$0x40]   ;;  %v2074_v52 = vsel %vm21_vm4, %v9379_v30, %v2070_v47  ;;  %v9411_v30 = vld [vmem:[%s20803_s0 + $0x56] sm:$0x4]   ;;  %v13026_v47 = vpop.permute.xlu1 %743  }
  0xe8   :  { %v9381_v34 = vld [vmem:[%s20803_s0 + $0x2f2] sm:$0x80]   ;;  %v2078_v60 = vsel %vm25_vm5, %v9380_v31, %v2074_v52  ;;  %v9412_v31 = vld [vmem:[%s20803_s0 + $0x75] sm:$0x8]   ;;  %v8859_v52 = vld [vmem:[%s20803_s0 + $0x15d] sm:$0x8]  }
  0xe9   :  { %v9401_v35 = vld [vmem:[%s20803_s0 + $0x719] sm:$0x1]   ;;  %v2082_v2 = vsel %vm29_vm6, %v9381_v34, %v2078_v60  ;;  %v9415_v39 = vld [vmem:[%s20803_s0 + $0xd2] sm:$0x40]   ;;  %v8861_v60 = vld [vmem:[%s20803_s0 + $0x19b] sm:$0x20]  }
  0xea   :  { %v9402_v36 = vld [vmem:[%s20803_s0 + $0x738] sm:$0x2]   ;;  %2083 = vrot.lane.b32.xlu0 %v2082_v2, %s11141_s19  ;;  %v8849_v2 = vld [vmem:[%s20803_s0 + $0x1f] sm:$0x2]   ;;  %v9437_v23 = vld [vmem:[%s20803_s0 + $0x556] sm:$0x4]  }
  0xeb   :  { %v2163_v40 = vsel %vm5_vm0, %v9402_v36, %v9401_v35  ;;  %v9403_v42 = vld [vmem:[%s20803_s0 + $0x757] sm:$0x4]   ;;  %v2240_v35 = vsel %vm17_vm3, %v9421_v17, %v2236_v28  ;;  %v2198_v36 = vsel %vm9_vm1, %v9411_v30, %v2194_v29  ;;  %v8855_v17 = vld [vmem:[%s20803_s0 + $0xd9] sm:$0x80]   ;;  %v9438_v26 = vld [vmem:[%s20803_s0 + $0x575] sm:$0x8]  }
  0xec   :  { %v9404_v43 = vld [vmem:[%s20803_s0 + $0x776] sm:$0x8]   ;;  %v2167_v48 = vsel %vm9_vm1, %v9403_v42, %v2163_v40  ;;  %v9416_v40 = vld [vmem:[%s20803_s0 + $0xf1] sm:$0x80]   ;;  %v2244_v42 = vsel %vm21_vm4, %v9422_v18, %v2240_v35 }
  0xed   :  { %v9405_v44 = vld [vmem:[%s20803_s0 + $0x795] sm:$0x10]   ;;  %v2171_v54 = vsel %vm13_vm2, %v9404_v43, %v2167_v48  ;;  %v2202_v43 = vsel %vm13_vm2, %v9412_v31, %v2198_v36  ;;  %v2248_v48 = vsel %vm25_vm5, %v9423_v19, %v2244_v42  ;;  %v9435_v18 = vld [vmem:[%s20803_s0 + $0x518] sm:$0x1]   ;;  %v13090_v19 = vpop.permute.xlu1 %809  }
  0xee   :  { %v9406_v49 = vld [vmem:[%s20803_s0 + $0x7b4] sm:$0x20]   ;;  %v2175_v61 = vsel %vm17_vm3, %v9405_v44, %v2171_v54  ;;  %v8856_v44 = vld [vmem:[%s20803_s0 + $0x100] sm:$0x1]   ;;  %v9439_v30 = vld [vmem:[%s20803_s0 + $0x594] sm:$0x10]  }
  0xef   :  { %v9407_v50 = vld [vmem:[%s20803_s0 + $0x7d3] sm:$0x40]   ;;  %v2179_v3 = vsel %vm21_vm4, %v9406_v49, %v2175_v61  ;;  %v2206_v49 = vsel %vm17_vm3, %v9413_v32, %v2202_v43  ;;  %v8860_v54 = vld [vmem:[%s20803_s0 + $0x17c] sm:$0x10]   ;;  %v9440_v31 = vld [vmem:[%s20803_s0 + $0x5b3] sm:$0x20]  }
  0xf0   :  { %v9392_v51 = vld [vmem:[%s20803_s0 + $0x319] sm:$0x1]   ;;  %v2183_v9 = vsel %vm25_vm5, %v9407_v50, %v2179_v3  ;;  %v38_v50 = vsel %vm5_vm0, %v8857_v46, %v8856_v44  ;;  %v8862_v61 = vld [vmem:[%s20803_s0 + $0x1ba] sm:$0x40]   ;;  %v9441_v32 = vld [vmem:[%s20803_s0 + $0x5d2] sm:$0x40]  }
  0xf1   :  { %v9393_v55 = vld [vmem:[%s20803_s0 + $0x338] sm:$0x2]   ;;  %2184 = vrot.lane.b32.xlu1 %v2183_v9, %s11141_s19  ;;  %v8850_v3 = vld [vmem:[%s20803_s0 + $0x3e] sm:$0x4]   ;;  %v9442_v36 = vld [vmem:[%s20803_s0 + $0x5f1] sm:$0x80]  }
  0xf2   :  { %v9394_v56 = vld [vmem:[%s20803_s0 + $0x357] sm:$0x4]   ;;  %v2128_v62 = vsel %vm5_vm0, %v9393_v55, %v9392_v51  ;;  %v8858_v51 = vld [vmem:[%s20803_s0 + $0x13e] sm:$0x4]   ;;  %v2252_v55 = vsel %vm29_vm6, %v9424_v22, %v2248_v48  ;;  %v9436_v22 = vld [vmem:[%s20803_s0 + $0x537] sm:$0x2]  }
  0xf3   :  { %v9395_v58 = vld [vmem:[%s20803_s0 + $0x376] sm:$0x8]   ;;  %v2132_v4 = vsel %vm9_vm1, %v9394_v56, %v2128_v62  ;;  %v2210_v56 = vsel %vm21_vm4, %v9414_v38, %v2206_v49  ;;  %v8863_v62 = vld [vmem:[%s20803_s0 + $0x1d9] sm:$0x80]   ;;  %v2298_v29 = vsel %vm5_vm0, %v9436_v22, %v9435_v18  ;;  %v9426_v38 = vld [vmem:[%s20803_s0 + $0x118] sm:$0x1]  }
  0xf4   :  { %v9396_v63 = vld [vmem:[%s20803_s0 + $0x395] sm:$0x10]   ;;  %v2136_v10 = vsel %vm13_vm2, %v9395_v58, %v2132_v4  ;;  %v42_v58 = vsel %vm9_vm1, %v8858_v51, %v38_v50  ;;  %v13064_v4 = vpop.permute.xlu0 %708   ;;  %v2302_v35 = vsel %vm9_vm1, %v9437_v23, %v2298_v29  ;;  %v9428_v44 = vld [vmem:[%s20803_s0 + $0x156] sm:$0x4]   ;;  %v8884_v18 = vld [vmem:[%s20803_s0 + $0x41f] sm:$0x2]  }
  0xf5   :  { %v9397_v0 = vld [vmem:[%s20803_s0 + $0x3b4] sm:$0x20]   ;;  %v2140_v15 = vsel %vm17_vm3, %v9396_v63, %v2136_v10  ;;  %2253 = vrot.lane.b32.xlu1 %v2252_v55, %s11142_s7  ;;  %v2214_v63 = vsel %vm25_vm5, %v9415_v39, %v2210_v56  ;;  %v8851_v10 = vld [vmem:[%s20803_s0 + $0x5d] sm:$0x8]   ;;  %v9427_v39 = vld [vmem:[%s20803_s0 + $0x137] sm:$0x2]   ;;  %v2306_v42 = vsel %vm13_vm2, %v9438_v26, %v2302_v35 }
  0xf6   :  { %v9398_v1 = vld [vmem:[%s20803_s0 + $0x3d3] sm:$0x40]   ;;  %v2144_v20 = vsel %vm21_vm4, %v9397_v0, %v2140_v15  ;;  %v46_v0 = vsel %vm13_vm2, %v8859_v52, %v42_v58  ;;  %v2263_v43 = vsel %vm5_vm0, %v9427_v39, %v9426_v38  ;;  %v9429_v46 = vld [vmem:[%s20803_s0 + $0x175] sm:$0x8]   ;;  %v2310_v50 = vsel %vm17_vm3, %v9439_v30, %v2306_v42  ;;  %v8889_v29 = vld [vmem:[%s20803_s0 + $0x4ba] sm:$0x40]  }
  0xf7   :  { %v9399_v6 = vld [vmem:[%s20803_s0 + $0x3f2] sm:$0x80]   ;;  %v2148_v27 = vsel %vm25_vm5, %v9398_v1, %v2144_v20  ;;  %v2_v1 = vld [vmem:[%s20803_s0] sm:$0x1]   ;;  %v50_v7 = vsel %vm17_vm3, %v8860_v54, %v46_v0  ;;  %v9430_v48 = vld [vmem:[%s20803_s0 + $0x194] sm:$0x10]   ;;  %v2267_v51 = vsel %vm9_vm1, %v9428_v44, %v2263_v43  ;;  %v2314_v56 = vsel %vm21_vm4, %v9440_v31, %v2310_v50 }
  0xf8   :  { %v2152_v34 = vsel %vm29_vm6, %v9399_v6, %v2148_v27  ;;  %v2218_v6 = vsel %vm29_vm6, %v9416_v40, %v2214_v63  ;;  %v6_v9 = vsel %vm5_vm0, %v8849_v2, %v2_v1  ;;  %v54_v13 = vsel %vm21_vm4, %v8861_v60, %v50_v7  ;;  %v13130_v40 = vpop.permute.xlu0 %778   ;;  %v9431_v52 = vld [vmem:[%s20803_s0 + $0x1b3] sm:$0x20]   ;;  %v8892_v60 = vld [vmem:[%s20803_s0 + $0x500] sm:$0x1]   ;;  %v13176_v63 = vpop.permute.xlu1 %878  }
  0xf9   :  { %2153 = vrot.lane.b32.xlu0 %v2152_v34, %s11141_s19  ;;  %v10_v15 = vsel %vm9_vm1, %v8850_v3, %v6_v9  ;;  %v58_v20 = vsel %vm25_vm5, %v8862_v61, %v54_v13  ;;  %v9432_v54 = vld [vmem:[%s20803_s0 + $0x1d2] sm:$0x40]   ;;  %v2271_v58 = vsel %vm13_vm2, %v9429_v46, %v2267_v51  ;;  %v8893_v61 = vld [vmem:[%s20803_s0 + $0x51f] sm:$0x2]  }
  0xfa   :  { %v14_v21 = vsel %vm13_vm2, %v8851_v10, %v10_v15  ;;  %v62_v27 = vsel %vm29_vm6, %v8863_v62, %v58_v20  ;;  %v9433_v55 = vld [vmem:[%s20803_s0 + $0x1f1] sm:$0x80]   ;;  %v8894_v62 = vld [vmem:[%s20803_s0 + $0x53e] sm:$0x4]   ;;  %v2275_v0 = vsel %vm17_vm3, %v9430_v48, %v2271_v58  ;;  %v170_v1 = vsel %vm5_vm0, %v8893_v61, %v8892_v60 }
  0xfb   :  { %v18_v28 = vsel %vm17_vm3, %v8852_v11, %v14_v21  ;;  %8864 = vst.msk [vmem:[%s20804_s1 + $0x8] sm:$0xff] %vm31_vm7, %v62_v27   ;;  %v8895_v2 = vld [vmem:[%s20803_s0 + $0x55d] sm:$0x8]   ;;  %v2279_v9 = vsel %vm21_vm4, %v9431_v52, %v2275_v0  ;;  %v174_v10 = vsel %vm9_vm1, %v8894_v62, %v170_v1  ;;  %v9454_v35 = vld [vmem:[%s20803_s0 + $0x637] sm:$0x2]  }
  0xfc   :  { %v22_v34 = vsel %vm21_vm4, %v8853_v12, %v18_v28  ;;  %8944 = vst.msk [vmem:[%s20804_s1 + $0x8] sm:$0xff] %vm296_vm8, %v12637_v41   ;;  %v8896_v3 = vld [vmem:[%s20803_s0 + $0x57c] sm:$0x10]   ;;  %v13207_v15 = vpop.permute.xlu0 %844   ;;  %v9455_v42 = vld [vmem:[%s20803_s0 + $0x656] sm:$0x4]  }
  0xfd   :  { %2219 = vrot.lane.b32.xlu0 %v2218_v6, %s11142_s7  ;;  %v26_v41 = vsel %vm25_vm5, %v8854_v16, %v22_v34  ;;  %v8897_v6 = vld [vmem:[%s20803_s0 + $0x59b] sm:$0x20]   ;;  %v2283_v16 = vsel %vm25_vm5, %v9432_v54, %v2279_v9  ;;  %v9453_v34 = vld [vmem:[%s20803_s0 + $0x618] sm:$0x1]   ;;  %9014 = vst.msk [vmem:[%s20804_s1 + $0x8] sm:$0xff] %vm571_vm9, %v13003_v33  }
  0xfe   :  { %v30_v49 = vsel %vm29_vm6, %v8855_v17, %v26_v41  ;;  %v8898_v11 = vld [vmem:[%s20803_s0 + $0x5ba] sm:$0x40]   ;;  %v178_v17 = vsel %vm13_vm2, %v8895_v2, %v174_v10  ;;  %v2287_v22 = vsel %vm29_vm6, %v9433_v55, %v2283_v16  ;;  %v2368_v41 = vsel %vm5_vm0, %v9454_v35, %v9453_v34  ;;  %v9456_v43 = vld [vmem:[%s20803_s0 + $0x675] sm:$0x8]  }
  0xff   :  { %32 = vst.msk [vmem:[%s20804_s1] sm:$0xff] %vm31_vm7, %v30_v49   ;;  %v8899_v12 = vld [vmem:[%s20803_s0 + $0x5d9] sm:$0x80]   ;;  %v182_v23 = vsel %vm17_vm3, %v8896_v3, %v178_v17  ;;  %v9457_v44 = vld [vmem:[%s20803_s0 + $0x694] sm:$0x10]   ;;  %v2372_v49 = vsel %vm9_vm1, %v9455_v42, %v2368_v41 }
 0x100   :  { %297 = vst.msk [vmem:[%s20804_s1] sm:$0xff] %vm296_vm8, %v12663_v53   ;;  %v2318_v53 = vsel %vm25_vm5, %v9441_v32, %v2314_v56  ;;  %v8883_v13 = vld [vmem:[%s20803_s0 + $0x400] sm:$0x1]   ;;  %v186_v30 = vsel %vm21_vm4, %v8897_v6, %v182_v23  ;;  %v9458_v50 = vld [vmem:[%s20803_s0 + $0x6b3] sm:$0x20]   ;;  %v2376_v55 = vsel %vm13_vm2, %v9456_v43, %v2372_v49  ;;  %v13286_v61 = vpop.permute.xlu0 %913  }
 0x101   :  { %v2322_v7 = vsel %vm29_vm6, %v9442_v36, %v2318_v53  ;;  %v8885_v20 = vld [vmem:[%s20803_s0 + $0x43e] sm:$0x4]   ;;  %v137_v26 = vsel %vm5_vm0, %v8884_v18, %v8883_v13  ;;  %2288 = vrot.lane.b32.xlu0 %v2287_v22, %s11142_s7  ;;  %v13245_v36 = vpop.permute.xlu1 %948   ;;  %v190_v38 = vsel %vm25_vm5, %v8898_v11, %v186_v30  ;;  %v9459_v51 = vld [vmem:[%s20803_s0 + $0x6d2] sm:$0x40]   ;;  %v2380_v62 = vsel %vm17_vm3, %v9457_v44, %v2376_v55 }
 0x102   :  { %2323 = vrot.lane.b32.xlu1 %v2322_v7, %s11142_s7  ;;  %v8886_v21 = vld [vmem:[%s20803_s0 + $0x45d] sm:$0x8]   ;;  %v141_v31 = vsel %vm9_vm1, %v8885_v20, %v137_v26  ;;  %v194_v46 = vsel %vm29_vm6, %v8899_v12, %v190_v38  ;;  %v9460_v52 = vld [vmem:[%s20803_s0 + $0x6f1] sm:$0x80]   ;;  %v2384_v6 = vsel %vm21_vm4, %v9458_v50, %v2380_v62  ;;  %572 = vst.msk [vmem:[%s20804_s1] sm:$0xff] %vm571_vm9, %v12931_v59  }
 0x103   :  { %v8887_v27 = vld [vmem:[%s20803_s0 + $0x47c] sm:$0x10]   ;;  %v145_v39 = vsel %vm13_vm2, %v8886_v21, %v141_v31  ;;  %8900 = vst.msk [vmem:[%s20804_s1 + $0x28] sm:$0xff] %vm31_vm7, %v194_v46   ;;  %v9444_v56 = vld [vmem:[%s20803_s0 + $0x218] sm:$0x1]   ;;  %v2388_v13 = vsel %vm25_vm5, %v9459_v51, %v2384_v6 }
 0x104   :  { %v8888_v28 = vld [vmem:[%s20803_s0 + $0x49b] sm:$0x20]   ;;  %v149_v48 = vsel %vm17_vm3, %v8887_v27, %v145_v39  ;;  %v9445_v58 = vld [vmem:[%s20803_s0 + $0x237] sm:$0x2]   ;;  %8953 = vst.msk [vmem:[%s20804_s1 + $0x28] sm:$0xff] %vm296_vm8, %v12702_v8   ;;  %v13363_v34 = vpop.permute.xlu0 %983  }
 0x105   :  { %v8890_v32 = vld [vmem:[%s20803_s0 + $0x4d9] sm:$0x80]   ;;  %v153_v54 = vsel %vm21_vm4, %v8888_v28, %v149_v48  ;;  %v9446_v60 = vld [vmem:[%s20803_s0 + $0x256] sm:$0x4]   ;;  %v2333_v53 = vsel %vm5_vm0, %v9445_v58, %v9444_v56  ;;  %v13317_v12 = vpop.permute.xlu1 %1018   ;;  %v9506_v59 = vld [vmem:[%s20803_s0 + $0x536] sm:$0x2]  }
 0x106   :  { %v157_v8 = vsel %vm25_vm5, %v8889_v29, %v153_v54  ;;  %v9447_v0 = vld [vmem:[%s20803_s0 + $0x275] sm:$0x8]   ;;  %v2337_v7 = vsel %vm9_vm1, %v9446_v60, %v2333_v53  ;;  %v8901_v11 = vld [vmem:[%s20803_s0 + $0x600] sm:$0x1]   ;;  %9023 = vst.msk [vmem:[%s20804_s1 + $0x28] sm:$0xff] %vm571_vm9, %v12966_v14  }
 0x107   :  { %v9448_v1 = vld [vmem:[%s20803_s0 + $0x294] sm:$0x10]   ;;  %v161_v3 = vsel %vm29_vm6, %v8890_v32, %v157_v8  ;;  %v2341_v16 = vsel %vm13_vm2, %v9447_v0, %v2337_v7  ;;  %v8902_v17 = vld [vmem:[%s20803_s0 + $0x61f] sm:$0x2]   ;;  %847 = vst.msk [vmem:[%s20804_s1] sm:$0xff] %vm846_vm10, %v13207_v15   ;;  %9093 = vst.msk [vmem:[%s20804_s1 + $0x28] sm:$0xff] %vm846_vm10, %v13245_v36  }
 0x108   :  { %v9449_v2 = vld [vmem:[%s20803_s0 + $0x2b3] sm:$0x20]   ;;  %8891 = vst.msk [vmem:[%s20804_s1 + $0x20] sm:$0xff] %vm31_vm7, %v161_v3   ;;  %v8903_v18 = vld [vmem:[%s20803_s0 + $0x63e] sm:$0x4]   ;;  %v2345_v21 = vsel %vm17_vm3, %v9448_v1, %v2341_v16  ;;  %v203_v22 = vsel %vm5_vm0, %v8902_v17, %v8901_v11 }
 0x109   :  { %v9450_v9 = vld [vmem:[%s20803_s0 + $0x2d2] sm:$0x40]   ;;  %v8904_v20 = vld [vmem:[%s20803_s0 + $0x65d] sm:$0x8]   ;;  %8935 = vst.msk [vmem:[%s20804_s1 + $0x20] sm:$0xff] %vm296_vm8, %v12739_v25   ;;  %v2392_v25 = vsel %vm29_vm6, %v9460_v52, %v2388_v13  ;;  %v2349_v28 = vsel %vm21_vm4, %v9449_v2, %v2345_v21  ;;  %v207_v29 = vsel %vm9_vm1, %v8903_v18, %v203_v22  ;;  %v13389_v52 = vpop.permute.xlu1 %1084   ;;  %v13427_v13 = vpop.permute.xlu0 %1053  }
 0x10a   :  { %v9451_v10 = vld [vmem:[%s20803_s0 + $0x2f1] sm:$0x80]   ;;  %v8905_v23 = vld [vmem:[%s20803_s0 + $0x67c] sm:$0x10]   ;;  %2393 = vrot.lane.b32.xlu1 %v2392_v25, %s11142_s7  ;;  %v2353_v35 = vsel %vm25_vm5, %v9450_v9, %v2349_v28  ;;  %v211_v38 = vsel %vm13_vm2, %v8904_v20, %v207_v29  ;;  %9005 = vst.msk [vmem:[%s20804_s1 + $0x20] sm:$0xff] %vm571_vm9, %v12905_v45  }
 0x10b   :  { %v8906_v26 = vld [vmem:[%s20803_s0 + $0x69b] sm:$0x20]   ;;  %v2357_v44 = vsel %vm29_vm6, %v9451_v10, %v2353_v35  ;;  %v215_v46 = vsel %vm17_vm3, %v8905_v23, %v211_v38  ;;  %v9471_v56 = vld [vmem:[%s20803_s0 + $0x718] sm:$0x1]   ;;  %v9505_v45 = vld [vmem:[%s20803_s0 + $0x517] sm:$0x1]  }
 0x10c   :  { %v8907_v27 = vld [vmem:[%s20803_s0 + $0x6ba] sm:$0x40]   ;;  %2358 = vrot.lane.b32.xlu0 %v2357_v44, %s11142_s7  ;;  %v219_v54 = vsel %vm21_vm4, %v8906_v26, %v215_v46  ;;  %v9472_v58 = vld [vmem:[%s20803_s0 + $0x737] sm:$0x2]   ;;  %9075 = vst.msk [vmem:[%s20804_s1 + $0x20] sm:$0xff] %vm846_vm10, %v13176_v63  }
 0x10d   :  { %v8908_v30 = vld [vmem:[%s20803_s0 + $0x6d9] sm:$0x80]   ;;  %v9473_v60 = vld [vmem:[%s20803_s0 + $0x756] sm:$0x4]   ;;  %v223_v8 = vsel %vm25_vm5, %v8907_v27, %v219_v54  ;;  %v2438_v53 = vsel %vm5_vm0, %v9472_v58, %v9471_v56  ;;  %v13477_v38 = vpop.permute.xlu1 %1153   ;;  %v9577_v15 = vld [vmem:[%s20803_s0 + $0x554] sm:$0x4]  }
 0x10e   :  { %v8865_v31 = vld [vmem:[%s20803_s0 + $0x200] sm:$0x1]   ;;  %v9474_v0 = vld [vmem:[%s20803_s0 + $0x775] sm:$0x8]   ;;  %v227_v3 = vsel %vm29_vm6, %v8908_v30, %v223_v8  ;;  %v2442_v7 = vsel %vm9_vm1, %v9473_v60, %v2438_v53  ;;  %v13519_v8 = vpop.permute.xlu0 %1119   ;;  %9084 = vst.msk [vmem:[%s20804_s1 + $0x8] sm:$0xff] %vm846_vm10, %v13286_v61  }
 0x10f   :  { %v8866_v32 = vld [vmem:[%s20803_s0 + $0x21f] sm:$0x2]   ;;  %v9475_v1 = vld [vmem:[%s20803_s0 + $0x794] sm:$0x10]   ;;  %8909 = vst.msk [vmem:[%s20804_s1 + $0x30] sm:$0xff] %vm31_vm7, %v227_v3   ;;  %v2446_v17 = vsel %vm13_vm2, %v9474_v0, %v2442_v7 }
 0x110   :  { %v71_v39 = vsel %vm5_vm0, %v8866_v32, %v8865_v31  ;;  %v8867_v41 = vld [vmem:[%s20803_s0 + $0x23e] sm:$0x4]   ;;  %v9476_v2 = vld [vmem:[%s20803_s0 + $0x7b3] sm:$0x20]   ;;  %8971 = vst.msk [vmem:[%s20804_s1 + $0x30] sm:$0xff] %vm296_vm8, %v12765_v37   ;;  %v2450_v22 = vsel %vm17_vm3, %v9475_v1, %v2446_v17 }
 0x111   :  { %v8868_v42 = vld [vmem:[%s20803_s0 + $0x25d] sm:$0x8]   ;;  %v75_v48 = vsel %vm9_vm1, %v8867_v41, %v71_v39  ;;  %v9477_v9 = vld [vmem:[%s20803_s0 + $0x7d2] sm:$0x40]   ;;  %v2454_v29 = vsel %vm21_vm4, %v9476_v2, %v2450_v22  ;;  %9041 = vst.msk [vmem:[%s20804_s1 + $0x30] sm:$0xff] %vm571_vm9, %v13026_v47   ;;  %v2573_v47 = vsel %vm5_vm0, %v9506_v59, %v9505_v45 }
 0x112   :  { %v8869_v43 = vld [vmem:[%s20803_s0 + $0x27c] sm:$0x10]   ;;  %v79_v55 = vsel %vm13_vm2, %v8868_v42, %v75_v48  ;;  %v9462_v10 = vld [vmem:[%s20803_s0 + $0x318] sm:$0x1]   ;;  %9111 = vst.msk [vmem:[%s20804_s1 + $0x30] sm:$0xff] %vm846_vm10, %v13317_v12  }
 0x113   :  { %v8870_v49 = vld [vmem:[%s20803_s0 + $0x29b] sm:$0x20]   ;;  %v83_v62 = vsel %vm17_vm3, %v8869_v43, %v79_v55  ;;  %v9463_v11 = vld [vmem:[%s20803_s0 + $0x337] sm:$0x2]   ;;  %9145 = vst.msk [vmem:[%s20804_s1 + $0x20] sm:$0xff] %vm1121_vm11, %v13477_v38   ;;  %1122 = vst.msk [vmem:[%s20804_s1] sm:$0xff] %vm1121_vm11, %v13519_v8  }
 0x114   :  { %v8871_v50 = vld [vmem:[%s20803_s0 + $0x2ba] sm:$0x40]   ;;  %v87_v6 = vsel %vm21_vm4, %v8870_v49, %v83_v62  ;;  %v2403_v18 = vsel %vm5_vm0, %v9463_v11, %v9462_v10  ;;  %v9464_v20 = vld [vmem:[%s20803_s0 + $0x356] sm:$0x4]   ;;  %v9487_v10 = vld [vmem:[%s20803_s0 + $0x417] sm:$0x1]  }
 0x115   :  { %v8872_v51 = vld [vmem:[%s20803_s0 + $0x2d9] sm:$0x80]   ;;  %v91_v16 = vsel %vm25_vm5, %v8871_v50, %v87_v6  ;;  %v9465_v25 = vld [vmem:[%s20803_s0 + $0x375] sm:$0x8]   ;;  %v2407_v23 = vsel %vm9_vm1, %v9464_v20, %v2403_v18  ;;  %v9488_v11 = vld [vmem:[%s20803_s0 + $0x436] sm:$0x2]  }
 0x116   :  { %v9466_v21 = vld [vmem:[%s20803_s0 + $0x394] sm:$0x10]   ;;  %v95_v37 = vsel %vm29_vm6, %v8872_v51, %v91_v16  ;;  %v2411_v30 = vsel %vm13_vm2, %v9465_v25, %v2407_v23  ;;  %v8910_v31 = vld [vmem:[%s20803_s0 + $0x700] sm:$0x1]   ;;  %v13545_v16 = vpop.permute.xlu1 %1223   ;;  %v2503_v20 = vsel %vm5_vm0, %v9488_v11, %v9487_v10  ;;  %v9489_v25 = vld [vmem:[%s20803_s0 + $0x455] sm:$0x4]  }
 0x117   :  { %v9467_v26 = vld [vmem:[%s20803_s0 + $0x3b3] sm:$0x20]   ;;  %8873 = vst.msk [vmem:[%s20804_s1 + $0x10] sm:$0xff] %vm31_vm7, %v95_v37   ;;  %v8911_v32 = vld [vmem:[%s20803_s0 + $0x71f] sm:$0x2]   ;;  %v2415_v39 = vsel %vm17_vm3, %v9466_v21, %v2411_v30 }
 0x118   :  { %v9468_v27 = vld [vmem:[%s20803_s0 + $0x3d2] sm:$0x40]   ;;  %v8912_v35 = vld [vmem:[%s20803_s0 + $0x73e] sm:$0x4]   ;;  %8962 = vst.msk [vmem:[%s20804_s1 + $0x10] sm:$0xff] %vm296_vm8, %v12803_v57   ;;  %v2458_v57 = vsel %vm25_vm5, %v9477_v9, %v2454_v29  ;;  %v236_v41 = vsel %vm5_vm0, %v8911_v32, %v8910_v31  ;;  %v2419_v46 = vsel %vm21_vm4, %v9467_v26, %v2415_v39  ;;  %v2507_v26 = vsel %vm9_vm1, %v9489_v25, %v2503_v20  ;;  %v13586_v39 = vpop.permute.xlu0 %1188  }
 0x119   :  { %v9469_v28 = vld [vmem:[%s20803_s0 + $0x3f1] sm:$0x80]   ;;  %v8913_v42 = vld [vmem:[%s20803_s0 + $0x75d] sm:$0x8]   ;;  %2459 = vrot.lane.b32.xlu1 %v2458_v57, %s11142_s7  ;;  %v240_v48 = vsel %vm9_vm1, %v8912_v35, %v236_v41  ;;  %v2423_v54 = vsel %vm25_vm5, %v9468_v27, %v2419_v46  ;;  %v9490_v21 = vld [vmem:[%s20803_s0 + $0x474] sm:$0x8]  }
 0x11a   :  { %v8914_v43 = vld [vmem:[%s20803_s0 + $0x77c] sm:$0x10]   ;;  %v244_v55 = vsel %vm13_vm2, %v8913_v42, %v240_v48  ;;  %v2427_v62 = vsel %vm29_vm6, %v9469_v28, %v2423_v54  ;;  %v9491_v37 = vld [vmem:[%s20803_s0 + $0x493] sm:$0x10]   ;;  %v2511_v31 = vsel %vm13_vm2, %v9490_v21, %v2507_v26  ;;  %9032 = vst.msk [vmem:[%s20804_s1 + $0x10] sm:$0xff] %vm571_vm9, %v13064_v4   ;;  %v13664_v14 = vpop.permute.xlu1 %1293  }
 0x11b   :  { %v8915_v44 = vld [vmem:[%s20803_s0 + $0x79b] sm:$0x20]   ;;  %v248_v53 = vsel %vm17_vm3, %v8914_v43, %v244_v55  ;;  %2428 = vrot.lane.b32.xlu0 %v2427_v62, %s11142_s7  ;;  %v9492_v27 = vld [vmem:[%s20803_s0 + $0x4b2] sm:$0x20]   ;;  %v2515_v41 = vsel %vm17_vm3, %v9491_v37, %v2511_v31  ;;  %9102 = vst.msk [vmem:[%s20804_s1 + $0x10] sm:$0xff] %vm846_vm10, %v13363_v34   ;;  %s11163_s7 = smov 12  }
 0x11c   :  { %v8916_v49 = vld [vmem:[%s20803_s0 + $0x7ba] sm:$0x40]   ;;  %v252_v6 = vsel %vm21_vm4, %v8915_v44, %v248_v53  ;;  %v9493_v28 = vld [vmem:[%s20803_s0 + $0x4d1] sm:$0x40]   ;;  %v9580_v34 = vld [vmem:[%s20803_s0 + $0x5b1] sm:$0x20]  }
 0x11d   :  { %v8917_v50 = vld [vmem:[%s20803_s0 + $0x7d9] sm:$0x80]   ;;  %v256_v17 = vsel %vm25_vm5, %v8916_v49, %v252_v6  ;;  %v9494_v29 = vld [vmem:[%s20803_s0 + $0x4f0] sm:$0x80]   ;;  %v2519_v49 = vsel %vm21_vm4, %v9492_v27, %v2515_v41  ;;  %v9646_v38 = vld [vmem:[%s20803_s0 + $0x534] sm:$0x2]  }
 0x11e   :  { %v8874_v51 = vld [vmem:[%s20803_s0 + $0x300] sm:$0x1]   ;;  %v260_v22 = vsel %vm29_vm6, %v8917_v50, %v256_v17  ;;  %v9479_v32 = vld [vmem:[%s20803_s0 + $0x17] sm:$0x1]   ;;  %v2523_v55 = vsel %vm25_vm5, %v9493_v28, %v2519_v49  ;;  %v13725_v37 = vpop.permute.xlu1 %1359   ;;  %v9647_v8 = vld [vmem:[%s20803_s0 + $0x553] sm:$0x4]  }
 0x11f   :  { %v8875_v56 = vld [vmem:[%s20803_s0 + $0x31f] sm:$0x2]   ;;  %8918 = vst.msk [vmem:[%s20804_s1 + $0x38] sm:$0xff] %vm31_vm7, %v260_v22   ;;  %v9480_v35 = vld [vmem:[%s20803_s0 + $0x36] sm:$0x2]  }
 0x120   :  { %v8876_v58 = vld [vmem:[%s20803_s0 + $0x33e] sm:$0x4]   ;;  %v104_v0 = vsel %vm5_vm0, %v8875_v56, %v8874_v51  ;;  %v9481_v57 = vld [vmem:[%s20803_s0 + $0x55] sm:$0x4]   ;;  %8988 = vst.msk [vmem:[%s20804_s1 + $0x38] sm:$0x7f] %vm296_vm8, %v12829_v5   ;;  %v2469_v42 = vsel %vm5_vm0, %v9480_v35, %v9479_v32 }
 0x121   :  { %v8877_v60 = vld [vmem:[%s20803_s0 + $0x35d] sm:$0x8]   ;;  %v108_v7 = vsel %vm9_vm1, %v8876_v58, %v104_v0  ;;  %v9482_v43 = vld [vmem:[%s20803_s0 + $0x74] sm:$0x8]   ;;  %v2473_v50 = vsel %vm9_vm1, %v9481_v57, %v2469_v42  ;;  %9058 = vst.msk [vmem:[%s20804_s1 + $0x38] sm:$0x7f] %vm571_vm9, %v13090_v19  }
 0x122   :  { %v8878_v1 = vld [vmem:[%s20803_s0 + $0x37c] sm:$0x10]   ;;  %v112_v18 = vsel %vm13_vm2, %v8877_v60, %v108_v7  ;;  %v9483_v44 = vld [vmem:[%s20803_s0 + $0x93] sm:$0x10]   ;;  %v2477_v56 = vsel %vm13_vm2, %v9482_v43, %v2473_v50  ;;  %9128 = vst.msk [vmem:[%s20804_s1 + $0x38] sm:$0x7f] %vm846_vm10, %v13389_v52  }
 0x123   :  { %v8879_v2 = vld [vmem:[%s20803_s0 + $0x39b] sm:$0x20]   ;;  %v116_v23 = vsel %vm17_vm3, %v8878_v1, %v112_v18  ;;  %v9484_v46 = vld [vmem:[%s20803_s0 + $0xb2] sm:$0x20]   ;;  %v2481_v33 = vsel %vm17_vm3, %v9483_v44, %v2477_v56  ;;  %v9581_v52 = vld [vmem:[%s20803_s0 + $0x5d0] sm:$0x40]  }
 0x124   :  { %v8880_v3 = vld [vmem:[%s20803_s0 + $0x3ba] sm:$0x40]   ;;  %v120_v30 = vsel %vm21_vm4, %v8879_v2, %v116_v23  ;;  %v9485_v51 = vld [vmem:[%s20803_s0 + $0xd1] sm:$0x40]   ;;  %v2485_v62 = vsel %vm21_vm4, %v9484_v46, %v2481_v33  ;;  %9163 = vst.msk [vmem:[%s20804_s1 + $0x28] sm:$0xff] %vm1121_vm11, %v13545_v16   ;;  %9154 = vst.msk [vmem:[%s20804_s1 + $0x8] sm:$0xff] %vm1121_vm11, %v13586_v39  }
 0x125   :  { %v8881_v9 = vld [vmem:[%s20803_s0 + $0x3d9] sm:$0x80]   ;;  %v124_v5 = vsel %vm25_vm5, %v8880_v3, %v120_v30  ;;  %v9486_v54 = vld [vmem:[%s20803_s0 + $0xf0] sm:$0x80]   ;;  %v2489_v3 = vsel %vm25_vm5, %v9485_v51, %v2485_v62  ;;  %9181 = vst.msk [vmem:[%s20804_s1 + $0x30] sm:$0xff] %vm1121_vm11, %v13664_v14  }
 0x126   :  { %v128_v48 = vsel %vm29_vm6, %v8881_v9, %v124_v5  ;;  %v9507_v58 = vld [vmem:[%s20803_s0 + $0x555] sm:$0x4]   ;;  %v2493_v11 = vsel %vm29_vm6, %v9486_v54, %v2489_v3  ;;  %9198 = vst.msk [vmem:[%s20804_s1 + $0x38] sm:$0x7f] %vm1121_vm11, %v13725_v37   ;;  %v9650_v37 = vld [vmem:[%s20803_s0 + $0x5b0] sm:$0x20]  }
 0x127   :  { %8882 = vst.msk [vmem:[%s20804_s1 + $0x18] sm:$0xff] %vm31_vm7, %v128_v48   ;;  %v9508_v4 = vld [vmem:[%s20803_s0 + $0x574] sm:$0x8]   ;;  %v2577_v53 = vsel %vm9_vm1, %v9507_v58, %v2573_v47  ;;  %2494 = vrot.lane.b32.xlu0 %v2493_v11, %s11143_s25  ;;  %vm2496_vm7 = vcmask 786144  }
 0x128   :  { %8980 = vst.msk [vmem:[%s20804_s1 + $0x18] sm:$0xff] %vm296_vm8, %v12867_v24   ;;  %v2527_v24 = vsel %vm29_vm6, %v9494_v29, %v2523_v55  ;;  %v9509_v19 = vld [vmem:[%s20803_s0 + $0x593] sm:$0x10]   ;;  %v2581_v6 = vsel %vm13_vm2, %v9508_v4, %v2577_v53  ;;  %vm2771_vm8 = vcmask 753344  }
 0x129   :  { %v9510_v60 = vld [vmem:[%s20803_s0 + $0x5b2] sm:$0x20]   ;;  %2528 = vrot.lane.b32.xlu1 %v2527_v24, %s11143_s25  ;;  %9050 = vst.msk [vmem:[%s20804_s1 + $0x18] sm:$0xff] %vm571_vm9, %v13130_v40   ;;  %v13700_v40 = vpop.permute.xlu0 %1258   ;;  %v2585_v17 = vsel %vm17_vm3, %v9509_v19, %v2581_v6  ;;  %vm3046_vm9 = vcmask 720544  }
 0x12a   :  { %v9511_v0 = vld [vmem:[%s20803_s0 + $0x5d1] sm:$0x40]   ;;  %v2589_v22 = vsel %vm21_vm4, %v9510_v60, %v2585_v17  ;;  %9120 = vst.msk [vmem:[%s20804_s1 + $0x18] sm:$0xff] %vm846_vm10, %v13427_v13   ;;  %v9582_v13 = vld [vmem:[%s20803_s0 + $0x5ef] sm:$0x80]   ;;  %vm3321_vm10 = vcmask 687744  }
 0x12b   :  { %v9512_v1 = vld [vmem:[%s20803_s0 + $0x5f0] sm:$0x80]   ;;  %v2593_v29 = vsel %vm25_vm5, %v9511_v0, %v2589_v22  ;;  %v13801_v0 = vpop.permute.xlu1 %1428   ;;  %9172 = vst.msk [vmem:[%s20804_s1 + $0x10] sm:$0xff] %vm1121_vm11, %v13700_v40   ;;  %v9649_v40 = vld [vmem:[%s20803_s0 + $0x591] sm:$0x10]  }
 0x12c   :  { %v9496_v2 = vld [vmem:[%s20803_s0 + $0x117] sm:$0x1]   ;;  %v2597_v5 = vsel %vm29_vm6, %v9512_v1, %v2593_v29  ;;  %9215 = vst.msk [vmem:[%s20804_s1 + $0x20] sm:$0xff] %vm1396_vm12, %v13801_v0   ;;  %v9715_v0 = vld [vmem:[%s20803_s0 + $0x514] sm:$0x1]  }
 0x12d   :  { %v9497_v7 = vld [vmem:[%s20803_s0 + $0x136] sm:$0x2]   ;;  %v13763_v48 = vpop.permute.xlu0 %1328   ;;  %2598 = vrot.lane.b32.xlu1 %v2597_v5, %s11143_s25 }
 0x12e   :  { %v9498_v9 = vld [vmem:[%s20803_s0 + $0x155] sm:$0x4]   ;;  %v2538_v18 = vsel %vm5_vm0, %v9497_v7, %v9496_v2  ;;  %9190 = vst.msk [vmem:[%s20804_s1 + $0x18] sm:$0xff] %vm1121_vm11, %v13763_v48   ;;  %v9651_v48 = vld [vmem:[%s20803_s0 + $0x5cf] sm:$0x40]   ;;  %vm3596_vm11 = vcmask 654944  }
 0x12f   :  { %v9499_v10 = vld [vmem:[%s20803_s0 + $0x174] sm:$0x8]   ;;  %v2542_v23 = vsel %vm9_vm1, %v9498_v9, %v2538_v18 }
 0x130   :  { %v9500_v20 = vld [vmem:[%s20803_s0 + $0x193] sm:$0x10]   ;;  %v2546_v30 = vsel %vm13_vm2, %v9499_v10, %v2542_v23 }
 0x131   :  { %v9501_v25 = vld [vmem:[%s20803_s0 + $0x1b2] sm:$0x20]   ;;  %v2550_v41 = vsel %vm17_vm3, %v9500_v20, %v2546_v30 }
 0x132   :  { %v9502_v21 = vld [vmem:[%s20803_s0 + $0x1d1] sm:$0x40]   ;;  %v2554_v49 = vsel %vm21_vm4, %v9501_v25, %v2550_v41 }
 0x133   :  { %v9503_v26 = vld [vmem:[%s20803_s0 + $0x1f0] sm:$0x80]   ;;  %v2558_v56 = vsel %vm25_vm5, %v9502_v21, %v2554_v49 }
 0x134   :  { %v9523_v27 = vld [vmem:[%s20803_s0 + $0x617] sm:$0x1]   ;;  %v2562_v47 = vsel %vm29_vm6, %v9503_v26, %v2558_v56 }
 0x135   :  { %v9524_v28 = vld [vmem:[%s20803_s0 + $0x636] sm:$0x2]   ;;  %2563 = vrot.lane.b32.xlu0 %v2562_v47, %s11143_s25 }
 0x136   :  { %v2643_v31 = vsel %vm5_vm0, %v9524_v28, %v9523_v27  ;;  %v9525_v32 = vld [vmem:[%s20803_s0 + $0x655] sm:$0x4]   ;;  %v13839_v27 = vpop.permute.xlu0 %1394  }
 0x137   :  { %v9526_v35 = vld [vmem:[%s20803_s0 + $0x674] sm:$0x8]   ;;  %v2647_v42 = vsel %vm9_vm1, %v9525_v32, %v2643_v31  ;;  %1397 = vst.msk [vmem:[%s20804_s1] sm:$0xff] %vm1396_vm12, %v13839_v27   ;;  %v9716_v27 = vld [vmem:[%s20803_s0 + $0x533] sm:$0x2]  }
 0x138   :  { %v9527_v57 = vld [vmem:[%s20803_s0 + $0x693] sm:$0x10]   ;;  %v2651_v50 = vsel %vm13_vm2, %v9526_v35, %v2647_v42 }
 0x139   :  { %v9528_v43 = vld [vmem:[%s20803_s0 + $0x6b2] sm:$0x20]   ;;  %v2655_v45 = vsel %vm17_vm3, %v9527_v57, %v2651_v50 }
 0x13a   :  { %v9529_v44 = vld [vmem:[%s20803_s0 + $0x6d1] sm:$0x40]   ;;  %v2659_v4 = vsel %vm21_vm4, %v9528_v43, %v2655_v45 }
 0x13b   :  { %v9530_v46 = vld [vmem:[%s20803_s0 + $0x6f0] sm:$0x80]   ;;  %v2663_v1 = vsel %vm25_vm5, %v9529_v44, %v2659_v4  ;;  %v9557_v44 = vld [vmem:[%s20803_s0 + $0x416] sm:$0x1]  }
 0x13c   :  { %v9514_v51 = vld [vmem:[%s20803_s0 + $0x217] sm:$0x1]   ;;  %v2667_v9 = vsel %vm29_vm6, %v9530_v46, %v2663_v1  ;;  %v13865_v46 = vpop.permute.xlu1 %1498  }
 0x13d   :  { %v9515_v54 = vld [vmem:[%s20803_s0 + $0x236] sm:$0x2]   ;;  %2668 = vrot.lane.b32.xlu1 %v2667_v9, %s11143_s25  ;;  %v9553_v9 = vld [vmem:[%s20803_s0 + $0x92] sm:$0x10]   ;;  %9233 = vst.msk [vmem:[%s20804_s1 + $0x28] sm:$0xff] %vm1396_vm12, %v13865_v46  }
 0x13e   :  { %v9516_v55 = vld [vmem:[%s20803_s0 + $0x255] sm:$0x4]   ;;  %v2608_v59 = vsel %vm5_vm0, %v9515_v54, %v9514_v51  ;;  %v9558_v51 = vld [vmem:[%s20803_s0 + $0x435] sm:$0x2]  }
 0x13f   :  { %v9517_v58 = vld [vmem:[%s20803_s0 + $0x274] sm:$0x8]   ;;  %v2612_v19 = vsel %vm9_vm1, %v9516_v55, %v2608_v59  ;;  %v9559_v54 = vld [vmem:[%s20803_s0 + $0x454] sm:$0x4]   ;;  %v2778_v59 = vsel %vm5_vm0, %v9558_v51, %v9557_v44 }
 0x140   :  { %v9518_v24 = vld [vmem:[%s20803_s0 + $0x293] sm:$0x10]   ;;  %v2616_v2 = vsel %vm13_vm2, %v9517_v58, %v2612_v19  ;;  %v9560_v55 = vld [vmem:[%s20803_s0 + $0x473] sm:$0x8]   ;;  %v2782_v4 = vsel %vm9_vm1, %v9559_v54, %v2778_v59 }
 0x141   :  { %v9519_v33 = vld [vmem:[%s20803_s0 + $0x2b2] sm:$0x20]   ;;  %v2620_v10 = vsel %vm17_vm3, %v9518_v24, %v2616_v2  ;;  %v9561_v58 = vld [vmem:[%s20803_s0 + $0x492] sm:$0x10]   ;;  %v2786_v2 = vsel %vm13_vm2, %v9560_v55, %v2782_v4 }
 0x142   :  { %v9520_v60 = vld [vmem:[%s20803_s0 + $0x2d1] sm:$0x40]   ;;  %v2624_v25 = vsel %vm21_vm4, %v9519_v33, %v2620_v10  ;;  %v9562_v24 = vld [vmem:[%s20803_s0 + $0x4b1] sm:$0x20]  }
 0x143   :  { %v9521_v62 = vld [vmem:[%s20803_s0 + $0x2f0] sm:$0x80]   ;;  %v2628_v28 = vsel %vm25_vm5, %v9520_v60, %v2624_v25  ;;  %v9563_v33 = vld [vmem:[%s20803_s0 + $0x4d0] sm:$0x40]  }
 0x144   :  { %v9541_v53 = vld [vmem:[%s20803_s0 + $0x717] sm:$0x1]   ;;  %v2632_v57 = vsel %vm29_vm6, %v9521_v62, %v2628_v28  ;;  %v9564_v19 = vld [vmem:[%s20803_s0 + $0x4ef] sm:$0x80]   ;;  %v13938_v28 = vpop.permute.xlu1 %1568  }
 0x145   :  { %v9542_v3 = vld [vmem:[%s20803_s0 + $0x736] sm:$0x2]   ;;  %2633 = vrot.lane.b32.xlu0 %v2632_v57, %s11143_s25  ;;  %v9549_v60 = vld [vmem:[%s20803_s0 + $0x16] sm:$0x1]   ;;  %9251 = vst.msk [vmem:[%s20804_s1 + $0x30] sm:$0xff] %vm1396_vm12, %v13938_v28   ;;  %v3398_v28 = vsel %vm5_vm0, %v9716_v27, %v9715_v0 }
 0x146   :  { %v9543_v6 = vld [vmem:[%s20803_s0 + $0x755] sm:$0x4]   ;;  %v2713_v11 = vsel %vm5_vm0, %v9542_v3, %v9541_v53  ;;  %v9550_v62 = vld [vmem:[%s20803_s0 + $0x35] sm:$0x2]   ;;  %v13903_v53 = vpop.permute.xlu0 %1463  }
 0x147   :  { %v9544_v7 = vld [vmem:[%s20803_s0 + $0x774] sm:$0x8]   ;;  %v2717_v21 = vsel %vm9_vm1, %v9543_v6, %v2713_v11  ;;  %v2744_v3 = vsel %vm5_vm0, %v9550_v62, %v9549_v60  ;;  %v9551_v6 = vld [vmem:[%s20803_s0 + $0x54] sm:$0x4]   ;;  %v2790_v11 = vsel %vm17_vm3, %v9561_v58, %v2786_v2  ;;  %9224 = vst.msk [vmem:[%s20804_s1 + $0x8] sm:$0xff] %vm1396_vm12, %v13903_v53  }
 0x148   :  { %v9545_v17 = vld [vmem:[%s20803_s0 + $0x793] sm:$0x10]   ;;  %v2721_v29 = vsel %vm13_vm2, %v9544_v7, %v2717_v21  ;;  %v9552_v7 = vld [vmem:[%s20803_s0 + $0x73] sm:$0x8]   ;;  %v2794_v21 = vsel %vm21_vm4, %v9562_v24, %v2790_v11 }
 0x149   :  { %v9546_v18 = vld [vmem:[%s20803_s0 + $0x7b2] sm:$0x20]   ;;  %v2725_v5 = vsel %vm17_vm3, %v9545_v17, %v2721_v29  ;;  %v2748_v17 = vsel %vm9_vm1, %v9551_v6, %v2744_v3  ;;  %v9556_v25 = vld [vmem:[%s20803_s0 + $0xef] sm:$0x80]   ;;  %v2798_v29 = vsel %vm25_vm5, %v9563_v33, %v2794_v21 }
 0x14a   :  { %v9547_v20 = vld [vmem:[%s20803_s0 + $0x7d1] sm:$0x40]   ;;  %v2729_v49 = vsel %vm21_vm4, %v9546_v18, %v2725_v5  ;;  %v9554_v18 = vld [vmem:[%s20803_s0 + $0xb1] sm:$0x20]   ;;  %v2802_v36 = vsel %vm29_vm6, %v9564_v19, %v2798_v29 }
 0x14b   :  { %v9532_v22 = vld [vmem:[%s20803_s0 + $0x317] sm:$0x1]   ;;  %v2733_v56 = vsel %vm25_vm5, %v9547_v20, %v2729_v49  ;;  %v9555_v20 = vld [vmem:[%s20803_s0 + $0xd0] sm:$0x40]  }
 0x14c   :  { %v9533_v23 = vld [vmem:[%s20803_s0 + $0x336] sm:$0x2]   ;;  %2734 = vrot.lane.b32.xlu1 %v2733_v56, %s11143_s25  ;;  %v9569_v51 = vld [vmem:[%s20803_s0 + $0x173] sm:$0x8]   ;;  %v14030_v56 = vpop.permute.xlu1 %1634  }
 0x14d   :  { %v9534_v26 = vld [vmem:[%s20803_s0 + $0x355] sm:$0x4]   ;;  %v2678_v30 = vsel %vm5_vm0, %v9533_v23, %v9532_v22  ;;  %v2752_v22 = vsel %vm13_vm2, %v9552_v7, %v2748_v17  ;;  %v9575_v23 = vld [vmem:[%s20803_s0 + $0x516] sm:$0x1]   ;;  %9268 = vst.msk [vmem:[%s20804_s1 + $0x38] sm:$0x7f] %vm1396_vm12, %v14030_v56  }
 0x14e   :  { %v9535_v31 = vld [vmem:[%s20803_s0 + $0x374] sm:$0x8]   ;;  %v2682_v41 = vsel %vm9_vm1, %v9534_v26, %v2678_v30  ;;  %v9576_v26 = vld [vmem:[%s20803_s0 + $0x535] sm:$0x2]   ;;  %v2756_v30 = vsel %vm17_vm3, %v9553_v9, %v2752_v22  ;;  %v9719_v56 = vld [vmem:[%s20803_s0 + $0x590] sm:$0x10]  }
 0x14f   :  { %v9536_v32 = vld [vmem:[%s20803_s0 + $0x393] sm:$0x10]   ;;  %v2686_v50 = vsel %vm13_vm2, %v9535_v31, %v2682_v41  ;;  %v2848_v63 = vsel %vm5_vm0, %v9576_v26, %v9575_v23  ;;  %v9578_v31 = vld [vmem:[%s20803_s0 + $0x573] sm:$0x8]   ;;  %v2760_v61 = vsel %vm21_vm4, %v9554_v18, %v2756_v30 }
 0x150   :  { %v9537_v35 = vld [vmem:[%s20803_s0 + $0x3b2] sm:$0x20]   ;;  %v2690_v45 = vsel %vm17_vm3, %v9536_v32, %v2686_v50  ;;  %v9579_v32 = vld [vmem:[%s20803_s0 + $0x592] sm:$0x10]   ;;  %v2852_v12 = vsel %vm9_vm1, %v9577_v15, %v2848_v63  ;;  %2803 = vrot.lane.b32.xlu1 %v2802_v36, %s11144_s28  ;;  %v2764_v57 = vsel %vm25_vm5, %v9555_v20, %v2760_v61 }
 0x151   :  { %v9538_v42 = vld [vmem:[%s20803_s0 + $0x3d1] sm:$0x40]   ;;  %v2694_v47 = vsel %vm21_vm4, %v9537_v35, %v2690_v45  ;;  %v14004_v35 = vpop.permute.xlu0 %1533   ;;  %v2856_v5 = vsel %vm13_vm2, %v9578_v31, %v2852_v12  ;;  %v9566_v41 = vld [vmem:[%s20803_s0 + $0x116] sm:$0x1]   ;;  %v2768_v44 = vsel %vm29_vm6, %v9556_v25, %v2764_v57  ;;  %v14105_v12 = vpop.permute.xlu1 %1703  }
 0x152   :  { %v9539_v43 = vld [vmem:[%s20803_s0 + $0x3f0] sm:$0x80]   ;;  %v2698_v1 = vsel %vm25_vm5, %v9538_v42, %v2694_v47  ;;  %v9567_v42 = vld [vmem:[%s20803_s0 + $0x135] sm:$0x2]   ;;  %v2860_v49 = vsel %vm17_vm3, %v9579_v32, %v2856_v5  ;;  %9242 = vst.msk [vmem:[%s20804_s1 + $0x10] sm:$0xff] %vm1396_vm12, %v14004_v35  }
 0x153   :  { %v2702_v10 = vsel %vm29_vm6, %v9539_v43, %v2698_v1  ;;  %v9568_v43 = vld [vmem:[%s20803_s0 + $0x154] sm:$0x4]   ;;  %v2813_v50 = vsel %vm5_vm0, %v9567_v42, %v9566_v41  ;;  %v2864_v45 = vsel %vm21_vm4, %v9580_v34, %v2860_v49  ;;  %v9718_v35 = vld [vmem:[%s20803_s0 + $0x571] sm:$0x8]   ;;  %9285 = vst.msk [vmem:[%s20804_s1 + $0x20] sm:$0xff] %vm1671_vm13, %v14105_v12  }
 0x154   :  { %2703 = vrot.lane.b32.xlu0 %v2702_v10, %s11143_s25  ;;  %v9570_v54 = vld [vmem:[%s20803_s0 + $0x192] sm:$0x10]   ;;  %v2817_v59 = vsel %vm9_vm1, %v9568_v43, %v2813_v50  ;;  %v2868_v47 = vsel %vm25_vm5, %v9581_v52, %v2864_v45  ;;  %s11146_s25 = smov 80  }
 0x155   :  { %v9571_v55 = vld [vmem:[%s20803_s0 + $0x1b1] sm:$0x20]   ;;  %v2821_v4 = vsel %vm13_vm2, %v9569_v51, %v2817_v59  ;;  %v2872_v1 = vsel %vm29_vm6, %v9582_v13, %v2868_v47  ;;  %v14067_v10 = vpop.permute.xlu0 %1603  }
 0x156   :  { %v9572_v58 = vld [vmem:[%s20803_s0 + $0x1d0] sm:$0x40]   ;;  %v2825_v2 = vsel %vm17_vm3, %v9570_v54, %v2821_v4  ;;  %2873 = vrot.lane.b32.xlu1 %v2872_v1, %s11144_s28  ;;  %9260 = vst.msk [vmem:[%s20804_s1 + $0x18] sm:$0xff] %vm1396_vm12, %v14067_v10   ;;  %v9720_v10 = vld [vmem:[%s20803_s0 + $0x5af] sm:$0x20]   ;;  %vm3871_vm12 = vcmask 622144  }
 0x157   :  { %v9573_v24 = vld [vmem:[%s20803_s0 + $0x1ef] sm:$0x80]   ;;  %v2829_v11 = vsel %vm21_vm4, %v9571_v55, %v2825_v2 }
 0x158   :  { %2769 = vrot.lane.b32.xlu0 %v2768_v44, %s11144_s28  ;;  %v9593_v33 = vld [vmem:[%s20803_s0 + $0x616] sm:$0x1]   ;;  %v2833_v21 = vsel %vm25_vm5, %v9572_v58, %v2829_v11 }
 0x159   :  { %v9594_v19 = vld [vmem:[%s20803_s0 + $0x635] sm:$0x2]   ;;  %v2837_v63 = vsel %vm29_vm6, %v9573_v24, %v2833_v21  ;;  %v14143_v24 = vpop.permute.xlu0 %1669   ;;  %v14182_v21 = vpop.permute.xlu1 %1773  }
 0x15a   :  { %v9595_v60 = vld [vmem:[%s20803_s0 + $0x654] sm:$0x4]   ;;  %v2918_v3 = vsel %vm5_vm0, %v9594_v19, %v9593_v33  ;;  %1672 = vst.msk [vmem:[%s20804_s1] sm:$0xff] %vm1671_vm13, %v14143_v24   ;;  %v9787_v24 = vld [vmem:[%s20803_s0 + $0x551] sm:$0x4]   ;;  %9303 = vst.msk [vmem:[%s20804_s1 + $0x28] sm:$0xff] %vm1671_vm13, %v14182_v21  }
 0x15b   :  { %v9596_v62 = vld [vmem:[%s20803_s0 + $0x673] sm:$0x8]   ;;  %v2922_v17 = vsel %vm9_vm1, %v9595_v60, %v2918_v3 }
 0x15c   :  { %v9597_v6 = vld [vmem:[%s20803_s0 + $0x692] sm:$0x10]   ;;  %v2926_v22 = vsel %vm13_vm2, %v9596_v62, %v2922_v17  ;;  %2838 = vrot.lane.b32.xlu0 %v2837_v63, %s11144_s28  ;;  %v9632_v63 = vld [vmem:[%s20803_s0 + $0x4b0] sm:$0x20]  }
 0x15d   :  { %v9598_v7 = vld [vmem:[%s20803_s0 + $0x6b1] sm:$0x20]   ;;  %v2930_v15 = vsel %vm17_vm3, %v9597_v6, %v2926_v22 }
 0x15e   :  { %v9599_v9 = vld [vmem:[%s20803_s0 + $0x6d0] sm:$0x40]   ;;  %v2934_v34 = vsel %vm21_vm4, %v9598_v7, %v2930_v15 }
 0x15f   :  { %v9600_v18 = vld [vmem:[%s20803_s0 + $0x6ef] sm:$0x80]   ;;  %v2938_v41 = vsel %vm25_vm5, %v9599_v9, %v2934_v34  ;;  %v14208_v34 = vpop.permute.xlu0 %1738  }
 0x160   :  { %v9584_v20 = vld [vmem:[%s20803_s0 + $0x216] sm:$0x1]   ;;  %v2942_v51 = vsel %vm29_vm6, %v9600_v18, %v2938_v41  ;;  %v9627_v18 = vld [vmem:[%s20803_s0 + $0x415] sm:$0x1]   ;;  %9294 = vst.msk [vmem:[%s20804_s1 + $0x8] sm:$0xff] %vm1671_vm13, %v14208_v34  }
 0x161   :  { %v9585_v25 = vld [vmem:[%s20803_s0 + $0x235] sm:$0x2]   ;;  %2943 = vrot.lane.b32.xlu1 %v2942_v51, %s11144_s28  ;;  %v9622_v41 = vld [vmem:[%s20803_s0 + $0x72] sm:$0x8]  }
 0x162   :  { %v2883_v23 = vsel %vm5_vm0, %v9585_v25, %v9584_v20  ;;  %v9586_v26 = vld [vmem:[%s20803_s0 + $0x254] sm:$0x4]   ;;  %v9628_v20 = vld [vmem:[%s20803_s0 + $0x434] sm:$0x2]  }
 0x163   :  { %v9587_v29 = vld [vmem:[%s20803_s0 + $0x273] sm:$0x8]   ;;  %v2887_v31 = vsel %vm9_vm1, %v9586_v26, %v2883_v23  ;;  %v9629_v25 = vld [vmem:[%s20803_s0 + $0x453] sm:$0x4]   ;;  %v3053_v26 = vsel %vm5_vm0, %v9628_v20, %v9627_v18 }
 0x164   :  { %v9588_v30 = vld [vmem:[%s20803_s0 + $0x292] sm:$0x10]   ;;  %v2891_v52 = vsel %vm13_vm2, %v9587_v29, %v2887_v31  ;;  %v9630_v29 = vld [vmem:[%s20803_s0 + $0x472] sm:$0x8]   ;;  %v3057_v31 = vsel %vm9_vm1, %v9629_v25, %v3053_v26 }
 0x165   :  { %v9589_v32 = vld [vmem:[%s20803_s0 + $0x2b1] sm:$0x20]   ;;  %v2895_v42 = vsel %vm17_vm3, %v9588_v30, %v2891_v52  ;;  %v9631_v30 = vld [vmem:[%s20803_s0 + $0x491] sm:$0x10]  }
 0x166   :  { %v9590_v36 = vld [vmem:[%s20803_s0 + $0x2d0] sm:$0x40]   ;;  %v2899_v54 = vsel %vm21_vm4, %v9589_v32, %v2895_v42  ;;  %v9633_v32 = vld [vmem:[%s20803_s0 + $0x4cf] sm:$0x40]  }
 0x167   :  { %v9591_v61 = vld [vmem:[%s20803_s0 + $0x2ef] sm:$0x80]   ;;  %v2903_v33 = vsel %vm25_vm5, %v9590_v36, %v2899_v54  ;;  %v9634_v36 = vld [vmem:[%s20803_s0 + $0x4ee] sm:$0x80]  }
 0x168   :  { %v9611_v13 = vld [vmem:[%s20803_s0 + $0x716] sm:$0x1]   ;;  %v2907_v1 = vsel %vm29_vm6, %v9591_v61, %v2903_v33  ;;  %v9619_v61 = vld [vmem:[%s20803_s0 + $0x15] sm:$0x1]  }
 0x169   :  { %v9612_v57 = vld [vmem:[%s20803_s0 + $0x735] sm:$0x2]   ;;  %2908 = vrot.lane.b32.xlu0 %v2907_v1, %s11144_s28  ;;  %v9625_v51 = vld [vmem:[%s20803_s0 + $0xcf] sm:$0x40]  }
 0x16a   :  { %v9613_v5 = vld [vmem:[%s20803_s0 + $0x754] sm:$0x4]   ;;  %v2988_v43 = vsel %vm5_vm0, %v9612_v57, %v9611_v13  ;;  %v3061_v13 = vsel %vm13_vm2, %v9630_v29, %v3057_v31  ;;  %v9620_v57 = vld [vmem:[%s20803_s0 + $0x34] sm:$0x2]  }
 0x16b   :  { %v9614_v44 = vld [vmem:[%s20803_s0 + $0x773] sm:$0x8]   ;;  %v2992_v55 = vsel %vm9_vm1, %v9613_v5, %v2988_v43  ;;  %v9621_v5 = vld [vmem:[%s20803_s0 + $0x53] sm:$0x4]   ;;  %v3065_v43 = vsel %vm17_vm3, %v9631_v30, %v3061_v13 }
 0x16c   :  { %v9615_v49 = vld [vmem:[%s20803_s0 + $0x792] sm:$0x10]   ;;  %v2996_v47 = vsel %vm13_vm2, %v9614_v44, %v2992_v55  ;;  %v3019_v44 = vsel %vm5_vm0, %v9620_v57, %v9619_v61  ;;  %v3069_v54 = vsel %vm21_vm4, %v9632_v63, %v3065_v43  ;;  %v9636_v1 = vld [vmem:[%s20803_s0 + $0x115] sm:$0x1]  }
 0x16d   :  { %v9616_v50 = vld [vmem:[%s20803_s0 + $0x7b1] sm:$0x20]   ;;  %v3000_v2 = vsel %vm17_vm3, %v9615_v49, %v2996_v47  ;;  %v9623_v49 = vld [vmem:[%s20803_s0 + $0x91] sm:$0x10]   ;;  %v3023_v55 = vsel %vm9_vm1, %v9621_v5, %v3019_v44  ;;  %v3073_v33 = vsel %vm25_vm5, %v9633_v32, %v3069_v54 }
 0x16e   :  { %v9617_v45 = vld [vmem:[%s20803_s0 + $0x7d0] sm:$0x40]   ;;  %v3004_v11 = vsel %vm21_vm4, %v9616_v50, %v3000_v2  ;;  %v9624_v50 = vld [vmem:[%s20803_s0 + $0xb0] sm:$0x20]   ;;  %v3027_v47 = vsel %vm13_vm2, %v9622_v41, %v3023_v55  ;;  %v3077_v16 = vsel %vm29_vm6, %v9634_v36, %v3073_v33 }
 0x16f   :  { %v9602_v59 = vld [vmem:[%s20803_s0 + $0x316] sm:$0x1]   ;;  %v3008_v22 = vsel %vm25_vm5, %v9617_v45, %v3004_v11  ;;  %v9626_v45 = vld [vmem:[%s20803_s0 + $0xee] sm:$0x80]   ;;  %v3031_v39 = vsel %vm17_vm3, %v9623_v49, %v3027_v47 }
 0x170   :  { %v9603_v58 = vld [vmem:[%s20803_s0 + $0x335] sm:$0x2]   ;;  %3009 = vrot.lane.b32.xlu1 %v3008_v22, %s11144_s28  ;;  %v9637_v2 = vld [vmem:[%s20803_s0 + $0x134] sm:$0x2]  }
 0x171   :  { %v2953_v4 = vsel %vm5_vm0, %v9603_v58, %v9602_v59  ;;  %v9604_v19 = vld [vmem:[%s20803_s0 + $0x354] sm:$0x4]   ;;  %v9645_v59 = vld [vmem:[%s20803_s0 + $0x515] sm:$0x1]   ;;  %v14242_v58 = vpop.permute.xlu1 %1843  }
 0x172   :  { %v9605_v60 = vld [vmem:[%s20803_s0 + $0x373] sm:$0x8]   ;;  %v2957_v3 = vsel %vm9_vm1, %v9604_v19, %v2953_v4  ;;  %v9648_v4 = vld [vmem:[%s20803_s0 + $0x572] sm:$0x8]   ;;  %v3123_v14 = vsel %vm5_vm0, %v9646_v38, %v9645_v59  ;;  %v3035_v19 = vsel %vm21_vm4, %v9624_v50, %v3031_v39  ;;  %9321 = vst.msk [vmem:[%s20804_s1 + $0x30] sm:$0xff] %vm1671_vm13, %v14242_v58  }
 0x173   :  { %v9606_v62 = vld [vmem:[%s20803_s0 + $0x392] sm:$0x10]   ;;  %v2961_v17 = vsel %vm13_vm2, %v9605_v60, %v2957_v3  ;;  %v3127_v60 = vsel %vm9_vm1, %v9647_v8, %v3123_v14  ;;  %v14311_v3 = vpop.permute.xlu0 %1808   ;;  %v9638_v11 = vld [vmem:[%s20803_s0 + $0x153] sm:$0x4]  }
 0x174   :  { %v9607_v6 = vld [vmem:[%s20803_s0 + $0x3b1] sm:$0x20]   ;;  %v2965_v23 = vsel %vm17_vm3, %v9606_v62, %v2961_v17  ;;  %3078 = vrot.lane.b32.xlu1 %v3077_v16, %s11145_s24  ;;  %v9652_v62 = vld [vmem:[%s20803_s0 + $0x5ee] sm:$0x80]   ;;  %9312 = vst.msk [vmem:[%s20804_s1 + $0x10] sm:$0xff] %vm1671_vm13, %v14311_v3  }
 0x175   :  { %v9608_v7 = vld [vmem:[%s20803_s0 + $0x3d0] sm:$0x40]   ;;  %v2969_v15 = vsel %vm21_vm4, %v9607_v6, %v2965_v23  ;;  %v3039_v6 = vsel %vm25_vm5, %v9625_v51, %v3035_v19  ;;  %v9639_v17 = vld [vmem:[%s20803_s0 + $0x172] sm:$0x8]   ;;  %v14325_v20 = vpop.permute.xlu1 %1909   ;;  %v9790_v3 = vld [vmem:[%s20803_s0 + $0x5ae] sm:$0x20]  }
 0x176   :  { %v9609_v9 = vld [vmem:[%s20803_s0 + $0x3ef] sm:$0x80]   ;;  %v2973_v52 = vsel %vm25_vm5, %v9608_v7, %v2969_v15  ;;  %v3131_v7 = vsel %vm13_vm2, %v9648_v4, %v3127_v60  ;;  %v9640_v18 = vld [vmem:[%s20803_s0 + $0x191] sm:$0x10]   ;;  %v3043_v25 = vsel %vm29_vm6, %v9626_v45, %v3039_v6  ;;  %9338 = vst.msk [vmem:[%s20804_s1 + $0x38] sm:$0x7f] %vm1671_vm13, %v14325_v20  }
 0x177   :  { %v2977_v42 = vsel %vm29_vm6, %v9609_v9, %v2973_v52  ;;  %v3088_v9 = vsel %vm5_vm0, %v9637_v2, %v9636_v1  ;;  %v3135_v22 = vsel %vm17_vm3, %v9649_v40, %v3131_v7  ;;  %v9641_v26 = vld [vmem:[%s20803_s0 + $0x1b0] sm:$0x20]   ;;  %v14375_v54 = vpop.permute.xlu0 %1878   ;;  %v9791_v20 = vld [vmem:[%s20803_s0 + $0x5cd] sm:$0x40]  }
 0x178   :  { %2978 = vrot.lane.b32.xlu0 %v2977_v42, %s11144_s28  ;;  %v3092_v23 = vsel %vm9_vm1, %v9638_v11, %v3088_v9  ;;  %v9642_v29 = vld [vmem:[%s20803_s0 + $0x1cf] sm:$0x40]   ;;  %v3139_v63 = vsel %vm21_vm4, %v9650_v37, %v3135_v22  ;;  %9330 = vst.msk [vmem:[%s20804_s1 + $0x18] sm:$0xff] %vm1671_vm13, %v14375_v54   ;;  %v9792_v54 = vld [vmem:[%s20803_s0 + $0x5ec] sm:$0x80]   ;;  %vm4146_vm13 = vcmask 589344  }
 0x179   :  { %v9643_v30 = vld [vmem:[%s20803_s0 + $0x1ee] sm:$0x80]   ;;  %v3096_v15 = vsel %vm13_vm2, %v9639_v17, %v3092_v23  ;;  %v3143_v61 = vsel %vm25_vm5, %v9651_v48, %v3139_v63  ;;  %v14401_v40 = vpop.permute.xlu1 %1978  }
 0x17a   :  { %v9663_v31 = vld [vmem:[%s20803_s0 + $0x615] sm:$0x1]   ;;  %v3100_v52 = vsel %vm17_vm3, %v9640_v18, %v3096_v15  ;;  %v3147_v42 = vsel %vm29_vm6, %v9652_v62, %v3143_v61  ;;  %9355 = vst.msk [vmem:[%s20804_s1 + $0x20] sm:$0xff] %vm1946_vm14, %v14401_v40   ;;  %v9856_v40 = vld [vmem:[%s20803_s0 + $0x531] sm:$0x2]  }
 0x17b   :  { %v9664_v32 = vld [vmem:[%s20803_s0 + $0x634] sm:$0x2]   ;;  %v3104_v43 = vsel %vm21_vm4, %v9641_v26, %v3100_v52  ;;  %3148 = vrot.lane.b32.xlu1 %v3147_v42, %s11145_s24 }
 0x17c   :  { %3044 = vrot.lane.b32.xlu0 %v3043_v25, %s11145_s24  ;;  %v9665_v36 = vld [vmem:[%s20803_s0 + $0x653] sm:$0x4]   ;;  %v3193_v13 = vsel %vm5_vm0, %v9664_v32, %v9663_v31  ;;  %v3108_v55 = vsel %vm25_vm5, %v9642_v29, %v3104_v43  ;;  %v14439_v29 = vpop.permute.xlu0 %1944  }
 0x17d   :  { %v9666_v57 = vld [vmem:[%s20803_s0 + $0x672] sm:$0x8]   ;;  %v3197_v44 = vsel %vm9_vm1, %v9665_v36, %v3193_v13  ;;  %v3112_v38 = vsel %vm29_vm6, %v9643_v30, %v3108_v55  ;;  %1947 = vst.msk [vmem:[%s20804_s1] sm:$0xff] %vm1946_vm14, %v14439_v29   ;;  %v9857_v29 = vld [vmem:[%s20803_s0 + $0x550] sm:$0x4]  }
 0x17e   :  { %v9667_v5 = vld [vmem:[%s20803_s0 + $0x691] sm:$0x10]   ;;  %v3201_v45 = vsel %vm13_vm2, %v9666_v57, %v3197_v44 }
 0x17f   :  { %v9668_v41 = vld [vmem:[%s20803_s0 + $0x6b0] sm:$0x20]   ;;  %v3205_v8 = vsel %vm17_vm3, %v9667_v5, %v3201_v45 }
 0x180   :  { %v9669_v49 = vld [vmem:[%s20803_s0 + $0x6cf] sm:$0x40]   ;;  %3113 = vrot.lane.b32.xlu0 %v3112_v38, %s11145_s24  ;;  %v3209_v37 = vsel %vm21_vm4, %v9668_v41, %v3205_v8  ;;  %v9701_v38 = vld [vmem:[%s20803_s0 + $0x490] sm:$0x10]  }
 0x181   :  { %v9670_v50 = vld [vmem:[%s20803_s0 + $0x6ee] sm:$0x80]   ;;  %v3213_v1 = vsel %vm25_vm5, %v9669_v49, %v3209_v37  ;;  %v9697_v49 = vld [vmem:[%s20803_s0 + $0x414] sm:$0x1]   ;;  %v14504_v37 = vpop.permute.xlu0 %2013  }
 0x182   :  { %v9654_v51 = vld [vmem:[%s20803_s0 + $0x215] sm:$0x1]   ;;  %v3217_v17 = vsel %vm29_vm6, %v9670_v50, %v3213_v1  ;;  %v9698_v50 = vld [vmem:[%s20803_s0 + $0x433] sm:$0x2]   ;;  %9364 = vst.msk [vmem:[%s20804_s1 + $0x8] sm:$0xff] %vm1946_vm14, %v14504_v37  }
 0x183   :  { %v9655_v59 = vld [vmem:[%s20803_s0 + $0x234] sm:$0x2]   ;;  %3218 = vrot.lane.b32.xlu1 %v3217_v17, %s11145_s24  ;;  %v9691_v1 = vld [vmem:[%s20803_s0 + $0x52] sm:$0x4]  }
 0x184   :  { %v9656_v33 = vld [vmem:[%s20803_s0 + $0x253] sm:$0x4]   ;;  %v3158_v4 = vsel %vm5_vm0, %v9655_v59, %v9654_v51  ;;  %v14477_v51 = vpop.permute.xlu1 %2048   ;;  %v3328_v59 = vsel %vm5_vm0, %v9698_v50, %v9697_v49  ;;  %v9694_v17 = vld [vmem:[%s20803_s0 + $0xaf] sm:$0x20]  }
 0x185   :  { %v9657_v47 = vld [vmem:[%s20803_s0 + $0x272] sm:$0x8]   ;;  %v3162_v48 = vsel %vm9_vm1, %v9656_v33, %v3158_v4  ;;  %v9699_v33 = vld [vmem:[%s20803_s0 + $0x452] sm:$0x4]   ;;  %9373 = vst.msk [vmem:[%s20804_s1 + $0x28] sm:$0xff] %vm1946_vm14, %v14477_v51  }
 0x186   :  { %v9658_v16 = vld [vmem:[%s20803_s0 + $0x291] sm:$0x10]   ;;  %v3166_v2 = vsel %vm13_vm2, %v9657_v47, %v3162_v48  ;;  %v9700_v47 = vld [vmem:[%s20803_s0 + $0x471] sm:$0x8]   ;;  %v3332_v4 = vsel %vm9_vm1, %v9699_v33, %v3328_v59 }
 0x187   :  { %v9659_v39 = vld [vmem:[%s20803_s0 + $0x2b0] sm:$0x20]   ;;  %v3170_v18 = vsel %vm17_vm3, %v9658_v16, %v3166_v2  ;;  %v9702_v16 = vld [vmem:[%s20803_s0 + $0x4af] sm:$0x20]  }
 0x188   :  { %v9660_v14 = vld [vmem:[%s20803_s0 + $0x2cf] sm:$0x40]   ;;  %v3174_v30 = vsel %vm21_vm4, %v9659_v39, %v3170_v18  ;;  %v9703_v39 = vld [vmem:[%s20803_s0 + $0x4ce] sm:$0x40]  }
 0x189   :  { %v9661_v19 = vld [vmem:[%s20803_s0 + $0x2ee] sm:$0x80]   ;;  %v3178_v36 = vsel %vm25_vm5, %v9660_v14, %v3174_v30  ;;  %v9704_v14 = vld [vmem:[%s20803_s0 + $0x4ed] sm:$0x80]   ;;  %v14538_v30 = vpop.permute.xlu1 %2118  }
 0x18a   :  { %v9681_v60 = vld [vmem:[%s20803_s0 + $0x715] sm:$0x1]   ;;  %v3182_v41 = vsel %vm29_vm6, %v9661_v19, %v3178_v36  ;;  %v3336_v19 = vsel %vm13_vm2, %v9700_v47, %v3332_v4  ;;  %v9710_v59 = vld [vmem:[%s20803_s0 + $0x190] sm:$0x10]   ;;  %9391 = vst.msk [vmem:[%s20804_s1 + $0x30] sm:$0xff] %vm1946_vm14, %v14538_v30  }
 0x18b   :  { %v9682_v62 = vld [vmem:[%s20803_s0 + $0x734] sm:$0x2]   ;;  %3183 = vrot.lane.b32.xlu0 %v3182_v41, %s11145_s24  ;;  %v9711_v33 = vld [vmem:[%s20803_s0 + $0x1af] sm:$0x20]  }
 0x18c   :  { %v3263_v6 = vsel %vm5_vm0, %v9682_v62, %v9681_v60  ;;  %v9683_v7 = vld [vmem:[%s20803_s0 + $0x753] sm:$0x4]   ;;  %v9689_v60 = vld [vmem:[%s20803_s0 + $0x14] sm:$0x1]  }
 0x18d   :  { %v9684_v9 = vld [vmem:[%s20803_s0 + $0x772] sm:$0x8]   ;;  %v3267_v25 = vsel %vm9_vm1, %v9683_v7, %v3263_v6  ;;  %v9690_v62 = vld [vmem:[%s20803_s0 + $0x33] sm:$0x2]   ;;  %v3340_v6 = vsel %vm17_vm3, %v9701_v38, %v3336_v19  ;;  %v14621_v49 = vpop.permute.xlu1 %2184  }
 0x18e   :  { %v9685_v11 = vld [vmem:[%s20803_s0 + $0x791] sm:$0x10]   ;;  %v3271_v63 = vsel %vm13_vm2, %v9684_v9, %v3267_v25  ;;  %v3294_v7 = vsel %vm5_vm0, %v9690_v62, %v9689_v60  ;;  %v9692_v9 = vld [vmem:[%s20803_s0 + $0x71] sm:$0x8]   ;;  %v3344_v25 = vsel %vm21_vm4, %v9702_v16, %v3340_v6  ;;  %9408 = vst.msk [vmem:[%s20804_s1 + $0x38] sm:$0x7f] %vm1946_vm14, %v14621_v49  }
 0x18f   :  { %v9686_v22 = vld [vmem:[%s20803_s0 + $0x7b0] sm:$0x20]   ;;  %v3275_v61 = vsel %vm17_vm3, %v9685_v11, %v3271_v63  ;;  %v9693_v11 = vld [vmem:[%s20803_s0 + $0x90] sm:$0x10]   ;;  %v3348_v63 = vsel %vm25_vm5, %v9703_v39, %v3344_v25  ;;  %v9860_v49 = vld [vmem:[%s20803_s0 + $0x5ad] sm:$0x20]  }
 0x190   :  { %v9687_v23 = vld [vmem:[%s20803_s0 + $0x7cf] sm:$0x40]   ;;  %v3279_v42 = vsel %vm21_vm4, %v9686_v22, %v3275_v61  ;;  %v3298_v22 = vsel %vm9_vm1, %v9691_v1, %v3294_v7  ;;  %v3352_v46 = vsel %vm29_vm6, %v9704_v14, %v3348_v63  ;;  %v9721_v61 = vld [vmem:[%s20803_s0 + $0x5ce] sm:$0x40]  }
 0x191   :  { %v9672_v26 = vld [vmem:[%s20803_s0 + $0x315] sm:$0x1]   ;;  %v3283_v55 = vsel %vm25_vm5, %v9687_v23, %v3279_v42  ;;  %v9695_v23 = vld [vmem:[%s20803_s0 + $0xce] sm:$0x40]  }
 0x192   :  { %v9673_v15 = vld [vmem:[%s20803_s0 + $0x334] sm:$0x2]   ;;  %3284 = vrot.lane.b32.xlu1 %v3283_v55, %s11145_s24  ;;  %v9707_v42 = vld [vmem:[%s20803_s0 + $0x133] sm:$0x2]  }
 0x193   :  { %v9674_v31 = vld [vmem:[%s20803_s0 + $0x353] sm:$0x4]   ;;  %v3228_v52 = vsel %vm5_vm0, %v9673_v15, %v9672_v26  ;;  %v9696_v26 = vld [vmem:[%s20803_s0 + $0xed] sm:$0x80]   ;;  %v3302_v15 = vsel %vm13_vm2, %v9692_v9, %v3298_v22 }
 0x194   :  { %v9675_v32 = vld [vmem:[%s20803_s0 + $0x372] sm:$0x8]   ;;  %v3232_v43 = vsel %vm9_vm1, %v9674_v31, %v3228_v52  ;;  %v9717_v31 = vld [vmem:[%s20803_s0 + $0x552] sm:$0x4]   ;;  %v3306_v53 = vsel %vm17_vm3, %v9693_v11, %v3302_v15 }
 0x195   :  { %v9676_v13 = vld [vmem:[%s20803_s0 + $0x391] sm:$0x10]   ;;  %v3236_v45 = vsel %vm13_vm2, %v9675_v32, %v3232_v43  ;;  %v3310_v32 = vsel %vm21_vm4, %v9694_v17, %v3306_v53  ;;  %v3402_v36 = vsel %vm9_vm1, %v9717_v31, %v3398_v28  ;;  %v9722_v52 = vld [vmem:[%s20803_s0 + $0x5ed] sm:$0x80]  }
 0x196   :  { %v9677_v57 = vld [vmem:[%s20803_s0 + $0x3b0] sm:$0x20]   ;;  %v3240_v8 = vsel %vm17_vm3, %v9676_v13, %v3236_v45  ;;  %3353 = vrot.lane.b32.xlu1 %v3352_v46, %s11146_s25  ;;  %v9706_v13 = vld [vmem:[%s20803_s0 + $0x114] sm:$0x1]   ;;  %v3406_v41 = vsel %vm13_vm2, %v9718_v35, %v3402_v36 }
 0x197   :  { %v9678_v5 = vld [vmem:[%s20803_s0 + $0x3cf] sm:$0x40]   ;;  %v3244_v48 = vsel %vm21_vm4, %v9677_v57, %v3240_v8  ;;  %v14608_v57 = vpop.permute.xlu0 %2083   ;;  %v9708_v43 = vld [vmem:[%s20803_s0 + $0x152] sm:$0x4]   ;;  %v3410_v55 = vsel %vm17_vm3, %v9719_v56, %v3406_v41  ;;  %v3363_v45 = vsel %vm5_vm0, %v9707_v42, %v9706_v13 }
 0x198   :  { %v9679_v44 = vld [vmem:[%s20803_s0 + $0x3ee] sm:$0x80]   ;;  %v3248_v2 = vsel %vm25_vm5, %v9678_v5, %v3244_v48  ;;  %v3314_v5 = vsel %vm25_vm5, %v9695_v23, %v3310_v32  ;;  %v9712_v47 = vld [vmem:[%s20803_s0 + $0x1ce] sm:$0x40]   ;;  %v3414_v38 = vsel %vm21_vm4, %v9720_v10, %v3410_v55  ;;  %v3367_v8 = vsel %vm9_vm1, %v9708_v43, %v3363_v45  ;;  %9382 = vst.msk [vmem:[%s20804_s1 + $0x10] sm:$0xff] %vm1946_vm14, %v14608_v57  }
 0x199   :  { %v3252_v18 = vsel %vm29_vm6, %v9679_v44, %v3248_v2  ;;  %v9709_v44 = vld [vmem:[%s20803_s0 + $0x171] sm:$0x8]   ;;  %v3318_v50 = vsel %vm29_vm6, %v9696_v26, %v3314_v5  ;;  %v3418_v14 = vsel %vm25_vm5, %v9721_v61, %v3414_v38  ;;  %v14709_v61 = vpop.permute.xlu1 %2253   ;;  %v9859_v57 = vld [vmem:[%s20803_s0 + $0x58e] sm:$0x10]  }
 0x19a   :  { %3253 = vrot.lane.b32.xlu0 %v3252_v18, %s11145_s24  ;;  %v9713_v4 = vld [vmem:[%s20803_s0 + $0x1ed] sm:$0x80]   ;;  %v3371_v48 = vsel %vm13_vm2, %v9709_v44, %v3367_v8  ;;  %v3422_v2 = vsel %vm29_vm6, %v9722_v52, %v3418_v14  ;;  %9425 = vst.msk [vmem:[%s20804_s1 + $0x20] sm:$0xff] %vm2221_vm15, %v14709_v61   ;;  %v9925_v61 = vld [vmem:[%s20803_s0 + $0x511] sm:$0x1]   ;;  %s11159_s24 = smov 28  }
 0x19b   :  { %v9733_v16 = vld [vmem:[%s20803_s0 + $0x614] sm:$0x1]   ;;  %v3375_v6 = vsel %vm17_vm3, %v9710_v59, %v3371_v48  ;;  %v14671_v18 = vpop.permute.xlu0 %2153   ;;  %3423 = vrot.lane.b32.xlu1 %v3422_v2, %s11146_s25 }
 0x19c   :  { %v9734_v39 = vld [vmem:[%s20803_s0 + $0x633] sm:$0x2]   ;;  %v3379_v25 = vsel %vm21_vm4, %v9711_v33, %v3375_v6  ;;  %9400 = vst.msk [vmem:[%s20804_s1 + $0x18] sm:$0xff] %vm1946_vm14, %v14671_v18   ;;  %v9861_v18 = vld [vmem:[%s20803_s0 + $0x5cc] sm:$0x40]   ;;  %vm4421_vm14 = vcmask 556544  }
 0x19d   :  { %v3468_v19 = vsel %vm5_vm0, %v9734_v39, %v9733_v16  ;;  %v9735_v60 = vld [vmem:[%s20803_s0 + $0x652] sm:$0x4]   ;;  %v3383_v15 = vsel %vm25_vm5, %v9712_v47, %v3379_v25 }
 0x19e   :  { %3319 = vrot.lane.b32.xlu0 %v3318_v50, %s11146_s25  ;;  %v9736_v62 = vld [vmem:[%s20803_s0 + $0x671] sm:$0x8]   ;;  %v3472_v7 = vsel %vm9_vm1, %v9735_v60, %v3468_v19  ;;  %v3387_v28 = vsel %vm29_vm6, %v9713_v4, %v3383_v15 }
 0x19f   :  { %v9737_v1 = vld [vmem:[%s20803_s0 + $0x690] sm:$0x10]   ;;  %v3476_v22 = vsel %vm13_vm2, %v9736_v62, %v3472_v7  ;;  %v14735_v33 = vpop.permute.xlu0 %2219  }
 0x1a0   :  { %v9738_v9 = vld [vmem:[%s20803_s0 + $0x6af] sm:$0x20]   ;;  %v3480_v0 = vsel %vm17_vm3, %v9737_v1, %v3476_v22  ;;  %v9768_v22 = vld [vmem:[%s20803_s0 + $0x432] sm:$0x2]   ;;  %2222 = vst.msk [vmem:[%s20804_s1] sm:$0xff] %vm2221_vm15, %v14735_v33  }
 0x1a1   :  { %v9739_v11 = vld [vmem:[%s20803_s0 + $0x6ce] sm:$0x40]   ;;  %v3484_v35 = vsel %vm21_vm4, %v9738_v9, %v3480_v0  ;;  %v9926_v33 = vld [vmem:[%s20803_s0 + $0x530] sm:$0x2]  }
 0x1a2   :  { %v9740_v17 = vld [vmem:[%s20803_s0 + $0x6ed] sm:$0x80]   ;;  %3388 = vrot.lane.b32.xlu0 %v3387_v28, %s11146_s25  ;;  %v3488_v52 = vsel %vm25_vm5, %v9739_v11, %v3484_v35  ;;  %v9767_v11 = vld [vmem:[%s20803_s0 + $0x413] sm:$0x1]  }
 0x1a3   :  { %v9724_v23 = vld [vmem:[%s20803_s0 + $0x214] sm:$0x1]   ;;  %v3492_v43 = vsel %vm29_vm6, %v9740_v17, %v3488_v52  ;;  %v3603_v0 = vsel %vm5_vm0, %v9768_v22, %v9767_v11  ;;  %v9774_v35 = vld [vmem:[%s20803_s0 + $0x4ec] sm:$0x80]  }
 0x1a4   :  { %v9725_v26 = vld [vmem:[%s20803_s0 + $0x233] sm:$0x2]   ;;  %3493 = vrot.lane.b32.xlu1 %v3492_v43, %s11146_s25  ;;  %v9781_v22 = vld [vmem:[%s20803_s0 + $0x1ae] sm:$0x20]  }
 0x1a5   :  { %v9726_v63 = vld [vmem:[%s20803_s0 + $0x252] sm:$0x4]   ;;  %v3433_v27 = vsel %vm5_vm0, %v9725_v26, %v9724_v23  ;;  %v9769_v23 = vld [vmem:[%s20803_s0 + $0x451] sm:$0x4]  }
 0x1a6   :  { %v9727_v31 = vld [vmem:[%s20803_s0 + $0x271] sm:$0x8]   ;;  %v3437_v56 = vsel %vm9_vm1, %v9726_v63, %v3433_v27  ;;  %v9770_v26 = vld [vmem:[%s20803_s0 + $0x470] sm:$0x8]   ;;  %v3607_v28 = vsel %vm9_vm1, %v9769_v23, %v3603_v0 }
 0x1a7   :  { %v9728_v46 = vld [vmem:[%s20803_s0 + $0x290] sm:$0x10]   ;;  %v3441_v13 = vsel %vm13_vm2, %v9727_v31, %v3437_v56  ;;  %v9771_v27 = vld [vmem:[%s20803_s0 + $0x48f] sm:$0x10]  }
 0x1a8   :  { %v9729_v53 = vld [vmem:[%s20803_s0 + $0x2af] sm:$0x20]   ;;  %v3445_v44 = vsel %vm17_vm3, %v9728_v46, %v3441_v13  ;;  %v9772_v31 = vld [vmem:[%s20803_s0 + $0x4ae] sm:$0x20]  }
 0x1a9   :  { %v9730_v10 = vld [vmem:[%s20803_s0 + $0x2ce] sm:$0x40]   ;;  %v3449_v47 = vsel %vm21_vm4, %v9729_v53, %v3445_v44  ;;  %v9773_v46 = vld [vmem:[%s20803_s0 + $0x4cd] sm:$0x40]  }
 0x1aa   :  { %v9731_v32 = vld [vmem:[%s20803_s0 + $0x2ed] sm:$0x80]   ;;  %v3453_v39 = vsel %vm25_vm5, %v9730_v10, %v3449_v47  ;;  %v9759_v56 = vld [vmem:[%s20803_s0 + $0x13] sm:$0x1]  }
 0x1ab   :  { %v9751_v36 = vld [vmem:[%s20803_s0 + $0x714] sm:$0x1]   ;;  %v3457_v1 = vsel %vm29_vm6, %v9731_v32, %v3453_v39  ;;  %v9760_v10 = vld [vmem:[%s20803_s0 + $0x32] sm:$0x2]  }
 0x1ac   :  { %v9752_v5 = vld [vmem:[%s20803_s0 + $0x733] sm:$0x2]   ;;  %3458 = vrot.lane.b32.xlu0 %v3457_v1, %s11146_s25  ;;  %v3569_v52 = vsel %vm5_vm0, %v9760_v10, %v9759_v56  ;;  %v9761_v13 = vld [vmem:[%s20803_s0 + $0x51] sm:$0x4]  }
 0x1ad   :  { %v9753_v41 = vld [vmem:[%s20803_s0 + $0x752] sm:$0x4]   ;;  %v3538_v50 = vsel %vm5_vm0, %v9752_v5, %v9751_v36  ;;  %v3611_v36 = vsel %vm13_vm2, %v9770_v26, %v3607_v28  ;;  %v9762_v5 = vld [vmem:[%s20803_s0 + $0x70] sm:$0x8]   ;;  %v3573_v44 = vsel %vm9_vm1, %v9761_v13, %v3569_v52 }
 0x1ae   :  { %v9754_v42 = vld [vmem:[%s20803_s0 + $0x771] sm:$0x8]   ;;  %v3542_v38 = vsel %vm9_vm1, %v9753_v41, %v3538_v50  ;;  %v9763_v41 = vld [vmem:[%s20803_s0 + $0x8f] sm:$0x10]   ;;  %v3615_v43 = vsel %vm17_vm3, %v9771_v27, %v3611_v36  ;;  %v3577_v47 = vsel %vm13_vm2, %v9762_v5, %v3573_v44 }
 0x1af   :  { %v9755_v55 = vld [vmem:[%s20803_s0 + $0x790] sm:$0x10]   ;;  %v3546_v14 = vsel %vm13_vm2, %v9754_v42, %v3542_v38  ;;  %v9764_v50 = vld [vmem:[%s20803_s0 + $0xae] sm:$0x20]   ;;  %v3581_v39 = vsel %vm17_vm3, %v9763_v41, %v3577_v47 }
 0x1b0   :  { %v9756_v45 = vld [vmem:[%s20803_s0 + $0x7af] sm:$0x20]   ;;  %v3550_v2 = vsel %vm17_vm3, %v9755_v55, %v3546_v14  ;;  %v9765_v55 = vld [vmem:[%s20803_s0 + $0xcd] sm:$0x40]   ;;  %v3585_v34 = vsel %vm21_vm4, %v9764_v50, %v3581_v39 }
 0x1b1   :  { %v9757_v59 = vld [vmem:[%s20803_s0 + $0x7ce] sm:$0x40]   ;;  %v3554_v17 = vsel %vm21_vm4, %v9756_v45, %v3550_v2  ;;  %v9766_v45 = vld [vmem:[%s20803_s0 + $0xec] sm:$0x80]  }
 0x1b2   :  { %v9742_v8 = vld [vmem:[%s20803_s0 + $0x314] sm:$0x1]   ;;  %v3558_v63 = vsel %vm25_vm5, %v9757_v59, %v3554_v17  ;;  %v3619_v59 = vsel %vm21_vm4, %v9772_v31, %v3615_v43  ;;  %v9785_v38 = vld [vmem:[%s20803_s0 + $0x513] sm:$0x1]  }
 0x1b3   :  { %v9743_v4 = vld [vmem:[%s20803_s0 + $0x333] sm:$0x2]   ;;  %3559 = vrot.lane.b32.xlu1 %v3558_v63, %s11146_s25  ;;  %v9788_v14 = vld [vmem:[%s20803_s0 + $0x570] sm:$0x8]  }
 0x1b4   :  { %v9744_v16 = vld [vmem:[%s20803_s0 + $0x352] sm:$0x4]   ;;  %v3503_v48 = vsel %vm5_vm0, %v9743_v4, %v9742_v8  ;;  %v9786_v8 = vld [vmem:[%s20803_s0 + $0x532] sm:$0x2]   ;;  %v14842_v4 = vpop.permute.xlu1 %2323  }
 0x1b5   :  { %v9745_v19 = vld [vmem:[%s20803_s0 + $0x371] sm:$0x8]   ;;  %v3507_v6 = vsel %vm9_vm1, %v9744_v16, %v3503_v48  ;;  %v3623_v16 = vsel %vm25_vm5, %v9773_v46, %v3619_v59  ;;  %v3673_v12 = vsel %vm5_vm0, %v9786_v8, %v9785_v38  ;;  %v9789_v48 = vld [vmem:[%s20803_s0 + $0x58f] sm:$0x10]   ;;  %9443 = vst.msk [vmem:[%s20804_s1 + $0x28] sm:$0xff] %vm2221_vm15, %v14842_v4  }
 0x1b6   :  { %v9746_v60 = vld [vmem:[%s20803_s0 + $0x390] sm:$0x10]   ;;  %v3511_v25 = vsel %vm13_vm2, %v9745_v19, %v3507_v6  ;;  %v3627_v21 = vsel %vm29_vm6, %v9774_v35, %v3623_v16  ;;  %v3677_v58 = vsel %vm9_vm1, %v9787_v24, %v3673_v12  ;;  %v14908_v19 = vpop.permute.xlu0 %2288   ;;  %v9776_v1 = vld [vmem:[%s20803_s0 + $0x113] sm:$0x1]  }
 0x1b7   :  { %v9747_v62 = vld [vmem:[%s20803_s0 + $0x3af] sm:$0x20]   ;;  %v3515_v15 = vsel %vm17_vm3, %v9746_v60, %v3511_v25  ;;  %3628 = vrot.lane.b32.xlu1 %v3627_v21, %s11147_s2  ;;  %v3589_v60 = vsel %vm25_vm5, %v9765_v55, %v3585_v34  ;;  %v9777_v2 = vld [vmem:[%s20803_s0 + $0x132] sm:$0x2]   ;;  %9434 = vst.msk [vmem:[%s20804_s1 + $0x8] sm:$0xff] %vm2221_vm15, %v14908_v19  }
 0x1b8   :  { %v9748_v7 = vld [vmem:[%s20803_s0 + $0x3ce] sm:$0x40]   ;;  %v3519_v53 = vsel %vm21_vm4, %v9747_v62, %v3515_v15  ;;  %v3681_v62 = vsel %vm13_vm2, %v9788_v14, %v3677_v58  ;;  %v9778_v6 = vld [vmem:[%s20803_s0 + $0x151] sm:$0x4]   ;;  %v3638_v11 = vsel %vm5_vm0, %v9777_v2, %v9776_v1  ;;  %v15005_v14 = vpop.permute.xlu1 %2393  }
 0x1b9   :  { %v9749_v9 = vld [vmem:[%s20803_s0 + $0x3ed] sm:$0x80]   ;;  %v3523_v32 = vsel %vm25_vm5, %v9748_v7, %v3519_v53  ;;  %v3593_v7 = vsel %vm29_vm6, %v9766_v45, %v3589_v60  ;;  %v9779_v17 = vld [vmem:[%s20803_s0 + $0x170] sm:$0x8]   ;;  %v3642_v26 = vsel %vm9_vm1, %v9778_v6, %v3638_v11  ;;  %9461 = vst.msk [vmem:[%s20804_s1 + $0x30] sm:$0xff] %vm2221_vm15, %v15005_v14   ;;  %v4223_v14 = vsel %vm5_vm0, %v9926_v33, %v9925_v61 }
 0x1ba   :  { %v3527_v42 = vsel %vm29_vm6, %v9749_v9, %v3523_v32  ;;  %v3685_v9 = vsel %vm17_vm3, %v9789_v48, %v3681_v62  ;;  %v9780_v25 = vld [vmem:[%s20803_s0 + $0x18f] sm:$0x10]   ;;  %v3646_v31 = vsel %vm13_vm2, %v9779_v17, %v3642_v26  ;;  %v9940_v61 = vld [vmem:[%s20803_s0 + $0x2cb] sm:$0x40]  }
 0x1bb   :  { %3528 = vrot.lane.b32.xlu0 %v3527_v42, %s11146_s25  ;;  %v3689_v23 = vsel %vm21_vm4, %v9790_v3, %v3685_v9  ;;  %v9782_v63 = vld [vmem:[%s20803_s0 + $0x1cd] sm:$0x40]   ;;  %v3650_v56 = vsel %vm17_vm3, %v9780_v25, %v3646_v31  ;;  %s11149_s25 = smov 68   ;;  %v9941_v33 = vld [vmem:[%s20803_s0 + $0x2ea] sm:$0x80]  }
 0x1bc   :  { %v9783_v15 = vld [vmem:[%s20803_s0 + $0x1ec] sm:$0x80]   ;;  %v3693_v27 = vsel %vm25_vm5, %v9791_v20, %v3689_v23  ;;  %v3654_v13 = vsel %vm21_vm4, %v9781_v22, %v3650_v56  ;;  %v15043_v22 = vpop.permute.xlu0 %2358  }
 0x1bd   :  { %v9803_v0 = vld [vmem:[%s20803_s0 + $0x613] sm:$0x1]   ;;  %v3697_v35 = vsel %vm29_vm6, %v9792_v54, %v3693_v27  ;;  %v3658_v44 = vsel %vm25_vm5, %v9782_v63, %v3654_v13  ;;  %v9839_v13 = vld [vmem:[%s20803_s0 + $0x450] sm:$0x4]   ;;  %9452 = vst.msk [vmem:[%s20804_s1 + $0x10] sm:$0xff] %vm2221_vm15, %v15043_v22  }
 0x1be   :  { %v9804_v46 = vld [vmem:[%s20803_s0 + $0x632] sm:$0x2]   ;;  %3698 = vrot.lane.b32.xlu1 %v3697_v35, %s11147_s2  ;;  %v3662_v38 = vsel %vm29_vm6, %v9783_v15, %v3658_v44  ;;  %v9841_v44 = vld [vmem:[%s20803_s0 + $0x48e] sm:$0x10]   ;;  %v9928_v22 = vld [vmem:[%s20803_s0 + $0x56e] sm:$0x8]  }
 0x1bf   :  { %3594 = vrot.lane.b32.xlu0 %v3593_v7, %s11147_s2  ;;  %v9805_v53 = vld [vmem:[%s20803_s0 + $0x651] sm:$0x4]   ;;  %v3743_v10 = vsel %vm5_vm0, %v9804_v46, %v9803_v0 }
 0x1c0   :  { %v9806_v28 = vld [vmem:[%s20803_s0 + $0x670] sm:$0x8]   ;;  %v3747_v5 = vsel %vm9_vm1, %v9805_v53, %v3743_v10 }
 0x1c1   :  { %v9807_v32 = vld [vmem:[%s20803_s0 + $0x68f] sm:$0x10]   ;;  %v3751_v50 = vsel %vm13_vm2, %v9806_v28, %v3747_v5 }
 0x1c2   :  { %v9808_v36 = vld [vmem:[%s20803_s0 + $0x6ae] sm:$0x20]   ;;  %v3755_v8 = vsel %vm17_vm3, %v9807_v32, %v3751_v50  ;;  %v9842_v50 = vld [vmem:[%s20803_s0 + $0x4ad] sm:$0x20]  }
 0x1c3   :  { %v9809_v52 = vld [vmem:[%s20803_s0 + $0x6cd] sm:$0x40]   ;;  %3663 = vrot.lane.b32.xlu0 %v3662_v38, %s11147_s2  ;;  %v3759_v48 = vsel %vm21_vm4, %v9808_v36, %v3755_v8  ;;  %v9837_v36 = vld [vmem:[%s20803_s0 + $0x412] sm:$0x1]  }
 0x1c4   :  { %v9810_v41 = vld [vmem:[%s20803_s0 + $0x6ec] sm:$0x80]   ;;  %v3763_v20 = vsel %vm25_vm5, %v9809_v52, %v3759_v48  ;;  %v9838_v52 = vld [vmem:[%s20803_s0 + $0x431] sm:$0x2]  }
 0x1c5   :  { %v9794_v42 = vld [vmem:[%s20803_s0 + $0x213] sm:$0x1]   ;;  %v3767_v6 = vsel %vm29_vm6, %v9810_v41, %v3763_v20  ;;  %v9829_v38 = vld [vmem:[%s20803_s0 + $0x12] sm:$0x1]  }
 0x1c6   :  { %v9795_v43 = vld [vmem:[%s20803_s0 + $0x232] sm:$0x2]   ;;  %3768 = vrot.lane.b32.xlu1 %v3767_v6, %s11147_s2  ;;  %v9835_v20 = vld [vmem:[%s20803_s0 + $0xcc] sm:$0x40]  }
 0x1c7   :  { %v3708_v55 = vsel %vm5_vm0, %v9795_v43, %v9794_v42  ;;  %v9796_v45 = vld [vmem:[%s20803_s0 + $0x251] sm:$0x4]   ;;  %v3878_v42 = vsel %vm5_vm0, %v9838_v52, %v9837_v36  ;;  %v9840_v43 = vld [vmem:[%s20803_s0 + $0x46f] sm:$0x8]  }
 0x1c8   :  { %v9797_v59 = vld [vmem:[%s20803_s0 + $0x270] sm:$0x8]   ;;  %v3712_v16 = vsel %vm9_vm1, %v9796_v45, %v3708_v55  ;;  %v3882_v45 = vsel %vm9_vm1, %v9839_v13, %v3878_v42  ;;  %v9853_v36 = vld [vmem:[%s20803_s0 + $0x1eb] sm:$0x80]  }
 0x1c9   :  { %v9798_v47 = vld [vmem:[%s20803_s0 + $0x28f] sm:$0x10]   ;;  %v3716_v21 = vsel %vm13_vm2, %v9797_v59, %v3712_v16  ;;  %v9843_v59 = vld [vmem:[%s20803_s0 + $0x4cc] sm:$0x40]   ;;  %v3886_v16 = vsel %vm13_vm2, %v9840_v43, %v3882_v45 }
 0x1ca   :  { %v9799_v39 = vld [vmem:[%s20803_s0 + $0x2ae] sm:$0x20]   ;;  %v3720_v54 = vsel %vm17_vm3, %v9798_v47, %v3716_v21  ;;  %v9844_v47 = vld [vmem:[%s20803_s0 + $0x4eb] sm:$0x80]   ;;  %v3890_v21 = vsel %vm17_vm3, %v9841_v44, %v3886_v16 }
 0x1cb   :  { %v9800_v12 = vld [vmem:[%s20803_s0 + $0x2cd] sm:$0x40]   ;;  %v3724_v7 = vsel %vm21_vm4, %v9799_v39, %v3720_v54  ;;  %v9830_v39 = vld [vmem:[%s20803_s0 + $0x31] sm:$0x2]   ;;  %v15129_v54 = vpop.permute.xlu1 %2459  }
 0x1cc   :  { %v9801_v24 = vld [vmem:[%s20803_s0 + $0x2ec] sm:$0x80]   ;;  %v3728_v23 = vsel %vm25_vm5, %v9800_v12, %v3724_v7  ;;  %v9831_v12 = vld [vmem:[%s20803_s0 + $0x50] sm:$0x4]   ;;  %9478 = vst.msk [vmem:[%s20804_s1 + $0x38] sm:$0x7f] %vm2221_vm15, %v15129_v54  }
 0x1cd   :  { %v9821_v34 = vld [vmem:[%s20803_s0 + $0x713] sm:$0x1]   ;;  %v3732_v31 = vsel %vm29_vm6, %v9801_v24, %v3728_v23  ;;  %v9832_v24 = vld [vmem:[%s20803_s0 + $0x6f] sm:$0x8]   ;;  %v9929_v54 = vld [vmem:[%s20803_s0 + $0x58d] sm:$0x10]  }
 0x1ce   :  { %v9822_v58 = vld [vmem:[%s20803_s0 + $0x732] sm:$0x2]   ;;  %3733 = vrot.lane.b32.xlu0 %v3732_v31, %s11147_s2  ;;  %v9862_v23 = vld [vmem:[%s20803_s0 + $0x5eb] sm:$0x80]  }
 0x1cf   :  { %v9823_v3 = vld [vmem:[%s20803_s0 + $0x751] sm:$0x4]   ;;  %v3813_v60 = vsel %vm5_vm0, %v9822_v58, %v9821_v34  ;;  %v3844_v34 = vsel %vm5_vm0, %v9830_v39, %v9829_v38  ;;  %v9833_v58 = vld [vmem:[%s20803_s0 + $0x8e] sm:$0x10]  }
 0x1d0   :  { %v9824_v62 = vld [vmem:[%s20803_s0 + $0x770] sm:$0x8]   ;;  %v3817_v9 = vsel %vm9_vm1, %v9823_v3, %v3813_v60  ;;  %v9834_v3 = vld [vmem:[%s20803_s0 + $0xad] sm:$0x20]   ;;  %v3894_v60 = vsel %vm21_vm4, %v9842_v50, %v3890_v21 }
 0x1d1   :  { %v9825_v1 = vld [vmem:[%s20803_s0 + $0x78f] sm:$0x10]   ;;  %v3821_v26 = vsel %vm13_vm2, %v9824_v62, %v3817_v9  ;;  %v3848_v62 = vsel %vm9_vm1, %v9831_v12, %v3844_v34  ;;  %v3898_v6 = vsel %vm25_vm5, %v9843_v59, %v3894_v60  ;;  %v9858_v9 = vld [vmem:[%s20803_s0 + $0x56f] sm:$0x8]  }
 0x1d2   :  { %v9826_v2 = vld [vmem:[%s20803_s0 + $0x7ae] sm:$0x20]   ;;  %v3825_v46 = vsel %vm17_vm3, %v9825_v1, %v3821_v26  ;;  %v9836_v1 = vld [vmem:[%s20803_s0 + $0xeb] sm:$0x80]   ;;  %v3852_v7 = vsel %vm13_vm2, %v9832_v24, %v3848_v62  ;;  %v3902_v51 = vsel %vm29_vm6, %v9844_v47, %v3898_v6  ;;  %v15293_v6 = vpop.permute.xlu1 %2528  }
 0x1d3   :  { %v9827_v11 = vld [vmem:[%s20803_s0 + $0x7cd] sm:$0x40]   ;;  %v3829_v10 = vsel %vm21_vm4, %v9826_v2, %v3825_v46  ;;  %v9855_v2 = vld [vmem:[%s20803_s0 + $0x512] sm:$0x1]   ;;  %v3856_v37 = vsel %vm17_vm3, %v9833_v58, %v3852_v7  ;;  %9495 = vst.msk [vmem:[%s20804_s1 + $0x20] sm:$0xff] %vm2496_vm7, %v15293_v6  }
 0x1d4   :  { %v9812_v17 = vld [vmem:[%s20803_s0 + $0x313] sm:$0x1]   ;;  %v3833_v5 = vsel %vm25_vm5, %v9827_v11, %v3829_v10  ;;  %v3948_v30 = vsel %vm5_vm0, %v9856_v40, %v9855_v2  ;;  %v15195_v11 = vpop.permute.xlu0 %2428   ;;  %v9846_v26 = vld [vmem:[%s20803_s0 + $0x112] sm:$0x1]  }
 0x1d5   :  { %v9813_v25 = vld [vmem:[%s20803_s0 + $0x332] sm:$0x2]   ;;  %3834 = vrot.lane.b32.xlu1 %v3833_v5, %s11147_s2  ;;  %v9848_v31 = vld [vmem:[%s20803_s0 + $0x150] sm:$0x4]   ;;  %9470 = vst.msk [vmem:[%s20804_s1 + $0x18] sm:$0xff] %vm2221_vm15, %v15195_v11   ;;  %vm4696_vm15 = vcmask 523744  }
 0x1d6   :  { %v3778_v63 = vsel %vm5_vm0, %v9813_v25, %v9812_v17  ;;  %v9814_v15 = vld [vmem:[%s20803_s0 + $0x351] sm:$0x4]   ;;  %v3860_v17 = vsel %vm21_vm4, %v9834_v3, %v3856_v37  ;;  %v3952_v25 = vsel %vm9_vm1, %v9857_v29, %v3948_v30  ;;  %v9849_v46 = vld [vmem:[%s20803_s0 + $0x16f] sm:$0x8]   ;;  %v9930_v11 = vld [vmem:[%s20803_s0 + $0x5ac] sm:$0x20]  }
 0x1d7   :  { %v9815_v0 = vld [vmem:[%s20803_s0 + $0x370] sm:$0x8]   ;;  %v3782_v53 = vsel %vm9_vm1, %v9814_v15, %v3778_v63  ;;  %v9847_v63 = vld [vmem:[%s20803_s0 + $0x131] sm:$0x2]   ;;  %v3864_v15 = vsel %vm25_vm5, %v9835_v20, %v3860_v17 }
 0x1d8   :  { %v9816_v27 = vld [vmem:[%s20803_s0 + $0x38f] sm:$0x10]   ;;  %v3786_v32 = vsel %vm13_vm2, %v9815_v0, %v3782_v53  ;;  %v3956_v0 = vsel %vm13_vm2, %v9858_v9, %v3952_v25  ;;  %v9850_v53 = vld [vmem:[%s20803_s0 + $0x18e] sm:$0x10]  }
 0x1d9   :  { %v9817_v28 = vld [vmem:[%s20803_s0 + $0x3ae] sm:$0x20]   ;;  %v3790_v41 = vsel %vm17_vm3, %v9816_v27, %v3786_v32  ;;  %3903 = vrot.lane.b32.xlu1 %v3902_v51, %s11148_s29  ;;  %v3913_v27 = vsel %vm5_vm0, %v9847_v63, %v9846_v26  ;;  %v9851_v10 = vld [vmem:[%s20803_s0 + $0x1ad] sm:$0x20]  }
 0x1da   :  { %v9818_v35 = vld [vmem:[%s20803_s0 + $0x3cd] sm:$0x40]   ;;  %v3794_v55 = vsel %vm21_vm4, %v9817_v28, %v3790_v41  ;;  %v3868_v28 = vsel %vm29_vm6, %v9836_v1, %v3864_v15  ;;  %v9852_v32 = vld [vmem:[%s20803_s0 + $0x1cc] sm:$0x40]  }
 0x1db   :  { %v9819_v56 = vld [vmem:[%s20803_s0 + $0x3ec] sm:$0x80]   ;;  %v3798_v8 = vsel %vm25_vm5, %v9818_v35, %v3794_v55  ;;  %v3960_v35 = vsel %vm17_vm3, %v9859_v57, %v3956_v0  ;;  %v9873_v5 = vld [vmem:[%s20803_s0 + $0x612] sm:$0x1]  }
 0x1dc   :  { %v3802_v48 = vsel %vm29_vm6, %v9819_v56, %v3798_v8  ;;  %v3917_v56 = vsel %vm9_vm1, %v9848_v31, %v3913_v27  ;;  %v3964_v52 = vsel %vm21_vm4, %v9860_v49, %v3960_v35  ;;  %v9874_v41 = vld [vmem:[%s20803_s0 + $0x631] sm:$0x2]   ;;  %v15331_v27 = vpop.permute.xlu0 %2494  }
 0x1dd   :  { %3803 = vrot.lane.b32.xlu0 %v3802_v48, %s11147_s2  ;;  %v3921_v13 = vsel %vm13_vm2, %v9849_v46, %v3917_v56  ;;  %v9875_v42 = vld [vmem:[%s20803_s0 + $0x650] sm:$0x4]   ;;  %v3968_v43 = vsel %vm25_vm5, %v9861_v18, %v3964_v52  ;;  %v4018_v50 = vsel %vm5_vm0, %v9874_v41, %v9873_v5  ;;  %2497 = vst.msk [vmem:[%s20804_s1] sm:$0xff] %vm2496_vm7, %v15331_v27   ;;  %v9997_v27 = vld [vmem:[%s20803_s0 + $0x54e] sm:$0x4]   ;;  %s11158_s2 = smov 32  }
 0x1de   :  { %v3925_v44 = vsel %vm17_vm3, %v9850_v53, %v3921_v13  ;;  %v9876_v55 = vld [vmem:[%s20803_s0 + $0x66f] sm:$0x8]   ;;  %v3972_v47 = vsel %vm29_vm6, %v9862_v23, %v3968_v43  ;;  %v4022_v8 = vsel %vm9_vm1, %v9875_v42, %v4018_v50  ;;  %v9908_v50 = vld [vmem:[%s20803_s0 + $0x430] sm:$0x2]  }
 0x1df   :  { %v9877_v45 = vld [vmem:[%s20803_s0 + $0x68e] sm:$0x10]   ;;  %v3929_v38 = vsel %vm21_vm4, %v9851_v10, %v3925_v44  ;;  %3973 = vrot.lane.b32.xlu1 %v3972_v47, %s11148_s29  ;;  %v4026_v48 = vsel %vm13_vm2, %v9876_v55, %v4022_v8  ;;  %v9907_v44 = vld [vmem:[%s20803_s0 + $0x411] sm:$0x1]   ;;  %v15369_v55 = vpop.permute.xlu1 %2598  }
 0x1e0   :  { %v9878_v59 = vld [vmem:[%s20803_s0 + $0x6ad] sm:$0x20]   ;;  %v3933_v24 = vsel %vm25_vm5, %v9852_v32, %v3929_v38  ;;  %v4030_v20 = vsel %vm17_vm3, %v9877_v45, %v4026_v48  ;;  %v4153_v47 = vsel %vm5_vm0, %v9908_v50, %v9907_v44  ;;  %v9909_v38 = vld [vmem:[%s20803_s0 + $0x44f] sm:$0x4]   ;;  %9513 = vst.msk [vmem:[%s20804_s1 + $0x28] sm:$0xff] %vm2496_vm7, %v15369_v55  }
 0x1e1   :  { %3869 = vrot.lane.b32.xlu0 %v3868_v28, %s11148_s29  ;;  %v9879_v16 = vld [vmem:[%s20803_s0 + $0x6cc] sm:$0x40]   ;;  %v3937_v3 = vsel %vm29_vm6, %v9853_v36, %v3933_v24  ;;  %v4034_v7 = vsel %vm21_vm4, %v9878_v59, %v4030_v20  ;;  %v9910_v8 = vld [vmem:[%s20803_s0 + $0x46e] sm:$0x8]  }
 0x1e2   :  { %v9880_v39 = vld [vmem:[%s20803_s0 + $0x6eb] sm:$0x80]   ;;  %v4038_v37 = vsel %vm25_vm5, %v9879_v16, %v4034_v7  ;;  %v9911_v16 = vld [vmem:[%s20803_s0 + $0x48d] sm:$0x10]  }
 0x1e3   :  { %v9864_v12 = vld [vmem:[%s20803_s0 + $0x212] sm:$0x1]   ;;  %v4042_v25 = vsel %vm29_vm6, %v9880_v39, %v4038_v37  ;;  %v9912_v24 = vld [vmem:[%s20803_s0 + $0x4ac] sm:$0x20]  }
 0x1e4   :  { %v9865_v21 = vld [vmem:[%s20803_s0 + $0x231] sm:$0x2]   ;;  %4043 = vrot.lane.b32.xlu1 %v4042_v25, %s11148_s29  ;;  %v9913_v48 = vld [vmem:[%s20803_s0 + $0x4cb] sm:$0x40]  }
 0x1e5   :  { %v9866_v34 = vld [vmem:[%s20803_s0 + $0x250] sm:$0x4]   ;;  %v3983_v60 = vsel %vm5_vm0, %v9865_v21, %v9864_v12  ;;  %3938 = vrot.lane.b32.xlu0 %v3937_v3, %s11148_s29  ;;  %v4157_v12 = vsel %vm9_vm1, %v9909_v38, %v4153_v47  ;;  %v9914_v21 = vld [vmem:[%s20803_s0 + $0x4ea] sm:$0x80]  }
 0x1e6   :  { %v9867_v58 = vld [vmem:[%s20803_s0 + $0x26f] sm:$0x8]   ;;  %v3987_v40 = vsel %vm9_vm1, %v9866_v34, %v3983_v60  ;;  %v9899_v3 = vld [vmem:[%s20803_s0 + $0x11] sm:$0x1]  }
 0x1e7   :  { %v9868_v62 = vld [vmem:[%s20803_s0 + $0x28e] sm:$0x10]   ;;  %v3991_v30 = vsel %vm13_vm2, %v9867_v58, %v3987_v40  ;;  %v4161_v58 = vsel %vm13_vm2, %v9910_v8, %v4157_v12  ;;  %v9900_v20 = vld [vmem:[%s20803_s0 + $0x30] sm:$0x2]  }
 0x1e8   :  { %v9869_v1 = vld [vmem:[%s20803_s0 + $0x2ad] sm:$0x20]   ;;  %v3995_v23 = vsel %vm17_vm3, %v9868_v62, %v3991_v30  ;;  %v9901_v60 = vld [vmem:[%s20803_s0 + $0x4f] sm:$0x4]   ;;  %v15407_v62 = vpop.permute.xlu0 %2563   ;;  %v4119_v7 = vsel %vm5_vm0, %v9900_v20, %v9899_v3 }
 0x1e9   :  { %v9870_v2 = vld [vmem:[%s20803_s0 + $0x2cc] sm:$0x40]   ;;  %v3999_v31 = vsel %vm21_vm4, %v9869_v1, %v3995_v23  ;;  %v9902_v40 = vld [vmem:[%s20803_s0 + $0x6e] sm:$0x8]   ;;  %v4123_v30 = vsel %vm9_vm1, %v9901_v60, %v4119_v7  ;;  %9504 = vst.msk [vmem:[%s20804_s1 + $0x8] sm:$0xff] %vm2496_vm7, %v15407_v62  }
 0x1ea   :  { %v9871_v29 = vld [vmem:[%s20803_s0 + $0x2eb] sm:$0x80]   ;;  %v4003_v56 = vsel %vm25_vm5, %v9870_v2, %v3999_v31  ;;  %v4165_v2 = vsel %vm17_vm3, %v9911_v16, %v4161_v58  ;;  %v4127_v25 = vsel %vm13_vm2, %v9902_v40, %v4123_v30  ;;  %v9927_v23 = vld [vmem:[%s20803_s0 + $0x54f] sm:$0x4]  }
 0x1eb   :  { %v9891_v9 = vld [vmem:[%s20803_s0 + $0x712] sm:$0x1]   ;;  %v4007_v5 = vsel %vm29_vm6, %v9871_v29, %v4003_v56  ;;  %v9903_v29 = vld [vmem:[%s20803_s0 + $0x8d] sm:$0x10]   ;;  %v4169_v37 = vsel %vm21_vm4, %v9912_v24, %v4165_v2 }
 0x1ec   :  { %v9892_v51 = vld [vmem:[%s20803_s0 + $0x731] sm:$0x2]   ;;  %4008 = vrot.lane.b32.xlu0 %v4007_v5, %s11148_s29  ;;  %v4131_v19 = vsel %vm17_vm3, %v9903_v29, %v4127_v25  ;;  %v9916_v31 = vld [vmem:[%s20803_s0 + $0x111] sm:$0x1]  }
 0x1ed   :  { %v4088_v57 = vsel %vm5_vm0, %v9892_v51, %v9891_v9  ;;  %v9893_v49 = vld [vmem:[%s20803_s0 + $0x750] sm:$0x4]   ;;  %v9904_v9 = vld [vmem:[%s20803_s0 + $0xac] sm:$0x20]  }
 0x1ee   :  { %v9894_v18 = vld [vmem:[%s20803_s0 + $0x76f] sm:$0x8]   ;;  %v4092_v26 = vsel %vm9_vm1, %v9893_v49, %v4088_v57  ;;  %v9905_v57 = vld [vmem:[%s20803_s0 + $0xcb] sm:$0x40]  }
 0x1ef   :  { %v9895_v17 = vld [vmem:[%s20803_s0 + $0x78e] sm:$0x10]   ;;  %v4096_v46 = vsel %vm13_vm2, %v9894_v18, %v4092_v26  ;;  %v9906_v49 = vld [vmem:[%s20803_s0 + $0xea] sm:$0x80]   ;;  %v15430_v18 = vpop.permute.xlu1 %2668   ;;  %v4135_v26 = vsel %vm21_vm4, %v9904_v9, %v4131_v19 }
 0x1f0   :  { %v9896_v63 = vld [vmem:[%s20803_s0 + $0x7ad] sm:$0x20]   ;;  %v4100_v10 = vsel %vm17_vm3, %v9895_v17, %v4096_v46  ;;  %v4173_v17 = vsel %vm25_vm5, %v9913_v48, %v4169_v37  ;;  %v15500_v46 = vpop.permute.xlu0 %2633   ;;  %v9918_v56 = vld [vmem:[%s20803_s0 + $0x14f] sm:$0x4]   ;;  %9531 = vst.msk [vmem:[%s20804_s1 + $0x30] sm:$0xff] %vm2496_vm7, %v15430_v18  }
 0x1f1   :  { %v9897_v15 = vld [vmem:[%s20803_s0 + $0x7cc] sm:$0x40]   ;;  %v4104_v41 = vsel %vm21_vm4, %v9896_v63, %v4100_v10  ;;  %v4177_v4 = vsel %vm29_vm6, %v9914_v21, %v4173_v17  ;;  %v4227_v63 = vsel %vm9_vm1, %v9927_v23, %v4223_v14  ;;  %v9919_v10 = vld [vmem:[%s20803_s0 + $0x16e] sm:$0x8]   ;;  %9522 = vst.msk [vmem:[%s20804_s1 + $0x10] sm:$0xff] %vm2496_vm7, %v15500_v46  }
 0x1f2   :  { %v9882_v0 = vld [vmem:[%s20803_s0 + $0x312] sm:$0x1]   ;;  %v4108_v45 = vsel %vm25_vm5, %v9897_v15, %v4104_v41  ;;  %v9931_v15 = vld [vmem:[%s20803_s0 + $0x5cb] sm:$0x40]   ;;  %v10000_v46 = vld [vmem:[%s20803_s0 + $0x5ab] sm:$0x20]  }
 0x1f3   :  { %v9883_v53 = vld [vmem:[%s20803_s0 + $0x331] sm:$0x2]   ;;  %4109 = vrot.lane.b32.xlu1 %v4108_v45, %s11148_s29  ;;  %v9921_v5 = vld [vmem:[%s20803_s0 + $0x1ac] sm:$0x20]  }
 0x1f4   :  { %v9884_v28 = vld [vmem:[%s20803_s0 + $0x350] sm:$0x4]   ;;  %v4053_v32 = vsel %vm5_vm0, %v9883_v53, %v9882_v0  ;;  %v9932_v0 = vld [vmem:[%s20803_s0 + $0x5ea] sm:$0x80]   ;;  %v4139_v53 = vsel %vm25_vm5, %v9905_v57, %v4135_v26  ;;  %v15563_v20 = vpop.permute.xlu0 %2703  }
 0x1f5   :  { %v9885_v35 = vld [vmem:[%s20803_s0 + $0x36f] sm:$0x8]   ;;  %v4057_v42 = vsel %vm9_vm1, %v9884_v28, %v4053_v32  ;;  %v4231_v28 = vsel %vm13_vm2, %v9928_v22, %v4227_v63  ;;  %v4143_v32 = vsel %vm29_vm6, %v9906_v49, %v4139_v53  ;;  %v9922_v41 = vld [vmem:[%s20803_s0 + $0x1cb] sm:$0x40]   ;;  %9540 = vst.msk [vmem:[%s20804_s1 + $0x18] sm:$0xff] %vm2496_vm7, %v15563_v20  }
 0x1f6   :  { %v9886_v36 = vld [vmem:[%s20803_s0 + $0x38e] sm:$0x10]   ;;  %v4061_v59 = vsel %vm13_vm2, %v9885_v35, %v4057_v42  ;;  %v9917_v35 = vld [vmem:[%s20803_s0 + $0x130] sm:$0x2]   ;;  %v15525_v42 = vpop.permute.xlu1 %2734   ;;  %v10002_v20 = vld [vmem:[%s20803_s0 + $0x5e9] sm:$0x80]  }
 0x1f7   :  { %v9887_v52 = vld [vmem:[%s20803_s0 + $0x3ad] sm:$0x20]   ;;  %v4065_v39 = vsel %vm17_vm3, %v9886_v36, %v4061_v59  ;;  %4178 = vrot.lane.b32.xlu1 %v4177_v4, %s11149_s25  ;;  %v4235_v36 = vsel %vm17_vm3, %v9929_v54, %v4231_v28  ;;  %v9923_v50 = vld [vmem:[%s20803_s0 + $0x1ea] sm:$0x80]   ;;  %9548 = vst.msk [vmem:[%s20804_s1 + $0x38] sm:$0x7f] %vm2496_vm7, %v15525_v42  }
 0x1f8   :  { %v9888_v13 = vld [vmem:[%s20803_s0 + $0x3cc] sm:$0x40]   ;;  %v4069_v34 = vsel %vm21_vm4, %v9887_v52, %v4065_v39  ;;  %v4188_v52 = vsel %vm5_vm0, %v9917_v35, %v9916_v31  ;;  %v9943_v45 = vld [vmem:[%s20803_s0 + $0x611] sm:$0x1]   ;;  %v15627_v28 = vpop.permute.xlu0 %2769   ;;  %v10001_v42 = vld [vmem:[%s20803_s0 + $0x5ca] sm:$0x40]  }
 0x1f9   :  { %v9889_v43 = vld [vmem:[%s20803_s0 + $0x3eb] sm:$0x80]   ;;  %v4073_v1 = vsel %vm25_vm5, %v9888_v13, %v4069_v34  ;;  %v9920_v13 = vld [vmem:[%s20803_s0 + $0x18d] sm:$0x10]   ;;  %v4192_v44 = vsel %vm9_vm1, %v9918_v56, %v4188_v52  ;;  %2772 = vst.msk [vmem:[%s20804_s1] sm:$0xff] %vm2771_vm8, %v15627_v28   ;;  %vm4975_vm7 = vcmask 490944  }
 0x1fa   :  { %v4077_v51 = vsel %vm29_vm6, %v9889_v43, %v4073_v1  ;;  %v4239_v43 = vsel %vm21_vm4, %v9930_v11, %v4235_v36  ;;  %v9944_v59 = vld [vmem:[%s20803_s0 + $0x630] sm:$0x2]   ;;  %v4196_v38 = vsel %vm13_vm2, %v9919_v10, %v4192_v44  ;;  %v15601_v4 = vpop.permute.xlu1 %2803   ;;  %v10067_v28 = vld [vmem:[%s20803_s0 + $0x54d] sm:$0x4]  }
 0x1fb   :  { %4078 = vrot.lane.b32.xlu0 %v4077_v51, %s11148_s29  ;;  %v4243_v47 = vsel %vm25_vm5, %v9931_v15, %v4239_v43  ;;  %v4293_v8 = vsel %vm5_vm0, %v9944_v59, %v9943_v45  ;;  %v9945_v16 = vld [vmem:[%s20803_s0 + $0x64f] sm:$0x4]   ;;  %v4200_v48 = vsel %vm17_vm3, %v9920_v13, %v4196_v38  ;;  %9565 = vst.msk [vmem:[%s20804_s1 + $0x20] sm:$0xff] %vm2771_vm8, %v15601_v4   ;;  %v10066_v4 = vld [vmem:[%s20803_s0 + $0x52e] sm:$0x2]  }
 0x1fc   :  { %v9946_v39 = vld [vmem:[%s20803_s0 + $0x66e] sm:$0x8]   ;;  %v4247_v24 = vsel %vm29_vm6, %v9932_v0, %v4243_v47  ;;  %v4297_v21 = vsel %vm9_vm1, %v9945_v16, %v4293_v8  ;;  %v4204_v60 = vsel %vm21_vm4, %v9921_v5, %v4200_v48  ;;  %v9977_v8 = vld [vmem:[%s20803_s0 + $0x410] sm:$0x1]  }
 0x1fd   :  { %v9947_v12 = vld [vmem:[%s20803_s0 + $0x68d] sm:$0x10]   ;;  %4248 = vrot.lane.b32.xlu1 %v4247_v24, %s11149_s25  ;;  %v4301_v1 = vsel %vm13_vm2, %v9946_v39, %v4297_v21  ;;  %v4208_v29 = vsel %vm25_vm5, %v9922_v41, %v4204_v60  ;;  %v9978_v24 = vld [vmem:[%s20803_s0 + $0x42f] sm:$0x2]  }
 0x1fe   :  { %v9948_v34 = vld [vmem:[%s20803_s0 + $0x6ac] sm:$0x20]   ;;  %v4305_v9 = vsel %vm17_vm3, %v9947_v12, %v4301_v1  ;;  %v4212_v49 = vsel %vm29_vm6, %v9923_v50, %v4208_v29  ;;  %v15665_v16 = vpop.permute.xlu1 %2873   ;;  %v9979_v48 = vld [vmem:[%s20803_s0 + $0x44e] sm:$0x4]  }
 0x1ff   :  { %4144 = vrot.lane.b32.xlu0 %v4143_v32, %s11149_s25  ;;  %v9949_v58 = vld [vmem:[%s20803_s0 + $0x6cb] sm:$0x40]   ;;  %v4309_v17 = vsel %vm21_vm4, %v9948_v34, %v4305_v9  ;;  %v9980_v21 = vld [vmem:[%s20803_s0 + $0x46d] sm:$0x8]   ;;  %9583 = vst.msk [vmem:[%s20804_s1 + $0x28] sm:$0xff] %vm2771_vm8, %v15665_v16  }
 0x200   :  { %v9950_v3 = vld [vmem:[%s20803_s0 + $0x6ea] sm:$0x80]   ;;  %v4313_v19 = vsel %vm25_vm5, %v9949_v58, %v4309_v17  ;;  %v9981_v60 = vld [vmem:[%s20803_s0 + $0x48c] sm:$0x10]  }
 0x201   :  { %v9934_v2 = vld [vmem:[%s20803_s0 + $0x211] sm:$0x1]   ;;  %v4317_v26 = vsel %vm29_vm6, %v9950_v3, %v4313_v19  ;;  %v4428_v3 = vsel %vm5_vm0, %v9978_v24, %v9977_v8  ;;  %v9982_v1 = vld [vmem:[%s20803_s0 + $0x4ab] sm:$0x20]  }
 0x202   :  { %v9935_v7 = vld [vmem:[%s20803_s0 + $0x230] sm:$0x2]   ;;  %4318 = vrot.lane.b32.xlu1 %v4317_v26, %s11149_s25  ;;  %v9984_v29 = vld [vmem:[%s20803_s0 + $0x4e9] sm:$0x80]  }
 0x203   :  { %v9936_v40 = vld [vmem:[%s20803_s0 + $0x24f] sm:$0x4]   ;;  %v4258_v51 = vsel %vm5_vm0, %v9935_v7, %v9934_v2  ;;  %4213 = vrot.lane.b32.xlu0 %v4212_v49, %s11149_s25  ;;  %v9983_v2 = vld [vmem:[%s20803_s0 + $0x4ca] sm:$0x40]  }
 0x204   :  { %v9937_v37 = vld [vmem:[%s20803_s0 + $0x26e] sm:$0x8]   ;;  %v4262_v25 = vsel %vm9_vm1, %v9936_v40, %v4258_v51  ;;  %v4432_v40 = vsel %vm9_vm1, %v9979_v48, %v4428_v3  ;;  %v9969_v9 = vld [vmem:[%s20803_s0 + $0x10] sm:$0x1]  }
 0x205   :  { %v9938_v30 = vld [vmem:[%s20803_s0 + $0x28d] sm:$0x10]   ;;  %v4266_v14 = vsel %vm13_vm2, %v9937_v37, %v4262_v25  ;;  %v9970_v51 = vld [vmem:[%s20803_s0 + $0x2f] sm:$0x2]   ;;  %v15703_v37 = vpop.permute.xlu0 %2838  }
 0x206   :  { %v9939_v57 = vld [vmem:[%s20803_s0 + $0x2ac] sm:$0x20]   ;;  %v4270_v63 = vsel %vm17_vm3, %v9938_v30, %v4266_v14  ;;  %v4394_v49 = vsel %vm5_vm0, %v9970_v51, %v9969_v9  ;;  %v9971_v17 = vld [vmem:[%s20803_s0 + $0x4e] sm:$0x4]   ;;  %9574 = vst.msk [vmem:[%s20804_s1 + $0x8] sm:$0xff] %vm2771_vm8, %v15703_v37  }
 0x207   :  { %v9961_v23 = vld [vmem:[%s20803_s0 + $0x711] sm:$0x1]   ;;  %v4274_v35 = vsel %vm21_vm4, %v9939_v57, %v4270_v63  ;;  %v4436_v57 = vsel %vm13_vm2, %v9980_v21, %v4432_v40  ;;  %v9972_v25 = vld [vmem:[%s20803_s0 + $0x6d] sm:$0x8]   ;;  %v4398_v19 = vsel %vm9_vm1, %v9971_v17, %v4394_v49 }
 0x208   :  { %v9962_v22 = vld [vmem:[%s20803_s0 + $0x730] sm:$0x2]   ;;  %v4278_v52 = vsel %vm25_vm5, %v9940_v61, %v4274_v35  ;;  %v9973_v61 = vld [vmem:[%s20803_s0 + $0x8c] sm:$0x10]   ;;  %v4402_v26 = vsel %vm13_vm2, %v9972_v25, %v4398_v19 }
 0x209   :  { %v9963_v54 = vld [vmem:[%s20803_s0 + $0x74f] sm:$0x4]   ;;  %v4363_v15 = vsel %vm5_vm0, %v9962_v22, %v9961_v23  ;;  %v4282_v50 = vsel %vm29_vm6, %v9941_v33, %v4278_v52  ;;  %v4440_v23 = vsel %vm17_vm3, %v9981_v60, %v4436_v57  ;;  %v9974_v14 = vld [vmem:[%s20803_s0 + $0xab] sm:$0x20]  }
 0x20a   :  { %v9964_v11 = vld [vmem:[%s20803_s0 + $0x76e] sm:$0x8]   ;;  %v4367_v56 = vsel %vm9_vm1, %v9963_v54, %v4363_v15  ;;  %4283 = vrot.lane.b32.xlu0 %v4282_v50, %s11149_s25  ;;  %v9975_v22 = vld [vmem:[%s20803_s0 + $0xca] sm:$0x40]  }
 0x20b   :  { %v9965_v0 = vld [vmem:[%s20803_s0 + $0x78d] sm:$0x10]   ;;  %v4371_v13 = vsel %vm13_vm2, %v9964_v11, %v4367_v56  ;;  %v9976_v54 = vld [vmem:[%s20803_s0 + $0xe9] sm:$0x80]   ;;  %v4444_v11 = vsel %vm21_vm4, %v9982_v1, %v4440_v23 }
 0x20c   :  { %v9966_v31 = vld [vmem:[%s20803_s0 + $0x7ac] sm:$0x20]   ;;  %v4375_v45 = vsel %vm17_vm3, %v9965_v0, %v4371_v13  ;;  %v9995_v63 = vld [vmem:[%s20803_s0 + $0x510] sm:$0x1]   ;;  %v15738_v0 = vpop.permute.xlu1 %2943  }
 0x20d   :  { %v9967_v53 = vld [vmem:[%s20803_s0 + $0x7cb] sm:$0x40]   ;;  %v4379_v39 = vsel %vm21_vm4, %v9966_v31, %v4375_v45  ;;  %v9996_v15 = vld [vmem:[%s20803_s0 + $0x52f] sm:$0x2]   ;;  %v4448_v31 = vsel %vm25_vm5, %v9983_v2, %v4444_v11  ;;  %9601 = vst.msk [vmem:[%s20804_s1 + $0x30] sm:$0xff] %vm2771_vm8, %v15738_v0  }
 0x20e   :  { %v9952_v10 = vld [vmem:[%s20803_s0 + $0x311] sm:$0x1]   ;;  %v4383_v34 = vsel %vm25_vm5, %v9967_v53, %v4379_v39  ;;  %v4406_v53 = vsel %vm17_vm3, %v9973_v61, %v4402_v26  ;;  %v4498_v6 = vsel %vm5_vm0, %v9996_v15, %v9995_v63  ;;  %v9998_v35 = vld [vmem:[%s20803_s0 + $0x56d] sm:$0x8]   ;;  %v4452_v55 = vsel %vm29_vm6, %v9984_v29, %v4448_v31 }
 0x20f   :  { %v9953_v32 = vld [vmem:[%s20803_s0 + $0x330] sm:$0x2]   ;;  %4384 = vrot.lane.b32.xlu1 %v4383_v34, %s11149_s25  ;;  %v9999_v56 = vld [vmem:[%s20803_s0 + $0x58c] sm:$0x10]   ;;  %v4410_v62 = vsel %vm21_vm4, %v9974_v14, %v4406_v53  ;;  %v4502_v18 = vsel %vm9_vm1, %v9997_v27, %v4498_v6 }
 0x210   :  { %v9954_v36 = vld [vmem:[%s20803_s0 + $0x34f] sm:$0x4]   ;;  %v4328_v5 = vsel %vm5_vm0, %v9953_v32, %v9952_v10  ;;  %v15804_v10 = vpop.permute.xlu0 %2908   ;;  %v4414_v32 = vsel %vm25_vm5, %v9975_v22, %v4410_v62  ;;  %v9986_v52 = vld [vmem:[%s20803_s0 + $0x110] sm:$0x1]  }
 0x211   :  { %v9955_v41 = vld [vmem:[%s20803_s0 + $0x36e] sm:$0x8]   ;;  %v4332_v59 = vsel %vm9_vm1, %v9954_v36, %v4328_v5  ;;  %v4506_v36 = vsel %vm13_vm2, %v9998_v35, %v4502_v18  ;;  %v9987_v13 = vld [vmem:[%s20803_s0 + $0x12f] sm:$0x2]   ;;  %9592 = vst.msk [vmem:[%s20804_s1 + $0x10] sm:$0xff] %vm2771_vm8, %v15804_v10  }
 0x212   :  { %v9956_v43 = vld [vmem:[%s20803_s0 + $0x38d] sm:$0x10]   ;;  %v4336_v12 = vsel %vm13_vm2, %v9955_v41, %v4332_v59  ;;  %v9988_v5 = vld [vmem:[%s20803_s0 + $0x14e] sm:$0x4]   ;;  %v4418_v41 = vsel %vm29_vm6, %v9976_v54, %v4414_v32  ;;  %v10069_v10 = vld [vmem:[%s20803_s0 + $0x58b] sm:$0x10]  }
 0x213   :  { %v9957_v44 = vld [vmem:[%s20803_s0 + $0x3ac] sm:$0x20]   ;;  %v4340_v58 = vsel %vm17_vm3, %v9956_v43, %v4336_v12  ;;  %4453 = vrot.lane.b32.xlu1 %v4452_v55, %s11150_s8  ;;  %v4510_v43 = vsel %vm17_vm3, %v9999_v56, %v4506_v36  ;;  %v9989_v50 = vld [vmem:[%s20803_s0 + $0x16d] sm:$0x8]  }
 0x214   :  { %v9958_v47 = vld [vmem:[%s20803_s0 + $0x3cb] sm:$0x40]   ;;  %v4344_v7 = vsel %vm21_vm4, %v9957_v44, %v4340_v58  ;;  %v4463_v44 = vsel %vm5_vm0, %v9987_v13, %v9986_v52  ;;  %v9990_v45 = vld [vmem:[%s20803_s0 + $0x18c] sm:$0x10]   ;;  %v15867_v9 = vpop.permute.xlu0 %2978  }
 0x215   :  { %v9959_v38 = vld [vmem:[%s20803_s0 + $0x3ea] sm:$0x80]   ;;  %v4348_v30 = vsel %vm25_vm5, %v9958_v47, %v4344_v7  ;;  %v9991_v59 = vld [vmem:[%s20803_s0 + $0x1ab] sm:$0x20]   ;;  %v15830_v47 = vpop.permute.xlu1 %3009   ;;  %v4467_v8 = vsel %vm9_vm1, %v9988_v5, %v4463_v44  ;;  %9610 = vst.msk [vmem:[%s20804_s1 + $0x18] sm:$0xff] %vm2771_vm8, %v15867_v9  }
 0x216   :  { %v4352_v33 = vsel %vm29_vm6, %v9959_v38, %v4348_v30  ;;  %v4514_v38 = vsel %vm21_vm4, %v10000_v46, %v4510_v43  ;;  %v9992_v39 = vld [vmem:[%s20803_s0 + $0x1ca] sm:$0x40]   ;;  %v4471_v21 = vsel %vm13_vm2, %v9989_v50, %v4467_v8  ;;  %9618 = vst.msk [vmem:[%s20804_s1 + $0x38] sm:$0x7f] %vm2771_vm8, %v15830_v47   ;;  %v10070_v47 = vld [vmem:[%s20803_s0 + $0x5aa] sm:$0x20]  }
 0x217   :  { %4353 = vrot.lane.b32.xlu0 %v4352_v33, %s11149_s25  ;;  %v9993_v12 = vld [vmem:[%s20803_s0 + $0x1e9] sm:$0x80]   ;;  %v4518_v48 = vsel %vm25_vm5, %v10001_v42, %v4514_v38  ;;  %v4475_v1 = vsel %vm17_vm3, %v9990_v45, %v4471_v21  ;;  %v10071_v9 = vld [vmem:[%s20803_s0 + $0x5c9] sm:$0x40]   ;;  %vm5254_vm8 = vcmask 458144  }
 0x218   :  { %v10013_v24 = vld [vmem:[%s20803_s0 + $0x610] sm:$0x1]   ;;  %v4522_v60 = vsel %vm29_vm6, %v10002_v20, %v4518_v48  ;;  %v4479_v51 = vsel %vm21_vm4, %v9991_v59, %v4475_v1  ;;  %v15943_v43 = vpop.permute.xlu0 %3044   ;;  %v10048_v1 = vld [vmem:[%s20803_s0 + $0x42e] sm:$0x2]  }
 0x219   :  { %v10014_v34 = vld [vmem:[%s20803_s0 + $0x62f] sm:$0x2]   ;;  %4523 = vrot.lane.b32.xlu1 %v4522_v60, %s11150_s8  ;;  %v4483_v25 = vsel %vm25_vm5, %v9992_v39, %v4479_v51  ;;  %v15905_v31 = vpop.permute.xlu1 %3078   ;;  %v10047_v60 = vld [vmem:[%s20803_s0 + $0x40f] sm:$0x1]   ;;  %3047 = vst.msk [vmem:[%s20804_s1] sm:$0xff] %vm3046_vm9, %v15943_v43  }
 0x21a   :  { %v10015_v58 = vld [vmem:[%s20803_s0 + $0x64e] sm:$0x4]   ;;  %v4568_v2 = vsel %vm5_vm0, %v10014_v34, %v10013_v24  ;;  %v4487_v22 = vsel %vm29_vm6, %v9993_v12, %v4483_v25  ;;  %v4703_v51 = vsel %vm5_vm0, %v10048_v1, %v10047_v60  ;;  %9635 = vst.msk [vmem:[%s20804_s1 + $0x20] sm:$0xff] %vm3046_vm9, %v15905_v31   ;;  %v10138_v43 = vld [vmem:[%s20803_s0 + $0x54c] sm:$0x4]  }
 0x21b   :  { %4419 = vrot.lane.b32.xlu0 %v4418_v41, %s11150_s8  ;;  %v10016_v3 = vld [vmem:[%s20803_s0 + $0x66d] sm:$0x8]   ;;  %v4572_v30 = vsel %vm9_vm1, %v10015_v58, %v4568_v2  ;;  %v10049_v2 = vld [vmem:[%s20803_s0 + $0x44d] sm:$0x4]  }
 0x21c   :  { %v10017_v7 = vld [vmem:[%s20803_s0 + $0x68c] sm:$0x10]   ;;  %v4576_v61 = vsel %vm13_vm2, %v10016_v3, %v4572_v30  ;;  %v10050_v30 = vld [vmem:[%s20803_s0 + $0x46c] sm:$0x8]   ;;  %v4707_v25 = vsel %vm9_vm1, %v10049_v2, %v4703_v51 }
 0x21d   :  { %v10018_v40 = vld [vmem:[%s20803_s0 + $0x6ab] sm:$0x20]   ;;  %v4580_v54 = vsel %vm17_vm3, %v10017_v7, %v4576_v61  ;;  %v15982_v7 = vpop.permute.xlu1 %3148   ;;  %v10053_v61 = vld [vmem:[%s20803_s0 + $0x4c9] sm:$0x40]  }
 0x21e   :  { %v10019_v29 = vld [vmem:[%s20803_s0 + $0x6ca] sm:$0x40]   ;;  %v4584_v53 = vsel %vm21_vm4, %v10018_v40, %v4580_v54  ;;  %v10040_v54 = vld [vmem:[%s20803_s0 + $0x2e] sm:$0x2]   ;;  %9653 = vst.msk [vmem:[%s20804_s1 + $0x28] sm:$0xff] %vm3046_vm9, %v15982_v7  }
 0x21f   :  { %v10020_v57 = vld [vmem:[%s20803_s0 + $0x6e9] sm:$0x80]   ;;  %4488 = vrot.lane.b32.xlu0 %v4487_v22, %s11150_s8  ;;  %v4588_v55 = vsel %vm25_vm5, %v10019_v29, %v4584_v53  ;;  %v4711_v22 = vsel %vm13_vm2, %v10050_v30, %v4707_v25  ;;  %v10083_v2 = vld [vmem:[%s20803_s0 + $0x60f] sm:$0x1]  }
 0x220   :  { %v10004_v49 = vld [vmem:[%s20803_s0 + $0x210] sm:$0x1]   ;;  %v4592_v32 = vsel %vm29_vm6, %v10020_v57, %v4588_v55  ;;  %v10051_v57 = vld [vmem:[%s20803_s0 + $0x48b] sm:$0x10]  }
 0x221   :  { %v10005_v17 = vld [vmem:[%s20803_s0 + $0x22f] sm:$0x2]   ;;  %4593 = vrot.lane.b32.xlu1 %v4592_v32, %s11150_s8  ;;  %v10068_v32 = vld [vmem:[%s20803_s0 + $0x56c] sm:$0x8]  }
 0x222   :  { %v4533_v33 = vsel %vm5_vm0, %v10005_v17, %v10004_v49  ;;  %v10006_v23 = vld [vmem:[%s20803_s0 + $0x24e] sm:$0x4]   ;;  %v10052_v49 = vld [vmem:[%s20803_s0 + $0x4aa] sm:$0x20]  }
 0x223   :  { %v10007_v19 = vld [vmem:[%s20803_s0 + $0x26d] sm:$0x8]   ;;  %v4537_v11 = vsel %vm9_vm1, %v10006_v23, %v4533_v33  ;;  %v10054_v33 = vld [vmem:[%s20803_s0 + $0x4e8] sm:$0x80]  }
 0x224   :  { %v10008_v14 = vld [vmem:[%s20803_s0 + $0x28c] sm:$0x10]   ;;  %v4541_v6 = vsel %vm13_vm2, %v10007_v19, %v4537_v11  ;;  %v10039_v23 = vld [vmem:[%s20803_s0 + $0xf] sm:$0x1]   ;;  %v16008_v19 = vpop.permute.xlu0 %3113  }
 0x225   :  { %v10009_v26 = vld [vmem:[%s20803_s0 + $0x2ab] sm:$0x20]   ;;  %v4545_v62 = vsel %vm17_vm3, %v10008_v14, %v4541_v6  ;;  %v10041_v11 = vld [vmem:[%s20803_s0 + $0x4d] sm:$0x4]   ;;  %v4669_v53 = vsel %vm5_vm0, %v10040_v54, %v10039_v23  ;;  %9644 = vst.msk [vmem:[%s20804_s1 + $0x8] sm:$0xff] %vm3046_vm9, %v16008_v19  }
 0x226   :  { %v10010_v63 = vld [vmem:[%s20803_s0 + $0x2ca] sm:$0x40]   ;;  %v4549_v36 = vsel %vm21_vm4, %v10009_v26, %v4545_v62  ;;  %v10042_v26 = vld [vmem:[%s20803_s0 + $0x6c] sm:$0x8]   ;;  %v4673_v55 = vsel %vm9_vm1, %v10041_v11, %v4669_v53 }
 0x227   :  { %v10011_v15 = vld [vmem:[%s20803_s0 + $0x2e9] sm:$0x80]   ;;  %v4553_v44 = vsel %vm25_vm5, %v10010_v63, %v4549_v36  ;;  %v10043_v6 = vld [vmem:[%s20803_s0 + $0x8b] sm:$0x10]  }
 0x228   :  { %v10031_v27 = vld [vmem:[%s20803_s0 + $0x710] sm:$0x1]   ;;  %v4557_v39 = vsel %vm29_vm6, %v10011_v15, %v4553_v44  ;;  %v4715_v15 = vsel %vm17_vm3, %v10051_v57, %v4711_v22  ;;  %v10046_v62 = vld [vmem:[%s20803_s0 + $0xe8] sm:$0x80]   ;;  %v16111_v44 = vpop.permute.xlu0 %3183  }
 0x229   :  { %v10032_v35 = vld [vmem:[%s20803_s0 + $0x72f] sm:$0x2]   ;;  %4558 = vrot.lane.b32.xlu0 %v4557_v39, %s11150_s8  ;;  %v10060_v39 = vld [vmem:[%s20803_s0 + $0x18b] sm:$0x10]   ;;  %9662 = vst.msk [vmem:[%s20804_s1 + $0x10] sm:$0xff] %vm3046_vm9, %v16111_v44  }
 0x22a   :  { %v10033_v56 = vld [vmem:[%s20803_s0 + $0x74e] sm:$0x4]   ;;  %v4638_v18 = vsel %vm5_vm0, %v10032_v35, %v10031_v27  ;;  %v10044_v27 = vld [vmem:[%s20803_s0 + $0xaa] sm:$0x20]   ;;  %v10141_v44 = vld [vmem:[%s20803_s0 + $0x5a9] sm:$0x20]  }
 0x22b   :  { %v10034_v46 = vld [vmem:[%s20803_s0 + $0x76d] sm:$0x8]   ;;  %v4642_v52 = vsel %vm9_vm1, %v10033_v56, %v4638_v18  ;;  %v10045_v35 = vld [vmem:[%s20803_s0 + $0xc9] sm:$0x40]   ;;  %v4719_v56 = vsel %vm21_vm4, %v10052_v49, %v4715_v15 }
 0x22c   :  { %v10035_v42 = vld [vmem:[%s20803_s0 + $0x78c] sm:$0x10]   ;;  %v4646_v50 = vsel %vm13_vm2, %v10034_v46, %v4642_v52  ;;  %v10065_v18 = vld [vmem:[%s20803_s0 + $0x50f] sm:$0x1]   ;;  %v16042_v46 = vpop.permute.xlu1 %3218   ;;  %v16175_v11 = vpop.permute.xlu0 %3253  }
 0x22d   :  { %v10036_v20 = vld [vmem:[%s20803_s0 + $0x7ab] sm:$0x20]   ;;  %v4650_v12 = vsel %vm17_vm3, %v10035_v42, %v4646_v50  ;;  %v4723_v42 = vsel %vm25_vm5, %v10053_v61, %v4719_v56  ;;  %v4773_v0 = vsel %vm5_vm0, %v10066_v4, %v10065_v18  ;;  %v10086_v49 = vld [vmem:[%s20803_s0 + $0x66c] sm:$0x8]   ;;  %9671 = vst.msk [vmem:[%s20804_s1 + $0x30] sm:$0xff] %vm3046_vm9, %v16042_v46   ;;  %9680 = vst.msk [vmem:[%s20804_s1 + $0x18] sm:$0xff] %vm3046_vm9, %v16175_v11  }
 0x22e   :  { %v10037_v13 = vld [vmem:[%s20803_s0 + $0x7ca] sm:$0x40]   ;;  %v4654_v58 = vsel %vm21_vm4, %v10036_v20, %v4650_v12  ;;  %v4677_v20 = vsel %vm13_vm2, %v10042_v26, %v4673_v55  ;;  %v4727_v16 = vsel %vm29_vm6, %v10054_v33, %v4723_v42  ;;  %v4777_v52 = vsel %vm9_vm1, %v10067_v28, %v4773_v0  ;;  %v10088_v25 = vld [vmem:[%s20803_s0 + $0x6aa] sm:$0x20]   ;;  %v10143_v11 = vld [vmem:[%s20803_s0 + $0x5e7] sm:$0x80]  }
 0x22f   :  { %v10022_v5 = vld [vmem:[%s20803_s0 + $0x310] sm:$0x1]   ;;  %v4658_v40 = vsel %vm25_vm5, %v10037_v13, %v4654_v58  ;;  %v4681_v37 = vsel %vm17_vm3, %v10043_v6, %v4677_v20  ;;  %v10072_v13 = vld [vmem:[%s20803_s0 + $0x5e8] sm:$0x80]  }
 0x230   :  { %v10023_v41 = vld [vmem:[%s20803_s0 + $0x32f] sm:$0x2]   ;;  %4659 = vrot.lane.b32.xlu1 %v4658_v40, %s11150_s8  ;;  %v4685_v36 = vsel %vm21_vm4, %v10044_v27, %v4681_v37  ;;  %v16125_v12 = vpop.permute.xlu1 %3284   ;;  %v10062_v58 = vld [vmem:[%s20803_s0 + $0x1c9] sm:$0x40]  }
 0x231   :  { %v4603_v45 = vsel %vm5_vm0, %v10023_v41, %v10022_v5  ;;  %v10024_v59 = vld [vmem:[%s20803_s0 + $0x34e] sm:$0x4]   ;;  %v10056_v5 = vld [vmem:[%s20803_s0 + $0x10f] sm:$0x1]   ;;  %v4689_v50 = vsel %vm25_vm5, %v10045_v35, %v4685_v36  ;;  %9688 = vst.msk [vmem:[%s20804_s1 + $0x38] sm:$0x7f] %vm3046_vm9, %v16125_v12  }
 0x232   :  { %v10025_v38 = vld [vmem:[%s20803_s0 + $0x36d] sm:$0x8]   ;;  %v4607_v24 = vsel %vm9_vm1, %v10024_v59, %v4603_v45  ;;  %v10057_v41 = vld [vmem:[%s20803_s0 + $0x12e] sm:$0x2]   ;;  %v4781_v45 = vsel %vm13_vm2, %v10068_v32, %v4777_v52  ;;  %v10142_v12 = vld [vmem:[%s20803_s0 + $0x5c8] sm:$0x40]  }
 0x233   :  { %v10026_v8 = vld [vmem:[%s20803_s0 + $0x38c] sm:$0x10]   ;;  %v4611_v3 = vsel %vm13_vm2, %v10025_v38, %v4607_v24  ;;  %v4738_v59 = vsel %vm5_vm0, %v10057_v41, %v10056_v5  ;;  %v10058_v38 = vld [vmem:[%s20803_s0 + $0x14d] sm:$0x4]   ;;  %v4693_v24 = vsel %vm29_vm6, %v10046_v62, %v4689_v50  ;;  %vm5533_vm9 = vcmask 425344  }
 0x234   :  { %v10027_v48 = vld [vmem:[%s20803_s0 + $0x3ab] sm:$0x20]   ;;  %v4615_v29 = vsel %vm17_vm3, %v10026_v8, %v4611_v3  ;;  %4728 = vrot.lane.b32.xlu1 %v4727_v16, %s11151_s3  ;;  %v10059_v8 = vld [vmem:[%s20803_s0 + $0x16c] sm:$0x8]   ;;  %v16201_v42 = vpop.permute.xlu1 %3353  }
 0x235   :  { %v10028_v21 = vld [vmem:[%s20803_s0 + $0x3ca] sm:$0x40]   ;;  %v4619_v17 = vsel %vm21_vm4, %v10027_v48, %v4615_v29  ;;  %v4785_v48 = vsel %vm17_vm3, %v10069_v10, %v4781_v45  ;;  %v10063_v3 = vld [vmem:[%s20803_s0 + $0x1e8] sm:$0x80]   ;;  %9705 = vst.msk [vmem:[%s20804_s1 + $0x20] sm:$0xff] %vm3321_vm10, %v16201_v42  }
 0x236   :  { %v10029_v34 = vld [vmem:[%s20803_s0 + $0x3e9] sm:$0x80]   ;;  %v4623_v14 = vsel %vm25_vm5, %v10028_v21, %v4619_v17  ;;  %v4742_v21 = vsel %vm9_vm1, %v10058_v38, %v4738_v59  ;;  %v4789_v60 = vsel %vm21_vm4, %v10070_v47, %v4785_v48  ;;  %v10084_v40 = vld [vmem:[%s20803_s0 + $0x62e] sm:$0x2]   ;;  %v16239_v59 = vpop.permute.xlu0 %3319   ;;  %v10207_v42 = vld [vmem:[%s20803_s0 + $0x50d] sm:$0x1]  }
 0x237   :  { %v4627_v63 = vsel %vm29_vm6, %v10029_v34, %v4623_v14  ;;  %v10061_v34 = vld [vmem:[%s20803_s0 + $0x1aa] sm:$0x20]   ;;  %v4746_v1 = vsel %vm13_vm2, %v10059_v8, %v4742_v21  ;;  %v4793_v51 = vsel %vm25_vm5, %v10071_v9, %v4789_v60  ;;  %v4843_v57 = vsel %vm5_vm0, %v10084_v40, %v10083_v2  ;;  %3322 = vst.msk [vmem:[%s20804_s1] sm:$0xff] %vm3321_vm10, %v16239_v59   ;;  %v10208_v59 = vld [vmem:[%s20803_s0 + $0x52c] sm:$0x2]  }
 0x238   :  { %4628 = vrot.lane.b32.xlu0 %v4627_v63, %s11150_s8  ;;  %v10085_v29 = vld [vmem:[%s20803_s0 + $0x64d] sm:$0x4]   ;;  %v4750_v30 = vsel %vm17_vm3, %v10060_v39, %v4746_v1  ;;  %v4797_v61 = vsel %vm29_vm6, %v10072_v13, %v4793_v51 }
 0x239   :  { %v10087_v17 = vld [vmem:[%s20803_s0 + $0x68b] sm:$0x10]   ;;  %v4754_v33 = vsel %vm21_vm4, %v10061_v34, %v4750_v30  ;;  %v4847_v23 = vsel %vm9_vm1, %v10085_v29, %v4843_v57  ;;  %4798 = vrot.lane.b32.xlu1 %v4797_v61, %s11151_s3  ;;  %v10118_v57 = vld [vmem:[%s20803_s0 + $0x40e] sm:$0x1]  }
 0x23a   :  { %v10089_v14 = vld [vmem:[%s20803_s0 + $0x6c9] sm:$0x40]   ;;  %v4758_v26 = vsel %vm25_vm5, %v10062_v58, %v4754_v33  ;;  %v4851_v63 = vsel %vm13_vm2, %v10086_v49, %v4847_v23  ;;  %v16277_v49 = vpop.permute.xlu1 %3423   ;;  %v10119_v61 = vld [vmem:[%s20803_s0 + $0x42d] sm:$0x2]  }
 0x23b   :  { %v10090_v22 = vld [vmem:[%s20803_s0 + $0x6e8] sm:$0x80]   ;;  %v4762_v27 = vsel %vm29_vm6, %v10063_v3, %v4758_v26  ;;  %v4855_v35 = vsel %vm17_vm3, %v10087_v17, %v4851_v63  ;;  %v10120_v33 = vld [vmem:[%s20803_s0 + $0x44c] sm:$0x4]   ;;  %9723 = vst.msk [vmem:[%s20804_s1 + $0x28] sm:$0xff] %vm3321_vm10, %v16277_v49  }
 0x23c   :  { %4694 = vrot.lane.b32.xlu0 %v4693_v24, %s11151_s3  ;;  %v10074_v54 = vld [vmem:[%s20803_s0 + $0x20f] sm:$0x1]   ;;  %v4859_v20 = vsel %vm21_vm4, %v10088_v25, %v4855_v35  ;;  %v10121_v23 = vld [vmem:[%s20803_s0 + $0x46b] sm:$0x8]  }
 0x23d   :  { %v10075_v15 = vld [vmem:[%s20803_s0 + $0x22e] sm:$0x2]   ;;  %v4863_v37 = vsel %vm25_vm5, %v10089_v14, %v4859_v20  ;;  %v10122_v26 = vld [vmem:[%s20803_s0 + $0x48a] sm:$0x10]  }
 0x23e   :  { %v10076_v53 = vld [vmem:[%s20803_s0 + $0x24d] sm:$0x4]   ;;  %v4808_v56 = vsel %vm5_vm0, %v10075_v15, %v10074_v54  ;;  %v4867_v52 = vsel %vm29_vm6, %v10090_v22, %v4863_v37  ;;  %v4982_v54 = vsel %vm5_vm0, %v10119_v61, %v10118_v57  ;;  %v10123_v63 = vld [vmem:[%s20803_s0 + $0x4a9] sm:$0x20]  }
 0x23f   :  { %v10077_v6 = vld [vmem:[%s20803_s0 + $0x26c] sm:$0x8]   ;;  %v4812_v4 = vsel %vm9_vm1, %v10076_v53, %v4808_v56  ;;  %4868 = vrot.lane.b32.xlu1 %v4867_v52, %s11151_s3  ;;  %v10124_v15 = vld [vmem:[%s20803_s0 + $0x4c8] sm:$0x40]  }
 0x240   :  { %v10078_v55 = vld [vmem:[%s20803_s0 + $0x28b] sm:$0x10]   ;;  %4763 = vrot.lane.b32.xlu0 %v4762_v27, %s11151_s3  ;;  %v4816_v0 = vsel %vm13_vm2, %v10077_v6, %v4812_v4  ;;  %v4986_v6 = vsel %vm9_vm1, %v10120_v33, %v4982_v54  ;;  %v10125_v27 = vld [vmem:[%s20803_s0 + $0x4e7] sm:$0x80]  }
 0x241   :  { %v10079_v62 = vld [vmem:[%s20803_s0 + $0x2aa] sm:$0x20]   ;;  %v4820_v13 = vsel %vm17_vm3, %v10078_v55, %v4816_v0  ;;  %v10110_v35 = vld [vmem:[%s20803_s0 + $0xe] sm:$0x1]   ;;  %v16315_v55 = vpop.permute.xlu0 %3388  }
 0x242   :  { %v10080_v18 = vld [vmem:[%s20803_s0 + $0x2c9] sm:$0x40]   ;;  %v4824_v38 = vsel %vm21_vm4, %v10079_v62, %v4820_v13  ;;  %v10111_v56 = vld [vmem:[%s20803_s0 + $0x2d] sm:$0x2]   ;;  %9714 = vst.msk [vmem:[%s20804_s1 + $0x8] sm:$0xff] %vm3321_vm10, %v16315_v55  }
 0x243   :  { %v10081_v28 = vld [vmem:[%s20803_s0 + $0x2e8] sm:$0x80]   ;;  %v4828_v21 = vsel %vm25_vm5, %v10080_v18, %v4824_v38  ;;  %v4990_v18 = vsel %vm13_vm2, %v10121_v23, %v4986_v6  ;;  %v4948_v20 = vsel %vm5_vm0, %v10111_v56, %v10110_v35  ;;  %v10112_v4 = vld [vmem:[%s20803_s0 + $0x4c] sm:$0x4]  }
 0x244   :  { %v10101_v32 = vld [vmem:[%s20803_s0 + $0x70f] sm:$0x1]   ;;  %v4832_v2 = vsel %vm29_vm6, %v10081_v28, %v4828_v21  ;;  %v10113_v28 = vld [vmem:[%s20803_s0 + $0x6b] sm:$0x8]   ;;  %v4994_v37 = vsel %vm17_vm3, %v10122_v26, %v4990_v18  ;;  %v4952_v0 = vsel %vm9_vm1, %v10112_v4, %v4948_v20 }
 0x245   :  { %v10102_v16 = vld [vmem:[%s20803_s0 + $0x72e] sm:$0x2]   ;;  %4833 = vrot.lane.b32.xlu0 %v4832_v2, %s11151_s3  ;;  %v4998_v52 = vsel %vm21_vm4, %v10123_v63, %v4994_v37  ;;  %v4956_v13 = vsel %vm13_vm2, %v10113_v28, %v4952_v0  ;;  %v10139_v38 = vld [vmem:[%s20803_s0 + $0x56b] sm:$0x8]  }
 0x246   :  { %v4913_v10 = vsel %vm5_vm0, %v10102_v16, %v10101_v32  ;;  %v10103_v47 = vld [vmem:[%s20803_s0 + $0x74d] sm:$0x4]   ;;  %v10114_v32 = vld [vmem:[%s20803_s0 + $0x8a] sm:$0x10]  }
 0x247   :  { %v10104_v9 = vld [vmem:[%s20803_s0 + $0x76c] sm:$0x8]   ;;  %v4917_v5 = vsel %vm9_vm1, %v10103_v47, %v4913_v10  ;;  %v10115_v10 = vld [vmem:[%s20803_s0 + $0xa9] sm:$0x20]  }
 0x248   :  { %v10105_v36 = vld [vmem:[%s20803_s0 + $0x78b] sm:$0x10]   ;;  %v4921_v8 = vsel %vm13_vm2, %v10104_v9, %v4917_v5  ;;  %v10116_v47 = vld [vmem:[%s20803_s0 + $0xc8] sm:$0x40]  }
 0x249   :  { %v10106_v41 = vld [vmem:[%s20803_s0 + $0x7aa] sm:$0x20]   ;;  %v4925_v34 = vsel %vm17_vm3, %v10105_v36, %v4921_v8  ;;  %v10117_v9 = vld [vmem:[%s20803_s0 + $0xe7] sm:$0x80]   ;;  %v16341_v36 = vpop.permute.xlu1 %3493  }
 0x24a   :  { %v10107_v50 = vld [vmem:[%s20803_s0 + $0x7c9] sm:$0x40]   ;;  %v4929_v40 = vsel %vm21_vm4, %v10106_v41, %v4925_v34  ;;  %v10136_v5 = vld [vmem:[%s20803_s0 + $0x50e] sm:$0x1]   ;;  %9741 = vst.msk [vmem:[%s20804_s1 + $0x30] sm:$0xff] %vm3321_vm10, %v16341_v36   ;;  %v5331_v36 = vsel %vm5_vm0, %v10208_v59, %v10207_v42 }
 0x24b   :  { %v10108_v45 = vld [vmem:[%s20803_s0 + $0x7e8] sm:$0x80]   ;;  %v4933_v17 = vsel %vm25_vm5, %v10107_v50, %v4929_v40  ;;  %v10137_v41 = vld [vmem:[%s20803_s0 + $0x52d] sm:$0x2]   ;;  %v5002_v50 = vsel %vm25_vm5, %v10124_v15, %v4998_v52  ;;  %v10222_v59 = vld [vmem:[%s20803_s0 + $0x2c7] sm:$0x40]  }
 0x24c   :  { %v10092_v39 = vld [vmem:[%s20803_s0 + $0x30f] sm:$0x1]   ;;  %v4937_v14 = vsel %vm29_vm6, %v10108_v45, %v4933_v17  ;;  %v4960_v45 = vsel %vm17_vm3, %v10114_v32, %v4956_v13  ;;  %v5052_v31 = vsel %vm5_vm0, %v10137_v41, %v10136_v5  ;;  %v10140_v8 = vld [vmem:[%s20803_s0 + $0x58a] sm:$0x10]   ;;  %v5006_v7 = vsel %vm29_vm6, %v10125_v27, %v5002_v50 }
 0x24d   :  { %v10093_v24 = vld [vmem:[%s20803_s0 + $0x32e] sm:$0x2]   ;;  %4938 = vrot.lane.b32.xlu1 %v4937_v14, %s11151_s3  ;;  %v4964_v19 = vsel %vm21_vm4, %v10115_v10, %v4960_v45  ;;  %v5056_v46 = vsel %vm9_vm1, %v10138_v43, %v5052_v31  ;;  %v10127_v21 = vld [vmem:[%s20803_s0 + $0x10e] sm:$0x1]  }
 0x24e   :  { %v10094_v48 = vld [vmem:[%s20803_s0 + $0x34d] sm:$0x4]   ;;  %v4878_v58 = vsel %vm5_vm0, %v10093_v24, %v10092_v39  ;;  %v16416_v39 = vpop.permute.xlu0 %3458   ;;  %v4968_v24 = vsel %vm25_vm5, %v10116_v47, %v4964_v19  ;;  %v10128_v34 = vld [vmem:[%s20803_s0 + $0x12d] sm:$0x2]  }
 0x24f   :  { %v10095_v3 = vld [vmem:[%s20803_s0 + $0x36c] sm:$0x8]   ;;  %v4882_v29 = vsel %vm9_vm1, %v10094_v48, %v4878_v58  ;;  %v5060_v48 = vsel %vm13_vm2, %v10139_v38, %v5056_v46  ;;  %v10129_v58 = vld [vmem:[%s20803_s0 + $0x14c] sm:$0x4]   ;;  %9732 = vst.msk [vmem:[%s20804_s1 + $0x10] sm:$0xff] %vm3321_vm10, %v16416_v39  }
 0x250   :  { %v10096_v60 = vld [vmem:[%s20803_s0 + $0x38b] sm:$0x10]   ;;  %v4886_v25 = vsel %vm13_vm2, %v10095_v3, %v4882_v29  ;;  %v4972_v3 = vsel %vm29_vm6, %v10117_v9, %v4968_v24  ;;  %v10130_v2 = vld [vmem:[%s20803_s0 + $0x16b] sm:$0x8]   ;;  %v10210_v39 = vld [vmem:[%s20803_s0 + $0x56a] sm:$0x8]  }
 0x251   :  { %v10097_v1 = vld [vmem:[%s20803_s0 + $0x3aa] sm:$0x20]   ;;  %v4890_v22 = vsel %vm17_vm3, %v10096_v60, %v4886_v25  ;;  %5007 = vrot.lane.b32.xlu1 %v5006_v7, %s11152_s9  ;;  %v5064_v60 = vsel %vm17_vm3, %v10140_v8, %v5060_v48  ;;  %v10131_v40 = vld [vmem:[%s20803_s0 + $0x18a] sm:$0x10]  }
 0x252   :  { %v10098_v51 = vld [vmem:[%s20803_s0 + $0x3c9] sm:$0x40]   ;;  %v4894_v53 = vsel %vm21_vm4, %v10097_v1, %v4890_v22  ;;  %v5017_v1 = vsel %vm5_vm0, %v10128_v34, %v10127_v21  ;;  %v10132_v29 = vld [vmem:[%s20803_s0 + $0x1a9] sm:$0x20]   ;;  %v16479_v35 = vpop.permute.xlu0 %3528  }
 0x253   :  { %v10099_v30 = vld [vmem:[%s20803_s0 + $0x3e8] sm:$0x80]   ;;  %v4898_v62 = vsel %vm25_vm5, %v10098_v51, %v4894_v53  ;;  %v16442_v51 = vpop.permute.xlu1 %3559   ;;  %v5021_v57 = vsel %vm9_vm1, %v10129_v58, %v5017_v1  ;;  %v10133_v17 = vld [vmem:[%s20803_s0 + $0x1c8] sm:$0x40]   ;;  %9750 = vst.msk [vmem:[%s20804_s1 + $0x18] sm:$0xff] %vm3321_vm10, %v16479_v35  }
 0x254   :  { %v4902_v16 = vsel %vm29_vm6, %v10099_v30, %v4898_v62  ;;  %v5068_v30 = vsel %vm21_vm4, %v10141_v44, %v5064_v60  ;;  %v10134_v25 = vld [vmem:[%s20803_s0 + $0x1e7] sm:$0x80]   ;;  %v5025_v23 = vsel %vm13_vm2, %v10130_v2, %v5021_v57  ;;  %9758 = vst.msk [vmem:[%s20804_s1 + $0x38] sm:$0x7f] %vm3321_vm10, %v16442_v51   ;;  %v10211_v51 = vld [vmem:[%s20803_s0 + $0x589] sm:$0x10]  }
 0x255   :  { %4903 = vrot.lane.b32.xlu0 %v4902_v16, %s11151_s3  ;;  %v10154_v61 = vld [vmem:[%s20803_s0 + $0x60e] sm:$0x1]   ;;  %v5072_v33 = vsel %vm25_vm5, %v10142_v12, %v5068_v30  ;;  %v5029_v63 = vsel %vm17_vm3, %v10131_v40, %v5025_v23  ;;  %v10212_v35 = vld [vmem:[%s20803_s0 + $0x5a8] sm:$0x20]   ;;  %vm5812_vm10 = vcmask 392544   ;;  %s11162_s3 = smov 16  }
 0x256   :  { %v10155_v14 = vld [vmem:[%s20803_s0 + $0x62d] sm:$0x2]   ;;  %v5076_v26 = vsel %vm29_vm6, %v10143_v11, %v5072_v33  ;;  %v5033_v56 = vsel %vm21_vm4, %v10132_v29, %v5029_v63  ;;  %v16543_v24 = vpop.permute.xlu0 %3594   ;;  %v10189_v63 = vld [vmem:[%s20803_s0 + $0x40d] sm:$0x1]  }
 0x257   :  { %v10156_v22 = vld [vmem:[%s20803_s0 + $0x64c] sm:$0x4]   ;;  %v5122_v15 = vsel %vm5_vm0, %v10155_v14, %v10154_v61  ;;  %5077 = vrot.lane.b32.xlu1 %v5076_v26, %s11152_s9  ;;  %v5037_v28 = vsel %vm25_vm5, %v10133_v17, %v5033_v56  ;;  %v16517_v50 = vpop.permute.xlu1 %3628   ;;  %v10191_v56 = vld [vmem:[%s20803_s0 + $0x44b] sm:$0x4]   ;;  %3597 = vst.msk [vmem:[%s20804_s1] sm:$0xff] %vm3596_vm11, %v16543_v24  }
 0x258   :  { %v10157_v54 = vld [vmem:[%s20803_s0 + $0x66b] sm:$0x8]   ;;  %v5126_v62 = vsel %vm9_vm1, %v10156_v22, %v5122_v15  ;;  %v5041_v47 = vsel %vm29_vm6, %v10134_v25, %v5037_v28  ;;  %v10190_v15 = vld [vmem:[%s20803_s0 + $0x42c] sm:$0x2]   ;;  %9775 = vst.msk [vmem:[%s20804_s1 + $0x20] sm:$0xff] %vm3596_vm11, %v16517_v50  }
 0x259   :  { %4973 = vrot.lane.b32.xlu0 %v4972_v3, %s11152_s9  ;;  %v10158_v53 = vld [vmem:[%s20803_s0 + $0x68a] sm:$0x10]   ;;  %v5130_v32 = vsel %vm13_vm2, %v10157_v54, %v5126_v62  ;;  %v10192_v62 = vld [vmem:[%s20803_s0 + $0x46a] sm:$0x8]   ;;  %v10279_v50 = vld [vmem:[%s20803_s0 + $0x52b] sm:$0x2]  }
 0x25a   :  { %v10159_v6 = vld [vmem:[%s20803_s0 + $0x6a9] sm:$0x20]   ;;  %v5134_v9 = vsel %vm17_vm3, %v10158_v53, %v5130_v32  ;;  %v10194_v32 = vld [vmem:[%s20803_s0 + $0x4a8] sm:$0x20]   ;;  %v10280_v24 = vld [vmem:[%s20803_s0 + $0x54a] sm:$0x4]  }
 0x25b   :  { %v10160_v27 = vld [vmem:[%s20803_s0 + $0x6c8] sm:$0x40]   ;;  %v5138_v45 = vsel %vm21_vm4, %v10159_v6, %v5134_v9  ;;  %v16581_v14 = vpop.permute.xlu1 %3698   ;;  %v10181_v9 = vld [vmem:[%s20803_s0 + $0xd] sm:$0x1]  }
 0x25c   :  { %v10161_v18 = vld [vmem:[%s20803_s0 + $0x6e7] sm:$0x80]   ;;  %v5142_v7 = vsel %vm25_vm5, %v10160_v27, %v5138_v45  ;;  %v5261_v27 = vsel %vm5_vm0, %v10190_v15, %v10189_v63  ;;  %9793 = vst.msk [vmem:[%s20804_s1 + $0x28] sm:$0xff] %vm3596_vm11, %v16581_v14  }
 0x25d   :  { %v10145_v20 = vld [vmem:[%s20803_s0 + $0x20e] sm:$0x1]   ;;  %5042 = vrot.lane.b32.xlu0 %v5041_v47, %s11152_s9  ;;  %v5146_v48 = vsel %vm29_vm6, %v10161_v18, %v5142_v7  ;;  %v10193_v18 = vld [vmem:[%s20803_s0 + $0x489] sm:$0x10]   ;;  %v5265_v28 = vsel %vm9_vm1, %v10191_v56, %v5261_v27 }
 0x25e   :  { %v10146_v4 = vld [vmem:[%s20803_s0 + $0x22d] sm:$0x2]   ;;  %5147 = vrot.lane.b32.xlu1 %v5146_v48, %s11152_s9  ;;  %v5269_v47 = vsel %vm13_vm2, %v10192_v62, %v5265_v28  ;;  %v10226_v27 = vld [vmem:[%s20803_s0 + $0x62c] sm:$0x2]  }
 0x25f   :  { %v5087_v16 = vsel %vm5_vm0, %v10146_v4, %v10145_v20  ;;  %v10147_v37 = vld [vmem:[%s20803_s0 + $0x24c] sm:$0x4]   ;;  %v10229_v28 = vld [vmem:[%s20803_s0 + $0x689] sm:$0x10]  }
 0x260   :  { %v10148_v0 = vld [vmem:[%s20803_s0 + $0x26b] sm:$0x8]   ;;  %v5091_v52 = vsel %vm9_vm1, %v10147_v37, %v5087_v16  ;;  %v10195_v16 = vld [vmem:[%s20803_s0 + $0x4c7] sm:$0x40]  }
 0x261   :  { %v10149_v10 = vld [vmem:[%s20803_s0 + $0x28a] sm:$0x10]   ;;  %v5095_v31 = vsel %vm13_vm2, %v10148_v0, %v5091_v52  ;;  %v10196_v37 = vld [vmem:[%s20803_s0 + $0x4e6] sm:$0x80]   ;;  %v16619_v0 = vpop.permute.xlu0 %3663  }
 0x262   :  { %v10150_v13 = vld [vmem:[%s20803_s0 + $0x2a9] sm:$0x20]   ;;  %v5099_v19 = vsel %vm17_vm3, %v10149_v10, %v5095_v31  ;;  %v10182_v52 = vld [vmem:[%s20803_s0 + $0x2c] sm:$0x2]   ;;  %9784 = vst.msk [vmem:[%s20804_s1 + $0x8] sm:$0xff] %vm3596_vm11, %v16619_v0  }
 0x263   :  { %v10151_v5 = vld [vmem:[%s20803_s0 + $0x2c8] sm:$0x40]   ;;  %v5103_v21 = vsel %vm21_vm4, %v10150_v13, %v5099_v19  ;;  %v10183_v13 = vld [vmem:[%s20803_s0 + $0x4b] sm:$0x4]   ;;  %v5227_v45 = vsel %vm5_vm0, %v10182_v52, %v10181_v9 }
 0x264   :  { %v10152_v41 = vld [vmem:[%s20803_s0 + $0x2e7] sm:$0x80]   ;;  %v5107_v1 = vsel %vm25_vm5, %v10151_v5, %v5103_v21  ;;  %v10184_v31 = vld [vmem:[%s20803_s0 + $0x6a] sm:$0x8]   ;;  %v5231_v19 = vsel %vm9_vm1, %v10183_v13, %v5227_v45 }
 0x265   :  { %v10172_v43 = vld [vmem:[%s20803_s0 + $0x70e] sm:$0x1]   ;;  %v5111_v57 = vsel %vm29_vm6, %v10152_v41, %v5107_v1  ;;  %v5273_v41 = vsel %vm17_vm3, %v10193_v18, %v5269_v47  ;;  %v5235_v48 = vsel %vm13_vm2, %v10184_v31, %v5231_v19  ;;  %v10209_v21 = vld [vmem:[%s20803_s0 + $0x54b] sm:$0x4]  }
 0x266   :  { %v10173_v38 = vld [vmem:[%s20803_s0 + $0x72d] sm:$0x2]   ;;  %5112 = vrot.lane.b32.xlu0 %v5111_v57, %s11152_s9  ;;  %v5277_v7 = vsel %vm21_vm4, %v10194_v32, %v5273_v41  ;;  %v10214_v1 = vld [vmem:[%s20803_s0 + $0x5e6] sm:$0x80]  }
 0x267   :  { %v10174_v8 = vld [vmem:[%s20803_s0 + $0x74c] sm:$0x4]   ;;  %v5192_v46 = vsel %vm5_vm0, %v10173_v38, %v10172_v43  ;;  %v10185_v43 = vld [vmem:[%s20803_s0 + $0x89] sm:$0x10]  }
 0x268   :  { %v10175_v44 = vld [vmem:[%s20803_s0 + $0x76b] sm:$0x8]   ;;  %v5196_v34 = vsel %vm9_vm1, %v10174_v8, %v5192_v46  ;;  %v10186_v38 = vld [vmem:[%s20803_s0 + $0xa8] sm:$0x20]   ;;  %v5239_v55 = vsel %vm17_vm3, %v10185_v43, %v5235_v48 }
 0x269   :  { %v10176_v12 = vld [vmem:[%s20803_s0 + $0x78a] sm:$0x10]   ;;  %v5200_v2 = vsel %vm13_vm2, %v10175_v44, %v5196_v34  ;;  %v10187_v46 = vld [vmem:[%s20803_s0 + $0xc7] sm:$0x40]   ;;  %v16712_v34 = vpop.permute.xlu0 %3733  }
 0x26a   :  { %v10177_v11 = vld [vmem:[%s20803_s0 + $0x7a9] sm:$0x20]   ;;  %v5204_v17 = vsel %vm17_vm3, %v10176_v12, %v5200_v2  ;;  %v10188_v44 = vld [vmem:[%s20803_s0 + $0xe6] sm:$0x80]   ;;  %v16654_v12 = vpop.permute.xlu1 %3768   ;;  %9802 = vst.msk [vmem:[%s20804_s1 + $0x10] sm:$0xff] %vm3596_vm11, %v16712_v34  }
 0x26b   :  { %v10178_v58 = vld [vmem:[%s20803_s0 + $0x7c8] sm:$0x40]   ;;  %v5208_v22 = vsel %vm21_vm4, %v10177_v11, %v5204_v17  ;;  %v5281_v11 = vsel %vm25_vm5, %v10195_v16, %v5277_v7  ;;  %v10198_v2 = vld [vmem:[%s20803_s0 + $0x10d] sm:$0x1]   ;;  %9811 = vst.msk [vmem:[%s20804_s1 + $0x30] sm:$0xff] %vm3596_vm11, %v16654_v12  }
 0x26c   :  { %v10179_v3 = vld [vmem:[%s20803_s0 + $0x7e7] sm:$0x80]   ;;  %v5212_v53 = vsel %vm25_vm5, %v10178_v58, %v5208_v22  ;;  %v5285_v49 = vsel %vm29_vm6, %v10196_v37, %v5281_v11  ;;  %v5243_v58 = vsel %vm21_vm4, %v10186_v38, %v5239_v55  ;;  %v10200_v57 = vld [vmem:[%s20803_s0 + $0x14b] sm:$0x4]   ;;  %v10282_v34 = vld [vmem:[%s20803_s0 + $0x588] sm:$0x10]  }
 0x26d   :  { %v10163_v60 = vld [vmem:[%s20803_s0 + $0x30e] sm:$0x1]   ;;  %v5216_v20 = vsel %vm29_vm6, %v10179_v3, %v5212_v53  ;;  %v5335_v3 = vsel %vm9_vm1, %v10209_v21, %v5331_v36  ;;  %v10201_v17 = vld [vmem:[%s20803_s0 + $0x16a] sm:$0x8]   ;;  %v16775_v32 = vpop.permute.xlu0 %3803  }
 0x26e   :  { %v10164_v40 = vld [vmem:[%s20803_s0 + $0x32d] sm:$0x2]   ;;  %5217 = vrot.lane.b32.xlu1 %v5216_v20, %s11152_s9  ;;  %v10202_v22 = vld [vmem:[%s20803_s0 + $0x189] sm:$0x10]   ;;  %9820 = vst.msk [vmem:[%s20804_s1 + $0x18] sm:$0xff] %vm3596_vm11, %v16775_v32  }
 0x26f   :  { %v10165_v29 = vld [vmem:[%s20803_s0 + $0x34c] sm:$0x4]   ;;  %v5157_v25 = vsel %vm5_vm0, %v10164_v40, %v10163_v60  ;;  %v10213_v60 = vld [vmem:[%s20803_s0 + $0x5c7] sm:$0x40]   ;;  %v5247_v40 = vsel %vm25_vm5, %v10187_v46, %v5243_v58  ;;  %v10284_v32 = vld [vmem:[%s20803_s0 + $0x5c6] sm:$0x40]  }
 0x270   :  { %v10166_v30 = vld [vmem:[%s20803_s0 + $0x36b] sm:$0x8]   ;;  %v5161_v54 = vsel %vm9_vm1, %v10165_v29, %v5157_v25  ;;  %v5339_v29 = vsel %vm13_vm2, %v10210_v39, %v5335_v3  ;;  %v16737_v25 = vpop.permute.xlu1 %3834   ;;  %v10205_v53 = vld [vmem:[%s20803_s0 + $0x1e6] sm:$0x80]  }
 0x271   :  { %v10167_v61 = vld [vmem:[%s20803_s0 + $0x38a] sm:$0x10]   ;;  %v5165_v6 = vsel %vm13_vm2, %v10166_v30, %v5161_v54  ;;  %v10199_v30 = vld [vmem:[%s20803_s0 + $0x12c] sm:$0x2]   ;;  %9828 = vst.msk [vmem:[%s20804_s1 + $0x38] sm:$0x7f] %vm3596_vm11, %v16737_v25  }
 0x272   :  { %v10168_v33 = vld [vmem:[%s20803_s0 + $0x3a9] sm:$0x20]   ;;  %v5169_v4 = vsel %vm17_vm3, %v10167_v61, %v5165_v6  ;;  %5286 = vrot.lane.b32.xlu1 %v5285_v49, %s11153_s12  ;;  %v5251_v61 = vsel %vm29_vm6, %v10188_v44, %v5247_v40  ;;  %v10203_v54 = vld [vmem:[%s20803_s0 + $0x1a8] sm:$0x20]   ;;  %v10283_v25 = vld [vmem:[%s20803_s0 + $0x5a7] sm:$0x20]  }
 0x273   :  { %v10169_v23 = vld [vmem:[%s20803_s0 + $0x3c8] sm:$0x40]   ;;  %v5173_v10 = vsel %vm21_vm4, %v10168_v33, %v5169_v4  ;;  %v5343_v33 = vsel %vm17_vm3, %v10211_v51, %v5339_v29  ;;  %v10225_v6 = vld [vmem:[%s20803_s0 + $0x60d] sm:$0x1]   ;;  %v16851_v29 = vpop.permute.xlu0 %3869   ;;  %vm6091_vm11 = vcmask 359744  }
 0x274   :  { %v10170_v26 = vld [vmem:[%s20803_s0 + $0x3e7] sm:$0x80]   ;;  %v5177_v5 = vsel %vm25_vm5, %v10169_v23, %v5173_v10  ;;  %v5296_v23 = vsel %vm5_vm0, %v10199_v30, %v10198_v2  ;;  %v5347_v63 = vsel %vm21_vm4, %v10212_v35, %v5343_v33  ;;  %v5401_v18 = vsel %vm5_vm0, %v10226_v27, %v10225_v6  ;;  %v10227_v20 = vld [vmem:[%s20803_s0 + $0x64b] sm:$0x4]   ;;  %v16813_v44 = vpop.permute.xlu1 %3903   ;;  %3872 = vst.msk [vmem:[%s20804_s1] sm:$0xff] %vm3871_vm12, %v16851_v29  }
 0x275   :  { %v5181_v8 = vsel %vm29_vm6, %v10170_v26, %v5177_v5  ;;  %v10204_v26 = vld [vmem:[%s20803_s0 + $0x1c7] sm:$0x40]   ;;  %v5300_v15 = vsel %vm9_vm1, %v10200_v57, %v5296_v23  ;;  %v5351_v56 = vsel %vm25_vm5, %v10213_v60, %v5347_v63  ;;  %v5405_v10 = vsel %vm9_vm1, %v10227_v20, %v5401_v18  ;;  %9845 = vst.msk [vmem:[%s20804_s1 + $0x20] sm:$0xff] %vm3871_vm12, %v16813_v44   ;;  %v10351_v29 = vld [vmem:[%s20803_s0 + $0x549] sm:$0x4]  }
 0x276   :  { %5182 = vrot.lane.b32.xlu0 %v5181_v8, %s11152_s9  ;;  %v5304_v62 = vsel %vm13_vm2, %v10201_v17, %v5300_v15  ;;  %v10228_v4 = vld [vmem:[%s20803_s0 + $0x66a] sm:$0x8]   ;;  %v5355_v16 = vsel %vm29_vm6, %v10214_v1, %v5351_v56 }
 0x277   :  { %v5308_v37 = vsel %vm17_vm3, %v10202_v22, %v5304_v62  ;;  %v10230_v47 = vld [vmem:[%s20803_s0 + $0x6a8] sm:$0x20]   ;;  %5356 = vrot.lane.b32.xlu1 %v5355_v16, %s11153_s12  ;;  %v5409_v5 = vsel %vm13_vm2, %v10228_v4, %v5405_v10  ;;  %v10260_v16 = vld [vmem:[%s20803_s0 + $0x40c] sm:$0x1]  }
 0x278   :  { %v10231_v9 = vld [vmem:[%s20803_s0 + $0x6c7] sm:$0x40]   ;;  %v5312_v13 = vsel %vm21_vm4, %v10203_v54, %v5308_v37  ;;  %v5413_v38 = vsel %vm17_vm3, %v10229_v28, %v5409_v5  ;;  %v16889_v20 = vpop.permute.xlu1 %3973   ;;  %v10261_v37 = vld [vmem:[%s20803_s0 + $0x42b] sm:$0x2]  }
 0x279   :  { %v10232_v52 = vld [vmem:[%s20803_s0 + $0x6e6] sm:$0x80]   ;;  %v5316_v43 = vsel %vm25_vm5, %v10204_v26, %v5312_v13  ;;  %v5417_v48 = vsel %vm21_vm4, %v10230_v47, %v5413_v38  ;;  %v10262_v10 = vld [vmem:[%s20803_s0 + $0x44a] sm:$0x4]   ;;  %9863 = vst.msk [vmem:[%s20804_s1 + $0x28] sm:$0xff] %vm3871_vm12, %v16889_v20  }
 0x27a   :  { %5252 = vrot.lane.b32.xlu0 %v5251_v61, %s11153_s12  ;;  %v10216_v41 = vld [vmem:[%s20803_s0 + $0x20d] sm:$0x1]   ;;  %v5320_v11 = vsel %vm29_vm6, %v10205_v53, %v5316_v43  ;;  %v5421_v55 = vsel %vm25_vm5, %v10231_v9, %v5417_v48  ;;  %v10263_v13 = vld [vmem:[%s20803_s0 + $0x469] sm:$0x8]  }
 0x27b   :  { %v10217_v45 = vld [vmem:[%s20803_s0 + $0x22c] sm:$0x2]   ;;  %v5425_v58 = vsel %vm29_vm6, %v10232_v52, %v5421_v55  ;;  %v5540_v52 = vsel %vm5_vm0, %v10261_v37, %v10260_v16  ;;  %v10264_v5 = vld [vmem:[%s20803_s0 + $0x488] sm:$0x10]  }
 0x27c   :  { %v10218_v31 = vld [vmem:[%s20803_s0 + $0x24b] sm:$0x4]   ;;  %v5366_v8 = vsel %vm5_vm0, %v10217_v45, %v10216_v41  ;;  %5426 = vrot.lane.b32.xlu1 %v5425_v58, %s11153_s12  ;;  %v10265_v41 = vld [vmem:[%s20803_s0 + $0x4a7] sm:$0x20]   ;;  %v16915_v45 = vpop.permute.xlu0 %3938   ;;  %v5544_v38 = vsel %vm9_vm1, %v10262_v10, %v5540_v52 }
 0x27d   :  { %v10219_v7 = vld [vmem:[%s20803_s0 + $0x26a] sm:$0x8]   ;;  %v5370_v42 = vsel %vm9_vm1, %v10218_v31, %v5366_v8  ;;  %v10266_v8 = vld [vmem:[%s20803_s0 + $0x4c6] sm:$0x40]   ;;  %9854 = vst.msk [vmem:[%s20804_s1 + $0x8] sm:$0xff] %vm3871_vm12, %v16915_v45  }
 0x27e   :  { %v10220_v19 = vld [vmem:[%s20803_s0 + $0x289] sm:$0x10]   ;;  %5321 = vrot.lane.b32.xlu0 %v5320_v11, %s11153_s12  ;;  %v5374_v36 = vsel %vm13_vm2, %v10219_v7, %v5370_v42  ;;  %v10267_v7 = vld [vmem:[%s20803_s0 + $0x4e5] sm:$0x80]   ;;  %v5548_v11 = vsel %vm13_vm2, %v10263_v13, %v5544_v38 }
 0x27f   :  { %v10221_v46 = vld [vmem:[%s20803_s0 + $0x2a8] sm:$0x20]   ;;  %v5378_v3 = vsel %vm17_vm3, %v10220_v19, %v5374_v36  ;;  %v10252_v19 = vld [vmem:[%s20803_s0 + $0xc] sm:$0x1]  }
 0x280   :  { %v10223_v21 = vld [vmem:[%s20803_s0 + $0x2e6] sm:$0x80]   ;;  %v5382_v30 = vsel %vm21_vm4, %v10221_v46, %v5378_v3  ;;  %v10253_v48 = vld [vmem:[%s20803_s0 + $0x2b] sm:$0x2]  }
 0x281   :  { %v10243_v49 = vld [vmem:[%s20803_s0 + $0x70d] sm:$0x1]   ;;  %v5386_v23 = vsel %vm25_vm5, %v10222_v59, %v5382_v30  ;;  %v10254_v42 = vld [vmem:[%s20803_s0 + $0x4a] sm:$0x4]   ;;  %v5506_v55 = vsel %vm5_vm0, %v10253_v48, %v10252_v19 }
 0x282   :  { %v10244_v39 = vld [vmem:[%s20803_s0 + $0x72c] sm:$0x2]   ;;  %v5390_v53 = vsel %vm29_vm6, %v10223_v21, %v5386_v23  ;;  %v10255_v59 = vld [vmem:[%s20803_s0 + $0x69] sm:$0x8]   ;;  %v5510_v3 = vsel %vm9_vm1, %v10254_v42, %v5506_v55 }
 0x283   :  { %v10245_v51 = vld [vmem:[%s20803_s0 + $0x74b] sm:$0x4]   ;;  %v5471_v60 = vsel %vm5_vm0, %v10244_v39, %v10243_v49  ;;  %5391 = vrot.lane.b32.xlu0 %v5390_v53, %s11153_s12  ;;  %v5552_v49 = vsel %vm17_vm3, %v10264_v5, %v5548_v11  ;;  %v10256_v36 = vld [vmem:[%s20803_s0 + $0x88] sm:$0x10]  }
 0x284   :  { %v10246_v35 = vld [vmem:[%s20803_s0 + $0x76a] sm:$0x8]   ;;  %v5475_v57 = vsel %vm9_vm1, %v10245_v51, %v5471_v60  ;;  %v10257_v39 = vld [vmem:[%s20803_s0 + $0xa7] sm:$0x20]   ;;  %v5556_v58 = vsel %vm21_vm4, %v10265_v41, %v5552_v49 }
 0x285   :  { %v10247_v1 = vld [vmem:[%s20803_s0 + $0x789] sm:$0x10]   ;;  %v5479_v22 = vsel %vm13_vm2, %v10246_v35, %v5475_v57  ;;  %v10258_v51 = vld [vmem:[%s20803_s0 + $0xc6] sm:$0x40]   ;;  %v16953_v35 = vpop.permute.xlu1 %4043   ;;  %v17019_v57 = vpop.permute.xlu0 %4008  }
 0x286   :  { %v10248_v2 = vld [vmem:[%s20803_s0 + $0x7a8] sm:$0x20]   ;;  %v5483_v6 = vsel %vm17_vm3, %v10247_v1, %v5479_v22  ;;  %v10259_v60 = vld [vmem:[%s20803_s0 + $0xe5] sm:$0x80]   ;;  %9881 = vst.msk [vmem:[%s20804_s1 + $0x30] sm:$0xff] %vm3871_vm12, %v16953_v35   ;;  %9872 = vst.msk [vmem:[%s20804_s1 + $0x10] sm:$0xff] %vm3871_vm12, %v17019_v57  }
 0x287   :  { %v10249_v40 = vld [vmem:[%s20803_s0 + $0x7c7] sm:$0x40]   ;;  %v5487_v4 = vsel %vm21_vm4, %v10248_v2, %v5483_v6  ;;  %v10278_v1 = vld [vmem:[%s20803_s0 + $0x50c] sm:$0x1]   ;;  %v5560_v2 = vsel %vm25_vm5, %v10266_v8, %v5556_v58 }
 0x288   :  { %v10250_v17 = vld [vmem:[%s20803_s0 + $0x7e6] sm:$0x80]   ;;  %v5491_v47 = vsel %vm25_vm5, %v10249_v40, %v5487_v4  ;;  %v5514_v40 = vsel %vm13_vm2, %v10255_v59, %v5510_v3  ;;  %v10281_v30 = vld [vmem:[%s20803_s0 + $0x569] sm:$0x8]   ;;  %v5564_v14 = vsel %vm29_vm6, %v10267_v7, %v5560_v2  ;;  %v5610_v12 = vsel %vm5_vm0, %v10279_v50, %v10278_v1 }
 0x289   :  { %v10234_v61 = vld [vmem:[%s20803_s0 + $0x30d] sm:$0x1]   ;;  %v5495_v31 = vsel %vm29_vm6, %v10250_v17, %v5491_v47  ;;  %v5518_v0 = vsel %vm17_vm3, %v10256_v36, %v5514_v40  ;;  %v10269_v23 = vld [vmem:[%s20803_s0 + $0x10c] sm:$0x1]   ;;  %v17083_v8 = vpop.permute.xlu0 %4078  }
 0x28a   :  { %v10235_v33 = vld [vmem:[%s20803_s0 + $0x32c] sm:$0x2]   ;;  %5496 = vrot.lane.b32.xlu1 %v5495_v31, %s11153_s12  ;;  %v5522_v17 = vsel %vm21_vm4, %v10257_v39, %v5518_v0  ;;  %v10270_v22 = vld [vmem:[%s20803_s0 + $0x12b] sm:$0x2]   ;;  %9890 = vst.msk [vmem:[%s20804_s1 + $0x18] sm:$0xff] %vm3871_vm12, %v17083_v8  }
 0x28b   :  { %v5436_v54 = vsel %vm5_vm0, %v10235_v33, %v10234_v61  ;;  %v10236_v26 = vld [vmem:[%s20803_s0 + $0x34b] sm:$0x4]   ;;  %v5614_v61 = vsel %vm9_vm1, %v10280_v24, %v5610_v12  ;;  %v10285_v33 = vld [vmem:[%s20803_s0 + $0x5e5] sm:$0x80]   ;;  %v10355_v8 = vld [vmem:[%s20803_s0 + $0x5c5] sm:$0x40]  }
 0x28c   :  { %v10237_v63 = vld [vmem:[%s20803_s0 + $0x36a] sm:$0x8]   ;;  %v5440_v27 = vsel %vm9_vm1, %v10236_v26, %v5436_v54  ;;  %v17033_v54 = vpop.permute.xlu1 %4109   ;;  %v5526_v26 = vsel %vm25_vm5, %v10258_v51, %v5522_v17  ;;  %v10271_v53 = vld [vmem:[%s20803_s0 + $0x14a] sm:$0x4]  }
 0x28d   :  { %v10238_v15 = vld [vmem:[%s20803_s0 + $0x389] sm:$0x10]   ;;  %v5444_v28 = vsel %vm13_vm2, %v10237_v63, %v5440_v27  ;;  %v5618_v63 = vsel %vm13_vm2, %v10281_v30, %v5614_v61  ;;  %v10272_v6 = vld [vmem:[%s20803_s0 + $0x169] sm:$0x8]   ;;  %v17147_v61 = vpop.permute.xlu0 %4144   ;;  %9898 = vst.msk [vmem:[%s20804_s1 + $0x38] sm:$0x7f] %vm3871_vm12, %v17033_v54  }
 0x28e   :  { %v10239_v56 = vld [vmem:[%s20803_s0 + $0x3a8] sm:$0x20]   ;;  %v5448_v9 = vsel %vm17_vm3, %v10238_v15, %v5444_v28  ;;  %5565 = vrot.lane.b32.xlu1 %v5564_v14, %s11154_s13  ;;  %v5575_v15 = vsel %vm5_vm0, %v10270_v22, %v10269_v23  ;;  %v10273_v27 = vld [vmem:[%s20803_s0 + $0x188] sm:$0x10]   ;;  %v10354_v54 = vld [vmem:[%s20803_s0 + $0x5a6] sm:$0x20]  }
 0x28f   :  { %v10240_v62 = vld [vmem:[%s20803_s0 + $0x3c7] sm:$0x40]   ;;  %v5452_v43 = vsel %vm21_vm4, %v10239_v56, %v5448_v9  ;;  %v5530_v56 = vsel %vm29_vm6, %v10259_v60, %v5526_v26  ;;  %v10274_v4 = vld [vmem:[%s20803_s0 + $0x1a7] sm:$0x20]   ;;  %4147 = vst.msk [vmem:[%s20804_s1] sm:$0xff] %vm4146_vm13, %v17147_v61   ;;  %vm6370_vm12 = vcmask 326944  }
 0x290   :  { %v10241_v18 = vld [vmem:[%s20803_s0 + $0x3e6] sm:$0x80]   ;;  %v5456_v46 = vsel %vm25_vm5, %v10240_v62, %v5452_v43  ;;  %v5622_v62 = vsel %vm17_vm3, %v10282_v34, %v5618_v63  ;;  %v10275_v28 = vld [vmem:[%s20803_s0 + $0x1c6] sm:$0x40]   ;;  %v17109_v39 = vpop.permute.xlu1 %4178   ;;  %v10421_v61 = vld [vmem:[%s20803_s0 + $0x529] sm:$0x2]  }
 0x291   :  { %v5460_v21 = vsel %vm29_vm6, %v10241_v18, %v5456_v46  ;;  %v5579_v18 = vsel %vm9_vm1, %v10271_v53, %v5575_v15  ;;  %v10276_v16 = vld [vmem:[%s20803_s0 + $0x1e5] sm:$0x80]   ;;  %v5626_v37 = vsel %vm21_vm4, %v10283_v25, %v5622_v62  ;;  %9915 = vst.msk [vmem:[%s20804_s1 + $0x20] sm:$0xff] %vm4146_vm13, %v17109_v39   ;;  %v10420_v39 = vld [vmem:[%s20803_s0 + $0x50a] sm:$0x1]  }
 0x292   :  { %5461 = vrot.lane.b32.xlu0 %v5460_v21, %s11153_s12  ;;  %v5583_v10 = vsel %vm13_vm2, %v10272_v6, %v5579_v18  ;;  %v10296_v47 = vld [vmem:[%s20803_s0 + $0x60c] sm:$0x1]   ;;  %v5630_v13 = vsel %vm25_vm5, %v10284_v32, %v5626_v37 }
 0x293   :  { %v10297_v9 = vld [vmem:[%s20803_s0 + $0x62b] sm:$0x2]   ;;  %v5587_v5 = vsel %vm17_vm3, %v10273_v27, %v5583_v10  ;;  %v5634_v7 = vsel %vm29_vm6, %v10285_v33, %v5630_v13 }
 0x294   :  { %v10298_v52 = vld [vmem:[%s20803_s0 + $0x64a] sm:$0x4]   ;;  %v5680_v41 = vsel %vm5_vm0, %v10297_v9, %v10296_v47  ;;  %v5591_v19 = vsel %vm21_vm4, %v10274_v4, %v5587_v5  ;;  %5635 = vrot.lane.b32.xlu1 %v5634_v7, %s11154_s13  ;;  %v17185_v47 = vpop.permute.xlu1 %4248   ;;  %v10332_v7 = vld [vmem:[%s20803_s0 + $0x42a] sm:$0x2]  }
 0x295   :  { %v10299_v31 = vld [vmem:[%s20803_s0 + $0x669] sm:$0x8]   ;;  %v5684_v46 = vsel %vm9_vm1, %v10298_v52, %v5680_v41  ;;  %v5595_v59 = vsel %vm25_vm5, %v10275_v28, %v5591_v19  ;;  %v10333_v19 = vld [vmem:[%s20803_s0 + $0x449] sm:$0x4]   ;;  %9933 = vst.msk [vmem:[%s20804_s1 + $0x28] sm:$0xff] %vm4146_vm13, %v17185_v47  }
 0x296   :  { %5531 = vrot.lane.b32.xlu0 %v5530_v56, %s11154_s13  ;;  %v10300_v43 = vld [vmem:[%s20803_s0 + $0x688] sm:$0x10]   ;;  %v5688_v21 = vsel %vm13_vm2, %v10299_v31, %v5684_v46  ;;  %v5599_v51 = vsel %vm29_vm6, %v10276_v16, %v5595_v59  ;;  %v10331_v31 = vld [vmem:[%s20803_s0 + $0x40b] sm:$0x1]  }
 0x297   :  { %v10301_v38 = vld [vmem:[%s20803_s0 + $0x6a7] sm:$0x20]   ;;  %v5692_v58 = vsel %vm17_vm3, %v10300_v43, %v5688_v21  ;;  %v10334_v46 = vld [vmem:[%s20803_s0 + $0x468] sm:$0x8]  }
 0x298   :  { %v10302_v11 = vld [vmem:[%s20803_s0 + $0x6c6] sm:$0x40]   ;;  %v5696_v40 = vsel %vm21_vm4, %v10301_v38, %v5692_v58  ;;  %v10335_v59 = vld [vmem:[%s20803_s0 + $0x487] sm:$0x10]  }
 0x299   :  { %v10303_v48 = vld [vmem:[%s20803_s0 + $0x6e5] sm:$0x80]   ;;  %v5700_v0 = vsel %vm25_vm5, %v10302_v11, %v5696_v40  ;;  %v10336_v21 = vld [vmem:[%s20803_s0 + $0x4a6] sm:$0x20]  }
 0x29a   :  { %v10287_v42 = vld [vmem:[%s20803_s0 + $0x20c] sm:$0x1]   ;;  %5600 = vrot.lane.b32.xlu0 %v5599_v51, %s11154_s13  ;;  %v5704_v33 = vsel %vm29_vm6, %v10303_v48, %v5700_v0  ;;  %v10338_v58 = vld [vmem:[%s20803_s0 + $0x4e4] sm:$0x80]  }
 0x29b   :  { %v10288_v49 = vld [vmem:[%s20803_s0 + $0x22b] sm:$0x2]   ;;  %5705 = vrot.lane.b32.xlu1 %v5704_v33, %s11154_s13 }
 0x29c   :  { %v10289_v55 = vld [vmem:[%s20803_s0 + $0x24a] sm:$0x4]   ;;  %v5645_v3 = vsel %vm5_vm0, %v10288_v49, %v10287_v42  ;;  %v5819_v42 = vsel %vm5_vm0, %v10332_v7, %v10331_v31  ;;  %v10337_v49 = vld [vmem:[%s20803_s0 + $0x4c5] sm:$0x40]  }
 0x29d   :  { %v10290_v36 = vld [vmem:[%s20803_s0 + $0x269] sm:$0x8]   ;;  %v5649_v50 = vsel %vm9_vm1, %v10289_v55, %v5645_v3  ;;  %v17223_v55 = vpop.permute.xlu0 %4213   ;;  %v5823_v51 = vsel %vm9_vm1, %v10333_v19, %v5819_v42  ;;  %v10323_v3 = vld [vmem:[%s20803_s0 + $0xb] sm:$0x1]  }
 0x29e   :  { %v10291_v60 = vld [vmem:[%s20803_s0 + $0x288] sm:$0x10]   ;;  %v5653_v12 = vsel %vm13_vm2, %v10290_v36, %v5649_v50  ;;  %v10325_v50 = vld [vmem:[%s20803_s0 + $0x49] sm:$0x4]   ;;  %9924 = vst.msk [vmem:[%s20804_s1 + $0x8] sm:$0xff] %vm4146_vm13, %v17223_v55  }
 0x29f   :  { %v10292_v1 = vld [vmem:[%s20803_s0 + $0x2a7] sm:$0x20]   ;;  %v5657_v23 = vsel %vm17_vm3, %v10291_v60, %v5653_v12  ;;  %v10324_v60 = vld [vmem:[%s20803_s0 + $0x2a] sm:$0x2]  }
 0x2a0   :  { %v10293_v2 = vld [vmem:[%s20803_s0 + $0x2c6] sm:$0x40]   ;;  %v5661_v53 = vsel %vm21_vm4, %v10292_v1, %v5657_v23  ;;  %v5785_v40 = vsel %vm5_vm0, %v10324_v60, %v10323_v3  ;;  %v10367_v7 = vld [vmem:[%s20803_s0 + $0x60b] sm:$0x1]  }
 0x2a1   :  { %v10294_v24 = vld [vmem:[%s20803_s0 + $0x2e5] sm:$0x80]   ;;  %v5665_v18 = vsel %vm25_vm5, %v10293_v2, %v5661_v53  ;;  %v5827_v2 = vsel %vm13_vm2, %v10334_v46, %v5823_v51  ;;  %v10352_v53 = vld [vmem:[%s20803_s0 + $0x568] sm:$0x8]   ;;  %v17324_v20 = vpop.permute.xlu0 %4283  }
 0x2a2   :  { %v10314_v30 = vld [vmem:[%s20803_s0 + $0x70c] sm:$0x1]   ;;  %v5669_v9 = vsel %vm29_vm6, %v10294_v24, %v5665_v18  ;;  %v10326_v24 = vld [vmem:[%s20803_s0 + $0x68] sm:$0x8]   ;;  %v5831_v12 = vsel %vm17_vm3, %v10335_v59, %v5827_v2  ;;  %9942 = vst.msk [vmem:[%s20804_s1 + $0x10] sm:$0xff] %vm4146_vm13, %v17324_v20   ;;  %v6168_v20 = vsel %vm5_vm0, %v10421_v61, %v10420_v39 }
 0x2a3   :  { %v10315_v14 = vld [vmem:[%s20803_s0 + $0x72b] sm:$0x2]   ;;  %5670 = vrot.lane.b32.xlu0 %v5669_v9, %s11154_s13  ;;  %v5835_v33 = vsel %vm21_vm4, %v10336_v21, %v5831_v12  ;;  %v10340_v18 = vld [vmem:[%s20803_s0 + $0x10b] sm:$0x1]   ;;  %v10435_v61 = vld [vmem:[%s20803_s0 + $0x2c4] sm:$0x40]  }
 0x2a4   :  { %v5750_v34 = vsel %vm5_vm0, %v10315_v14, %v10314_v30  ;;  %v10316_v25 = vld [vmem:[%s20803_s0 + $0x74a] sm:$0x4]   ;;  %v10327_v30 = vld [vmem:[%s20803_s0 + $0x87] sm:$0x10]   ;;  %v17249_v14 = vpop.permute.xlu1 %4318  }
 0x2a5   :  { %v10317_v32 = vld [vmem:[%s20803_s0 + $0x769] sm:$0x8]   ;;  %v5754_v22 = vsel %vm9_vm1, %v10316_v25, %v5750_v34  ;;  %v5789_v34 = vsel %vm9_vm1, %v10325_v50, %v5785_v40  ;;  %v10328_v25 = vld [vmem:[%s20803_s0 + $0xa6] sm:$0x20]   ;;  %v17387_v59 = vpop.permute.xlu0 %4353   ;;  %9951 = vst.msk [vmem:[%s20804_s1 + $0x30] sm:$0xff] %vm4146_vm13, %v17249_v14  }
 0x2a6   :  { %v10318_v17 = vld [vmem:[%s20803_s0 + $0x788] sm:$0x10]   ;;  %v5758_v6 = vsel %vm13_vm2, %v10317_v32, %v5754_v22  ;;  %v10329_v32 = vld [vmem:[%s20803_s0 + $0xc5] sm:$0x40]   ;;  %v5793_v23 = vsel %vm13_vm2, %v10326_v24, %v5789_v34  ;;  %9960 = vst.msk [vmem:[%s20804_s1 + $0x18] sm:$0xff] %vm4146_vm13, %v17387_v59  }
 0x2a7   :  { %v10319_v26 = vld [vmem:[%s20803_s0 + $0x7a7] sm:$0x20]   ;;  %v5762_v4 = vsel %vm17_vm3, %v10318_v17, %v5758_v6  ;;  %v10330_v17 = vld [vmem:[%s20803_s0 + $0xe4] sm:$0x80]   ;;  %v10424_v59 = vld [vmem:[%s20803_s0 + $0x586] sm:$0x10]  }
 0x2a8   :  { %v10320_v63 = vld [vmem:[%s20803_s0 + $0x7c6] sm:$0x40]   ;;  %v5766_v52 = vsel %vm21_vm4, %v10319_v26, %v5762_v4  ;;  %v10349_v22 = vld [vmem:[%s20803_s0 + $0x50b] sm:$0x1]  }
 0x2a9   :  { %v10321_v15 = vld [vmem:[%s20803_s0 + $0x7e5] sm:$0x80]   ;;  %v5770_v43 = vsel %vm25_vm5, %v10320_v63, %v5766_v52  ;;  %v10350_v26 = vld [vmem:[%s20803_s0 + $0x52a] sm:$0x2]   ;;  %v5839_v63 = vsel %vm25_vm5, %v10337_v49, %v5835_v33 }
 0x2aa   :  { %v10305_v27 = vld [vmem:[%s20803_s0 + $0x30c] sm:$0x1]   ;;  %v5774_v11 = vsel %vm29_vm6, %v10321_v15, %v5770_v43  ;;  %v5797_v15 = vsel %vm17_vm3, %v10327_v30, %v5793_v23  ;;  %v5889_v44 = vsel %vm5_vm0, %v10350_v26, %v10349_v22  ;;  %v10353_v6 = vld [vmem:[%s20803_s0 + $0x587] sm:$0x10]   ;;  %v5843_v45 = vsel %vm29_vm6, %v10338_v58, %v5839_v63 }
 0x2ab   :  { %v10306_v56 = vld [vmem:[%s20803_s0 + $0x32b] sm:$0x2]   ;;  %5775 = vrot.lane.b32.xlu1 %v5774_v11, %s11154_s13  ;;  %v5801_v35 = vsel %vm21_vm4, %v10328_v25, %v5797_v15  ;;  %v5893_v57 = vsel %vm9_vm1, %v10351_v29, %v5889_v44  ;;  %v10341_v4 = vld [vmem:[%s20803_s0 + $0x12a] sm:$0x2]  }
 0x2ac   :  { %v10307_v62 = vld [vmem:[%s20803_s0 + $0x34a] sm:$0x4]   ;;  %v5715_v28 = vsel %vm5_vm0, %v10306_v56, %v10305_v27  ;;  %v10356_v27 = vld [vmem:[%s20803_s0 + $0x5e4] sm:$0x80]   ;;  %v5805_v56 = vsel %vm25_vm5, %v10329_v32, %v5801_v35  ;;  %v5854_v9 = vsel %vm5_vm0, %v10341_v4, %v10340_v18 }
 0x2ad   :  { %v10308_v16 = vld [vmem:[%s20803_s0 + $0x369] sm:$0x8]   ;;  %v5719_v13 = vsel %vm9_vm1, %v10307_v62, %v5715_v28  ;;  %v5897_v62 = vsel %vm13_vm2, %v10352_v53, %v5893_v57  ;;  %v10342_v28 = vld [vmem:[%s20803_s0 + $0x149] sm:$0x4]  }
 0x2ae   :  { %v10309_v37 = vld [vmem:[%s20803_s0 + $0x388] sm:$0x10]   ;;  %v5723_v38 = vsel %vm13_vm2, %v10308_v16, %v5719_v13  ;;  %v17350_v16 = vpop.permute.xlu1 %4384   ;;  %v10343_v52 = vld [vmem:[%s20803_s0 + $0x168] sm:$0x8]   ;;  %v5858_v31 = vsel %vm9_vm1, %v10342_v28, %v5854_v9 }
 0x2af   :  { %v10310_v10 = vld [vmem:[%s20803_s0 + $0x3a7] sm:$0x20]   ;;  %v5727_v48 = vsel %vm17_vm3, %v10309_v37, %v5723_v38  ;;  %5844 = vrot.lane.b32.xlu1 %v5843_v45, %s11155_s17  ;;  %v5809_v37 = vsel %vm29_vm6, %v10330_v17, %v5805_v56  ;;  %v10344_v13 = vld [vmem:[%s20803_s0 + $0x187] sm:$0x10]   ;;  %v5862_v46 = vsel %vm13_vm2, %v10343_v52, %v5858_v31  ;;  %v17451_v45 = vpop.permute.xlu0 %4419   ;;  %9968 = vst.msk [vmem:[%s20804_s1 + $0x38] sm:$0x7f] %vm4146_vm13, %v17350_v16  }
 0x2b0   :  { %v10311_v5 = vld [vmem:[%s20803_s0 + $0x3c6] sm:$0x40]   ;;  %v5731_v36 = vsel %vm21_vm4, %v10310_v10, %v5727_v48  ;;  %v5901_v10 = vsel %vm17_vm3, %v10353_v6, %v5897_v62  ;;  %v10346_v43 = vld [vmem:[%s20803_s0 + $0x1c5] sm:$0x40]   ;;  %v5866_v49 = vsel %vm17_vm3, %v10344_v13, %v5862_v46  ;;  %v10423_v16 = vld [vmem:[%s20803_s0 + $0x567] sm:$0x8]  }
 0x2b1   :  { %v10312_v41 = vld [vmem:[%s20803_s0 + $0x3e5] sm:$0x80]   ;;  %v5735_v1 = vsel %vm25_vm5, %v10311_v5, %v5731_v36  ;;  %v10345_v5 = vld [vmem:[%s20803_s0 + $0x1a6] sm:$0x20]   ;;  %4422 = vst.msk [vmem:[%s20804_s1] sm:$0xff] %vm4421_vm14, %v17451_v45   ;;  %vm6649_vm13 = vcmask 294144  }
 0x2b2   :  { %v5739_v0 = vsel %vm29_vm6, %v10312_v41, %v5735_v1  ;;  %v5905_v41 = vsel %vm21_vm4, %v10354_v54, %v5901_v10  ;;  %v10347_v38 = vld [vmem:[%s20803_s0 + $0x1e4] sm:$0x80]   ;;  %v5870_v60 = vsel %vm21_vm4, %v10345_v5, %v5866_v49  ;;  %v17425_v32 = vpop.permute.xlu1 %4453   ;;  %v10402_v49 = vld [vmem:[%s20803_s0 + $0x40a] sm:$0x1]   ;;  %v10493_v45 = vld [vmem:[%s20803_s0 + $0x547] sm:$0x4]  }
 0x2b3   :  { %5740 = vrot.lane.b32.xlu0 %v5739_v0, %s11154_s13  ;;  %v5909_v19 = vsel %vm25_vm5, %v10355_v8, %v5905_v41  ;;  %v10368_v11 = vld [vmem:[%s20803_s0 + $0x62a] sm:$0x2]   ;;  %v5874_v24 = vsel %vm25_vm5, %v10346_v43, %v5870_v60  ;;  %v10404_v60 = vld [vmem:[%s20803_s0 + $0x448] sm:$0x4]   ;;  %9985 = vst.msk [vmem:[%s20804_s1 + $0x20] sm:$0xff] %vm4421_vm14, %v17425_v32  }
 0x2b4   :  { %v10369_v48 = vld [vmem:[%s20803_s0 + $0x649] sm:$0x4]   ;;  %v5913_v21 = vsel %vm29_vm6, %v10356_v27, %v5909_v19  ;;  %v5959_v36 = vsel %vm5_vm0, %v10368_v11, %v10367_v7  ;;  %v5878_v17 = vsel %vm29_vm6, %v10347_v38, %v5874_v24  ;;  %v10492_v32 = vld [vmem:[%s20803_s0 + $0x528] sm:$0x2]  }
 0x2b5   :  { %v10370_v42 = vld [vmem:[%s20803_s0 + $0x668] sm:$0x8]   ;;  %5914 = vrot.lane.b32.xlu1 %v5913_v21, %s11155_s17  ;;  %v5963_v1 = vsel %vm9_vm1, %v10369_v48, %v5959_v36  ;;  %v10403_v36 = vld [vmem:[%s20803_s0 + $0x429] sm:$0x2]  }
 0x2b6   :  { %v10371_v51 = vld [vmem:[%s20803_s0 + $0x687] sm:$0x10]   ;;  %v5967_v30 = vsel %vm13_vm2, %v10370_v42, %v5963_v1  ;;  %v17489_v31 = vpop.permute.xlu1 %4523   ;;  %v10405_v1 = vld [vmem:[%s20803_s0 + $0x467] sm:$0x8]  }
 0x2b7   :  { %5810 = vrot.lane.b32.xlu0 %v5809_v37, %s11155_s17  ;;  %v10372_v58 = vld [vmem:[%s20803_s0 + $0x6a6] sm:$0x20]   ;;  %v5971_v33 = vsel %vm17_vm3, %v10371_v51, %v5967_v30  ;;  %10003 = vst.msk [vmem:[%s20804_s1 + $0x28] sm:$0xff] %vm4421_vm14, %v17489_v31  }
 0x2b8   :  { %v10373_v3 = vld [vmem:[%s20803_s0 + $0x6c5] sm:$0x40]   ;;  %v5975_v15 = vsel %vm21_vm4, %v10372_v58, %v5971_v33  ;;  %v10394_v33 = vld [vmem:[%s20803_s0 + $0xa] sm:$0x1]  }
 0x2b9   :  { %v10374_v2 = vld [vmem:[%s20803_s0 + $0x6e4] sm:$0x80]   ;;  %v5979_v35 = vsel %vm25_vm5, %v10373_v3, %v5975_v15  ;;  %v6098_v3 = vsel %vm5_vm0, %v10403_v36, %v10402_v49 }
 0x2ba   :  { %v10358_v40 = vld [vmem:[%s20803_s0 + $0x20b] sm:$0x1]   ;;  %v5983_v62 = vsel %vm29_vm6, %v10374_v2, %v5979_v35  ;;  %v10406_v2 = vld [vmem:[%s20803_s0 + $0x486] sm:$0x10]   ;;  %v6102_v30 = vsel %vm9_vm1, %v10404_v60, %v6098_v3 }
 0x2bb   :  { %v10359_v50 = vld [vmem:[%s20803_s0 + $0x22a] sm:$0x2]   ;;  %5879 = vrot.lane.b32.xlu0 %v5878_v17, %s11155_s17  ;;  %5984 = vrot.lane.b32.xlu1 %v5983_v62, %s11155_s17  ;;  %v6106_v17 = vsel %vm13_vm2, %v10405_v1, %v6102_v30  ;;  %v10439_v3 = vld [vmem:[%s20803_s0 + $0x629] sm:$0x2]  }
 0x2bc   :  { %v5924_v0 = vsel %vm5_vm0, %v10359_v50, %v10358_v40  ;;  %v10360_v12 = vld [vmem:[%s20803_s0 + $0x249] sm:$0x4]   ;;  %v17527_v40 = vpop.permute.xlu0 %4488   ;;  %v10441_v30 = vld [vmem:[%s20803_s0 + $0x667] sm:$0x8]  }
 0x2bd   :  { %v10361_v34 = vld [vmem:[%s20803_s0 + $0x268] sm:$0x8]   ;;  %v5928_v23 = vsel %vm9_vm1, %v10360_v12, %v5924_v0  ;;  %v10407_v0 = vld [vmem:[%s20803_s0 + $0x4a5] sm:$0x20]   ;;  %9994 = vst.msk [vmem:[%s20804_s1 + $0x8] sm:$0xff] %vm4421_vm14, %v17527_v40  }
 0x2be   :  { %v10362_v25 = vld [vmem:[%s20803_s0 + $0x287] sm:$0x10]   ;;  %v5932_v44 = vsel %vm13_vm2, %v10361_v34, %v5928_v23  ;;  %v10408_v12 = vld [vmem:[%s20803_s0 + $0x4c4] sm:$0x40]  }
 0x2bf   :  { %v10363_v22 = vld [vmem:[%s20803_s0 + $0x2a6] sm:$0x20]   ;;  %v5936_v57 = vsel %vm17_vm3, %v10362_v25, %v5932_v44  ;;  %v10409_v34 = vld [vmem:[%s20803_s0 + $0x4e3] sm:$0x80]  }
 0x2c0   :  { %v10364_v26 = vld [vmem:[%s20803_s0 + $0x2c5] sm:$0x40]   ;;  %v5940_v18 = vsel %vm21_vm4, %v10363_v22, %v5936_v57  ;;  %v10395_v23 = vld [vmem:[%s20803_s0 + $0x29] sm:$0x2]   ;;  %v17620_v47 = vpop.permute.xlu0 %4558  }
 0x2c1   :  { %v10365_v63 = vld [vmem:[%s20803_s0 + $0x2e4] sm:$0x80]   ;;  %v5944_v9 = vsel %vm25_vm5, %v10364_v26, %v5940_v18  ;;  %v10396_v22 = vld [vmem:[%s20803_s0 + $0x48] sm:$0x4]   ;;  %v6064_v15 = vsel %vm5_vm0, %v10395_v23, %v10394_v33  ;;  %10012 = vst.msk [vmem:[%s20804_s1 + $0x10] sm:$0xff] %vm4421_vm14, %v17620_v47  }
 0x2c2   :  { %v10385_v29 = vld [vmem:[%s20803_s0 + $0x70b] sm:$0x1]   ;;  %v5948_v43 = vsel %vm29_vm6, %v10365_v63, %v5944_v9  ;;  %v6110_v63 = vsel %vm17_vm3, %v10406_v2, %v6106_v17  ;;  %v10397_v44 = vld [vmem:[%s20803_s0 + $0x67] sm:$0x8]  }
 0x2c3   :  { %v10386_v53 = vld [vmem:[%s20803_s0 + $0x72a] sm:$0x2]   ;;  %5949 = vrot.lane.b32.xlu0 %v5948_v43, %s11155_s17  ;;  %v6114_v57 = vsel %vm21_vm4, %v10407_v0, %v6110_v63  ;;  %v10422_v18 = vld [vmem:[%s20803_s0 + $0x548] sm:$0x4]  }
 0x2c4   :  { %v10387_v6 = vld [vmem:[%s20803_s0 + $0x749] sm:$0x4]   ;;  %v6029_v54 = vsel %vm5_vm0, %v10386_v53, %v10385_v29  ;;  %v10398_v29 = vld [vmem:[%s20803_s0 + $0x86] sm:$0x10]   ;;  %v17683_v60 = vpop.permute.xlu0 %4628  }
 0x2c5   :  { %v10388_v8 = vld [vmem:[%s20803_s0 + $0x768] sm:$0x8]   ;;  %v6033_v4 = vsel %vm9_vm1, %v10387_v6, %v6029_v54  ;;  %v10399_v53 = vld [vmem:[%s20803_s0 + $0xa5] sm:$0x20]   ;;  %v17565_v6 = vpop.permute.xlu1 %4593   ;;  %v6068_v54 = vsel %vm9_vm1, %v10396_v22, %v6064_v15  ;;  %10030 = vst.msk [vmem:[%s20804_s1 + $0x18] sm:$0xff] %vm4421_vm14, %v17683_v60  }
 0x2c6   :  { %v10389_v27 = vld [vmem:[%s20803_s0 + $0x787] sm:$0x10]   ;;  %v6037_v52 = vsel %vm13_vm2, %v10388_v8, %v6033_v4  ;;  %v10400_v8 = vld [vmem:[%s20803_s0 + $0xc4] sm:$0x40]   ;;  %v6072_v62 = vsel %vm13_vm2, %v10397_v44, %v6068_v54  ;;  %10021 = vst.msk [vmem:[%s20804_s1 + $0x30] sm:$0xff] %vm4421_vm14, %v17565_v6  }
 0x2c7   :  { %v10390_v56 = vld [vmem:[%s20803_s0 + $0x7a6] sm:$0x20]   ;;  %v6041_v38 = vsel %vm17_vm3, %v10389_v27, %v6037_v52  ;;  %v10401_v27 = vld [vmem:[%s20803_s0 + $0xe3] sm:$0x80]   ;;  %v6076_v14 = vsel %vm17_vm3, %v10398_v29, %v6072_v62  ;;  %v10496_v60 = vld [vmem:[%s20803_s0 + $0x5a4] sm:$0x20]  }
 0x2c8   :  { %v10391_v28 = vld [vmem:[%s20803_s0 + $0x7c5] sm:$0x40]   ;;  %v6045_v48 = vsel %vm21_vm4, %v10390_v56, %v6041_v38  ;;  %v6118_v56 = vsel %vm25_vm5, %v10408_v12, %v6114_v57  ;;  %v10425_v4 = vld [vmem:[%s20803_s0 + $0x5a5] sm:$0x20]  }
 0x2c9   :  { %v10392_v37 = vld [vmem:[%s20803_s0 + $0x7e4] sm:$0x80]   ;;  %v6049_v51 = vsel %vm25_vm5, %v10391_v28, %v6045_v48  ;;  %v6122_v55 = vsel %vm29_vm6, %v10409_v34, %v6118_v56  ;;  %v6080_v28 = vsel %vm21_vm4, %v10399_v53, %v6076_v14  ;;  %v10427_v9 = vld [vmem:[%s20803_s0 + $0x5e3] sm:$0x80]  }
 0x2ca   :  { %v10376_v10 = vld [vmem:[%s20803_s0 + $0x30b] sm:$0x1]   ;;  %v6053_v50 = vsel %vm29_vm6, %v10392_v37, %v6049_v51  ;;  %v6172_v37 = vsel %vm9_vm1, %v10422_v18, %v6168_v20  ;;  %v10411_v52 = vld [vmem:[%s20803_s0 + $0x10a] sm:$0x1]  }
 0x2cb   :  { %v10377_v13 = vld [vmem:[%s20803_s0 + $0x32a] sm:$0x2]   ;;  %6054 = vrot.lane.b32.xlu1 %v6053_v50, %s11155_s17  ;;  %v10412_v43 = vld [vmem:[%s20803_s0 + $0x129] sm:$0x2]  }
 0x2cc   :  { %v10378_v5 = vld [vmem:[%s20803_s0 + $0x349] sm:$0x4]   ;;  %v5994_v7 = vsel %vm5_vm0, %v10377_v13, %v10376_v10  ;;  %v10426_v10 = vld [vmem:[%s20803_s0 + $0x5c4] sm:$0x40]   ;;  %v17646_v13 = vpop.permute.xlu1 %4659  }
 0x2cd   :  { %v10379_v41 = vld [vmem:[%s20803_s0 + $0x368] sm:$0x8]   ;;  %v5998_v42 = vsel %vm9_vm1, %v10378_v5, %v5994_v7  ;;  %v6084_v5 = vsel %vm25_vm5, %v10400_v8, %v6080_v28  ;;  %v10413_v38 = vld [vmem:[%s20803_s0 + $0x148] sm:$0x4]   ;;  %v17759_v28 = vpop.permute.xlu0 %4694   ;;  %10038 = vst.msk [vmem:[%s20804_s1 + $0x38] sm:$0x7f] %vm4421_vm14, %v17646_v13  }
 0x2ce   :  { %v10380_v19 = vld [vmem:[%s20803_s0 + $0x387] sm:$0x10]   ;;  %v6002_v58 = vsel %vm13_vm2, %v10379_v41, %v5998_v42  ;;  %v6176_v41 = vsel %vm13_vm2, %v10423_v16, %v6172_v37  ;;  %v10414_v7 = vld [vmem:[%s20803_s0 + $0x167] sm:$0x8]   ;;  %v10495_v13 = vld [vmem:[%s20803_s0 + $0x585] sm:$0x10]  }
 0x2cf   :  { %v10381_v46 = vld [vmem:[%s20803_s0 + $0x3a6] sm:$0x20]   ;;  %v6006_v24 = vsel %vm17_vm3, %v10380_v19, %v6002_v58  ;;  %6123 = vrot.lane.b32.xlu1 %v6122_v55, %s11156_s22  ;;  %v6088_v19 = vsel %vm29_vm6, %v10401_v27, %v6084_v5  ;;  %v10415_v48 = vld [vmem:[%s20803_s0 + $0x186] sm:$0x10]   ;;  %4697 = vst.msk [vmem:[%s20804_s1] sm:$0xff] %vm4696_vm15, %v17759_v28  }
 0x2d0   :  { %v10382_v11 = vld [vmem:[%s20803_s0 + $0x3c5] sm:$0x40]   ;;  %v6010_v25 = vsel %vm21_vm4, %v10381_v46, %v6006_v24  ;;  %v6180_v46 = vsel %vm17_vm3, %v10424_v59, %v6176_v41  ;;  %v10416_v42 = vld [vmem:[%s20803_s0 + $0x1a5] sm:$0x20]   ;;  %v17721_v29 = vpop.permute.xlu1 %4728   ;;  %v10564_v28 = vld [vmem:[%s20803_s0 + $0x546] sm:$0x4]  }
 0x2d1   :  { %v10383_v21 = vld [vmem:[%s20803_s0 + $0x3e4] sm:$0x80]   ;;  %v6014_v26 = vsel %vm25_vm5, %v10382_v11, %v6010_v25  ;;  %v6133_v11 = vsel %vm5_vm0, %v10412_v43, %v10411_v52  ;;  %v6184_v49 = vsel %vm21_vm4, %v10425_v4, %v6180_v46  ;;  %v10418_v51 = vld [vmem:[%s20803_s0 + $0x1e3] sm:$0x80]   ;;  %10055 = vst.msk [vmem:[%s20804_s1 + $0x20] sm:$0xff] %vm4696_vm15, %v17721_v29  }
 0x2d2   :  { %v6018_v35 = vsel %vm29_vm6, %v10383_v21, %v6014_v26  ;;  %v10417_v21 = vld [vmem:[%s20803_s0 + $0x1c4] sm:$0x40]   ;;  %v6137_v36 = vsel %vm9_vm1, %v10413_v38, %v6133_v11  ;;  %v6188_v1 = vsel %vm25_vm5, %v10426_v10, %v6184_v49 }
 0x2d3   :  { %6019 = vrot.lane.b32.xlu0 %v6018_v35, %s11155_s17  ;;  %v10438_v58 = vld [vmem:[%s20803_s0 + $0x60a] sm:$0x1]   ;;  %v6141_v2 = vsel %vm13_vm2, %v10414_v7, %v6137_v36  ;;  %v6192_v12 = vsel %vm29_vm6, %v10427_v9, %v6188_v1 }
 0x2d4   :  { %v6238_v50 = vsel %vm5_vm0, %v10439_v3, %v10438_v58  ;;  %v10440_v24 = vld [vmem:[%s20803_s0 + $0x648] sm:$0x4]   ;;  %v6145_v34 = vsel %vm17_vm3, %v10415_v48, %v6141_v2  ;;  %6193 = vrot.lane.b32.xlu1 %v6192_v12, %s11156_s22  ;;  %v10473_v12 = vld [vmem:[%s20803_s0 + $0x409] sm:$0x1]  }
 0x2d5   :  { %v10442_v0 = vld [vmem:[%s20803_s0 + $0x686] sm:$0x10]   ;;  %v6242_v25 = vsel %vm9_vm1, %v10440_v24, %v6238_v50  ;;  %v6149_v22 = vsel %vm21_vm4, %v10416_v42, %v6145_v34  ;;  %v10474_v34 = vld [vmem:[%s20803_s0 + $0x428] sm:$0x2]  }
 0x2d6   :  { %v10443_v17 = vld [vmem:[%s20803_s0 + $0x6a5] sm:$0x20]   ;;  %v6246_v26 = vsel %vm13_vm2, %v10441_v30, %v6242_v25  ;;  %v6153_v53 = vsel %vm25_vm5, %v10417_v21, %v6149_v22  ;;  %v10475_v25 = vld [vmem:[%s20803_s0 + $0x447] sm:$0x4]   ;;  %v6377_v22 = vsel %vm5_vm0, %v10474_v34, %v10473_v12 }
 0x2d7   :  { %6089 = vrot.lane.b32.xlu0 %v6088_v19, %s11156_s22  ;;  %v10444_v33 = vld [vmem:[%s20803_s0 + $0x6c4] sm:$0x40]   ;;  %v6250_v35 = vsel %vm17_vm3, %v10442_v0, %v6246_v26  ;;  %v6157_v56 = vsel %vm29_vm6, %v10418_v51, %v6153_v53  ;;  %v17797_v51 = vpop.permute.xlu1 %4798   ;;  %v10476_v26 = vld [vmem:[%s20803_s0 + $0x466] sm:$0x8]  }
 0x2d8   :  { %v10445_v23 = vld [vmem:[%s20803_s0 + $0x6e3] sm:$0x80]   ;;  %v6254_v62 = vsel %vm21_vm4, %v10443_v17, %v6250_v35  ;;  %v17823_v17 = vpop.permute.xlu0 %4763   ;;  %v6381_v35 = vsel %vm9_vm1, %v10475_v25, %v6377_v22  ;;  %v10489_v12 = vld [vmem:[%s20803_s0 + $0x1e2] sm:$0x80]   ;;  %10073 = vst.msk [vmem:[%s20804_s1 + $0x28] sm:$0xff] %vm4696_vm15, %v17797_v51  }
 0x2d9   :  { %v10429_v63 = vld [vmem:[%s20803_s0 + $0x20a] sm:$0x1]   ;;  %v6258_v14 = vsel %vm25_vm5, %v10444_v33, %v6254_v62  ;;  %v10466_v62 = vld [vmem:[%s20803_s0 + $0x28] sm:$0x2]   ;;  %10064 = vst.msk [vmem:[%s20804_s1 + $0x8] sm:$0xff] %vm4696_vm15, %v17823_v17  }
 0x2da   :  { %v10430_v15 = vld [vmem:[%s20803_s0 + $0x229] sm:$0x2]   ;;  %v6262_v37 = vsel %vm29_vm6, %v10445_v23, %v6258_v14  ;;  %v10511_v22 = vld [vmem:[%s20803_s0 + $0x647] sm:$0x4]  }
 0x2db   :  { %v10431_v44 = vld [vmem:[%s20803_s0 + $0x248] sm:$0x4]   ;;  %v6203_v57 = vsel %vm5_vm0, %v10430_v15, %v10429_v63  ;;  %6158 = vrot.lane.b32.xlu0 %v6157_v56, %s11156_s22  ;;  %6263 = vrot.lane.b32.xlu1 %v6262_v37, %s11156_s22  ;;  %v10477_v63 = vld [vmem:[%s20803_s0 + $0x485] sm:$0x10]   ;;  %v6385_v56 = vsel %vm13_vm2, %v10476_v26, %v6381_v35 }
 0x2dc   :  { %v10432_v54 = vld [vmem:[%s20803_s0 + $0x267] sm:$0x8]   ;;  %v6207_v39 = vsel %vm9_vm1, %v10431_v44, %v6203_v57  ;;  %v10478_v15 = vld [vmem:[%s20803_s0 + $0x4a4] sm:$0x20]   ;;  %v6389_v14 = vsel %vm17_vm3, %v10477_v63, %v6385_v56  ;;  %v17927_v31 = vpop.permute.xlu0 %4833  }
 0x2dd   :  { %v10433_v8 = vld [vmem:[%s20803_s0 + $0x286] sm:$0x10]   ;;  %v6211_v20 = vsel %vm13_vm2, %v10432_v54, %v6207_v39  ;;  %v10479_v57 = vld [vmem:[%s20803_s0 + $0x4c3] sm:$0x40]   ;;  %v6393_v37 = vsel %vm21_vm4, %v10478_v15, %v6389_v14  ;;  %10082 = vst.msk [vmem:[%s20804_s1 + $0x10] sm:$0xff] %vm4696_vm15, %v17927_v31  }
 0x2de   :  { %v10434_v27 = vld [vmem:[%s20803_s0 + $0x2a5] sm:$0x20]   ;;  %v6215_v10 = vsel %vm17_vm3, %v10433_v8, %v6211_v20  ;;  %v10480_v54 = vld [vmem:[%s20803_s0 + $0x4e2] sm:$0x80]   ;;  %v10567_v31 = vld [vmem:[%s20803_s0 + $0x5a3] sm:$0x20]  }
 0x2df   :  { %v10436_v18 = vld [vmem:[%s20803_s0 + $0x2e3] sm:$0x80]   ;;  %v6219_v43 = vsel %vm21_vm4, %v10434_v27, %v6215_v10  ;;  %v10465_v8 = vld [vmem:[%s20803_s0 + $0x9] sm:$0x1]  }
 0x2e0   :  { %v10456_v55 = vld [vmem:[%s20803_s0 + $0x70a] sm:$0x1]   ;;  %v6223_v11 = vsel %vm25_vm5, %v10435_v61, %v6219_v43  ;;  %v10467_v39 = vld [vmem:[%s20803_s0 + $0x47] sm:$0x4]   ;;  %v6343_v20 = vsel %vm5_vm0, %v10466_v62, %v10465_v8  ;;  %v17991_v26 = vpop.permute.xlu0 %4903  }
 0x2e1   :  { %v10457_v16 = vld [vmem:[%s20803_s0 + $0x729] sm:$0x2]   ;;  %v6227_v58 = vsel %vm29_vm6, %v10436_v18, %v6223_v11  ;;  %v10468_v61 = vld [vmem:[%s20803_s0 + $0x66] sm:$0x8]   ;;  %v17861_v18 = vpop.permute.xlu1 %4868   ;;  %v6347_v10 = vsel %vm9_vm1, %v10467_v39, %v6343_v20  ;;  %10100 = vst.msk [vmem:[%s20804_s1 + $0x18] sm:$0xff] %vm4696_vm15, %v17991_v26  }
 0x2e2   :  { %v10458_v59 = vld [vmem:[%s20803_s0 + $0x748] sm:$0x4]   ;;  %v6308_v9 = vsel %vm5_vm0, %v10457_v16, %v10456_v55  ;;  %6228 = vrot.lane.b32.xlu0 %v6227_v58, %s11156_s22  ;;  %v10469_v16 = vld [vmem:[%s20803_s0 + $0x85] sm:$0x10]   ;;  %10091 = vst.msk [vmem:[%s20804_s1 + $0x30] sm:$0xff] %vm4696_vm15, %v17861_v18  }
 0x2e3   :  { %v10459_v4 = vld [vmem:[%s20803_s0 + $0x767] sm:$0x8]   ;;  %v6312_v38 = vsel %vm9_vm1, %v10458_v59, %v6308_v9  ;;  %v10470_v59 = vld [vmem:[%s20803_s0 + $0xa4] sm:$0x20]   ;;  %v10569_v26 = vld [vmem:[%s20803_s0 + $0x5e1] sm:$0x80]  }
 0x2e4   :  { %v10460_v52 = vld [vmem:[%s20803_s0 + $0x786] sm:$0x10]   ;;  %v6316_v48 = vsel %vm13_vm2, %v10459_v4, %v6312_v38  ;;  %v10471_v4 = vld [vmem:[%s20803_s0 + $0xc3] sm:$0x40]  }
 0x2e5   :  { %v10461_v5 = vld [vmem:[%s20803_s0 + $0x7a5] sm:$0x20]   ;;  %v6320_v3 = vsel %vm17_vm3, %v10460_v52, %v6316_v48  ;;  %v10472_v9 = vld [vmem:[%s20803_s0 + $0xe2] sm:$0x80]  }
 0x2e6   :  { %v10462_v41 = vld [vmem:[%s20803_s0 + $0x7c4] sm:$0x40]   ;;  %v6324_v30 = vsel %vm21_vm4, %v10461_v5, %v6320_v3  ;;  %v10491_v52 = vld [vmem:[%s20803_s0 + $0x509] sm:$0x1]   ;;  %v6397_v5 = vsel %vm25_vm5, %v10479_v57, %v6393_v37 }
 0x2e7   :  { %v10463_v7 = vld [vmem:[%s20803_s0 + $0x7e3] sm:$0x80]   ;;  %v6328_v33 = vsel %vm25_vm5, %v10462_v41, %v6324_v30  ;;  %v6351_v41 = vsel %vm13_vm2, %v10468_v61, %v6347_v10  ;;  %v10494_v43 = vld [vmem:[%s20803_s0 + $0x566] sm:$0x8]   ;;  %v6401_v40 = vsel %vm29_vm6, %v10480_v54, %v6397_v5  ;;  %v6447_v47 = vsel %vm5_vm0, %v10492_v32, %v10491_v52 }
 0x2e8   :  { %v10447_v19 = vld [vmem:[%s20803_s0 + $0x30a] sm:$0x1]   ;;  %v6332_v44 = vsel %vm29_vm6, %v10463_v7, %v6328_v33  ;;  %v6355_v6 = vsel %vm17_vm3, %v10469_v16, %v6351_v41  ;;  %v10497_v38 = vld [vmem:[%s20803_s0 + $0x5c3] sm:$0x40]  }
 0x2e9   :  { %v10448_v46 = vld [vmem:[%s20803_s0 + $0x329] sm:$0x2]   ;;  %6333 = vrot.lane.b32.xlu1 %v6332_v44, %s11156_s22  ;;  %v6359_v7 = vsel %vm21_vm4, %v10470_v59, %v6355_v6  ;;  %v10482_v11 = vld [vmem:[%s20803_s0 + $0x109] sm:$0x1]   ;;  %v18055_v6 = vpop.permute.xlu0 %4973  }
 0x2ea   :  { %v6273_v42 = vsel %vm5_vm0, %v10448_v46, %v10447_v19  ;;  %v10449_v21 = vld [vmem:[%s20803_s0 + $0x348] sm:$0x4]   ;;  %v6451_v19 = vsel %vm9_vm1, %v10493_v45, %v6447_v47  ;;  %v10498_v46 = vld [vmem:[%s20803_s0 + $0x5e2] sm:$0x80]   ;;  %4976 = vst.msk [vmem:[%s20804_s1] sm:$0xff] %vm4975_vm7, %v18055_v6  }
 0x2eb   :  { %v10450_v49 = vld [vmem:[%s20803_s0 + $0x367] sm:$0x8]   ;;  %v6277_v1 = vsel %vm9_vm1, %v10449_v21, %v6273_v42  ;;  %v10483_v48 = vld [vmem:[%s20803_s0 + $0x128] sm:$0x2]   ;;  %v17953_v42 = vpop.permute.xlu1 %4938   ;;  %v6363_v21 = vsel %vm25_vm5, %v10471_v4, %v6359_v7  ;;  %v10634_v6 = vld [vmem:[%s20803_s0 + $0x526] sm:$0x2]  }
 0x2ec   :  { %v10451_v36 = vld [vmem:[%s20803_s0 + $0x386] sm:$0x10]   ;;  %v6281_v0 = vsel %vm13_vm2, %v10450_v49, %v6277_v1  ;;  %v6455_v49 = vsel %vm13_vm2, %v10494_v43, %v6451_v19  ;;  %v10484_v58 = vld [vmem:[%s20803_s0 + $0x147] sm:$0x4]   ;;  %10109 = vst.msk [vmem:[%s20804_s1 + $0x38] sm:$0xff] %vm4696_vm15, %v17953_v42  }
 0x2ed   :  { %v10452_v2 = vld [vmem:[%s20803_s0 + $0x3a5] sm:$0x20]   ;;  %v6285_v23 = vsel %vm17_vm3, %v10451_v36, %v6281_v0  ;;  %6402 = vrot.lane.b32.xlu1 %v6401_v40, %s11157_s21  ;;  %v6412_v36 = vsel %vm5_vm0, %v10483_v48, %v10482_v11  ;;  %v10485_v3 = vld [vmem:[%s20803_s0 + $0x166] sm:$0x8]   ;;  %v10568_v42 = vld [vmem:[%s20803_s0 + $0x5c2] sm:$0x40]  }
 0x2ee   :  { %v10453_v50 = vld [vmem:[%s20803_s0 + $0x3c4] sm:$0x40]   ;;  %v6289_v53 = vsel %vm21_vm4, %v10452_v2, %v6285_v23  ;;  %v10486_v1 = vld [vmem:[%s20803_s0 + $0x185] sm:$0x10]   ;;  %v6367_v2 = vsel %vm29_vm6, %v10472_v9, %v6363_v21 }
 0x2ef   :  { %v10454_v24 = vld [vmem:[%s20803_s0 + $0x3e3] sm:$0x80]   ;;  %v6293_v27 = vsel %vm25_vm5, %v10453_v50, %v6289_v53  ;;  %v6459_v50 = vsel %vm17_vm3, %v10495_v13, %v6455_v49  ;;  %v10487_v30 = vld [vmem:[%s20803_s0 + $0x1a4] sm:$0x20]   ;;  %v18029_v59 = vpop.permute.xlu1 %5007  }
 0x2f0   :  { %v6297_v55 = vsel %vm29_vm6, %v10454_v24, %v6293_v27  ;;  %v6416_v24 = vsel %vm9_vm1, %v10484_v58, %v6412_v36  ;;  %v10488_v0 = vld [vmem:[%s20803_s0 + $0x1c3] sm:$0x40]   ;;  %v6463_v34 = vsel %vm21_vm4, %v10496_v60, %v6459_v50  ;;  %10126 = vst.msk [vmem:[%s20804_s1 + $0x20] sm:$0xff] %vm4975_vm7, %v18029_v59   ;;  %v10633_v59 = vld [vmem:[%s20803_s0 + $0x507] sm:$0x1]  }
 0x2f1   :  { %6298 = vrot.lane.b32.xlu0 %v6297_v55, %s11156_s22  ;;  %v6420_v25 = vsel %vm13_vm2, %v10485_v3, %v6416_v24  ;;  %v10509_v33 = vld [vmem:[%s20803_s0 + $0x609] sm:$0x1]   ;;  %v6467_v63 = vsel %vm25_vm5, %v10497_v38, %v6463_v34 }
 0x2f2   :  { %v10510_v23 = vld [vmem:[%s20803_s0 + $0x628] sm:$0x2]   ;;  %v6424_v15 = vsel %vm17_vm3, %v10486_v1, %v6420_v25  ;;  %v6471_v54 = vsel %vm29_vm6, %v10498_v46, %v6467_v63 }
 0x2f3   :  { %v6517_v44 = vsel %vm5_vm0, %v10510_v23, %v10509_v33  ;;  %v10512_v53 = vld [vmem:[%s20803_s0 + $0x666] sm:$0x8]   ;;  %v6428_v8 = vsel %vm21_vm4, %v10487_v30, %v6424_v15  ;;  %6472 = vrot.lane.b32.xlu1 %v6471_v54, %s11157_s21  ;;  %v18093_v24 = vpop.permute.xlu1 %5077   ;;  %v10545_v54 = vld [vmem:[%s20803_s0 + $0x427] sm:$0x2]  }
 0x2f4   :  { %v10513_v35 = vld [vmem:[%s20803_s0 + $0x685] sm:$0x10]   ;;  %v6521_v27 = vsel %vm9_vm1, %v10511_v22, %v6517_v44  ;;  %v6432_v61 = vsel %vm25_vm5, %v10488_v0, %v6428_v8  ;;  %v10546_v8 = vld [vmem:[%s20803_s0 + $0x446] sm:$0x4]   ;;  %10144 = vst.msk [vmem:[%s20804_s1 + $0x28] sm:$0xff] %vm4975_vm7, %v18093_v24  }
 0x2f5   :  { %6368 = vrot.lane.b32.xlu0 %v6367_v2, %s11157_s21  ;;  %v10514_v57 = vld [vmem:[%s20803_s0 + $0x6a4] sm:$0x20]   ;;  %v6525_v55 = vsel %vm13_vm2, %v10512_v53, %v6521_v27  ;;  %v6436_v4 = vsel %vm29_vm6, %v10489_v12, %v6432_v61  ;;  %v10544_v53 = vld [vmem:[%s20803_s0 + $0x408] sm:$0x1]  }
 0x2f6   :  { %v10515_v56 = vld [vmem:[%s20803_s0 + $0x6c3] sm:$0x40]   ;;  %v6529_v37 = vsel %vm17_vm3, %v10513_v35, %v6525_v55  ;;  %v10547_v27 = vld [vmem:[%s20803_s0 + $0x465] sm:$0x8]   ;;  %v6656_v61 = vsel %vm5_vm0, %v10545_v54, %v10544_v53 }
 0x2f7   :  { %v10516_v62 = vld [vmem:[%s20803_s0 + $0x6e2] sm:$0x80]   ;;  %v6533_v41 = vsel %vm21_vm4, %v10514_v57, %v6529_v37  ;;  %v10548_v55 = vld [vmem:[%s20803_s0 + $0x484] sm:$0x10]  }
 0x2f8   :  { %v10500_v39 = vld [vmem:[%s20803_s0 + $0x209] sm:$0x1]   ;;  %v6537_v47 = vsel %vm25_vm5, %v10515_v56, %v6533_v41  ;;  %v18131_v56 = vpop.permute.xlu0 %5042   ;;  %v10551_v37 = vld [vmem:[%s20803_s0 + $0x4e1] sm:$0x80]  }
 0x2f9   :  { %v10501_v14 = vld [vmem:[%s20803_s0 + $0x228] sm:$0x2]   ;;  %6437 = vrot.lane.b32.xlu0 %v6436_v4, %s11157_s21  ;;  %v6541_v46 = vsel %vm29_vm6, %v10516_v62, %v6537_v47  ;;  %v6660_v4 = vsel %vm9_vm1, %v10546_v8, %v6656_v61  ;;  %v10580_v54 = vld [vmem:[%s20803_s0 + $0x608] sm:$0x1]   ;;  %10135 = vst.msk [vmem:[%s20804_s1 + $0x8] sm:$0xff] %vm4975_vm7, %v18131_v56  }
 0x2fa   :  { %v10502_v20 = vld [vmem:[%s20803_s0 + $0x247] sm:$0x4]   ;;  %v6482_v10 = vsel %vm5_vm0, %v10501_v14, %v10500_v39  ;;  %6542 = vrot.lane.b32.xlu1 %v6541_v46, %s11157_s21  ;;  %v10549_v14 = vld [vmem:[%s20803_s0 + $0x4a3] sm:$0x20]  }
 0x2fb   :  { %v10503_v16 = vld [vmem:[%s20803_s0 + $0x266] sm:$0x8]   ;;  %v6486_v32 = vsel %vm9_vm1, %v10502_v20, %v6482_v10  ;;  %v10550_v20 = vld [vmem:[%s20803_s0 + $0x4c2] sm:$0x40]  }
 0x2fc   :  { %v10504_v9 = vld [vmem:[%s20803_s0 + $0x285] sm:$0x10]   ;;  %v6490_v13 = vsel %vm13_vm2, %v10503_v16, %v6486_v32  ;;  %v10536_v10 = vld [vmem:[%s20803_s0 + $0x8] sm:$0x1]  }
 0x2fd   :  { %v10505_v52 = vld [vmem:[%s20803_s0 + $0x2a4] sm:$0x20]   ;;  %v6494_v11 = vsel %vm17_vm3, %v10504_v9, %v6490_v13  ;;  %v10537_v9 = vld [vmem:[%s20803_s0 + $0x27] sm:$0x2]  }
 0x2fe   :  { %v10506_v5 = vld [vmem:[%s20803_s0 + $0x2c3] sm:$0x40]   ;;  %v6498_v58 = vsel %vm21_vm4, %v10505_v52, %v6494_v11  ;;  %v6622_v41 = vsel %vm5_vm0, %v10537_v9, %v10536_v10  ;;  %v10538_v32 = vld [vmem:[%s20803_s0 + $0x46] sm:$0x4]  }
 0x2ff   :  { %v10507_v45 = vld [vmem:[%s20803_s0 + $0x2e2] sm:$0x80]   ;;  %v6502_v30 = vsel %vm25_vm5, %v10506_v5, %v6498_v58  ;;  %v6664_v5 = vsel %vm13_vm2, %v10547_v27, %v6660_v4  ;;  %v10583_v61 = vld [vmem:[%s20803_s0 + $0x665] sm:$0x8]  }
 0x300   :  { %v10527_v43 = vld [vmem:[%s20803_s0 + $0x709] sm:$0x1]   ;;  %v6506_v23 = vsel %vm29_vm6, %v10507_v45, %v6502_v30  ;;  %v10539_v45 = vld [vmem:[%s20803_s0 + $0x65] sm:$0x8]   ;;  %v6668_v13 = vsel %vm17_vm3, %v10548_v55, %v6664_v5 }
 0x301   :  { %v10528_v40 = vld [vmem:[%s20803_s0 + $0x728] sm:$0x2]   ;;  %6507 = vrot.lane.b32.xlu0 %v6506_v23, %s11157_s21  ;;  %v6672_v46 = vsel %vm21_vm4, %v10549_v14, %v6668_v13  ;;  %v10553_v30 = vld [vmem:[%s20803_s0 + $0x108] sm:$0x1]  }
 0x302   :  { %v6587_v60 = vsel %vm5_vm0, %v10528_v40, %v10527_v43  ;;  %v10529_v38 = vld [vmem:[%s20803_s0 + $0x747] sm:$0x4]   ;;  %v10540_v43 = vld [vmem:[%s20803_s0 + $0x84] sm:$0x10]   ;;  %v18169_v40 = vpop.permute.xlu1 %5147  }
 0x303   :  { %v10530_v7 = vld [vmem:[%s20803_s0 + $0x766] sm:$0x8]   ;;  %v6591_v48 = vsel %vm9_vm1, %v10529_v38, %v6587_v60  ;;  %v6626_v60 = vsel %vm9_vm1, %v10538_v32, %v6622_v41  ;;  %v10541_v38 = vld [vmem:[%s20803_s0 + $0xa3] sm:$0x20]   ;;  %10162 = vst.msk [vmem:[%s20804_s1 + $0x30] sm:$0xff] %vm4975_vm7, %v18169_v40  }
 0x304   :  { %v10531_v19 = vld [vmem:[%s20803_s0 + $0x785] sm:$0x10]   ;;  %v6595_v3 = vsel %vm13_vm2, %v10530_v7, %v6591_v48  ;;  %v10542_v7 = vld [vmem:[%s20803_s0 + $0xc2] sm:$0x40]   ;;  %v6630_v11 = vsel %vm13_vm2, %v10539_v45, %v6626_v60 }
 0x305   :  { %v10532_v21 = vld [vmem:[%s20803_s0 + $0x7a4] sm:$0x20]   ;;  %v6599_v0 = vsel %vm17_vm3, %v10531_v19, %v6595_v3  ;;  %v10543_v19 = vld [vmem:[%s20803_s0 + $0xe1] sm:$0x80]   ;;  %v6634_v58 = vsel %vm17_vm3, %v10540_v43, %v6630_v11 }
 0x306   :  { %v10533_v49 = vld [vmem:[%s20803_s0 + $0x7c3] sm:$0x40]   ;;  %v6603_v22 = vsel %vm21_vm4, %v10532_v21, %v6599_v0  ;;  %v10562_v48 = vld [vmem:[%s20803_s0 + $0x508] sm:$0x1]   ;;  %v6638_v17 = vsel %vm21_vm4, %v10541_v38, %v6634_v58 }
 0x307   :  { %v10534_v36 = vld [vmem:[%s20803_s0 + $0x7e2] sm:$0x80]   ;;  %v6607_v35 = vsel %vm25_vm5, %v10533_v49, %v6603_v22  ;;  %v10563_v21 = vld [vmem:[%s20803_s0 + $0x527] sm:$0x2]   ;;  %v18192_v49 = vpop.permute.xlu0 %5112  }
 0x308   :  { %v10518_v1 = vld [vmem:[%s20803_s0 + $0x309] sm:$0x1]   ;;  %v6611_v62 = vsel %vm29_vm6, %v10534_v36, %v6607_v35  ;;  %v6676_v36 = vsel %vm25_vm5, %v10550_v20, %v6672_v46  ;;  %v6726_v29 = vsel %vm5_vm0, %v10563_v21, %v10562_v48  ;;  %v10565_v3 = vld [vmem:[%s20803_s0 + $0x565] sm:$0x8]   ;;  %10153 = vst.msk [vmem:[%s20804_s1 + $0x10] sm:$0xff] %vm4975_vm7, %v18192_v49   ;;  %v7005_v49 = vsel %vm5_vm0, %v10634_v6, %v10633_v59 }
 0x309   :  { %v10519_v2 = vld [vmem:[%s20803_s0 + $0x328] sm:$0x2]   ;;  %6612 = vrot.lane.b32.xlu1 %v6611_v62, %s11157_s21  ;;  %v6680_v51 = vsel %vm29_vm6, %v10551_v37, %v6676_v36  ;;  %v6730_v18 = vsel %vm9_vm1, %v10564_v28, %v6726_v29  ;;  %v10554_v0 = vld [vmem:[%s20803_s0 + $0x127] sm:$0x2]   ;;  %v10648_v6 = vld [vmem:[%s20803_s0 + $0x2c1] sm:$0x40]  }
 0x30a   :  { %v10520_v50 = vld [vmem:[%s20803_s0 + $0x347] sm:$0x4]   ;;  %v6552_v12 = vsel %vm5_vm0, %v10519_v2, %v10518_v1  ;;  %v10566_v1 = vld [vmem:[%s20803_s0 + $0x584] sm:$0x10]   ;;  %v6642_v2 = vsel %vm25_vm5, %v10542_v7, %v6638_v17  ;;  %v6691_v23 = vsel %vm5_vm0, %v10554_v0, %v10553_v30 }
 0x30b   :  { %v10521_v34 = vld [vmem:[%s20803_s0 + $0x366] sm:$0x8]   ;;  %v6556_v63 = vsel %vm9_vm1, %v10520_v50, %v6552_v12  ;;  %v6734_v50 = vsel %vm13_vm2, %v10565_v3, %v6730_v18  ;;  %v10555_v12 = vld [vmem:[%s20803_s0 + $0x146] sm:$0x4]   ;;  %v18307_v55 = vpop.permute.xlu0 %5182  }
 0x30c   :  { %v10522_v25 = vld [vmem:[%s20803_s0 + $0x385] sm:$0x10]   ;;  %v6560_v57 = vsel %vm13_vm2, %v10521_v34, %v6556_v63  ;;  %v18270_v34 = vpop.permute.xlu1 %5217   ;;  %v10556_v22 = vld [vmem:[%s20803_s0 + $0x165] sm:$0x8]   ;;  %v6695_v53 = vsel %vm9_vm1, %v10555_v12, %v6691_v23  ;;  %10171 = vst.msk [vmem:[%s20804_s1 + $0x18] sm:$0xff] %vm4975_vm7, %v18307_v55  }
 0x30d   :  { %v10523_v33 = vld [vmem:[%s20803_s0 + $0x3a4] sm:$0x20]   ;;  %v6564_v39 = vsel %vm17_vm3, %v10522_v25, %v6560_v57  ;;  %6681 = vrot.lane.b32.xlu1 %v6680_v51, %s11158_s2  ;;  %v6646_v25 = vsel %vm29_vm6, %v10543_v19, %v6642_v2  ;;  %v10557_v63 = vld [vmem:[%s20803_s0 + $0x184] sm:$0x10]   ;;  %v6699_v27 = vsel %vm13_vm2, %v10556_v22, %v6695_v53  ;;  %10180 = vst.msk [vmem:[%s20804_s1 + $0x38] sm:$0xff] %vm4975_vm7, %v18270_v34  }
 0x30e   :  { %v10524_v15 = vld [vmem:[%s20803_s0 + $0x3c3] sm:$0x40]   ;;  %v6568_v16 = vsel %vm21_vm4, %v10523_v33, %v6564_v39  ;;  %v6738_v33 = vsel %vm17_vm3, %v10566_v1, %v6734_v50  ;;  %v10559_v35 = vld [vmem:[%s20803_s0 + $0x1c2] sm:$0x40]   ;;  %v6703_v20 = vsel %vm17_vm3, %v10557_v63, %v6699_v27  ;;  %v10636_v34 = vld [vmem:[%s20803_s0 + $0x564] sm:$0x8]  }
 0x30f   :  { %v10525_v44 = vld [vmem:[%s20803_s0 + $0x3e2] sm:$0x80]   ;;  %v6572_v52 = vsel %vm25_vm5, %v10524_v15, %v6568_v16  ;;  %v10558_v15 = vld [vmem:[%s20803_s0 + $0x1a3] sm:$0x20]   ;;  %v18371_v51 = vpop.permute.xlu0 %5252   ;;  %v10637_v55 = vld [vmem:[%s20803_s0 + $0x583] sm:$0x10]  }
 0x310   :  { %v6576_v47 = vsel %vm29_vm6, %v10525_v44, %v6572_v52  ;;  %v6742_v44 = vsel %vm21_vm4, %v10567_v31, %v6738_v33  ;;  %v10560_v57 = vld [vmem:[%s20803_s0 + $0x1e1] sm:$0x80]   ;;  %v6707_v9 = vsel %vm21_vm4, %v10558_v15, %v6703_v20  ;;  %v18333_v45 = vpop.permute.xlu1 %5286   ;;  %v10615_v20 = vld [vmem:[%s20803_s0 + $0x407] sm:$0x1]   ;;  %5255 = vst.msk [vmem:[%s20804_s1] sm:$0xff] %vm5254_vm8, %v18371_v51  }
 0x311   :  { %6577 = vrot.lane.b32.xlu0 %v6576_v47, %s11157_s21  ;;  %v6746_v8 = vsel %vm25_vm5, %v10568_v42, %v6742_v44  ;;  %v10581_v62 = vld [vmem:[%s20803_s0 + $0x627] sm:$0x2]   ;;  %v6711_v43 = vsel %vm25_vm5, %v10559_v35, %v6707_v9  ;;  %v10617_v9 = vld [vmem:[%s20803_s0 + $0x445] sm:$0x4]   ;;  %10197 = vst.msk [vmem:[%s20804_s1 + $0x20] sm:$0xff] %vm5254_vm8, %v18333_v45  }
 0x312   :  { %v10582_v39 = vld [vmem:[%s20803_s0 + $0x646] sm:$0x4]   ;;  %v6750_v14 = vsel %vm29_vm6, %v10569_v26, %v6746_v8  ;;  %v6796_v16 = vsel %vm5_vm0, %v10581_v62, %v10580_v54  ;;  %v6715_v19 = vsel %vm29_vm6, %v10560_v57, %v6711_v43  ;;  %v10705_v45 = vld [vmem:[%s20803_s0 + $0x525] sm:$0x2]  }
 0x313   :  { %v10584_v4 = vld [vmem:[%s20803_s0 + $0x684] sm:$0x10]   ;;  %6751 = vrot.lane.b32.xlu1 %v6750_v14, %s11158_s2  ;;  %v6800_v52 = vsel %vm9_vm1, %v10582_v39, %v6796_v16  ;;  %v10616_v16 = vld [vmem:[%s20803_s0 + $0x426] sm:$0x2]   ;;  %v10706_v51 = vld [vmem:[%s20803_s0 + $0x544] sm:$0x4]  }
 0x314   :  { %v10585_v37 = vld [vmem:[%s20803_s0 + $0x6a3] sm:$0x20]   ;;  %v6804_v47 = vsel %vm13_vm2, %v10583_v61, %v6800_v52  ;;  %v18409_v53 = vpop.permute.xlu1 %5356   ;;  %v10618_v52 = vld [vmem:[%s20803_s0 + $0x464] sm:$0x8]  }
 0x315   :  { %6647 = vrot.lane.b32.xlu0 %v6646_v25, %s11158_s2  ;;  %v10586_v10 = vld [vmem:[%s20803_s0 + $0x6c2] sm:$0x40]   ;;  %v6808_v46 = vsel %vm17_vm3, %v10584_v4, %v6804_v47  ;;  %10215 = vst.msk [vmem:[%s20804_s1 + $0x28] sm:$0xff] %vm5254_vm8, %v18409_v53  }
 0x316   :  { %v10587_v5 = vld [vmem:[%s20803_s0 + $0x6e1] sm:$0x80]   ;;  %v6812_v58 = vsel %vm21_vm4, %v10585_v37, %v6808_v46  ;;  %v10607_v46 = vld [vmem:[%s20803_s0 + $0x7] sm:$0x1]  }
 0x317   :  { %v10571_v41 = vld [vmem:[%s20803_s0 + $0x208] sm:$0x1]   ;;  %v6816_v17 = vsel %vm25_vm5, %v10586_v10, %v6812_v58  ;;  %v6935_v10 = vsel %vm5_vm0, %v10616_v16, %v10615_v20 }
 0x318   :  { %v10572_v32 = vld [vmem:[%s20803_s0 + $0x227] sm:$0x2]   ;;  %v6820_v50 = vsel %vm29_vm6, %v10587_v5, %v6816_v17  ;;  %v10619_v5 = vld [vmem:[%s20803_s0 + $0x483] sm:$0x10]   ;;  %v6939_v47 = vsel %vm9_vm1, %v10617_v9, %v6935_v10 }
 0x319   :  { %v6761_v13 = vsel %vm5_vm0, %v10572_v32, %v10571_v41  ;;  %v10573_v60 = vld [vmem:[%s20803_s0 + $0x246] sm:$0x4]   ;;  %6716 = vrot.lane.b32.xlu0 %v6715_v19, %s11158_s2  ;;  %6821 = vrot.lane.b32.xlu1 %v6820_v50, %s11158_s2  ;;  %v18447_v41 = vpop.permute.xlu0 %5321   ;;  %v6943_v19 = vsel %vm13_vm2, %v10618_v52, %v6939_v47  ;;  %v10652_v10 = vld [vmem:[%s20803_s0 + $0x626] sm:$0x2]  }
 0x31a   :  { %v10574_v38 = vld [vmem:[%s20803_s0 + $0x265] sm:$0x8]   ;;  %v6765_v11 = vsel %vm9_vm1, %v10573_v60, %v6761_v13  ;;  %v10620_v13 = vld [vmem:[%s20803_s0 + $0x4a2] sm:$0x20]   ;;  %v6947_v58 = vsel %vm17_vm3, %v10619_v5, %v6943_v19  ;;  %10206 = vst.msk [vmem:[%s20804_s1 + $0x8] sm:$0xff] %vm5254_vm8, %v18447_v41  }
 0x31b   :  { %v10575_v7 = vld [vmem:[%s20803_s0 + $0x284] sm:$0x10]   ;;  %v6769_v29 = vsel %vm13_vm2, %v10574_v38, %v6765_v11  ;;  %v10621_v60 = vld [vmem:[%s20803_s0 + $0x4c1] sm:$0x40]  }
 0x31c   :  { %v10576_v48 = vld [vmem:[%s20803_s0 + $0x2a3] sm:$0x20]   ;;  %v6773_v18 = vsel %vm17_vm3, %v10575_v7, %v6769_v29  ;;  %v10622_v38 = vld [vmem:[%s20803_s0 + $0x4e0] sm:$0x80]  }
 0x31d   :  { %v10577_v21 = vld [vmem:[%s20803_s0 + $0x2c2] sm:$0x40]   ;;  %v6777_v30 = vsel %vm21_vm4, %v10576_v48, %v6773_v18  ;;  %v10608_v11 = vld [vmem:[%s20803_s0 + $0x26] sm:$0x2]   ;;  %v6951_v18 = vsel %vm21_vm4, %v10620_v13, %v6947_v58  ;;  %v18540_v24 = vpop.permute.xlu0 %5391  }
 0x31e   :  { %v10578_v36 = vld [vmem:[%s20803_s0 + $0x2e1] sm:$0x80]   ;;  %v6781_v23 = vsel %vm25_vm5, %v10577_v21, %v6777_v30  ;;  %v10609_v48 = vld [vmem:[%s20803_s0 + $0x45] sm:$0x4]   ;;  %v18473_v21 = vpop.permute.xlu1 %5426   ;;  %v6901_v29 = vsel %vm5_vm0, %v10608_v11, %v10607_v46  ;;  %10224 = vst.msk [vmem:[%s20804_s1 + $0x10] sm:$0xff] %vm5254_vm8, %v18540_v24  }
 0x31f   :  { %v10598_v28 = vld [vmem:[%s20803_s0 + $0x708] sm:$0x1]   ;;  %v6785_v35 = vsel %vm29_vm6, %v10578_v36, %v6781_v23  ;;  %v10635_v30 = vld [vmem:[%s20803_s0 + $0x545] sm:$0x4]   ;;  %10233 = vst.msk [vmem:[%s20804_s1 + $0x30] sm:$0xff] %vm5254_vm8, %v18473_v21  }
 0x320   :  { %v10599_v3 = vld [vmem:[%s20803_s0 + $0x727] sm:$0x2]   ;;  %6786 = vrot.lane.b32.xlu0 %v6785_v35, %s11158_s2  ;;  %v10640_v23 = vld [vmem:[%s20803_s0 + $0x5e0] sm:$0x80]  }
 0x321   :  { %v10600_v1 = vld [vmem:[%s20803_s0 + $0x746] sm:$0x4]   ;;  %v6866_v31 = vsel %vm5_vm0, %v10599_v3, %v10598_v28  ;;  %v10610_v28 = vld [vmem:[%s20803_s0 + $0x64] sm:$0x8]   ;;  %v18603_v9 = vpop.permute.xlu0 %5461  }
 0x322   :  { %v10601_v42 = vld [vmem:[%s20803_s0 + $0x765] sm:$0x8]   ;;  %v6870_v0 = vsel %vm9_vm1, %v10600_v1, %v6866_v31  ;;  %v10611_v3 = vld [vmem:[%s20803_s0 + $0x83] sm:$0x10]   ;;  %v6905_v31 = vsel %vm9_vm1, %v10609_v48, %v6901_v29  ;;  %10242 = vst.msk [vmem:[%s20804_s1 + $0x18] sm:$0xff] %vm5254_vm8, %v18603_v9  }
 0x323   :  { %v10602_v26 = vld [vmem:[%s20803_s0 + $0x784] sm:$0x10]   ;;  %v6874_v22 = vsel %vm13_vm2, %v10601_v42, %v6870_v0  ;;  %v10612_v1 = vld [vmem:[%s20803_s0 + $0xa2] sm:$0x20]   ;;  %v6909_v50 = vsel %vm13_vm2, %v10610_v28, %v6905_v31  ;;  %v10709_v9 = vld [vmem:[%s20803_s0 + $0x5a1] sm:$0x20]  }
 0x324   :  { %v10603_v2 = vld [vmem:[%s20803_s0 + $0x7a3] sm:$0x20]   ;;  %v6878_v57 = vsel %vm17_vm3, %v10602_v26, %v6874_v22  ;;  %v10613_v42 = vld [vmem:[%s20803_s0 + $0xc1] sm:$0x40]   ;;  %v6913_v40 = vsel %vm17_vm3, %v10611_v3, %v6909_v50 }
 0x325   :  { %v10604_v12 = vld [vmem:[%s20803_s0 + $0x7c2] sm:$0x40]   ;;  %v6882_v39 = vsel %vm21_vm4, %v10603_v2, %v6878_v57  ;;  %v10614_v26 = vld [vmem:[%s20803_s0 + $0xe0] sm:$0x80]   ;;  %v6955_v2 = vsel %vm25_vm5, %v10621_v60, %v6951_v18 }
 0x326   :  { %v10605_v25 = vld [vmem:[%s20803_s0 + $0x7e1] sm:$0x80]   ;;  %v6886_v4 = vsel %vm25_vm5, %v10604_v12, %v6882_v39  ;;  %v6959_v56 = vsel %vm29_vm6, %v10622_v38, %v6955_v2  ;;  %v10638_v0 = vld [vmem:[%s20803_s0 + $0x5a2] sm:$0x20]   ;;  %v6917_v12 = vsel %vm21_vm4, %v10612_v1, %v6913_v40 }
 0x327   :  { %v10589_v33 = vld [vmem:[%s20803_s0 + $0x308] sm:$0x1]   ;;  %v6890_v32 = vsel %vm29_vm6, %v10605_v25, %v6886_v4  ;;  %v7009_v25 = vsel %vm9_vm1, %v10635_v30, %v7005_v49  ;;  %v10624_v22 = vld [vmem:[%s20803_s0 + $0x107] sm:$0x1]  }
 0x328   :  { %v10590_v63 = vld [vmem:[%s20803_s0 + $0x327] sm:$0x2]   ;;  %6891 = vrot.lane.b32.xlu1 %v6890_v32, %s11158_s2  ;;  %v10626_v35 = vld [vmem:[%s20803_s0 + $0x145] sm:$0x4]  }
 0x329   :  { %v10591_v15 = vld [vmem:[%s20803_s0 + $0x346] sm:$0x4]   ;;  %v6831_v54 = vsel %vm5_vm0, %v10590_v63, %v10589_v33  ;;  %v10639_v33 = vld [vmem:[%s20803_s0 + $0x5c1] sm:$0x40]   ;;  %v6921_v63 = vsel %vm25_vm5, %v10613_v42, %v6917_v12  ;;  %v18679_v12 = vpop.permute.xlu0 %5531  }
 0x32a   :  { %v10592_v44 = vld [vmem:[%s20803_s0 + $0x365] sm:$0x8]   ;;  %v6835_v61 = vsel %vm9_vm1, %v10591_v15, %v6831_v54  ;;  %v7013_v15 = vsel %vm13_vm2, %v10636_v34, %v7009_v25  ;;  %v10627_v57 = vld [vmem:[%s20803_s0 + $0x164] sm:$0x8]   ;;  %v18577_v54 = vpop.permute.xlu1 %5496   ;;  %5534 = vst.msk [vmem:[%s20804_s1] sm:$0xff] %vm5533_vm9, %v18679_v12  }
 0x32b   :  { %v10593_v8 = vld [vmem:[%s20803_s0 + $0x384] sm:$0x10]   ;;  %v6839_v37 = vsel %vm13_vm2, %v10592_v44, %v6835_v61  ;;  %v10625_v44 = vld [vmem:[%s20803_s0 + $0x126] sm:$0x2]   ;;  %10251 = vst.msk [vmem:[%s20804_s1 + $0x38] sm:$0xff] %vm5254_vm8, %v18577_v54  }
 0x32c   :  { %v10594_v27 = vld [vmem:[%s20803_s0 + $0x3a3] sm:$0x20]   ;;  %v6843_v43 = vsel %vm17_vm3, %v10593_v8, %v6839_v37  ;;  %6960 = vrot.lane.b32.xlu1 %v6959_v56, %s11159_s24  ;;  %v6925_v8 = vsel %vm29_vm6, %v10614_v26, %v6921_v63  ;;  %v10628_v39 = vld [vmem:[%s20803_s0 + $0x183] sm:$0x10]   ;;  %v10708_v54 = vld [vmem:[%s20803_s0 + $0x582] sm:$0x10]  }
 0x32d   :  { %v10595_v62 = vld [vmem:[%s20803_s0 + $0x3c2] sm:$0x40]   ;;  %v6847_v7 = vsel %vm21_vm4, %v10594_v27, %v6843_v43  ;;  %v7017_v27 = vsel %vm17_vm3, %v10637_v55, %v7013_v15  ;;  %v10629_v61 = vld [vmem:[%s20803_s0 + $0x1a2] sm:$0x20]   ;;  %v10777_v12 = vld [vmem:[%s20803_s0 + $0x543] sm:$0x4]  }
 0x32e   :  { %v10596_v14 = vld [vmem:[%s20803_s0 + $0x3e1] sm:$0x80]   ;;  %v6851_v36 = vsel %vm25_vm5, %v10595_v62, %v6847_v7  ;;  %v6970_v62 = vsel %vm5_vm0, %v10625_v44, %v10624_v22  ;;  %v7021_v20 = vsel %vm21_vm4, %v10638_v0, %v7017_v27  ;;  %v10631_v4 = vld [vmem:[%s20803_s0 + $0x1e0] sm:$0x80]   ;;  %v18641_v3 = vpop.permute.xlu1 %5565  }
 0x32f   :  { %v6855_v17 = vsel %vm29_vm6, %v10596_v14, %v6851_v36  ;;  %v10630_v14 = vld [vmem:[%s20803_s0 + $0x1c1] sm:$0x40]   ;;  %v6974_v16 = vsel %vm9_vm1, %v10626_v35, %v6970_v62  ;;  %v7025_v52 = vsel %vm25_vm5, %v10639_v33, %v7021_v20  ;;  %10268 = vst.msk [vmem:[%s20804_s1 + $0x20] sm:$0xff] %vm5533_vm9, %v18641_v3  }
 0x330   :  { %6856 = vrot.lane.b32.xlu0 %v6855_v17, %s11158_s2  ;;  %v10651_v37 = vld [vmem:[%s20803_s0 + $0x607] sm:$0x1]   ;;  %v6978_v5 = vsel %vm13_vm2, %v10627_v57, %v6974_v16  ;;  %v7029_v60 = vsel %vm29_vm6, %v10640_v23, %v7025_v52 }
 0x331   :  { %v7075_v32 = vsel %vm5_vm0, %v10652_v10, %v10651_v37  ;;  %v10653_v43 = vld [vmem:[%s20803_s0 + $0x645] sm:$0x4]   ;;  %v6982_v38 = vsel %vm17_vm3, %v10628_v39, %v6978_v5  ;;  %7030 = vrot.lane.b32.xlu1 %v7029_v60, %s11159_s24  ;;  %v10686_v60 = vld [vmem:[%s20803_s0 + $0x406] sm:$0x1]  }
 0x332   :  { %v10654_v47 = vld [vmem:[%s20803_s0 + $0x664] sm:$0x8]   ;;  %v7079_v7 = vsel %vm9_vm1, %v10653_v43, %v7075_v32  ;;  %v6986_v48 = vsel %vm21_vm4, %v10629_v61, %v6982_v38  ;;  %v10687_v38 = vld [vmem:[%s20803_s0 + $0x425] sm:$0x2]  }
 0x333   :  { %v10655_v13 = vld [vmem:[%s20803_s0 + $0x683] sm:$0x10]   ;;  %v7083_v36 = vsel %vm13_vm2, %v10654_v47, %v7079_v7  ;;  %v6990_v1 = vsel %vm25_vm5, %v10630_v14, %v6986_v48  ;;  %v10688_v7 = vld [vmem:[%s20803_s0 + $0x444] sm:$0x4]   ;;  %v7214_v48 = vsel %vm5_vm0, %v10687_v38, %v10686_v60 }
 0x334   :  { %6926 = vrot.lane.b32.xlu0 %v6925_v8, %s11159_s24  ;;  %v10656_v19 = vld [vmem:[%s20803_s0 + $0x6a2] sm:$0x20]   ;;  %v7087_v17 = vsel %vm17_vm3, %v10655_v13, %v7083_v36  ;;  %v6994_v2 = vsel %vm29_vm6, %v10631_v4, %v6990_v1  ;;  %v18717_v4 = vpop.permute.xlu1 %5635   ;;  %v10689_v36 = vld [vmem:[%s20803_s0 + $0x463] sm:$0x8]  }
 0x335   :  { %v10657_v46 = vld [vmem:[%s20803_s0 + $0x6c1] sm:$0x40]   ;;  %v7091_v50 = vsel %vm21_vm4, %v10656_v19, %v7087_v17  ;;  %v18743_v19 = vpop.permute.xlu0 %5600   ;;  %v7218_v17 = vsel %vm9_vm1, %v10688_v7, %v7214_v48  ;;  %v10702_v60 = vld [vmem:[%s20803_s0 + $0x1df] sm:$0x80]   ;;  %10286 = vst.msk [vmem:[%s20804_s1 + $0x28] sm:$0xff] %vm5533_vm9, %v18717_v4  }
 0x336   :  { %v10658_v11 = vld [vmem:[%s20803_s0 + $0x6e0] sm:$0x80]   ;;  %v7095_v40 = vsel %vm25_vm5, %v10657_v46, %v7091_v50  ;;  %v10679_v50 = vld [vmem:[%s20803_s0 + $0x25] sm:$0x2]   ;;  %10277 = vst.msk [vmem:[%s20804_s1 + $0x8] sm:$0xff] %vm5533_vm9, %v18743_v19  }
 0x337   :  { %v10642_v58 = vld [vmem:[%s20803_s0 + $0x207] sm:$0x1]   ;;  %v7099_v25 = vsel %vm29_vm6, %v10658_v11, %v7095_v40  ;;  %v10724_v48 = vld [vmem:[%s20803_s0 + $0x644] sm:$0x4]  }
 0x338   :  { %v10643_v29 = vld [vmem:[%s20803_s0 + $0x226] sm:$0x2]   ;;  %6995 = vrot.lane.b32.xlu0 %v6994_v2, %s11159_s24  ;;  %7100 = vrot.lane.b32.xlu1 %v7099_v25, %s11159_s24  ;;  %v7222_v2 = vsel %vm13_vm2, %v10689_v36, %v7218_v17  ;;  %v10726_v17 = vld [vmem:[%s20803_s0 + $0x682] sm:$0x10]  }
 0x339   :  { %v10644_v28 = vld [vmem:[%s20803_s0 + $0x245] sm:$0x4]   ;;  %v7040_v18 = vsel %vm5_vm0, %v10643_v29, %v10642_v58  ;;  %v10690_v58 = vld [vmem:[%s20803_s0 + $0x482] sm:$0x10]   ;;  %v18847_v53 = vpop.permute.xlu0 %5670  }
 0x33a   :  { %v10645_v31 = vld [vmem:[%s20803_s0 + $0x264] sm:$0x8]   ;;  %v7044_v59 = vsel %vm9_vm1, %v10644_v28, %v7040_v18  ;;  %v10691_v29 = vld [vmem:[%s20803_s0 + $0x4a1] sm:$0x20]   ;;  %v7226_v40 = vsel %vm17_vm3, %v10690_v58, %v7222_v2  ;;  %10295 = vst.msk [vmem:[%s20804_s1 + $0x10] sm:$0xff] %vm5533_vm9, %v18847_v53  }
 0x33b   :  { %v10646_v42 = vld [vmem:[%s20803_s0 + $0x283] sm:$0x10]   ;;  %v7048_v49 = vsel %vm13_vm2, %v10645_v31, %v7044_v59  ;;  %v10692_v18 = vld [vmem:[%s20803_s0 + $0x4c0] sm:$0x40]   ;;  %v7230_v25 = vsel %vm21_vm4, %v10691_v29, %v7226_v40  ;;  %v10780_v53 = vld [vmem:[%s20803_s0 + $0x5a0] sm:$0x20]  }
 0x33c   :  { %v10647_v26 = vld [vmem:[%s20803_s0 + $0x2a2] sm:$0x20]   ;;  %v7052_v33 = vsel %vm17_vm3, %v10646_v42, %v7048_v49  ;;  %v10693_v31 = vld [vmem:[%s20803_s0 + $0x4df] sm:$0x80]  }
 0x33d   :  { %v10649_v30 = vld [vmem:[%s20803_s0 + $0x2e0] sm:$0x80]   ;;  %v7056_v44 = vsel %vm21_vm4, %v10647_v26, %v7052_v33  ;;  %v10678_v42 = vld [vmem:[%s20803_s0 + $0x6] sm:$0x1]   ;;  %v18911_v36 = vpop.permute.xlu0 %5740  }
 0x33e   :  { %v10669_v56 = vld [vmem:[%s20803_s0 + $0x707] sm:$0x1]   ;;  %v7060_v62 = vsel %vm25_vm5, %v10648_v6, %v7056_v44  ;;  %v10680_v59 = vld [vmem:[%s20803_s0 + $0x44] sm:$0x4]   ;;  %v7180_v49 = vsel %vm5_vm0, %v10679_v50, %v10678_v42  ;;  %10313 = vst.msk [vmem:[%s20804_s1 + $0x18] sm:$0xff] %vm5533_vm9, %v18911_v36  }
 0x33f   :  { %v10670_v34 = vld [vmem:[%s20803_s0 + $0x726] sm:$0x2]   ;;  %v7064_v37 = vsel %vm29_vm6, %v10649_v30, %v7060_v62  ;;  %v10681_v6 = vld [vmem:[%s20803_s0 + $0x63] sm:$0x8]   ;;  %v18781_v30 = vpop.permute.xlu1 %5705   ;;  %v7184_v33 = vsel %vm9_vm1, %v10680_v59, %v7180_v49  ;;  %v10782_v36 = vld [vmem:[%s20803_s0 + $0x5de] sm:$0x80]  }
 0x340   :  { %v10671_v55 = vld [vmem:[%s20803_s0 + $0x745] sm:$0x4]   ;;  %v7145_v23 = vsel %vm5_vm0, %v10670_v34, %v10669_v56  ;;  %7065 = vrot.lane.b32.xlu0 %v7064_v37, %s11159_s24  ;;  %v10682_v34 = vld [vmem:[%s20803_s0 + $0x82] sm:$0x10]   ;;  %10304 = vst.msk [vmem:[%s20804_s1 + $0x30] sm:$0xff] %vm5533_vm9, %v18781_v30  }
 0x341   :  { %v10672_v0 = vld [vmem:[%s20803_s0 + $0x764] sm:$0x8]   ;;  %v7149_v35 = vsel %vm9_vm1, %v10671_v55, %v7145_v23  ;;  %v10683_v55 = vld [vmem:[%s20803_s0 + $0xa1] sm:$0x20]  }
 0x342   :  { %v10673_v22 = vld [vmem:[%s20803_s0 + $0x783] sm:$0x10]   ;;  %v7153_v39 = vsel %vm13_vm2, %v10672_v0, %v7149_v35  ;;  %v10684_v0 = vld [vmem:[%s20803_s0 + $0xc0] sm:$0x40]  }
 0x343   :  { %v10674_v63 = vld [vmem:[%s20803_s0 + $0x7a2] sm:$0x20]   ;;  %v7157_v10 = vsel %vm17_vm3, %v10673_v22, %v7153_v39  ;;  %v10685_v23 = vld [vmem:[%s20803_s0 + $0xdf] sm:$0x80]  }
 0x344   :  { %v10675_v15 = vld [vmem:[%s20803_s0 + $0x7c1] sm:$0x40]   ;;  %v7161_v47 = vsel %vm21_vm4, %v10674_v63, %v7157_v10  ;;  %v10704_v22 = vld [vmem:[%s20803_s0 + $0x506] sm:$0x1]   ;;  %v7234_v63 = vsel %vm25_vm5, %v10692_v18, %v7230_v25 }
 0x345   :  { %v10676_v57 = vld [vmem:[%s20803_s0 + $0x7e0] sm:$0x80]   ;;  %v7165_v46 = vsel %vm25_vm5, %v10675_v15, %v7161_v47  ;;  %v7188_v15 = vsel %vm13_vm2, %v10681_v6, %v7184_v33  ;;  %v10707_v44 = vld [vmem:[%s20803_s0 + $0x563] sm:$0x8]   ;;  %v7238_v41 = vsel %vm29_vm6, %v10693_v31, %v7234_v63  ;;  %v7284_v24 = vsel %vm5_vm0, %v10705_v45, %v10704_v22 }
 0x346   :  { %v10660_v8 = vld [vmem:[%s20803_s0 + $0x307] sm:$0x1]   ;;  %v7169_v28 = vsel %vm29_vm6, %v10676_v57, %v7165_v46  ;;  %v7192_v21 = vsel %vm17_vm3, %v10682_v34, %v7188_v15  ;;  %v10710_v35 = vld [vmem:[%s20803_s0 + $0x5c0] sm:$0x40]  }
 0x347   :  { %v10661_v27 = vld [vmem:[%s20803_s0 + $0x326] sm:$0x2]   ;;  %7170 = vrot.lane.b32.xlu1 %v7169_v28, %s11159_s24  ;;  %v7196_v57 = vsel %vm21_vm4, %v10683_v55, %v7192_v21  ;;  %v10695_v62 = vld [vmem:[%s20803_s0 + $0x106] sm:$0x1]   ;;  %v18975_v21 = vpop.permute.xlu0 %5810  }
 0x348   :  { %v7110_v61 = vsel %vm5_vm0, %v10661_v27, %v10660_v8  ;;  %v10662_v14 = vld [vmem:[%s20803_s0 + $0x345] sm:$0x4]   ;;  %v7288_v8 = vsel %vm9_vm1, %v10706_v51, %v7284_v24  ;;  %v10711_v27 = vld [vmem:[%s20803_s0 + $0x5df] sm:$0x80]   ;;  %5813 = vst.msk [vmem:[%s20804_s1] sm:$0xff] %vm5812_vm10, %v18975_v21  }
 0x349   :  { %v10663_v20 = vld [vmem:[%s20803_s0 + $0x364] sm:$0x8]   ;;  %v7114_v52 = vsel %vm9_vm1, %v10662_v14, %v7110_v61  ;;  %v10696_v39 = vld [vmem:[%s20803_s0 + $0x125] sm:$0x2]   ;;  %v18873_v61 = vpop.permute.xlu1 %5775   ;;  %v7200_v14 = vsel %vm25_vm5, %v10684_v0, %v7196_v57  ;;  %v10847_v21 = vld [vmem:[%s20803_s0 + $0x523] sm:$0x2]  }
 0x34a   :  { %v10664_v16 = vld [vmem:[%s20803_s0 + $0x383] sm:$0x10]   ;;  %v7118_v13 = vsel %vm13_vm2, %v10663_v20, %v7114_v52  ;;  %v7292_v20 = vsel %vm13_vm2, %v10707_v44, %v7288_v8  ;;  %v10697_v37 = vld [vmem:[%s20803_s0 + $0x144] sm:$0x4]   ;;  %10322 = vst.msk [vmem:[%s20804_s1 + $0x38] sm:$0xff] %vm5533_vm9, %v18873_v61  }
 0x34b   :  { %v10665_v5 = vld [vmem:[%s20803_s0 + $0x3a2] sm:$0x20]   ;;  %v7122_v11 = vsel %vm17_vm3, %v10664_v16, %v7118_v13  ;;  %7239 = vrot.lane.b32.xlu1 %v7238_v41, %s11160_s30  ;;  %v7249_v16 = vsel %vm5_vm0, %v10696_v39, %v10695_v62  ;;  %v10698_v10 = vld [vmem:[%s20803_s0 + $0x163] sm:$0x8]   ;;  %v10781_v61 = vld [vmem:[%s20803_s0 + $0x5bf] sm:$0x40]  }
 0x34c   :  { %v10666_v32 = vld [vmem:[%s20803_s0 + $0x3c1] sm:$0x40]   ;;  %v7126_v1 = vsel %vm21_vm4, %v10665_v5, %v7122_v11  ;;  %v10699_v52 = vld [vmem:[%s20803_s0 + $0x182] sm:$0x10]   ;;  %v7204_v5 = vsel %vm29_vm6, %v10685_v23, %v7200_v14 }
 0x34d   :  { %v10667_v43 = vld [vmem:[%s20803_s0 + $0x3e0] sm:$0x80]   ;;  %v7130_v26 = vsel %vm25_vm5, %v10666_v32, %v7126_v1  ;;  %v7296_v32 = vsel %vm17_vm3, %v10708_v54, %v7292_v20  ;;  %v10700_v47 = vld [vmem:[%s20803_s0 + $0x1a1] sm:$0x20]   ;;  %v18949_v55 = vpop.permute.xlu1 %5844  }
 0x34e   :  { %v7134_v56 = vsel %vm29_vm6, %v10667_v43, %v7130_v26  ;;  %v7253_v43 = vsel %vm9_vm1, %v10697_v37, %v7249_v16  ;;  %v10701_v13 = vld [vmem:[%s20803_s0 + $0x1c0] sm:$0x40]   ;;  %v7300_v38 = vsel %vm21_vm4, %v10709_v9, %v7296_v32  ;;  %10339 = vst.msk [vmem:[%s20804_s1 + $0x20] sm:$0xff] %vm5812_vm10, %v18949_v55   ;;  %v10846_v55 = vld [vmem:[%s20803_s0 + $0x504] sm:$0x1]  }
 0x34f   :  { %7135 = vrot.lane.b32.xlu0 %v7134_v56, %s11159_s24  ;;  %v7257_v7 = vsel %vm13_vm2, %v10698_v10, %v7253_v43  ;;  %v10722_v46 = vld [vmem:[%s20803_s0 + $0x606] sm:$0x1]   ;;  %v7304_v58 = vsel %vm25_vm5, %v10710_v35, %v7300_v38 }
 0x350   :  { %v10723_v11 = vld [vmem:[%s20803_s0 + $0x625] sm:$0x2]   ;;  %v7261_v29 = vsel %vm17_vm3, %v10699_v52, %v7257_v7  ;;  %v7308_v31 = vsel %vm29_vm6, %v10711_v27, %v7304_v58 }
 0x351   :  { %v7354_v28 = vsel %vm5_vm0, %v10723_v11, %v10722_v46  ;;  %v10725_v1 = vld [vmem:[%s20803_s0 + $0x663] sm:$0x8]   ;;  %v7265_v42 = vsel %vm21_vm4, %v10700_v47, %v7261_v29  ;;  %7309 = vrot.lane.b32.xlu1 %v7308_v31, %s11160_s30  ;;  %v19013_v43 = vpop.permute.xlu1 %5914   ;;  %v10758_v31 = vld [vmem:[%s20803_s0 + $0x424] sm:$0x2]  }
 0x352   :  { %v10727_v18 = vld [vmem:[%s20803_s0 + $0x6a1] sm:$0x20]   ;;  %v7358_v26 = vsel %vm9_vm1, %v10724_v48, %v7354_v28  ;;  %v7269_v6 = vsel %vm25_vm5, %v10701_v13, %v7265_v42  ;;  %v10759_v42 = vld [vmem:[%s20803_s0 + $0x443] sm:$0x4]   ;;  %10357 = vst.msk [vmem:[%s20804_s1 + $0x28] sm:$0xff] %vm5812_vm10, %v19013_v43  }
 0x353   :  { %7205 = vrot.lane.b32.xlu0 %v7204_v5, %s11160_s30  ;;  %v10728_v2 = vld [vmem:[%s20803_s0 + $0x6c0] sm:$0x40]   ;;  %v7362_v56 = vsel %vm13_vm2, %v10725_v1, %v7358_v26  ;;  %v7273_v0 = vsel %vm29_vm6, %v10702_v60, %v7269_v6  ;;  %v10757_v1 = vld [vmem:[%s20803_s0 + $0x405] sm:$0x1]  }
 0x354   :  { %v10729_v50 = vld [vmem:[%s20803_s0 + $0x6df] sm:$0x80]   ;;  %v7366_v25 = vsel %vm17_vm3, %v10726_v17, %v7362_v56  ;;  %v10760_v26 = vld [vmem:[%s20803_s0 + $0x462] sm:$0x8]   ;;  %v7493_v6 = vsel %vm5_vm0, %v10758_v31, %v10757_v1 }
 0x355   :  { %v10713_v59 = vld [vmem:[%s20803_s0 + $0x206] sm:$0x1]   ;;  %v7370_v15 = vsel %vm21_vm4, %v10727_v18, %v7366_v25  ;;  %v10761_v56 = vld [vmem:[%s20803_s0 + $0x481] sm:$0x10]  }
 0x356   :  { %v10714_v40 = vld [vmem:[%s20803_s0 + $0x225] sm:$0x2]   ;;  %v7374_v24 = vsel %vm25_vm5, %v10728_v2, %v7370_v15  ;;  %v19051_v2 = vpop.permute.xlu0 %5879   ;;  %v10764_v25 = vld [vmem:[%s20803_s0 + $0x4de] sm:$0x80]  }
 0x357   :  { %v10715_v49 = vld [vmem:[%s20803_s0 + $0x244] sm:$0x4]   ;;  %v7319_v33 = vsel %vm5_vm0, %v10714_v40, %v10713_v59  ;;  %7274 = vrot.lane.b32.xlu0 %v7273_v0, %s11160_s30  ;;  %v7378_v27 = vsel %vm29_vm6, %v10729_v50, %v7374_v24  ;;  %v10762_v40 = vld [vmem:[%s20803_s0 + $0x4a0] sm:$0x20]   ;;  %v7497_v0 = vsel %vm9_vm1, %v10759_v42, %v7493_v6  ;;  %10348 = vst.msk [vmem:[%s20804_s1 + $0x8] sm:$0xff] %vm5812_vm10, %v19051_v2  }
 0x358   :  { %v10716_v34 = vld [vmem:[%s20803_s0 + $0x263] sm:$0x8]   ;;  %v7323_v45 = vsel %vm9_vm1, %v10715_v49, %v7319_v33  ;;  %7379 = vrot.lane.b32.xlu1 %v7378_v27, %s11160_s30  ;;  %v10763_v49 = vld [vmem:[%s20803_s0 + $0x4bf] sm:$0x40]  }
 0x359   :  { %v10717_v23 = vld [vmem:[%s20803_s0 + $0x282] sm:$0x10]   ;;  %v7327_v54 = vsel %vm13_vm2, %v10716_v34, %v7323_v45  ;;  %v10749_v33 = vld [vmem:[%s20803_s0 + $0x5] sm:$0x1]  }
 0x35a   :  { %v10718_v22 = vld [vmem:[%s20803_s0 + $0x2a1] sm:$0x20]   ;;  %v7331_v62 = vsel %vm17_vm3, %v10717_v23, %v7327_v54  ;;  %v10750_v23 = vld [vmem:[%s20803_s0 + $0x24] sm:$0x2]  }
 0x35b   :  { %v10719_v63 = vld [vmem:[%s20803_s0 + $0x2c0] sm:$0x40]   ;;  %v7335_v37 = vsel %vm21_vm4, %v10718_v22, %v7331_v62  ;;  %v7459_v15 = vsel %vm5_vm0, %v10750_v23, %v10749_v33  ;;  %v10751_v45 = vld [vmem:[%s20803_s0 + $0x43] sm:$0x4]  }
 0x35c   :  { %v10720_v51 = vld [vmem:[%s20803_s0 + $0x2df] sm:$0x80]   ;;  %v7339_v47 = vsel %vm25_vm5, %v10719_v63, %v7335_v37  ;;  %v7501_v63 = vsel %vm13_vm2, %v10760_v26, %v7497_v0  ;;  %v10793_v31 = vld [vmem:[%s20803_s0 + $0x605] sm:$0x1]  }
 0x35d   :  { %v10740_v44 = vld [vmem:[%s20803_s0 + $0x706] sm:$0x1]   ;;  %v7343_v11 = vsel %vm29_vm6, %v10720_v51, %v7339_v47  ;;  %v10752_v51 = vld [vmem:[%s20803_s0 + $0x62] sm:$0x8]   ;;  %v7505_v54 = vsel %vm17_vm3, %v10761_v56, %v7501_v63 }
 0x35e   :  { %v10741_v41 = vld [vmem:[%s20803_s0 + $0x725] sm:$0x2]   ;;  %7344 = vrot.lane.b32.xlu0 %v7343_v11, %s11160_s30  ;;  %v7509_v27 = vsel %vm21_vm4, %v10762_v40, %v7505_v54  ;;  %v10766_v47 = vld [vmem:[%s20803_s0 + $0x105] sm:$0x1]  }
 0x35f   :  { %v7424_v9 = vsel %vm5_vm0, %v10741_v41, %v10740_v44  ;;  %v10742_v35 = vld [vmem:[%s20803_s0 + $0x744] sm:$0x4]   ;;  %v10753_v44 = vld [vmem:[%s20803_s0 + $0x81] sm:$0x10]   ;;  %v19089_v41 = vpop.permute.xlu1 %5984  }
 0x360   :  { %v10743_v57 = vld [vmem:[%s20803_s0 + $0x763] sm:$0x8]   ;;  %v7428_v39 = vsel %vm9_vm1, %v10742_v35, %v7424_v9  ;;  %v7463_v9 = vsel %vm9_vm1, %v10751_v45, %v7459_v15  ;;  %v10754_v35 = vld [vmem:[%s20803_s0 + $0xa0] sm:$0x20]   ;;  %10375 = vst.msk [vmem:[%s20804_s1 + $0x30] sm:$0xff] %vm5812_vm10, %v19089_v41  }
 0x361   :  { %v10744_v8 = vld [vmem:[%s20803_s0 + $0x782] sm:$0x10]   ;;  %v7432_v10 = vsel %vm13_vm2, %v10743_v57, %v7428_v39  ;;  %v10755_v57 = vld [vmem:[%s20803_s0 + $0xbf] sm:$0x40]   ;;  %v7467_v62 = vsel %vm13_vm2, %v10752_v51, %v7463_v9 }
 0x362   :  { %v10745_v14 = vld [vmem:[%s20803_s0 + $0x7a1] sm:$0x20]   ;;  %v7436_v13 = vsel %vm17_vm3, %v10744_v8, %v7432_v10  ;;  %v10756_v8 = vld [vmem:[%s20803_s0 + $0xde] sm:$0x80]   ;;  %v7471_v37 = vsel %vm17_vm3, %v10753_v44, %v7467_v62 }
 0x363   :  { %v10746_v20 = vld [vmem:[%s20803_s0 + $0x7c0] sm:$0x40]   ;;  %v7440_v48 = vsel %vm21_vm4, %v10745_v14, %v7436_v13  ;;  %v10775_v39 = vld [vmem:[%s20803_s0 + $0x505] sm:$0x1]   ;;  %v7475_v19 = vsel %vm21_vm4, %v10754_v35, %v7471_v37 }
 0x364   :  { %v10747_v16 = vld [vmem:[%s20803_s0 + $0x7df] sm:$0x80]   ;;  %v7444_v17 = vsel %vm25_vm5, %v10746_v20, %v7440_v48  ;;  %v10776_v14 = vld [vmem:[%s20803_s0 + $0x524] sm:$0x2]   ;;  %v19112_v20 = vpop.permute.xlu0 %5949  }
 0x365   :  { %v10731_v52 = vld [vmem:[%s20803_s0 + $0x306] sm:$0x1]   ;;  %v7448_v50 = vsel %vm29_vm6, %v10747_v16, %v7444_v17  ;;  %v7513_v16 = vsel %vm25_vm5, %v10763_v49, %v7509_v27  ;;  %v7563_v3 = vsel %vm5_vm0, %v10776_v14, %v10775_v39  ;;  %v10778_v10 = vld [vmem:[%s20803_s0 + $0x562] sm:$0x8]   ;;  %10366 = vst.msk [vmem:[%s20804_s1 + $0x10] sm:$0xff] %vm5812_vm10, %v19112_v20   ;;  %v7842_v20 = vsel %vm5_vm0, %v10847_v21, %v10846_v55 }
 0x366   :  { %v10732_v5 = vld [vmem:[%s20803_s0 + $0x325] sm:$0x2]   ;;  %7449 = vrot.lane.b32.xlu1 %v7448_v50, %s11160_s30  ;;  %v7517_v4 = vsel %vm29_vm6, %v10764_v25, %v7513_v16  ;;  %v7567_v30 = vsel %vm9_vm1, %v10777_v12, %v7563_v3  ;;  %v10767_v13 = vld [vmem:[%s20803_s0 + $0x124] sm:$0x2]   ;;  %v10861_v21 = vld [vmem:[%s20803_s0 + $0x2be] sm:$0x40]  }
 0x367   :  { %v10733_v32 = vld [vmem:[%s20803_s0 + $0x344] sm:$0x4]   ;;  %v7389_v60 = vsel %vm5_vm0, %v10732_v5, %v10731_v52  ;;  %v10779_v52 = vld [vmem:[%s20803_s0 + $0x581] sm:$0x10]   ;;  %v7479_v5 = vsel %vm25_vm5, %v10755_v57, %v7475_v19  ;;  %v7528_v11 = vsel %vm5_vm0, %v10767_v13, %v10766_v47 }
 0x368   :  { %v10734_v38 = vld [vmem:[%s20803_s0 + $0x363] sm:$0x8]   ;;  %v7393_v58 = vsel %vm9_vm1, %v10733_v32, %v7389_v60  ;;  %v7571_v32 = vsel %vm13_vm2, %v10778_v10, %v7567_v30  ;;  %v10768_v60 = vld [vmem:[%s20803_s0 + $0x143] sm:$0x4]   ;;  %v19227_v56 = vpop.permute.xlu0 %6019  }
 0x369   :  { %v10735_v7 = vld [vmem:[%s20803_s0 + $0x382] sm:$0x10]   ;;  %v7397_v18 = vsel %vm13_vm2, %v10734_v38, %v7393_v58  ;;  %v19190_v38 = vpop.permute.xlu1 %6054   ;;  %v10769_v48 = vld [vmem:[%s20803_s0 + $0x162] sm:$0x8]   ;;  %v7532_v1 = vsel %vm9_vm1, %v10768_v60, %v7528_v11  ;;  %10384 = vst.msk [vmem:[%s20804_s1 + $0x18] sm:$0xff] %vm5812_vm10, %v19227_v56  }
 0x36a   :  { %v10736_v46 = vld [vmem:[%s20803_s0 + $0x3a1] sm:$0x20]   ;;  %v7401_v59 = vsel %vm17_vm3, %v10735_v7, %v7397_v18  ;;  %7518 = vrot.lane.b32.xlu1 %v7517_v4, %s11161_s5  ;;  %v7483_v7 = vsel %vm29_vm6, %v10756_v8, %v7479_v5  ;;  %v10770_v58 = vld [vmem:[%s20803_s0 + $0x181] sm:$0x10]   ;;  %v7536_v26 = vsel %vm13_vm2, %v10769_v48, %v7532_v1  ;;  %10393 = vst.msk [vmem:[%s20804_s1 + $0x38] sm:$0xff] %vm5812_vm10, %v19190_v38  }
 0x36b   :  { %v10737_v29 = vld [vmem:[%s20803_s0 + $0x3c0] sm:$0x40]   ;;  %v7405_v34 = vsel %vm21_vm4, %v10736_v46, %v7401_v59  ;;  %v7575_v46 = vsel %vm17_vm3, %v10779_v52, %v7571_v32  ;;  %v10772_v17 = vld [vmem:[%s20803_s0 + $0x1bf] sm:$0x40]   ;;  %v7540_v49 = vsel %vm17_vm3, %v10770_v58, %v7536_v26  ;;  %v10849_v38 = vld [vmem:[%s20803_s0 + $0x561] sm:$0x8]  }
 0x36c   :  { %v10738_v28 = vld [vmem:[%s20803_s0 + $0x3df] sm:$0x80]   ;;  %v7409_v22 = vsel %vm25_vm5, %v10737_v29, %v7405_v34  ;;  %v10771_v29 = vld [vmem:[%s20803_s0 + $0x1a0] sm:$0x20]   ;;  %v19291_v4 = vpop.permute.xlu0 %6089   ;;  %v10850_v56 = vld [vmem:[%s20803_s0 + $0x580] sm:$0x10]  }
 0x36d   :  { %v7413_v24 = vsel %vm29_vm6, %v10738_v28, %v7409_v22  ;;  %v7579_v28 = vsel %vm21_vm4, %v10780_v53, %v7575_v46  ;;  %v10773_v18 = vld [vmem:[%s20803_s0 + $0x1de] sm:$0x80]   ;;  %v7544_v23 = vsel %vm21_vm4, %v10771_v29, %v7540_v49  ;;  %v19253_v51 = vpop.permute.xlu1 %6123   ;;  %v10828_v49 = vld [vmem:[%s20803_s0 + $0x404] sm:$0x1]   ;;  %6092 = vst.msk [vmem:[%s20804_s1] sm:$0xff] %vm6091_vm11, %v19291_v4  }
 0x36e   :  { %7414 = vrot.lane.b32.xlu0 %v7413_v24, %s11160_s30  ;;  %v7583_v42 = vsel %vm25_vm5, %v10781_v61, %v7579_v28  ;;  %v10794_v50 = vld [vmem:[%s20803_s0 + $0x624] sm:$0x2]   ;;  %v7548_v44 = vsel %vm25_vm5, %v10772_v17, %v7544_v23  ;;  %v10830_v23 = vld [vmem:[%s20803_s0 + $0x442] sm:$0x4]   ;;  %10410 = vst.msk [vmem:[%s20804_s1 + $0x20] sm:$0xff] %vm6091_vm11, %v19253_v51  }
 0x36f   :  { %v10795_v59 = vld [vmem:[%s20803_s0 + $0x643] sm:$0x4]   ;;  %v7587_v40 = vsel %vm29_vm6, %v10782_v36, %v7583_v42  ;;  %v7633_v34 = vsel %vm5_vm0, %v10794_v50, %v10793_v31  ;;  %v7552_v8 = vsel %vm29_vm6, %v10773_v18, %v7548_v44  ;;  %v10918_v51 = vld [vmem:[%s20803_s0 + $0x522] sm:$0x2]  }
 0x370   :  { %v10796_v6 = vld [vmem:[%s20803_s0 + $0x662] sm:$0x8]   ;;  %7588 = vrot.lane.b32.xlu1 %v7587_v40, %s11161_s5  ;;  %v7637_v22 = vsel %vm9_vm1, %v10795_v59, %v7633_v34  ;;  %v10829_v34 = vld [vmem:[%s20803_s0 + $0x423] sm:$0x2]   ;;  %v10919_v4 = vld [vmem:[%s20803_s0 + $0x541] sm:$0x4]  }
 0x371   :  { %v10797_v0 = vld [vmem:[%s20803_s0 + $0x681] sm:$0x10]   ;;  %v7641_v24 = vsel %vm13_vm2, %v10796_v6, %v7637_v22  ;;  %v19329_v1 = vpop.permute.xlu1 %6193   ;;  %v10831_v22 = vld [vmem:[%s20803_s0 + $0x461] sm:$0x8]  }
 0x372   :  { %7484 = vrot.lane.b32.xlu0 %v7483_v7, %s11161_s5  ;;  %v10798_v25 = vld [vmem:[%s20803_s0 + $0x6a0] sm:$0x20]   ;;  %v7645_v27 = vsel %vm17_vm3, %v10797_v0, %v7641_v24  ;;  %10428 = vst.msk [vmem:[%s20804_s1 + $0x28] sm:$0xff] %vm6091_vm11, %v19329_v1  }
 0x373   :  { %v10799_v33 = vld [vmem:[%s20803_s0 + $0x6bf] sm:$0x40]   ;;  %v7649_v37 = vsel %vm21_vm4, %v10798_v25, %v7645_v27  ;;  %v10820_v27 = vld [vmem:[%s20803_s0 + $0x4] sm:$0x1]  }
 0x374   :  { %v10800_v63 = vld [vmem:[%s20803_s0 + $0x6de] sm:$0x80]   ;;  %v7653_v19 = vsel %vm25_vm5, %v10799_v33, %v7649_v37  ;;  %v7772_v33 = vsel %vm5_vm0, %v10829_v34, %v10828_v49 }
 0x375   :  { %v10784_v15 = vld [vmem:[%s20803_s0 + $0x205] sm:$0x1]   ;;  %v7657_v32 = vsel %vm29_vm6, %v10800_v63, %v7653_v19  ;;  %v10832_v63 = vld [vmem:[%s20803_s0 + $0x480] sm:$0x10]   ;;  %v7776_v24 = vsel %vm9_vm1, %v10830_v23, %v7772_v33 }
 0x376   :  { %v10785_v45 = vld [vmem:[%s20803_s0 + $0x224] sm:$0x2]   ;;  %7553 = vrot.lane.b32.xlu0 %v7552_v8, %s11161_s5  ;;  %7658 = vrot.lane.b32.xlu1 %v7657_v32, %s11161_s5  ;;  %v7780_v8 = vsel %vm13_vm2, %v10831_v22, %v7776_v24  ;;  %v10865_v33 = vld [vmem:[%s20803_s0 + $0x623] sm:$0x2]  }
 0x377   :  { %v7598_v54 = vsel %vm5_vm0, %v10785_v45, %v10784_v15  ;;  %v10786_v9 = vld [vmem:[%s20803_s0 + $0x243] sm:$0x4]   ;;  %v19367_v15 = vpop.permute.xlu0 %6158   ;;  %v7784_v37 = vsel %vm17_vm3, %v10832_v63, %v7780_v8  ;;  %v10867_v24 = vld [vmem:[%s20803_s0 + $0x661] sm:$0x8]  }
 0x378   :  { %v10787_v35 = vld [vmem:[%s20803_s0 + $0x262] sm:$0x8]   ;;  %v7602_v62 = vsel %vm9_vm1, %v10786_v9, %v7598_v54  ;;  %v10833_v54 = vld [vmem:[%s20803_s0 + $0x49f] sm:$0x20]   ;;  %10419 = vst.msk [vmem:[%s20804_s1 + $0x8] sm:$0xff] %vm6091_vm11, %v19367_v15  }
 0x379   :  { %v10788_v57 = vld [vmem:[%s20803_s0 + $0x281] sm:$0x10]   ;;  %v7606_v3 = vsel %vm13_vm2, %v10787_v35, %v7602_v62  ;;  %v10834_v9 = vld [vmem:[%s20803_s0 + $0x4be] sm:$0x40]  }
 0x37a   :  { %v10789_v39 = vld [vmem:[%s20803_s0 + $0x2a0] sm:$0x20]   ;;  %v7610_v30 = vsel %vm17_vm3, %v10788_v57, %v7606_v3  ;;  %v10835_v35 = vld [vmem:[%s20803_s0 + $0x4dd] sm:$0x80]  }
 0x37b   :  { %v10790_v14 = vld [vmem:[%s20803_s0 + $0x2bf] sm:$0x40]   ;;  %v7614_v47 = vsel %vm21_vm4, %v10789_v39, %v7610_v30  ;;  %v10821_v62 = vld [vmem:[%s20803_s0 + $0x23] sm:$0x2]   ;;  %v7788_v30 = vsel %vm21_vm4, %v10833_v54, %v7784_v37  ;;  %v19460_v43 = vpop.permute.xlu0 %6228  }
 0x37c   :  { %v10791_v16 = vld [vmem:[%s20803_s0 + $0x2de] sm:$0x80]   ;;  %v7618_v11 = vsel %vm25_vm5, %v10790_v14, %v7614_v47  ;;  %v10822_v39 = vld [vmem:[%s20803_s0 + $0x42] sm:$0x4]   ;;  %v19393_v14 = vpop.permute.xlu1 %6263   ;;  %v7738_v3 = vsel %vm5_vm0, %v10821_v62, %v10820_v27  ;;  %10437 = vst.msk [vmem:[%s20804_s1 + $0x10] sm:$0xff] %vm6091_vm11, %v19460_v43  }
 0x37d   :  { %v10811_v12 = vld [vmem:[%s20803_s0 + $0x705] sm:$0x1]   ;;  %v7622_v17 = vsel %vm29_vm6, %v10791_v16, %v7618_v11  ;;  %v10848_v47 = vld [vmem:[%s20803_s0 + $0x542] sm:$0x4]   ;;  %10446 = vst.msk [vmem:[%s20804_s1 + $0x30] sm:$0xff] %vm6091_vm11, %v19393_v14  }
 0x37e   :  { %v10812_v10 = vld [vmem:[%s20803_s0 + $0x724] sm:$0x2]   ;;  %7623 = vrot.lane.b32.xlu0 %v7622_v17, %s11161_s5  ;;  %v10853_v11 = vld [vmem:[%s20803_s0 + $0x5dd] sm:$0x80]  }
 0x37f   :  { %v10813_v52 = vld [vmem:[%s20803_s0 + $0x743] sm:$0x4]   ;;  %v7703_v53 = vsel %vm5_vm0, %v10812_v10, %v10811_v12  ;;  %v10823_v12 = vld [vmem:[%s20803_s0 + $0x61] sm:$0x8]   ;;  %v19523_v23 = vpop.permute.xlu0 %6298  }
 0x380   :  { %v10814_v61 = vld [vmem:[%s20803_s0 + $0x762] sm:$0x8]   ;;  %v7707_v13 = vsel %vm9_vm1, %v10813_v52, %v7703_v53  ;;  %v10824_v10 = vld [vmem:[%s20803_s0 + $0x80] sm:$0x10]   ;;  %v7742_v53 = vsel %vm9_vm1, %v10822_v39, %v7738_v3  ;;  %10455 = vst.msk [vmem:[%s20804_s1 + $0x18] sm:$0xff] %vm6091_vm11, %v19523_v23  }
 0x381   :  { %v10815_v36 = vld [vmem:[%s20803_s0 + $0x781] sm:$0x10]   ;;  %v7711_v48 = vsel %vm13_vm2, %v10814_v61, %v7707_v13  ;;  %v10825_v52 = vld [vmem:[%s20803_s0 + $0x9f] sm:$0x20]   ;;  %v7746_v32 = vsel %vm13_vm2, %v10823_v12, %v7742_v53  ;;  %v10922_v23 = vld [vmem:[%s20803_s0 + $0x59e] sm:$0x20]  }
 0x382   :  { %v10816_v5 = vld [vmem:[%s20803_s0 + $0x7a0] sm:$0x20]   ;;  %v7715_v18 = vsel %vm17_vm3, %v10815_v36, %v7711_v48  ;;  %v10826_v61 = vld [vmem:[%s20803_s0 + $0xbe] sm:$0x40]   ;;  %v7750_v41 = vsel %vm17_vm3, %v10824_v10, %v7746_v32 }
 0x383   :  { %v10817_v60 = vld [vmem:[%s20803_s0 + $0x7bf] sm:$0x40]   ;;  %v7719_v59 = vsel %vm21_vm4, %v10816_v5, %v7715_v18  ;;  %v10827_v36 = vld [vmem:[%s20803_s0 + $0xdd] sm:$0x80]   ;;  %v7792_v5 = vsel %vm25_vm5, %v10834_v9, %v7788_v30 }
 0x384   :  { %v10818_v7 = vld [vmem:[%s20803_s0 + $0x7de] sm:$0x80]   ;;  %v7723_v0 = vsel %vm25_vm5, %v10817_v60, %v7719_v59  ;;  %v7796_v2 = vsel %vm29_vm6, %v10835_v35, %v7792_v5  ;;  %v10851_v13 = vld [vmem:[%s20803_s0 + $0x59f] sm:$0x20]   ;;  %v7754_v60 = vsel %vm21_vm4, %v10825_v52, %v7750_v41 }
 0x385   :  { %v10802_v46 = vld [vmem:[%s20803_s0 + $0x305] sm:$0x1]   ;;  %v7727_v45 = vsel %vm29_vm6, %v10818_v7, %v7723_v0  ;;  %v7846_v7 = vsel %vm9_vm1, %v10848_v47, %v7842_v20  ;;  %v10837_v48 = vld [vmem:[%s20803_s0 + $0x104] sm:$0x1]  }
 0x386   :  { %v10803_v58 = vld [vmem:[%s20803_s0 + $0x324] sm:$0x2]   ;;  %7728 = vrot.lane.b32.xlu1 %v7727_v45, %s11161_s5  ;;  %v10839_v17 = vld [vmem:[%s20803_s0 + $0x142] sm:$0x4]  }
 0x387   :  { %v10804_v29 = vld [vmem:[%s20803_s0 + $0x343] sm:$0x4]   ;;  %v7668_v31 = vsel %vm5_vm0, %v10803_v58, %v10802_v46  ;;  %v10852_v46 = vld [vmem:[%s20803_s0 + $0x5be] sm:$0x40]   ;;  %v7758_v58 = vsel %vm25_vm5, %v10826_v61, %v7754_v60  ;;  %v19599_v60 = vpop.permute.xlu0 %6368  }
 0x388   :  { %v10805_v28 = vld [vmem:[%s20803_s0 + $0x362] sm:$0x8]   ;;  %v7672_v6 = vsel %vm9_vm1, %v10804_v29, %v7668_v31  ;;  %v7850_v29 = vsel %vm13_vm2, %v10849_v38, %v7846_v7  ;;  %v10840_v18 = vld [vmem:[%s20803_s0 + $0x161] sm:$0x8]   ;;  %v19497_v31 = vpop.permute.xlu1 %6333   ;;  %6371 = vst.msk [vmem:[%s20804_s1] sm:$0xff] %vm6370_vm12, %v19599_v60  }
 0x389   :  { %v10806_v42 = vld [vmem:[%s20803_s0 + $0x381] sm:$0x10]   ;;  %v7676_v25 = vsel %vm13_vm2, %v10805_v28, %v7672_v6  ;;  %v10838_v28 = vld [vmem:[%s20803_s0 + $0x123] sm:$0x2]   ;;  %10464 = vst.msk [vmem:[%s20804_s1 + $0x38] sm:$0xff] %vm6091_vm11, %v19497_v31  }
 0x38a   :  { %v10807_v26 = vld [vmem:[%s20803_s0 + $0x3a0] sm:$0x20]   ;;  %v7680_v44 = vsel %vm17_vm3, %v10806_v42, %v7676_v25  ;;  %7797 = vrot.lane.b32.xlu1 %v7796_v2, %s11162_s3  ;;  %v7762_v42 = vsel %vm29_vm6, %v10827_v36, %v7758_v58  ;;  %v10841_v59 = vld [vmem:[%s20803_s0 + $0x180] sm:$0x10]   ;;  %v10921_v31 = vld [vmem:[%s20803_s0 + $0x57f] sm:$0x10]  }
 0x38b   :  { %v10808_v50 = vld [vmem:[%s20803_s0 + $0x3bf] sm:$0x40]   ;;  %v7684_v57 = vsel %vm21_vm4, %v10807_v26, %v7680_v44  ;;  %v7854_v26 = vsel %vm17_vm3, %v10850_v56, %v7850_v29  ;;  %v10842_v6 = vld [vmem:[%s20803_s0 + $0x19f] sm:$0x20]   ;;  %v10990_v60 = vld [vmem:[%s20803_s0 + $0x540] sm:$0x4]  }
 0x38c   :  { %v10809_v40 = vld [vmem:[%s20803_s0 + $0x3de] sm:$0x80]   ;;  %v7688_v16 = vsel %vm25_vm5, %v10808_v50, %v7684_v57  ;;  %v7807_v50 = vsel %vm5_vm0, %v10838_v28, %v10837_v48  ;;  %v7858_v49 = vsel %vm21_vm4, %v10851_v13, %v7854_v26  ;;  %v10844_v0 = vld [vmem:[%s20803_s0 + $0x1dd] sm:$0x80]   ;;  %v19561_v10 = vpop.permute.xlu1 %6402  }
 0x38d   :  { %v7692_v19 = vsel %vm29_vm6, %v10809_v40, %v7688_v16  ;;  %v10843_v40 = vld [vmem:[%s20803_s0 + $0x1be] sm:$0x40]   ;;  %v7811_v34 = vsel %vm9_vm1, %v10839_v17, %v7807_v50  ;;  %v7862_v22 = vsel %vm25_vm5, %v10852_v46, %v7858_v49  ;;  %10481 = vst.msk [vmem:[%s20804_s1 + $0x20] sm:$0xff] %vm6370_vm12, %v19561_v10  }
 0x38e   :  { %7693 = vrot.lane.b32.xlu0 %v7692_v19, %s11161_s5  ;;  %v10864_v25 = vld [vmem:[%s20803_s0 + $0x604] sm:$0x1]   ;;  %v7815_v63 = vsel %vm13_vm2, %v10840_v18, %v7811_v34  ;;  %v7866_v9 = vsel %vm29_vm6, %v10853_v11, %v7862_v22 }
 0x38f   :  { %v7912_v45 = vsel %vm5_vm0, %v10865_v33, %v10864_v25  ;;  %v10866_v44 = vld [vmem:[%s20803_s0 + $0x642] sm:$0x4]   ;;  %v7819_v35 = vsel %vm17_vm3, %v10841_v59, %v7815_v63  ;;  %7867 = vrot.lane.b32.xlu1 %v7866_v9, %s11162_s3  ;;  %v10899_v9 = vld [vmem:[%s20803_s0 + $0x403] sm:$0x1]  }
 0x390   :  { %v10868_v54 = vld [vmem:[%s20803_s0 + $0x680] sm:$0x10]   ;;  %v7916_v57 = vsel %vm9_vm1, %v10866_v44, %v7912_v45  ;;  %v7823_v39 = vsel %vm21_vm4, %v10842_v6, %v7819_v35  ;;  %v10900_v35 = vld [vmem:[%s20803_s0 + $0x422] sm:$0x2]  }
 0x391   :  { %v10869_v8 = vld [vmem:[%s20803_s0 + $0x69f] sm:$0x20]   ;;  %v7920_v16 = vsel %vm13_vm2, %v10867_v24, %v7916_v57  ;;  %v7827_v52 = vsel %vm25_vm5, %v10843_v40, %v7823_v39  ;;  %v10901_v57 = vld [vmem:[%s20803_s0 + $0x441] sm:$0x4]   ;;  %v8051_v39 = vsel %vm5_vm0, %v10900_v35, %v10899_v9 }
 0x392   :  { %7763 = vrot.lane.b32.xlu0 %v7762_v42, %s11162_s3  ;;  %v10870_v27 = vld [vmem:[%s20803_s0 + $0x6be] sm:$0x40]   ;;  %v7924_v19 = vsel %vm17_vm3, %v10868_v54, %v7920_v16  ;;  %v7831_v5 = vsel %vm29_vm6, %v10844_v0, %v7827_v52  ;;  %v19637_v0 = vpop.permute.xlu1 %6472   ;;  %v10902_v16 = vld [vmem:[%s20803_s0 + $0x460] sm:$0x8]  }
 0x393   :  { %v10871_v62 = vld [vmem:[%s20803_s0 + $0x6dd] sm:$0x80]   ;;  %v7928_v32 = vsel %vm21_vm4, %v10869_v8, %v7924_v19  ;;  %v19663_v8 = vpop.permute.xlu0 %6437   ;;  %v8055_v19 = vsel %vm9_vm1, %v10901_v57, %v8051_v39  ;;  %v10915_v9 = vld [vmem:[%s20803_s0 + $0x1dc] sm:$0x80]   ;;  %10499 = vst.msk [vmem:[%s20804_s1 + $0x28] sm:$0xff] %vm6370_vm12, %v19637_v0  }
 0x394   :  { %v10855_v37 = vld [vmem:[%s20803_s0 + $0x204] sm:$0x1]   ;;  %v7932_v41 = vsel %vm25_vm5, %v10870_v27, %v7928_v32  ;;  %v10892_v32 = vld [vmem:[%s20803_s0 + $0x22] sm:$0x2]   ;;  %10490 = vst.msk [vmem:[%s20804_s1 + $0x8] sm:$0xff] %vm6370_vm12, %v19663_v8  }
 0x395   :  { %v10856_v3 = vld [vmem:[%s20803_s0 + $0x223] sm:$0x2]   ;;  %v7936_v7 = vsel %vm29_vm6, %v10871_v62, %v7932_v41  ;;  %v10937_v39 = vld [vmem:[%s20803_s0 + $0x641] sm:$0x4]  }
 0x396   :  { %v10857_v12 = vld [vmem:[%s20803_s0 + $0x242] sm:$0x4]   ;;  %v7877_v30 = vsel %vm5_vm0, %v10856_v3, %v10855_v37  ;;  %7832 = vrot.lane.b32.xlu0 %v7831_v5, %s11162_s3  ;;  %7937 = vrot.lane.b32.xlu1 %v7936_v7, %s11162_s3  ;;  %v10903_v37 = vld [vmem:[%s20803_s0 + $0x47f] sm:$0x10]   ;;  %v8059_v5 = vsel %vm13_vm2, %v10902_v16, %v8055_v19 }
 0x397   :  { %v10858_v53 = vld [vmem:[%s20803_s0 + $0x261] sm:$0x8]   ;;  %v7881_v55 = vsel %vm9_vm1, %v10857_v12, %v7877_v30  ;;  %v10904_v3 = vld [vmem:[%s20803_s0 + $0x49e] sm:$0x20]   ;;  %v8063_v41 = vsel %vm17_vm3, %v10903_v37, %v8059_v5  ;;  %v19767_v1 = vpop.permute.xlu0 %6507  }
 0x398   :  { %v10859_v61 = vld [vmem:[%s20803_s0 + $0x280] sm:$0x10]   ;;  %v7885_v20 = vsel %vm13_vm2, %v10858_v53, %v7881_v55  ;;  %v10905_v30 = vld [vmem:[%s20803_s0 + $0x4bd] sm:$0x40]   ;;  %v8067_v7 = vsel %vm21_vm4, %v10904_v3, %v8063_v41  ;;  %10508 = vst.msk [vmem:[%s20804_s1 + $0x10] sm:$0xff] %vm6370_vm12, %v19767_v1  }
 0x399   :  { %v10860_v36 = vld [vmem:[%s20803_s0 + $0x29f] sm:$0x20]   ;;  %v7889_v46 = vsel %vm17_vm3, %v10859_v61, %v7885_v20  ;;  %v10906_v53 = vld [vmem:[%s20803_s0 + $0x4dc] sm:$0x80]   ;;  %v10993_v1 = vld [vmem:[%s20803_s0 + $0x59d] sm:$0x20]  }
 0x39a   :  { %v10862_v47 = vld [vmem:[%s20803_s0 + $0x2dd] sm:$0x80]   ;;  %v7893_v28 = vsel %vm21_vm4, %v10860_v36, %v7889_v46  ;;  %v10891_v61 = vld [vmem:[%s20803_s0 + $0x3] sm:$0x1]  }
 0x39b   :  { %v10882_v2 = vld [vmem:[%s20803_s0 + $0x704] sm:$0x1]   ;;  %v7897_v50 = vsel %vm25_vm5, %v10861_v21, %v7893_v28  ;;  %v10893_v55 = vld [vmem:[%s20803_s0 + $0x41] sm:$0x4]   ;;  %v8017_v20 = vsel %vm5_vm0, %v10892_v32, %v10891_v61  ;;  %v19831_v16 = vpop.permute.xlu0 %6577  }
 0x39c   :  { %v10883_v38 = vld [vmem:[%s20803_s0 + $0x723] sm:$0x2]   ;;  %v7901_v25 = vsel %vm29_vm6, %v10862_v47, %v7897_v50  ;;  %v10894_v21 = vld [vmem:[%s20803_s0 + $0x60] sm:$0x8]   ;;  %v19701_v47 = vpop.permute.xlu1 %6542   ;;  %v8021_v46 = vsel %vm9_vm1, %v10893_v55, %v8017_v20  ;;  %10526 = vst.msk [vmem:[%s20804_s1 + $0x18] sm:$0xff] %vm6370_vm12, %v19831_v16  }
 0x39d   :  { %v10884_v56 = vld [vmem:[%s20803_s0 + $0x742] sm:$0x4]   ;;  %v7982_v11 = vsel %vm5_vm0, %v10883_v38, %v10882_v2  ;;  %7902 = vrot.lane.b32.xlu0 %v7901_v25, %s11162_s3  ;;  %v10895_v38 = vld [vmem:[%s20803_s0 + $0x7f] sm:$0x10]   ;;  %10517 = vst.msk [vmem:[%s20804_s1 + $0x30] sm:$0xff] %vm6370_vm12, %v19701_v47  }
 0x39e   :  { %v10885_v13 = vld [vmem:[%s20803_s0 + $0x761] sm:$0x8]   ;;  %v7986_v17 = vsel %vm9_vm1, %v10884_v56, %v7982_v11  ;;  %v10896_v56 = vld [vmem:[%s20803_s0 + $0x9e] sm:$0x20]  }
 0x39f   :  { %v10886_v48 = vld [vmem:[%s20803_s0 + $0x780] sm:$0x10]   ;;  %v7990_v59 = vsel %vm13_vm2, %v10885_v13, %v7986_v17  ;;  %v10897_v13 = vld [vmem:[%s20803_s0 + $0xbd] sm:$0x40]  }
 0x3a0   :  { %v10887_v58 = vld [vmem:[%s20803_s0 + $0x79f] sm:$0x20]   ;;  %v7994_v33 = vsel %vm17_vm3, %v10886_v48, %v7990_v59  ;;  %v10898_v11 = vld [vmem:[%s20803_s0 + $0xdc] sm:$0x80]  }
 0x3a1   :  { %v10888_v29 = vld [vmem:[%s20803_s0 + $0x7be] sm:$0x40]   ;;  %v7998_v24 = vsel %vm21_vm4, %v10887_v58, %v7994_v33  ;;  %v10917_v48 = vld [vmem:[%s20803_s0 + $0x503] sm:$0x1]   ;;  %v8071_v58 = vsel %vm25_vm5, %v10905_v30, %v8067_v7 }
 0x3a2   :  { %v10889_v18 = vld [vmem:[%s20803_s0 + $0x7dd] sm:$0x80]   ;;  %v8002_v27 = vsel %vm25_vm5, %v10888_v29, %v7998_v24  ;;  %v8025_v29 = vsel %vm13_vm2, %v10894_v21, %v8021_v46  ;;  %v10920_v28 = vld [vmem:[%s20803_s0 + $0x560] sm:$0x8]   ;;  %v8075_v15 = vsel %vm29_vm6, %v10906_v53, %v8071_v58  ;;  %v8121_v43 = vsel %vm5_vm0, %v10918_v51, %v10917_v48 }
 0x3a3   :  { %v10873_v42 = vld [vmem:[%s20803_s0 + $0x304] sm:$0x1]   ;;  %v8006_v12 = vsel %vm29_vm6, %v10889_v18, %v8002_v27  ;;  %v8029_v14 = vsel %vm17_vm3, %v10895_v38, %v8025_v29  ;;  %v10923_v17 = vld [vmem:[%s20803_s0 + $0x5bd] sm:$0x40]  }
 0x3a4   :  { %v10874_v26 = vld [vmem:[%s20803_s0 + $0x323] sm:$0x2]   ;;  %8007 = vrot.lane.b32.xlu1 %v8006_v12, %s11162_s3  ;;  %v8033_v18 = vsel %vm21_vm4, %v10896_v56, %v8029_v14  ;;  %v10908_v50 = vld [vmem:[%s20803_s0 + $0x103] sm:$0x1]   ;;  %v19895_v14 = vpop.permute.xlu0 %6647  }
 0x3a5   :  { %v7947_v6 = vsel %vm5_vm0, %v10874_v26, %v10873_v42  ;;  %v10875_v40 = vld [vmem:[%s20803_s0 + $0x342] sm:$0x4]   ;;  %v8125_v42 = vsel %vm9_vm1, %v10919_v4, %v8121_v43  ;;  %v10924_v26 = vld [vmem:[%s20803_s0 + $0x5dc] sm:$0x80]   ;;  %6650 = vst.msk [vmem:[%s20804_s1] sm:$0xff] %vm6649_vm13, %v19895_v14  }
 0x3a6   :  { %v10876_v49 = vld [vmem:[%s20803_s0 + $0x361] sm:$0x8]   ;;  %v7951_v22 = vsel %vm9_vm1, %v10875_v40, %v7947_v6  ;;  %v10909_v59 = vld [vmem:[%s20803_s0 + $0x122] sm:$0x2]   ;;  %v19793_v6 = vpop.permute.xlu1 %6612   ;;  %v8037_v40 = vsel %vm25_vm5, %v10897_v13, %v8033_v18  ;;  %v11060_v14 = vld [vmem:[%s20803_s0 + $0x520] sm:$0x2]  }
 0x3a7   :  { %v10877_v34 = vld [vmem:[%s20803_s0 + $0x380] sm:$0x10]   ;;  %v7955_v54 = vsel %vm13_vm2, %v10876_v49, %v7951_v22  ;;  %v8129_v49 = vsel %vm13_vm2, %v10920_v28, %v8125_v42  ;;  %v10910_v25 = vld [vmem:[%s20803_s0 + $0x141] sm:$0x4]   ;;  %10535 = vst.msk [vmem:[%s20804_s1 + $0x38] sm:$0xff] %vm6370_vm12, %v19793_v6  }
 0x3a8   :  { %v10878_v63 = vld [vmem:[%s20803_s0 + $0x39f] sm:$0x20]   ;;  %v7959_v62 = vsel %vm17_vm3, %v10877_v34, %v7955_v54  ;;  %8076 = vrot.lane.b32.xlu1 %v8075_v15, %s11163_s7  ;;  %v8086_v34 = vsel %vm5_vm0, %v10909_v59, %v10908_v50  ;;  %v10911_v33 = vld [vmem:[%s20803_s0 + $0x160] sm:$0x8]   ;;  %v10994_v6 = vld [vmem:[%s20803_s0 + $0x5bc] sm:$0x40]  }
 0x3a9   :  { %v10879_v45 = vld [vmem:[%s20803_s0 + $0x3be] sm:$0x40]   ;;  %v7963_v52 = vsel %vm21_vm4, %v10878_v63, %v7959_v62  ;;  %v10912_v22 = vld [vmem:[%s20803_s0 + $0x17f] sm:$0x10]   ;;  %v8041_v63 = vsel %vm29_vm6, %v10898_v11, %v8037_v40 }
 0x3aa   :  { %v10880_v44 = vld [vmem:[%s20803_s0 + $0x3dd] sm:$0x80]   ;;  %v7967_v36 = vsel %vm25_vm5, %v10879_v45, %v7963_v52  ;;  %v8133_v45 = vsel %vm17_vm3, %v10921_v31, %v8129_v49  ;;  %v10913_v24 = vld [vmem:[%s20803_s0 + $0x19e] sm:$0x20]   ;;  %v19869_v56 = vpop.permute.xlu1 %6681  }
 0x3ab   :  { %v7971_v2 = vsel %vm29_vm6, %v10880_v44, %v7967_v36  ;;  %v8090_v44 = vsel %vm9_vm1, %v10910_v25, %v8086_v34  ;;  %v10914_v54 = vld [vmem:[%s20803_s0 + $0x1bd] sm:$0x40]   ;;  %v8137_v35 = vsel %vm21_vm4, %v10922_v23, %v8133_v45  ;;  %10552 = vst.msk [vmem:[%s20804_s1 + $0x20] sm:$0xff] %vm6649_vm13, %v19869_v56   ;;  %v11059_v56 = vld [vmem:[%s20803_s0 + $0x501] sm:$0x1]  }
 0x3ac   :  { %7972 = vrot.lane.b32.xlu0 %v7971_v2, %s11162_s3  ;;  %v8094_v57 = vsel %vm13_vm2, %v10911_v33, %v8090_v44  ;;  %v10935_v27 = vld [vmem:[%s20803_s0 + $0x603] sm:$0x1]   ;;  %v8141_v37 = vsel %vm25_vm5, %v10923_v17, %v8137_v35 }
 0x3ad   :  { %v10936_v62 = vld [vmem:[%s20803_s0 + $0x622] sm:$0x2]   ;;  %v8098_v3 = vsel %vm17_vm3, %v10912_v22, %v8094_v57  ;;  %v8145_v53 = vsel %vm29_vm6, %v10924_v26, %v8141_v37 }
 0x3ae   :  { %v8191_v12 = vsel %vm5_vm0, %v10936_v62, %v10935_v27  ;;  %v10938_v52 = vld [vmem:[%s20803_s0 + $0x660] sm:$0x8]   ;;  %v8102_v61 = vsel %vm21_vm4, %v10913_v24, %v8098_v3  ;;  %8146 = vrot.lane.b32.xlu1 %v8145_v53, %s11163_s7  ;;  %v19933_v44 = vpop.permute.xlu1 %6751   ;;  %v10971_v53 = vld [vmem:[%s20803_s0 + $0x421] sm:$0x2]  }
 0x3af   :  { %v10939_v19 = vld [vmem:[%s20803_s0 + $0x67f] sm:$0x10]   ;;  %v8195_v36 = vsel %vm9_vm1, %v10937_v39, %v8191_v12  ;;  %v8106_v21 = vsel %vm25_vm5, %v10914_v54, %v8102_v61  ;;  %v10972_v61 = vld [vmem:[%s20803_s0 + $0x440] sm:$0x4]   ;;  %10570 = vst.msk [vmem:[%s20804_s1 + $0x28] sm:$0xff] %vm6649_vm13, %v19933_v44  }
 0x3b0   :  { %8042 = vrot.lane.b32.xlu0 %v8041_v63, %s11163_s7  ;;  %v10940_v30 = vld [vmem:[%s20803_s0 + $0x69e] sm:$0x20]   ;;  %v8199_v2 = vsel %vm13_vm2, %v10938_v52, %v8195_v36  ;;  %v8110_v13 = vsel %vm29_vm6, %v10915_v9, %v8106_v21  ;;  %v10970_v52 = vld [vmem:[%s20803_s0 + $0x402] sm:$0x1]  }
 0x3b1   :  { %v10941_v5 = vld [vmem:[%s20803_s0 + $0x6bd] sm:$0x40]   ;;  %v8203_v7 = vsel %vm17_vm3, %v10939_v19, %v8199_v2  ;;  %v10973_v36 = vld [vmem:[%s20803_s0 + $0x45f] sm:$0x8]   ;;  %v8330_v21 = vsel %vm5_vm0, %v10971_v53, %v10970_v52 }
 0x3b2   :  { %v10942_v32 = vld [vmem:[%s20803_s0 + $0x6dc] sm:$0x80]   ;;  %v8207_v29 = vsel %vm21_vm4, %v10940_v30, %v8203_v7  ;;  %v10974_v2 = vld [vmem:[%s20803_s0 + $0x47e] sm:$0x10]  }
 0x3b3   :  { %v10926_v55 = vld [vmem:[%s20803_s0 + $0x203] sm:$0x1]   ;;  %v8211_v43 = vsel %vm25_vm5, %v10941_v5, %v8207_v29  ;;  %v19971_v5 = vpop.permute.xlu0 %6716   ;;  %v10977_v7 = vld [vmem:[%s20803_s0 + $0x4db] sm:$0x80]  }
 0x3b4   :  { %v10927_v41 = vld [vmem:[%s20803_s0 + $0x222] sm:$0x2]   ;;  %8111 = vrot.lane.b32.xlu0 %v8110_v13, %s11163_s7  ;;  %v8215_v26 = vsel %vm29_vm6, %v10942_v32, %v8211_v43  ;;  %v8334_v13 = vsel %vm9_vm1, %v10972_v61, %v8330_v21  ;;  %v10984_v52 = vld [vmem:[%s20803_s0 + $0x19d] sm:$0x20]   ;;  %10561 = vst.msk [vmem:[%s20804_s1 + $0x8] sm:$0xff] %vm6649_vm13, %v19971_v5  }
 0x3b5   :  { %v10928_v20 = vld [vmem:[%s20803_s0 + $0x241] sm:$0x4]   ;;  %v8156_v46 = vsel %vm5_vm0, %v10927_v41, %v10926_v55  ;;  %8216 = vrot.lane.b32.xlu1 %v8215_v26, %s11163_s7  ;;  %v10975_v41 = vld [vmem:[%s20803_s0 + $0x49d] sm:$0x20]  }
 0x3b6   :  { %v10929_v38 = vld [vmem:[%s20803_s0 + $0x260] sm:$0x8]   ;;  %v8160_v51 = vsel %vm9_vm1, %v10928_v20, %v8156_v46  ;;  %v10976_v20 = vld [vmem:[%s20803_s0 + $0x4bc] sm:$0x40]  }
 0x3b7   :  { %v10930_v11 = vld [vmem:[%s20803_s0 + $0x27f] sm:$0x10]   ;;  %v8164_v31 = vsel %vm13_vm2, %v10929_v38, %v8160_v51  ;;  %v10962_v46 = vld [vmem:[%s20803_s0 + $0x2] sm:$0x1]  }
 0x3b8   :  { %v10931_v48 = vld [vmem:[%s20803_s0 + $0x29e] sm:$0x20]   ;;  %v8168_v50 = vsel %vm17_vm3, %v10930_v11, %v8164_v31  ;;  %v10963_v11 = vld [vmem:[%s20803_s0 + $0x21] sm:$0x2]  }
 0x3b9   :  { %v10932_v58 = vld [vmem:[%s20803_s0 + $0x2bd] sm:$0x40]   ;;  %v8172_v25 = vsel %vm21_vm4, %v10931_v48, %v8168_v50  ;;  %v8296_v29 = vsel %vm5_vm0, %v10963_v11, %v10962_v46  ;;  %v10964_v51 = vld [vmem:[%s20803_s0 + $0x40] sm:$0x4]  }
 0x3ba   :  { %v10933_v4 = vld [vmem:[%s20803_s0 + $0x2dc] sm:$0x80]   ;;  %v8176_v24 = vsel %vm25_vm5, %v10932_v58, %v8172_v25  ;;  %v8338_v58 = vsel %vm13_vm2, %v10973_v36, %v8334_v13  ;;  %v11007_v36 = vld [vmem:[%s20803_s0 + $0x621] sm:$0x2]  }
 0x3bb   :  { %v10953_v28 = vld [vmem:[%s20803_s0 + $0x703] sm:$0x1]   ;;  %v8180_v62 = vsel %vm29_vm6, %v10933_v4, %v8176_v24  ;;  %v10965_v4 = vld [vmem:[%s20803_s0 + $0x5f] sm:$0x8]   ;;  %v8342_v31 = vsel %vm17_vm3, %v10974_v2, %v8338_v58 }
 0x3bc   :  { %v10954_v15 = vld [vmem:[%s20803_s0 + $0x722] sm:$0x2]   ;;  %8181 = vrot.lane.b32.xlu0 %v8180_v62, %s11163_s7  ;;  %v8346_v26 = vsel %vm21_vm4, %v10975_v41, %v8342_v31  ;;  %v10980_v24 = vld [vmem:[%s20803_s0 + $0x121] sm:$0x2]  }
 0x3bd   :  { %v8261_v23 = vsel %vm5_vm0, %v10954_v15, %v10953_v28  ;;  %v10955_v17 = vld [vmem:[%s20803_s0 + $0x741] sm:$0x4]   ;;  %v10966_v28 = vld [vmem:[%s20803_s0 + $0x7e] sm:$0x10]   ;;  %v20009_v15 = vpop.permute.xlu1 %6821  }
 0x3be   :  { %v10956_v18 = vld [vmem:[%s20803_s0 + $0x760] sm:$0x8]   ;;  %v8265_v59 = vsel %vm9_vm1, %v10955_v17, %v8261_v23  ;;  %v8300_v23 = vsel %vm9_vm1, %v10964_v51, %v8296_v29  ;;  %v10967_v17 = vld [vmem:[%s20803_s0 + $0x9d] sm:$0x20]   ;;  %10588 = vst.msk [vmem:[%s20804_s1 + $0x30] sm:$0xff] %vm6649_vm13, %v20009_v15  }
 0x3bf   :  { %v10957_v42 = vld [vmem:[%s20803_s0 + $0x77f] sm:$0x10]   ;;  %v8269_v33 = vsel %vm13_vm2, %v10956_v18, %v8265_v59  ;;  %v10968_v18 = vld [vmem:[%s20803_s0 + $0xbc] sm:$0x40]   ;;  %v8304_v50 = vsel %vm13_vm2, %v10965_v4, %v8300_v23 }
 0x3c0   :  { %v10958_v40 = vld [vmem:[%s20803_s0 + $0x79e] sm:$0x20]   ;;  %v8273_v54 = vsel %vm17_vm3, %v10957_v42, %v8269_v33  ;;  %v10969_v42 = vld [vmem:[%s20803_s0 + $0xdb] sm:$0x80]   ;;  %v8308_v25 = vsel %vm17_vm3, %v10966_v28, %v8304_v50 }
 0x3c1   :  { %v10959_v49 = vld [vmem:[%s20803_s0 + $0x7bd] sm:$0x40]   ;;  %v8277_v39 = vsel %vm21_vm4, %v10958_v40, %v8273_v54  ;;  %v10988_v59 = vld [vmem:[%s20803_s0 + $0x502] sm:$0x1]   ;;  %v8312_v8 = vsel %vm21_vm4, %v10967_v17, %v8308_v25 }
 0x3c2   :  { %v10960_v34 = vld [vmem:[%s20803_s0 + $0x7dc] sm:$0x80]   ;;  %v8281_v19 = vsel %vm25_vm5, %v10959_v49, %v8277_v39  ;;  %v10989_v40 = vld [vmem:[%s20803_s0 + $0x521] sm:$0x2]   ;;  %v20032_v49 = vpop.permute.xlu0 %6786   ;;  %v8316_v16 = vsel %vm25_vm5, %v10968_v18, %v8312_v8 }
 0x3c3   :  { %v10944_v22 = vld [vmem:[%s20803_s0 + $0x303] sm:$0x1]   ;;  %v8285_v32 = vsel %vm29_vm6, %v10960_v34, %v8281_v19  ;;  %v8350_v34 = vsel %vm25_vm5, %v10976_v20, %v8346_v26  ;;  %v8400_v10 = vsel %vm5_vm0, %v10989_v40, %v10988_v59  ;;  %v10991_v33 = vld [vmem:[%s20803_s0 + $0x55f] sm:$0x8]   ;;  %10579 = vst.msk [vmem:[%s20804_s1 + $0x10] sm:$0xff] %vm6649_vm13, %v20032_v49  }
 0x3c4   :  { %v10945_v63 = vld [vmem:[%s20803_s0 + $0x322] sm:$0x2]   ;;  %8286 = vrot.lane.b32.xlu1 %v8285_v32, %s11163_s7  ;;  %v8354_v0 = vsel %vm29_vm6, %v10977_v7, %v8350_v34  ;;  %v8404_v47 = vsel %vm9_vm1, %v10990_v60, %v8400_v10  ;;  %v10981_v54 = vld [vmem:[%s20803_s0 + $0x140] sm:$0x4]   ;;  %v11040_v49 = vld [vmem:[%s20803_s0 + $0xda] sm:$0x80]  }
 0x3c5   :  { %v10946_v45 = vld [vmem:[%s20803_s0 + $0x341] sm:$0x4]   ;;  %v8226_v9 = vsel %vm5_vm0, %v10945_v63, %v10944_v22  ;;  %v10992_v22 = vld [vmem:[%s20803_s0 + $0x57e] sm:$0x10]   ;;  %v8408_v63 = vsel %vm13_vm2, %v10991_v33, %v8404_v47 }
 0x3c6   :  { %v10947_v35 = vld [vmem:[%s20803_s0 + $0x360] sm:$0x8]   ;;  %v8230_v37 = vsel %vm9_vm1, %v10946_v45, %v8226_v9  ;;  %v10979_v45 = vld [vmem:[%s20803_s0 + $0x102] sm:$0x1]   ;;  %v20107_v9 = vpop.permute.xlu1 %6891   ;;  %v20144_v21 = vpop.permute.xlu0 %6856  }
 0x3c7   :  { %v10948_v57 = vld [vmem:[%s20803_s0 + $0x37f] sm:$0x10]   ;;  %v8234_v30 = vsel %vm13_vm2, %v10947_v35, %v8230_v37  ;;  %v8320_v35 = vsel %vm29_vm6, %v10969_v42, %v8316_v16  ;;  %v8365_v62 = vsel %vm5_vm0, %v10980_v24, %v10979_v45  ;;  %v10982_v39 = vld [vmem:[%s20803_s0 + $0x15f] sm:$0x8]   ;;  %10606 = vst.msk [vmem:[%s20804_s1 + $0x38] sm:$0xff] %vm6649_vm13, %v20107_v9   ;;  %10597 = vst.msk [vmem:[%s20804_s1 + $0x18] sm:$0xff] %vm6649_vm13, %v20144_v21  }
 0x3c8   :  { %v10949_v27 = vld [vmem:[%s20803_s0 + $0x39e] sm:$0x20]   ;;  %v8238_v55 = vsel %vm17_vm3, %v10948_v57, %v8234_v30  ;;  %8355 = vrot.lane.b32.xlu1 %v8354_v0, %s11164_s15  ;;  %v8412_v57 = vsel %vm17_vm3, %v10992_v22, %v8408_v63  ;;  %v10983_v37 = vld [vmem:[%s20803_s0 + $0x17e] sm:$0x10]   ;;  %v8679_v9 = vsel %vm5_vm0, %v11060_v14, %v11059_v56  ;;  %v11062_v21 = vld [vmem:[%s20803_s0 + $0x55e] sm:$0x8]  }
 0x3c9   :  { %v10950_v3 = vld [vmem:[%s20803_s0 + $0x3bd] sm:$0x40]   ;;  %v8242_v38 = vsel %vm21_vm4, %v10949_v27, %v8238_v55  ;;  %v10995_v27 = vld [vmem:[%s20803_s0 + $0x5db] sm:$0x80]   ;;  %v11073_v14 = vld [vmem:[%s20803_s0 + $0x29c] sm:$0x20]  }
 0x3ca   :  { %v10951_v12 = vld [vmem:[%s20803_s0 + $0x3dc] sm:$0x80]   ;;  %v8246_v48 = vsel %vm25_vm5, %v10950_v3, %v8242_v38  ;;  %v8416_v3 = vsel %vm21_vm4, %v10993_v1, %v8412_v57  ;;  %v10985_v19 = vld [vmem:[%s20803_s0 + $0x1bc] sm:$0x40]   ;;  %v20170_v51 = vpop.permute.xlu1 %6960   ;;  %v20208_v22 = vpop.permute.xlu0 %6926  }
 0x3cb   :  { %v8250_v43 = vsel %vm29_vm6, %v10951_v12, %v8246_v48  ;;  %v8369_v12 = vsel %vm9_vm1, %v10981_v54, %v8365_v62  ;;  %v11006_v30 = vld [vmem:[%s20803_s0 + $0x602] sm:$0x1]   ;;  %v8420_v53 = vsel %vm25_vm5, %v10994_v6, %v8416_v3 }
 0x3cc   :  { %8251 = vrot.lane.b32.xlu0 %v8250_v43, %s11163_s7  ;;  %v8373_v61 = vsel %vm13_vm2, %v10982_v39, %v8369_v12  ;;  %v11008_v32 = vld [vmem:[%s20803_s0 + $0x640] sm:$0x4]   ;;  %v8424_v2 = vsel %vm29_vm6, %v10995_v27, %v8420_v53  ;;  %v8470_v38 = vsel %vm5_vm0, %v11007_v36, %v11006_v30  ;;  %s11165_s7 = smov 4  }
 0x3cd   :  { %v11009_v55 = vld [vmem:[%s20803_s0 + $0x65f] sm:$0x8]   ;;  %v8377_v41 = vsel %vm17_vm3, %v10983_v37, %v8373_v61  ;;  %8425 = vrot.lane.b32.xlu1 %v8424_v2, %s11164_s15  ;;  %v8474_v11 = vsel %vm9_vm1, %v11008_v32, %v8470_v38 }
 0x3ce   :  { %v10986_v20 = vld [vmem:[%s20803_s0 + $0x1db] sm:$0x80]   ;;  %v8381_v46 = vsel %vm21_vm4, %v10984_v52, %v8377_v41  ;;  %v8478_v28 = vsel %vm13_vm2, %v11009_v55, %v8474_v11  ;;  %v20246_v12 = vpop.permute.xlu1 %7030   ;;  %v11041_v41 = vld [vmem:[%s20803_s0 + $0x401] sm:$0x1]  }
 0x3cf   :  { %v11010_v13 = vld [vmem:[%s20803_s0 + $0x67e] sm:$0x10]   ;;  %v8385_v4 = vsel %vm25_vm5, %v10985_v19, %v8381_v46  ;;  %v11043_v46 = vld [vmem:[%s20803_s0 + $0x43f] sm:$0x4]  }
 0x3d0   :  { %8321 = vrot.lane.b32.xlu0 %v8320_v35, %s11164_s15  ;;  %v11011_v7 = vld [vmem:[%s20803_s0 + $0x69d] sm:$0x20]   ;;  %v8389_v18 = vsel %vm29_vm6, %v10986_v20, %v8385_v4  ;;  %v8482_v42 = vsel %vm17_vm3, %v11010_v13, %v8478_v28  ;;  %v11042_v20 = vld [vmem:[%s20803_s0 + $0x420] sm:$0x2]  }
 0x3d1   :  { %v11012_v48 = vld [vmem:[%s20803_s0 + $0x6bc] sm:$0x40]   ;;  %v8486_v34 = vsel %vm21_vm4, %v11011_v7, %v8482_v42  ;;  %v8609_v7 = vsel %vm5_vm0, %v11042_v20, %v11041_v41  ;;  %v11044_v11 = vld [vmem:[%s20803_s0 + $0x45e] sm:$0x8]  }
 0x3d2   :  { %v10997_v58 = vld [vmem:[%s20803_s0 + $0x202] sm:$0x1]   ;;  %v8490_v0 = vsel %vm25_vm5, %v11012_v48, %v8486_v34  ;;  %v11045_v48 = vld [vmem:[%s20803_s0 + $0x47d] sm:$0x10]  }
 0x3d3   :  { %v10998_v29 = vld [vmem:[%s20803_s0 + $0x221] sm:$0x2]   ;;  %v11033_v42 = vld [vmem:[%s20803_s0 + $0x1] sm:$0x1]  }
 0x3d4   :  { %v8435_v43 = vsel %vm5_vm0, %v10998_v29, %v10997_v58  ;;  %v10999_v31 = vld [vmem:[%s20803_s0 + $0x240] sm:$0x4]   ;;  %8390 = vrot.lane.b32.xlu0 %v8389_v18, %s11164_s15  ;;  %v20284_v58 = vpop.permute.xlu0 %6995  }
 0x3d5   :  { %v11000_v23 = vld [vmem:[%s20803_s0 + $0x25f] sm:$0x8]   ;;  %v8439_v50 = vsel %vm9_vm1, %v10999_v31, %v8435_v43  ;;  %v8613_v43 = vsel %vm9_vm1, %v11043_v46, %v8609_v7  ;;  %v11046_v31 = vld [vmem:[%s20803_s0 + $0x49c] sm:$0x20]  }
 0x3d6   :  { %v11001_v17 = vld [vmem:[%s20803_s0 + $0x27e] sm:$0x10]   ;;  %v8443_v25 = vsel %vm13_vm2, %v11000_v23, %v8439_v50  ;;  %v11047_v23 = vld [vmem:[%s20803_s0 + $0x4bb] sm:$0x40]   ;;  %v8617_v18 = vsel %vm13_vm2, %v11044_v11, %v8613_v43 }
 0x3d7   :  { %v11013_v26 = vld [vmem:[%s20803_s0 + $0x6db] sm:$0x80]   ;;  %v8447_v8 = vsel %vm17_vm3, %v11001_v17, %v8443_v25  ;;  %v11035_v50 = vld [vmem:[%s20803_s0 + $0x3f] sm:$0x4]   ;;  %v8621_v34 = vsel %vm17_vm3, %v11045_v48, %v8617_v18 }
 0x3d8   :  { %v11002_v59 = vld [vmem:[%s20803_s0 + $0x29d] sm:$0x20]   ;;  %v8494_v63 = vsel %vm29_vm6, %v11013_v26, %v8490_v0  ;;  %v11034_v26 = vld [vmem:[%s20803_s0 + $0x20] sm:$0x2]   ;;  %v20377_v44 = vpop.permute.xlu0 %7065  }
 0x3d9   :  { %v11003_v40 = vld [vmem:[%s20803_s0 + $0x2bc] sm:$0x40]   ;;  %v8451_v45 = vsel %vm21_vm4, %v11002_v59, %v8447_v8  ;;  %8495 = vrot.lane.b32.xlu1 %v8494_v63, %s11164_s15  ;;  %v20310_v59 = vpop.permute.xlu1 %7100   ;;  %v11048_v25 = vld [vmem:[%s20803_s0 + $0x4da] sm:$0x80]   ;;  %v8625_v8 = vsel %vm21_vm4, %v11046_v31, %v8621_v34 }
 0x3da   :  { %v11024_v10 = vld [vmem:[%s20803_s0 + $0x702] sm:$0x1]   ;;  %v8455_v27 = vsel %vm25_vm5, %v11003_v40, %v8451_v45  ;;  %v11061_v45 = vld [vmem:[%s20803_s0 + $0x53f] sm:$0x4]  }
 0x3db   :  { %v11025_v60 = vld [vmem:[%s20803_s0 + $0x721] sm:$0x2]   ;;  %v11078_v7 = vld [vmem:[%s20803_s0 + $0x620] sm:$0x2]  }
 0x3dc   :  { %v11026_v33 = vld [vmem:[%s20803_s0 + $0x740] sm:$0x4]   ;;  %v8540_v1 = vsel %vm5_vm0, %v11025_v60, %v11024_v10  ;;  %v8575_v10 = vsel %vm5_vm0, %v11034_v26, %v11033_v42  ;;  %v11036_v60 = vld [vmem:[%s20803_s0 + $0x5e] sm:$0x8]   ;;  %v20440_v46 = vpop.permute.xlu0 %7135  }
 0x3dd   :  { %v11004_v47 = vld [vmem:[%s20803_s0 + $0x2db] sm:$0x80]   ;;  %v8544_v24 = vsel %vm9_vm1, %v11026_v33, %v8540_v1  ;;  %v11037_v33 = vld [vmem:[%s20803_s0 + $0x7d] sm:$0x10]  }
 0x3de   :  { %v11027_v6 = vld [vmem:[%s20803_s0 + $0x75f] sm:$0x8]   ;;  %v8459_v52 = vsel %vm29_vm6, %v11004_v47, %v8455_v27  ;;  %v8579_v47 = vsel %vm9_vm1, %v11035_v50, %v8575_v10  ;;  %v11038_v1 = vld [vmem:[%s20803_s0 + $0x9c] sm:$0x20]  }
 0x3df   :  { %v11028_v16 = vld [vmem:[%s20803_s0 + $0x77e] sm:$0x10]   ;;  %v8548_v62 = vsel %vm13_vm2, %v11027_v6, %v8544_v24  ;;  %8460 = vrot.lane.b32.xlu0 %v8459_v52, %s11164_s15  ;;  %v11039_v6 = vld [vmem:[%s20803_s0 + $0xbb] sm:$0x40]   ;;  %v8583_v63 = vsel %vm13_vm2, %v11036_v60, %v8579_v47 }
 0x3e0   :  { %v11029_v54 = vld [vmem:[%s20803_s0 + $0x79d] sm:$0x20]   ;;  %v8552_v19 = vsel %vm17_vm3, %v11028_v16, %v8548_v62  ;;  %v8629_v16 = vsel %vm25_vm5, %v11047_v23, %v8625_v8  ;;  %v8587_v15 = vsel %vm17_vm3, %v11037_v33, %v8583_v63  ;;  %v11063_v24 = vld [vmem:[%s20803_s0 + $0x57d] sm:$0x10]  }
 0x3e1   :  { %v11030_v35 = vld [vmem:[%s20803_s0 + $0x7bc] sm:$0x40]   ;;  %v8556_v32 = vsel %vm21_vm4, %v11029_v54, %v8552_v19  ;;  %v8633_v5 = vsel %vm29_vm6, %v11048_v25, %v8629_v16  ;;  %v8591_v54 = vsel %vm21_vm4, %v11038_v1, %v8587_v15  ;;  %v11065_v27 = vld [vmem:[%s20803_s0 + $0x5bb] sm:$0x40]  }
 0x3e2   :  { %v11015_v57 = vld [vmem:[%s20803_s0 + $0x302] sm:$0x1]   ;;  %v8560_v38 = vsel %vm25_vm5, %v11030_v35, %v8556_v32  ;;  %v8683_v35 = vsel %vm9_vm1, %v11061_v45, %v8679_v9  ;;  %v11050_v62 = vld [vmem:[%s20803_s0 + $0x101] sm:$0x1]  }
 0x3e3   :  { %v11016_v39 = vld [vmem:[%s20803_s0 + $0x321] sm:$0x2]   ;;  %v11052_v52 = vld [vmem:[%s20803_s0 + $0x13f] sm:$0x4]  }
 0x3e4   :  { %v11017_v37 = vld [vmem:[%s20803_s0 + $0x340] sm:$0x4]   ;;  %v8505_v53 = vsel %vm5_vm0, %v11016_v39, %v11015_v57  ;;  %v11064_v57 = vld [vmem:[%s20803_s0 + $0x59c] sm:$0x20]   ;;  %v8595_v39 = vsel %vm25_vm5, %v11039_v6, %v8591_v54  ;;  %v7206_v54 = vpop.permute.xlu0 %7205  }
 0x3e5   :  { %v11018_v3 = vld [vmem:[%s20803_s0 + $0x35f] sm:$0x8]   ;;  %v8509_v55 = vsel %vm9_vm1, %v11017_v37, %v8505_v53  ;;  %v8687_v37 = vsel %vm13_vm2, %v11062_v21, %v8683_v35  ;;  %v11053_v19 = vld [vmem:[%s20803_s0 + $0x15e] sm:$0x8]   ;;  %v8599_v53 = vsel %vm29_vm6, %v11040_v49, %v8595_v39 }
 0x3e6   :  { %v11031_v30 = vld [vmem:[%s20803_s0 + $0x7db] sm:$0x80]   ;;  %v8513_v13 = vsel %vm13_vm2, %v11018_v3, %v8509_v55  ;;  %v11051_v3 = vld [vmem:[%s20803_s0 + $0x120] sm:$0x2]  }
 0x3e7   :  { %v11019_v61 = vld [vmem:[%s20803_s0 + $0x37e] sm:$0x10]   ;;  %v8564_v29 = vsel %vm29_vm6, %v11031_v30, %v8560_v38  ;;  %v20414_v30 = vpop.permute.xlu1 %7170   ;;  %v8644_v32 = vsel %vm5_vm0, %v11051_v3, %v11050_v62  ;;  %v11054_v55 = vld [vmem:[%s20803_s0 + $0x17d] sm:$0x10]  }
 0x3e8   :  { %v11020_v36 = vld [vmem:[%s20803_s0 + $0x39d] sm:$0x20]   ;;  %v8517_v4 = vsel %vm17_vm3, %v11019_v61, %v8513_v13  ;;  %8565 = vrot.lane.b32.xlu1 %v8564_v29, %s11164_s15  ;;  %v8691_v61 = vsel %vm17_vm3, %v11063_v24, %v8687_v37  ;;  %v8648_v20 = vsel %vm9_vm1, %v11052_v52, %v8644_v32  ;;  %v11056_v38 = vld [vmem:[%s20803_s0 + $0x1bb] sm:$0x40]  }
 0x3e9   :  { %v11021_v2 = vld [vmem:[%s20803_s0 + $0x3bc] sm:$0x40]   ;;  %v8521_v17 = vsel %vm21_vm4, %v11020_v36, %v8517_v4  ;;  %v11066_v36 = vld [vmem:[%s20803_s0 + $0x5da] sm:$0x80]   ;;  %v8695_v41 = vsel %vm21_vm4, %v11064_v57, %v8691_v61  ;;  %v8652_v48 = vsel %vm13_vm2, %v11053_v19, %v8648_v20 }
 0x3ea   :  { %v11022_v28 = vld [vmem:[%s20803_s0 + $0x3db] sm:$0x80]   ;;  %v8525_v40 = vsel %vm25_vm5, %v11021_v2, %v8521_v17  ;;  %v11055_v2 = vld [vmem:[%s20803_s0 + $0x19c] sm:$0x20]   ;;  %v8699_v11 = vsel %vm25_vm5, %v11065_v27, %v8695_v41  ;;  %v8656_v23 = vsel %vm17_vm3, %v11054_v55, %v8652_v48 }
 0x3eb   :  { %v8529_v0 = vsel %vm29_vm6, %v11022_v28, %v8525_v40  ;;  %v11077_v13 = vld [vmem:[%s20803_s0 + $0x601] sm:$0x1]   ;;  %v8703_v31 = vsel %vm29_vm6, %v11066_v36, %v8699_v11  ;;  %v8660_v50 = vsel %vm21_vm4, %v11055_v2, %v8656_v23  ;;  %v20478_v60 = vpop.permute.xlu1 %7239  }
 0x3ec   :  { %8530 = vrot.lane.b32.xlu0 %v8529_v0, %s11164_s15  ;;  %8634 = vrot.lane.b32.xlu1 %v8633_v5, %s11165_s7  ;;  %v8749_v29 = vsel %vm5_vm0, %v11078_v7, %v11077_v13  ;;  %v11079_v4 = vld [vmem:[%s20803_s0 + $0x63f] sm:$0x4]   ;;  %v8664_v33 = vsel %vm25_vm5, %v11056_v38, %v8660_v50 }
 0x3ed   :  { %v11080_v28 = vld [vmem:[%s20803_s0 + $0x65e] sm:$0x8]   ;;  %v8753_v18 = vsel %vm9_vm1, %v11079_v4, %v8749_v29 }
 0x3ee   :  { %v11081_v43 = vld [vmem:[%s20803_s0 + $0x67d] sm:$0x10]   ;;  %v8757_v40 = vsel %vm13_vm2, %v11080_v28, %v8753_v18 }
 0x3ef   :  { %v11057_v17 = vld [vmem:[%s20803_s0 + $0x1da] sm:$0x80]   ;;  %v8761_v0 = vsel %vm17_vm3, %v11081_v43, %v8757_v40  ;;  %v7310_v38 = vpop.permute.xlu1 %7309  }
 0x3f0   :  { %8600 = vrot.lane.b32.xlu0 %v8599_v53, %s11165_s7  ;;  %v11082_v42 = vld [vmem:[%s20803_s0 + $0x69c] sm:$0x20]   ;;  %8704 = vrot.lane.b32.xlu1 %v8703_v31, %s11165_s7  ;;  %v8668_v16 = vsel %vm29_vm6, %v11057_v17, %v8664_v33  ;;  %v7275_v31 = vpop.permute.xlu0 %7274  }
 0x3f1   :  { %v11083_v26 = vld [vmem:[%s20803_s0 + $0x6bb] sm:$0x40]   ;;  %v8765_v63 = vsel %vm21_vm4, %v11082_v42, %v8761_v0 }
 0x3f2   :  { %v11068_v34 = vld [vmem:[%s20803_s0 + $0x201] sm:$0x1]   ;;  %v8769_v15 = vsel %vm25_vm5, %v11083_v26, %v8765_v63 }
 0x3f3   :  { %v11069_v25 = vld [vmem:[%s20803_s0 + $0x220] sm:$0x2]  }
 0x3f4   :  { %v11070_v10 = vld [vmem:[%s20803_s0 + $0x23f] sm:$0x4]   ;;  %v8714_v47 = vsel %vm5_vm0, %v11069_v25, %v11068_v34  ;;  %8669 = vrot.lane.b32.xlu0 %v8668_v16, %s11165_s7 }
 0x3f5   :  { %v11084_v8 = vld [vmem:[%s20803_s0 + $0x6da] sm:$0x80]   ;;  %v8718_v56 = vsel %vm9_vm1, %v11070_v10, %v8714_v47 }
 0x3f6   :  { %v11071_v1 = vld [vmem:[%s20803_s0 + $0x25e] sm:$0x8]   ;;  %v8773_v35 = vsel %vm29_vm6, %v11084_v8, %v8769_v15 }
 0x3f7   :  { %v11072_v6 = vld [vmem:[%s20803_s0 + $0x27d] sm:$0x10]   ;;  %v8722_v49 = vsel %vm13_vm2, %v11071_v1, %v8718_v56  ;;  %8774 = vrot.lane.b32.xlu1 %v8773_v35, %s11165_s7 }
 0x3f8   :  { %v11074_v45 = vld [vmem:[%s20803_s0 + $0x2bb] sm:$0x40]   ;;  %v8726_v57 = vsel %vm17_vm3, %v11072_v6, %v8722_v49 }
 0x3f9   :  { %v11095_v5 = vld [vmem:[%s20803_s0 + $0x701] sm:$0x1]   ;;  %v8730_v3 = vsel %vm21_vm4, %v11073_v14, %v8726_v57 }
 0x3fa   :  { %v11096_v9 = vld [vmem:[%s20803_s0 + $0x720] sm:$0x2]   ;;  %v8734_v36 = vsel %vm25_vm5, %v11074_v45, %v8730_v3 }
 0x3fb   :  { %v11097_v21 = vld [vmem:[%s20803_s0 + $0x73f] sm:$0x4]   ;;  %v8819_v62 = vsel %vm5_vm0, %v11096_v9, %v11095_v5 }
 0x3fc   :  { %v11098_v24 = vld [vmem:[%s20803_s0 + $0x75e] sm:$0x8]   ;;  %v8823_v52 = vsel %vm9_vm1, %v11097_v21, %v8819_v62 }
 0x3fd   :  { %v11075_v27 = vld [vmem:[%s20803_s0 + $0x2da] sm:$0x80]   ;;  %v8827_v32 = vsel %vm13_vm2, %v11098_v24, %v8823_v52 }
 0x3fe   :  { %v11099_v39 = vld [vmem:[%s20803_s0 + $0x77d] sm:$0x10]   ;;  %v8738_v13 = vsel %vm29_vm6, %v11075_v27, %v8734_v36 }
 0x3ff   :  { %v11100_v37 = vld [vmem:[%s20803_s0 + $0x79c] sm:$0x20]   ;;  %v8831_v7 = vsel %vm17_vm3, %v11099_v39, %v8827_v32  ;;  %8739 = vrot.lane.b32.xlu0 %v8738_v13, %s11165_s7 }
 0x400   :  { %v11101_v19 = vld [vmem:[%s20803_s0 + $0x7bb] sm:$0x40]   ;;  %v8835_v4 = vsel %vm21_vm4, %v11100_v37, %v8831_v7 }
 0x401   :  { %v11086_v53 = vld [vmem:[%s20803_s0 + $0x301] sm:$0x1]   ;;  %v8839_v23 = vsel %vm25_vm5, %v11101_v19, %v8835_v4 }
 0x402   :  { %v11087_v61 = vld [vmem:[%s20803_s0 + $0x320] sm:$0x2]  }
 0x403   :  { %v8784_v55 = vsel %vm5_vm0, %v11087_v61, %v11086_v53  ;;  %v11088_v2 = vld [vmem:[%s20803_s0 + $0x33f] sm:$0x4]   ;;  %vm6928_vm0 = vcmask 261344  }
 0x404   :  { %v11089_v41 = vld [vmem:[%s20803_s0 + $0x35e] sm:$0x8]   ;;  %v8788_v48 = vsel %vm9_vm1, %v11088_v2, %v8784_v55  ;;  %vm7207_vm1 = vcmask 228544   ;;  %10623 = vst.msk [vmem:[%s20804_s1 + $0x20] sm:$0xff] %vm6928_vm0, %v20170_v51   ;;  %6929 = vst.msk [vmem:[%s20804_s1] sm:$0xff] %vm6928_vm0, %v20208_v22  }
 0x405   :  { %v11090_v20 = vld [vmem:[%s20803_s0 + $0x37d] sm:$0x10]   ;;  %v8792_v28 = vsel %vm13_vm2, %v11089_v41, %v8788_v48  ;;  %10641 = vst.msk [vmem:[%s20804_s1 + $0x28] sm:$0xff] %vm6928_vm0, %v20246_v12   ;;  %10632 = vst.msk [vmem:[%s20804_s1 + $0x8] sm:$0xff] %vm6928_vm0, %v20284_v58   ;;  %v7380_v58 = vpop.permute.xlu1 %7379   ;;  %vm7486_vm2 = vcmask 195744  }
 0x406   :  { %v11102_v11 = vld [vmem:[%s20803_s0 + $0x7da] sm:$0x80]   ;;  %v8796_v17 = vsel %vm17_vm3, %v11090_v20, %v8792_v28  ;;  %10659 = vst.msk [vmem:[%s20804_s1 + $0x30] sm:$0xff] %vm6928_vm0, %v20310_v59   ;;  %10650 = vst.msk [vmem:[%s20804_s1 + $0x10] sm:$0xff] %vm6928_vm0, %v20377_v44   ;;  %v7345_v44 = vpop.permute.xlu0 %7344   ;;  %vm7765_vm3 = vcmask 162944  }
 0x407   :  { %v11091_v29 = vld [vmem:[%s20803_s0 + $0x39c] sm:$0x20]   ;;  %10677 = vst.msk [vmem:[%s20804_s1 + $0x38] sm:$0xff] %vm6928_vm0, %v20414_v30   ;;  %10668 = vst.msk [vmem:[%s20804_s1 + $0x18] sm:$0xff] %vm6928_vm0, %v20440_v46   ;;  %v8843_v51 = vsel %vm29_vm6, %v11102_v11, %v8839_v23 }
 0x408   :  { %v11092_v43 = vld [vmem:[%s20803_s0 + $0x3bb] sm:$0x40]   ;;  %v8800_v22 = vsel %vm21_vm4, %v11091_v29, %v8796_v17  ;;  %10694 = vst.msk [vmem:[%s20804_s1 + $0x20] sm:$0xff] %vm7207_vm1, %v20478_v60   ;;  %7208 = vst.msk [vmem:[%s20804_s1] sm:$0xff] %vm7207_vm1, %v7206_v54   ;;  %8844 = vrot.lane.b32.xlu1 %v8843_v51, %s11165_s7  ;;  %vm8044_vm4 = vcmask 130144  }
 0x409   :  { %v11093_v18 = vld [vmem:[%s20803_s0 + $0x3da] sm:$0x80]   ;;  %10712 = vst.msk [vmem:[%s20804_s1 + $0x28] sm:$0xff] %vm7207_vm1, %v7310_v38   ;;  %10703 = vst.msk [vmem:[%s20804_s1 + $0x8] sm:$0xff] %vm7207_vm1, %v7275_v31   ;;  %v8804_v12 = vsel %vm25_vm5, %v11092_v43, %v8800_v22  ;;  %v7450_v30 = vpop.permute.xlu1 %7449   ;;  %vm8323_vm5 = vcmask 97344  }
 0x40a   :  { %v8808_v59 = vsel %vm29_vm6, %v11093_v18, %v8804_v12  ;;  %10730 = vst.msk [vmem:[%s20804_s1 + $0x30] sm:$0xff] %vm7207_vm1, %v7380_v58   ;;  %10721 = vst.msk [vmem:[%s20804_s1 + $0x10] sm:$0xff] %vm7207_vm1, %v7345_v44   ;;  %v7415_v46 = vpop.permute.xlu0 %7414   ;;  %vm8602_vm6 = vcmask 64544  }
 0x40b   :  { %8809 = vrot.lane.b32.xlu0 %v8808_v59, %s11165_s7  ;;  %10748 = vst.msk [vmem:[%s20804_s1 + $0x38] sm:$0xff] %vm7207_vm1, %v7450_v30   ;;  %10739 = vst.msk [vmem:[%s20804_s1 + $0x18] sm:$0xff] %vm7207_vm1, %v7415_v46  }
 0x40d   :  { %v7519_v42 = vpop.permute.xlu1 %7518  }
 0x40e   :  { %10765 = vst.msk [vmem:[%s20804_s1 + $0x20] sm:$0xff] %vm7486_vm2, %v7519_v42   ;;  %v7485_v26 = vpop.permute.xlu0 %7484  }
 0x40f   :  { %7487 = vst.msk [vmem:[%s20804_s1] sm:$0xff] %vm7486_vm2, %v7485_v26  }
 0x411   :  { %v7589_v50 = vpop.permute.xlu1 %7588  }
 0x412   :  { %10783 = vst.msk [vmem:[%s20804_s1 + $0x28] sm:$0xff] %vm7486_vm2, %v7589_v50   ;;  %v7554_v40 = vpop.permute.xlu0 %7553  }
 0x413   :  { %10774 = vst.msk [vmem:[%s20804_s1 + $0x8] sm:$0xff] %vm7486_vm2, %v7554_v40  }
 0x415   :  { %v7659_v34 = vpop.permute.xlu1 %7658  }
 0x416   :  { %10801 = vst.msk [vmem:[%s20804_s1 + $0x30] sm:$0xff] %vm7486_vm2, %v7659_v34   ;;  %v7624_v25 = vpop.permute.xlu0 %7623  }
 0x417   :  { %10792 = vst.msk [vmem:[%s20804_s1 + $0x10] sm:$0xff] %vm7486_vm2, %v7624_v25  }
 0x419   :  { %v7729_v10 = vpop.permute.xlu1 %7728  }
 0x41a   :  { %10819 = vst.msk [vmem:[%s20804_s1 + $0x38] sm:$0xff] %vm7486_vm2, %v7729_v10   ;;  %v7694_v60 = vpop.permute.xlu0 %7693  }
 0x41b   :  { %10810 = vst.msk [vmem:[%s20804_s1 + $0x18] sm:$0xff] %vm7486_vm2, %v7694_v60  }
 0x41d   :  { %v7798_v33 = vpop.permute.xlu1 %7797  }
 0x41e   :  { %10836 = vst.msk [vmem:[%s20804_s1 + $0x20] sm:$0xff] %vm7765_vm3, %v7798_v33   ;;  %v7764_v0 = vpop.permute.xlu0 %7763  }
 0x41f   :  { %7766 = vst.msk [vmem:[%s20804_s1] sm:$0xff] %vm7765_vm3, %v7764_v0  }
 0x421   :  { %v7868_v8 = vpop.permute.xlu1 %7867  }
 0x422   :  { %10854 = vst.msk [vmem:[%s20804_s1 + $0x28] sm:$0xff] %vm7765_vm3, %v7868_v8   ;;  %v7833_v47 = vpop.permute.xlu0 %7832  }
 0x423   :  { %10845 = vst.msk [vmem:[%s20804_s1 + $0x8] sm:$0xff] %vm7765_vm3, %v7833_v47  }
 0x425   :  { %v7938_v1 = vpop.permute.xlu1 %7937  }
 0x426   :  { %10872 = vst.msk [vmem:[%s20804_s1 + $0x30] sm:$0xff] %vm7765_vm3, %v7938_v1   ;;  %v7903_v6 = vpop.permute.xlu0 %7902  }
 0x427   :  { %10863 = vst.msk [vmem:[%s20804_s1 + $0x10] sm:$0xff] %vm7765_vm3, %v7903_v6  }
 0x429   :  { %v8008_v16 = vpop.permute.xlu1 %8007  }
 0x42a   :  { %10890 = vst.msk [vmem:[%s20804_s1 + $0x38] sm:$0xff] %vm7765_vm3, %v8008_v16   ;;  %v7973_v63 = vpop.permute.xlu0 %7972  }
 0x42b   :  { %10881 = vst.msk [vmem:[%s20804_s1 + $0x18] sm:$0xff] %vm7765_vm3, %v7973_v63  }
 0x42d   :  { %v8077_v56 = vpop.permute.xlu1 %8076  }
 0x42e   :  { %10907 = vst.msk [vmem:[%s20804_s1 + $0x20] sm:$0xff] %vm8044_vm4, %v8077_v56   ;;  %v8043_v14 = vpop.permute.xlu0 %8042  }
 0x42f   :  { %8045 = vst.msk [vmem:[%s20804_s1] sm:$0xff] %vm8044_vm4, %v8043_v14  }
 0x431   :  { %v8147_v45 = vpop.permute.xlu1 %8146  }
 0x432   :  { %10925 = vst.msk [vmem:[%s20804_s1 + $0x28] sm:$0xff] %vm8044_vm4, %v8147_v45   ;;  %v8112_v5 = vpop.permute.xlu0 %8111  }
 0x433   :  { %10916 = vst.msk [vmem:[%s20804_s1 + $0x8] sm:$0xff] %vm8044_vm4, %v8112_v5  }
 0x435   :  { %v8217_v15 = vpop.permute.xlu1 %8216  }
 0x436   :  { %10943 = vst.msk [vmem:[%s20804_s1 + $0x30] sm:$0xff] %vm8044_vm4, %v8217_v15   ;;  %v8182_v49 = vpop.permute.xlu0 %8181  }
 0x437   :  { %10934 = vst.msk [vmem:[%s20804_s1 + $0x10] sm:$0xff] %vm8044_vm4, %v8182_v49  }
 0x439   :  { %v8287_v9 = vpop.permute.xlu1 %8286  }
 0x43a   :  { %10961 = vst.msk [vmem:[%s20804_s1 + $0x38] sm:$0xff] %vm8044_vm4, %v8287_v9  }
 0x43d   :  { %v8356_v24 = vpop.permute.xlu1 %8355  }
 0x43e   :  { %v8252_v21 = vpop.permute.xlu0 %8251   ;;  %10978 = vst.msk [vmem:[%s20804_s1 + $0x20] sm:$0xff] %vm8323_vm5, %v8356_v24  }
 0x43f   :  { %10952 = vst.msk [vmem:[%s20804_s1 + $0x18] sm:$0xff] %vm8044_vm4, %v8252_v21  }
 0x441   :  { %v8426_v35 = vpop.permute.xlu1 %8425  }
 0x442   :  { %v8322_v54 = vpop.permute.xlu0 %8321   ;;  %10996 = vst.msk [vmem:[%s20804_s1 + $0x28] sm:$0xff] %vm8323_vm5, %v8426_v35  }
 0x443   :  { %8324 = vst.msk [vmem:[%s20804_s1] sm:$0xff] %vm8323_vm5, %v8322_v54  }
 0x446   :  { %v8391_v57 = vpop.permute.xlu0 %8390  }
 0x447   :  { %10987 = vst.msk [vmem:[%s20804_s1 + $0x8] sm:$0xff] %vm8323_vm5, %v8391_v57  }
 0x44b   :  { %v8496_v27 = vpop.permute.xlu1 %8495  }
 0x44c   :  { %11014 = vst.msk [vmem:[%s20804_s1 + $0x30] sm:$0xff] %vm8323_vm5, %v8496_v27  }
 0x451   :  { %v8461_v62 = vpop.permute.xlu0 %8460  }
 0x452   :  { %11005 = vst.msk [vmem:[%s20804_s1 + $0x10] sm:$0xff] %vm8323_vm5, %v8461_v62  }
 0x45a   :  { %v8566_v39 = vpop.permute.xlu1 %8565  }
 0x45b   :  { %11032 = vst.msk [vmem:[%s20804_s1 + $0x38] sm:$0xff] %vm8323_vm5, %v8566_v39  }
 0x45e   :  { %v8531_v37 = vpop.permute.xlu0 %8530   ;;  %v8635_v3 = vpop.permute.xlu1 %8634  }
 0x45f   :  { %11023 = vst.msk [vmem:[%s20804_s1 + $0x18] sm:$0xff] %vm8323_vm5, %v8531_v37  }
 0x460   :  { %11049 = vst.msk [vmem:[%s20804_s1 + $0x20] sm:$0xff] %vm8602_vm6, %v8635_v3  }
 0x462   :  { %v8601_v52 = vpop.permute.xlu0 %8600   ;;  %v8705_v19 = vpop.permute.xlu1 %8704  }
 0x463   :  { %8603 = vst.msk [vmem:[%s20804_s1] sm:$0xff] %vm8602_vm6, %v8601_v52   ;;  %11067 = vst.msk [vmem:[%s20804_s1 + $0x28] sm:$0xff] %vm8602_vm6, %v8705_v19  }
 0x466   :  { %v8670_v53 = vpop.permute.xlu0 %8669  }
 0x467   :  { %11058 = vst.msk [vmem:[%s20804_s1 + $0x8] sm:$0xff] %vm8602_vm6, %v8670_v53  }
 0x469   :  { %v8775_v61 = vpop.permute.xlu1 %8774  }
 0x46a   :  { %11085 = vst.msk [vmem:[%s20804_s1 + $0x30] sm:$0xff] %vm8602_vm6, %v8775_v61  }
 0x471   :  { %v8740_v36 = vpop.permute.xlu0 %8739  }
 0x472   :  { %11076 = vst.msk [vmem:[%s20804_s1 + $0x10] sm:$0xff] %vm8602_vm6, %v8740_v36  }
 0x47a   :  { %v8845_v32 = vpop.permute.xlu1 %8844  }
 0x47b   :  { %11103 = vst.msk [vmem:[%s20804_s1 + $0x38] sm:$0xff] %vm8602_vm6, %v8845_v32  }
 0x47d   :  { %v8810_v55 = vpop.permute.xlu0 %8809  }
 0x47e   :  { %11094 = vst.msk [vmem:[%s20804_s1 + $0x18] sm:$0xff] %vm8602_vm6, %v8810_v55  }

// kernel: hybrid_gaussian_nll_giou.1
= control target key start
LH: loop header
LB: loop body
LE: loop exit
PB: predicated region body
PF: predicated region fallthrough
CT: control target
= control target key end

     0   :  { %s846_s15 = smov 0   ;;  %s848_s16 = smov 0   ;;  %s1078_s0 = inlined_call_operand.vmem [shape: f32[16,512], index: 0, kind: input, shape index: {}]   ;;  %s1079_s1 = inlined_call_operand.vmem [shape: f32[16,512], index: 1, kind: input, shape index: {}]   ;;  %s1080_s2 = inlined_call_operand.vmem [shape: f32[16,512], index: 2, kind: input, shape index: {}]   ;;  %s1081_s3 = inlined_call_operand.vmem [shape: f32[16,512], index: 3, kind: output, shape index: {0}]   ;;  %s1082_s4 = inlined_call_operand.vmem [shape: f32[16,512], index: 4, kind: output, shape index: {1}]  }
   0x1   :  { %s850_s17 = smov 0  }
   0x2 LB: > { %s27_s18 = sadd.s32 1, %s813_s16  ;;  %p718_p0 = scmp.ge.s32.totalorder %s817_s17, 1  ;;  %s817_s17 = sphi %s850_s17, %s15_s17   ;;  %s813_s16 = sphi %s848_s16, %s1086_s16   ;;  %s809_s15 = sphi %s846_s15, %s1085_s15  }
   0x3   : > { %p29_p1 = scmp.ge.s32.totalorder %s27_s18, 2  ;;  %p209_p2 = scmp.lt.s32.totalorder %s817_s17, 3 }
   0x5   : > { %s1088_s18 = smov (%p29_p1, %s27_s18), 0  ;;  %p210_p3 = pnand %p718_p0, %p209_p2 }
   0x6   : > { %p254_p4 = scmp.lt.s32.totalorder (!%p210_p3), %s809_s15, 1  ;;  %s819_s26 = smov (!%p210_p3), 2   ;;  %v296_v48 = vlaneseq (!%p210_p3) }
   0x7   : > { %213 = sbr.rel (%p210_p3) target bundleno = 316 (0x13c), region = 32  ;;  %s820_s7 = smov (!%p210_p3), 127  }
   0x8   : > { %v922_v49 = vand.u32 (!%p210_p3), 127, %v296_v48 }
   0xa   : > { %vm376_vm0 = vcmp.lt.s32.totalorder (!%p210_p3), %v922_v49, 2  ;;  %vm441_vm1 = vcmp.lt.s32.totalorder (!%p210_p3), %v922_v49, 127 }
   0xe   : > { %s1090_s15 = smov (!%p254_p4, %s809_s15), 1 }
   0xf   : > { %s864_s19 = sshll.u32 %s1090_s15, 5 }
  0x10   : > { %s258_s22 = scalar_lea.vmem %s1078_s0, %s864_s19  ;;  %s272_s25 = scalar_lea.vmem %s1080_s2, %s864_s19 }
  0x11   : > { %v874_v0 = vld [vmem:[%s258_s22 + $0x10] sm:$0xff]  ;;  %v876_v1 = vld [vmem:[%s258_s22] sm:$0xff]  ;;  %v882_v2 = vld [vmem:[%s258_s22 + $0x18] sm:$0xff]  ;;  %s265_s29 = scalar_lea.vmem %s1079_s1, %s864_s19  ;;  %s278_s6 = scalar_lea.vmem %s1081_s3, %s864_s19 }
  0x12   : > { %372 = vrot.lane.b32.xlu1 %v874_v0, %s819_s26  ;;  %368 = vrot.lane.b32.xlu0 %v876_v1, %s819_s26  ;;  %v884_v3 = vld [vmem:[%s258_s22 + $0x8] sm:$0xff]  ;;  %v324_v6 = vld [vmem:[%s272_s25] sm:$0xff]  ;;  %v393_v52 = vmax.f32 %v876_v1, 1e-09  ;;  %v396_v54 = vmax.f32 %v882_v2, 1e-09  ;;  %s283_s10 = scalar_lea.vmem %s1082_s4, %s864_s19 }
  0x13   : > { %v325_v4 = vld [vmem:[%s272_s25 + $0x8] sm:$0xff]  ;;  %v328_v7 = vmax.f32 %v324_v6, 1e-06  ;;  %v327_v8 = vld [vmem:[%s272_s25 + $0x18] sm:$0xff]  ;;  %v896_v10 = vld [vmem:[%s265_s29] sm:$0xff] }
  0x14   : > { %v329_v5 = vmax.f32 %v325_v4, 1e-06  ;;  %v894_v9 = vld [vmem:[%s265_s29 + $0x8] sm:$0xff]  ;;  %v331_v11 = vmax.f32 %v327_v8, 1e-06  ;;  %v326_v12 = vld [vmem:[%s272_s25 + $0x10] sm:$0xff]  ;;  %v332_v17 = vsub.f32 %v876_v1, %v896_v10 }
  0x15   : > { %v330_v13 = vmax.f32 %v326_v12, 1e-06  ;;  %v333_v14 = vsub.f32 %v884_v3, %v894_v9  ;;  %v904_v15 = vld [vmem:[%s265_s29 + $0x18] sm:$0xff]  ;;  %v906_v16 = vld [vmem:[%s265_s29 + $0x10] sm:$0xff]  ;;  %v394_v53 = vmax.f32 %v884_v3, 1e-09 }
  0x16   : > { %374 = vrot.lane.b32.xlu1 %v882_v2, %s819_s26  ;;  %370 = vrot.lane.b32.xlu0 %v884_v3, %s819_s26  ;;  %763 = vlog2.f32 %v329_v5  ;;  %v335_v19 = vsub.f32 %v882_v2, %v904_v15  ;;  %v344_v21 = vmul.f32 %v332_v17, %v332_v17  ;;  %v334_v22 = vsub.f32 %v874_v0, %v906_v16 }
  0x17   : > { %765 = vrcp.f32 %v329_v5  ;;  %v345_v18 = vmul.f32 %v333_v14, %v333_v14  ;;  %v395_v57 = vmax.f32 %v874_v0, 1e-09  ;;  %v402_v61 = vmax.f32 %v894_v9, 1e-09 }
  0x18   : > { %767 = vlog2.f32 %v328_v7  ;;  %v347_v27 = vmul.f32 %v335_v19, %v335_v19  ;;  %v346_v33 = vmul.f32 %v334_v22, %v334_v22  ;;  %v401_v8 = vmax.f32 %v896_v10, 1e-09 }
  0x19   : > { %769 = vrcp.f32 %v328_v7  ;;  %v404_v12 = vmax.f32 %v904_v15, 1e-09 }
  0x1a   : > { %383 = vrot.lane.b32.xlu1 %v894_v9, %s819_s26  ;;  %381 = vrot.lane.b32.xlu0 %v896_v10, %s819_s26  ;;  %771 = vlog2.f32 %v331_v11  ;;  %v403_v9 = vmax.f32 %v906_v16, 1e-09 }
  0x1b   : > { %773 = vrcp.f32 %v331_v11 }
  0x1c   : > { %775 = vlog2.f32 %v330_v13 }
  0x1d   : > { %777 = vrcp.f32 %v330_v13 }
  0x1e   : > { %387 = vrot.lane.b32.xlu1 %v904_v15, %s819_s26  ;;  %385 = vrot.lane.b32.xlu0 %v906_v16, %s819_s26 }
  0x20   : > { %v764_v20 = vpop.eup %763 }
  0x21   : > { %v766_v23 = vpop.eup %765  ;;  %v339_v24 = vmul.f32 0.6931472, %v764_v20 }
  0x22   : > { %v768_v25 = vpop.eup %767  ;;  %v353_v26 = vmul.f32 %v766_v23, %v345_v18 }
  0x23   : > { %v770_v28 = vpop.eup %769  ;;  %v337_v29 = vmul.f32 0.6931472, %v768_v25 }
  0x24   : > { %v772_v30 = vpop.eup %771  ;;  %v357_v31 = vadd.f32 %v353_v26, %v339_v24  ;;  %v352_v32 = vmul.f32 %v770_v28, %v344_v21 }
  0x25   : > { %v774_v34 = vpop.eup %773  ;;  %v343_v35 = vmul.f32 0.6931472, %v772_v30 }
  0x26   : > { %v776_v36 = vpop.eup %775  ;;  %v361_v37 = vmul.f32 0.5, %v357_v31  ;;  %v356_v38 = vadd.f32 %v352_v32, %v337_v29  ;;  %v355_v39 = vmul.f32 %v774_v34, %v347_v27 }
  0x27   : > { %v778_v40 = vpop.eup %777  ;;  %v341_v41 = vmul.f32 0.6931472, %v776_v36 }
  0x28   : > { %v360_v42 = vmul.f32 0.5, %v356_v38  ;;  %v359_v43 = vadd.f32 %v355_v39, %v343_v35  ;;  %v354_v44 = vmul.f32 %v778_v40, %v346_v33  ;;  %579 = vst [vmem:[%s278_s6 + $0x8] sm:$0xff] %v361_v37 }
  0x2a   : > { %v363_v45 = vmul.f32 0.5, %v359_v43  ;;  %v358_v46 = vadd.f32 %v354_v44, %v341_v41  ;;  %578 = vst [vmem:[%s278_s6] sm:$0xff] %v360_v42 }
  0x2c   : > { %v362_v47 = vmul.f32 0.5, %v358_v46  ;;  %581 = vst [vmem:[%s278_s6 + $0x18] sm:$0xff] %v363_v45 }
  0x2e   : > { %580 = vst [vmem:[%s278_s6 + $0x10] sm:$0xff] %v362_v47 }
  0x84   : > { %v373_v50 = vpop.permute.xlu1 %372  ;;  %v369_v51 = vpop.permute.xlu0 %368 }
  0x88   : > { %v375_v55 = vpop.permute.xlu1 %374  ;;  %v371_v56 = vpop.permute.xlu0 %370 }
  0x89   : > { %v931_v58 = vsel %vm376_vm0, %v373_v50, %v375_v55  ;;  %v380_v59 = vsel %vm376_vm0, %v375_v55, %v369_v51  ;;  %v379_v60 = vsel %vm376_vm0, %v369_v51, %v371_v56  ;;  %v940_v63 = vsel %vm376_vm0, %v371_v56, %v373_v50 }
  0x8a   : > { %v397_v62 = vadd.f32 %v393_v52, %v380_v59  ;;  %v398_v1 = vadd.f32 %v394_v53, %v379_v60  ;;  %v943_v0 = vadd.f32 %v396_v54, %v931_v58  ;;  %v950_v6 = vadd.f32 %v395_v57, %v940_v63 }
  0x8c   : > { %v384_v2 = vpop.permute.xlu1 %383  ;;  %v382_v3 = vpop.permute.xlu0 %381  ;;  %v945_v4 = vsub.f32 %v398_v1, %v379_v60  ;;  %v947_v5 = vsub.f32 %v397_v62, %v380_v59  ;;  %v963_v17 = vsub.f32 %v943_v0, %v931_v58  ;;  %v973_v15 = vsub.f32 %v950_v6, %v940_v63 }
  0x8d   : > { %v391_v7 = vsel %vm376_vm0, %v382_v3, %v384_v2 }
  0x8e   : > { %v406_v11 = vadd.f32 %v402_v61, %v391_v7  ;;  %452 = vrot.lane.b32.xlu1 %v945_v4, %s820_s7  ;;  %450 = vrot.lane.b32.xlu0 %v947_v5, %s820_s7  ;;  %v418_v34 = vmax.f32 %v379_v60, %v391_v7  ;;  %v503_v35 = vmin.f32 %v379_v60, %v391_v7 }
  0x90   : > { %v388_v13 = vpop.permute.xlu1 %387  ;;  %v386_v14 = vpop.permute.xlu0 %385  ;;  %v507_v18 = vmax.f32 %v398_v1, %v406_v11  ;;  %v422_v10 = vmin.f32 %v398_v1, %v406_v11  ;;  %v979_v24 = vsub.f32 %v406_v11, %v391_v7 }
  0x91   : > { %v392_v16 = vsel %vm376_vm0, %v388_v13, %v382_v3  ;;  %v389_v19 = vsel %vm376_vm0, %v386_v14, %v388_v13  ;;  %v390_v20 = vsel %vm376_vm0, %v384_v2, %v386_v14 }
  0x92   : > { %v405_v21 = vadd.f32 %v401_v8, %v392_v16  ;;  %v407_v22 = vadd.f32 %v403_v9, %v390_v20  ;;  %456 = vrot.lane.b32.xlu1 %v963_v17, %s820_s7  ;;  %v408_v23 = vadd.f32 %v404_v12, %v389_v19  ;;  %454 = vrot.lane.b32.xlu0 %v973_v15, %s820_s7 }
  0x93   : > { %v417_v36 = vmax.f32 %v380_v59, %v392_v16  ;;  %v502_v37 = vmin.f32 %v380_v59, %v392_v16  ;;  %v990_v38 = vsub.f32 %v507_v18, %v503_v35  ;;  %v992_v39 = vsub.f32 %v422_v10, %v418_v34 }
  0x94   : > { %v413_v25 = vsub.f32 %v405_v21, %v392_v16  ;;  %v506_v26 = vmax.f32 %v397_v62, %v405_v21  ;;  %v421_v27 = vmin.f32 %v397_v62, %v405_v21  ;;  %v424_v28 = vmin.f32 %v943_v0, %v408_v23 }
  0x95   : > { %v423_v29 = vmin.f32 %v950_v6, %v407_v22  ;;  %v509_v30 = vmax.f32 %v943_v0, %v408_v23  ;;  %v508_v31 = vmax.f32 %v950_v6, %v407_v22  ;;  %v416_v32 = vsub.f32 %v408_v23, %v389_v19 }
  0x96   : > { %468 = vrot.lane.b32.xlu1 %v979_v24, %s820_s7  ;;  %466 = vrot.lane.b32.xlu0 %v413_v25, %s820_s7  ;;  %v415_v33 = vsub.f32 %v407_v22, %v390_v20  ;;  %v510_v40 = vsub.f32 %v506_v26, %v502_v37  ;;  %v425_v41 = vsub.f32 %v421_v27, %v417_v36  ;;  %v430_v44 = vmax.f32 %v992_v39, 0.0 }
  0x97   : > { %v420_v42 = vmax.f32 %v931_v58, %v389_v19  ;;  %v419_v43 = vmax.f32 %v940_v63, %v390_v20  ;;  %v505_v51 = vmin.f32 %v931_v58, %v389_v19  ;;  %v504_v52 = vmin.f32 %v940_v63, %v390_v20 }
  0x98   : > { %v429_v46 = vmax.f32 %v425_v41, 0.0 }
  0x99   : > { %v428_v45 = vsub.f32 %v424_v28, %v420_v42  ;;  %v427_v47 = vsub.f32 %v423_v29, %v419_v43  ;;  %v513_v53 = vsub.f32 %v509_v30, %v505_v51  ;;  %v1008_v54 = vsub.f32 %v508_v31, %v504_v52 }
  0x9a   : > { %472 = vrot.lane.b32.xlu1 %v416_v32, %s820_s7  ;;  %470 = vrot.lane.b32.xlu0 %v415_v33, %s820_s7 }
  0x9b   : > { %v432_v48 = vmax.f32 %v428_v45, 0.0  ;;  %v431_v50 = vmax.f32 %v427_v47, 0.0 }
  0x9e   : > { %516 = vrot.lane.b32.xlu1 %v990_v38, %s820_s7  ;;  %514 = vrot.lane.b32.xlu0 %v510_v40, %s820_s7 }
  0xa2   : > { %435 = vrot.lane.b32.xlu1 %v430_v44, %s820_s7  ;;  %433 = vrot.lane.b32.xlu0 %v429_v46, %s820_s7 }
  0xa6   : > { %439 = vrot.lane.b32.xlu1 %v432_v48, %s820_s7  ;;  %437 = vrot.lane.b32.xlu0 %v431_v50, %s820_s7 }
  0xaa   : > { %520 = vrot.lane.b32.xlu1 %v513_v53, %s820_s7  ;;  %518 = vrot.lane.b32.xlu0 %v1008_v54, %s820_s7 }
 0x100   : > { %v453_v55 = vpop.permute.xlu1 %452  ;;  %v451_v56 = vpop.permute.xlu0 %450 }
 0x101   : > { %v460_v2 = vsel %vm441_vm1, %v451_v56, %v453_v55 }
 0x102   : > { %v462_v18 = vmul.f32 %v460_v2, %v947_v5 }
 0x104   : > { %v457_v57 = vpop.permute.xlu1 %456  ;;  %v455_v59 = vpop.permute.xlu0 %454 }
 0x105   : > { %v461_v8 = vsel %vm441_vm1, %v457_v57, %v451_v56  ;;  %v459_v13 = vsel %vm441_vm1, %v453_v55, %v455_v59  ;;  %v458_v10 = vsel %vm441_vm1, %v455_v59, %v457_v57 }
 0x106   : > { %v465_v21 = vmul.f32 %v461_v8, %v963_v17  ;;  %v464_v5 = vmul.f32 %v458_v10, %v973_v15  ;;  %v298_v8 = vadd.s32 128, %v922_v49 }
 0x108   : > { %v469_v60 = vpop.permute.xlu1 %468  ;;  %v467_v58 = vpop.permute.xlu0 %466 }
 0x109   : > { %v476_v63 = vsel %vm441_vm1, %v467_v58, %v469_v60 }
 0x10a   : > { %v478_v9 = vmul.f32 %v476_v63, %v413_v25  ;;  %v463_v25 = vmul.f32 %v459_v13, %v945_v4 }
 0x10c   : > { %v473_v61 = vpop.permute.xlu1 %472  ;;  %v471_v62 = vpop.permute.xlu0 %470  ;;  %v482_v26 = vadd.f32 %v478_v9, %v462_v18 }
 0x10d   : > { %v477_v3 = vsel %vm441_vm1, %v473_v61, %v467_v58  ;;  %v475_v6 = vsel %vm441_vm1, %v469_v60, %v471_v62  ;;  %v474_v11 = vsel %vm441_vm1, %v471_v62, %v473_v61 }
 0x10e   : > { %v481_v16 = vmul.f32 %v477_v3, %v416_v32  ;;  %v479_v19 = vmul.f32 %v475_v6, %v979_v24  ;;  %v480_v22 = vmul.f32 %v474_v11, %v415_v33 }
 0x110   : > { %v517_v1 = vpop.permute.xlu1 %516  ;;  %v515_v0 = vpop.permute.xlu0 %514  ;;  %v485_v30 = vadd.f32 %v481_v16, %v465_v21  ;;  %v483_v31 = vadd.f32 %v479_v19, %v463_v25  ;;  %v484_v17 = vadd.f32 %v480_v22, %v464_v5 }
 0x111   : > { %v524_v7 = vsel %vm441_vm1, %v515_v0, %v517_v1 }
 0x112   : > { %v526_v12 = vmul.f32 %v524_v7, %v510_v40  ;;  %v300_v7 = vadd.s32 384, %v922_v49 }
 0x114   : > { %v436_v14 = vpop.permute.xlu1 %435  ;;  %v434_v20 = vpop.permute.xlu0 %433  ;;  %v534_v27 = vadd.f32 1e-09, %v526_v12 }
 0x115   : > { %v444_v23 = vsel %vm441_vm1, %v434_v20, %v436_v14 }
 0x116   : > { %v446_v28 = vmul.f32 %v444_v23, %v429_v46  ;;  %779 = vrcp.f32 %v534_v27  ;;  %v304_v27 = vand.u32 3, %v300_v7 }
 0x118   : > { %v440_v29 = vpop.permute.xlu1 %439  ;;  %v486_v32 = vsub.f32 %v482_v26, %v446_v28  ;;  %v438_v34 = vpop.permute.xlu0 %437  ;;  %vm308_vm3 = vcmp.eq.s32.totalorder %v304_v27, 2 }
 0x119   : > { %v445_v24 = vsel %vm441_vm1, %v440_v29, %v434_v20  ;;  %v442_v35 = vsel %vm441_vm1, %v438_v34, %v440_v29  ;;  %v443_v4 = vsel %vm441_vm1, %v436_v14, %v438_v34  ;;  %v299_v20 = vadd.s32 256, %v922_v49 }
 0x11a   : > { %v449_v33 = vmul.f32 %v445_v24, %v432_v48  ;;  %v490_v36 = vadd.f32 1e-09, %v486_v32  ;;  %v447_v15 = vmul.f32 %v443_v4, %v430_v44  ;;  %v448_v37 = vmul.f32 %v442_v35, %v431_v50 }
 0x11b   : > { %v530_v60 = vsub.f32 %v526_v12, %v486_v32  ;;  %v303_v32 = vand.u32 3, %v299_v20 }
 0x11c   : > { %v489_v40 = vsub.f32 %v485_v30, %v449_v33  ;;  %v521_v41 = vpop.permute.xlu1 %520  ;;  %781 = vrcp.f32 %v490_v36  ;;  %v487_v42 = vsub.f32 %v483_v31, %v447_v15  ;;  %v488_v43 = vsub.f32 %v484_v17, %v448_v37  ;;  %v519_v46 = vpop.permute.xlu0 %518 }
 0x11d   : > { %v525_v45 = vsel %vm441_vm1, %v521_v41, %v515_v0  ;;  %v522_v51 = vsel %vm441_vm1, %v519_v46, %v521_v41  ;;  %v523_v52 = vsel %vm441_vm1, %v517_v1, %v519_v46  ;;  %v302_v30 = vand.u32 3, %v298_v8 }
 0x11e   : > { %v493_v47 = vadd.f32 1e-09, %v489_v40  ;;  %v529_v48 = vmul.f32 %v525_v45, %v513_v53  ;;  %v491_v39 = vadd.f32 1e-09, %v487_v42  ;;  %v492_v44 = vadd.f32 1e-09, %v488_v43 }
 0x11f   : > { %v527_v50 = vmul.f32 %v523_v52, %v990_v38  ;;  %v528_v55 = vmul.f32 %v522_v51, %v1008_v54  ;;  %v301_v38 = vand.u32 3, %v922_v49  ;;  %vm306_vm4 = vcmp.eq.s32.totalorder %v302_v30, 2 }
 0x120   : > { %783 = vrcp.f32 %v493_v47  ;;  %v537_v56 = vadd.f32 1e-09, %v529_v48  ;;  %v780_v53 = vpop.eup %779  ;;  %v533_v3 = vsub.f32 %v529_v48, %v489_v40  ;;  %vm307_vm5 = vcmp.eq.s32.totalorder %v303_v32, 2 }
 0x121   : > { %785 = vrcp.f32 %v491_v39  ;;  %v535_v57 = vadd.f32 1e-09, %v527_v50  ;;  %v536_v59 = vadd.f32 1e-09, %v528_v55  ;;  %v542_v62 = vmul.f32 %v780_v53, %v530_v60 }
 0x122   : > { %787 = vrcp.f32 %v492_v44  ;;  %v531_v9 = vsub.f32 %v527_v50, %v487_v42  ;;  %v532_v18 = vsub.f32 %v528_v55, %v488_v43  ;;  %vm1058_vm2 = vcmp.eq.s32.totalorder %v301_v38, 2 }
 0x123   : > { %789 = vrcp.f32 %v537_v56 }
 0x124   : > { %791 = vrcp.f32 %v535_v57 }
 0x125   : > { %793 = vrcp.f32 %v536_v59 }
 0x126   : > { %v782_v58 = vpop.eup %781 }
 0x127   : > { %v498_v61 = vmul.f32 %v782_v58, %v446_v28 }
 0x129   : > { %v546_v1 = vsub.f32 %v498_v61, %v542_v62 }
 0x12a   : > { %v784_v63 = vpop.eup %783 }
 0x12b   : > { %v786_v0 = vpop.eup %785  ;;  %v550_v2 = vsub.f32 1.0, %v546_v1  ;;  %v501_v13 = vmul.f32 %v784_v63, %v449_v33 }
 0x12c   : > { %v788_v54 = vpop.eup %787  ;;  %v499_v19 = vmul.f32 %v786_v0, %v447_v15 }
 0x12d   : > { %v790_v6 = vpop.eup %789  ;;  %v554_v12 = vmax.f32 %v550_v2, -1.0  ;;  %v500_v23 = vmul.f32 %v788_v54, %v448_v37 }
 0x12e   : > { %v792_v11 = vpop.eup %791  ;;  %v545_v14 = vmul.f32 %v790_v6, %v533_v3 }
 0x12f   : > { %v794_v10 = vpop.eup %793  ;;  %v543_v21 = vmul.f32 %v792_v11, %v531_v9  ;;  %v558_v22 = vmin.f32 %v554_v12, 10.0 }
 0x130   : > { %v549_v25 = vsub.f32 %v501_v13, %v545_v14  ;;  %v544_v26 = vmul.f32 %v794_v10, %v532_v18 }
 0x131   : > { %v547_v28 = vsub.f32 %v499_v19, %v543_v21  ;;  %v562_v5 = vsel %vm1058_vm2, %v558_v22, 0.0 }
 0x132   : > { %v553_v29 = vsub.f32 1.0, %v549_v25  ;;  %v548_v31 = vsub.f32 %v500_v23, %v544_v26  ;;  %590 = vst [vmem:[%s283_s10] sm:$0xff] %v562_v5 }
 0x133   : > { %v551_v24 = vsub.f32 1.0, %v547_v28 }
 0x134   : > { %v557_v49 = vmax.f32 %v553_v29, -1.0  ;;  %v552_v34 = vsub.f32 1.0, %v548_v31 }
 0x135   : > { %v555_v17 = vmax.f32 %v551_v24, -1.0 }
 0x136   : > { %v561_v33 = vmin.f32 %v557_v49, 10.0  ;;  %v556_v35 = vmax.f32 %v552_v34, -1.0 }
 0x137   : > { %v559_v4 = vmin.f32 %v555_v17, 10.0 }
 0x138   : > { %v565_v36 = vsel %vm308_vm3, %v561_v33, 0.0  ;;  %v560_v15 = vmin.f32 %v556_v35, 10.0 }
 0x139   : > { %v563_v37 = vsel %vm306_vm4, %v559_v4, 0.0  ;;  %593 = vst [vmem:[%s283_s10 + $0x18] sm:$0xff] %v565_v36 }
 0x13a   : > { %v564_v40 = vsel %vm307_vm5, %v560_v15, 0.0  ;;  %591 = vst [vmem:[%s283_s10 + $0x8] sm:$0xff] %v563_v37 }
 0x13b   : > { %592 = vst [vmem:[%s283_s10 + $0x10] sm:$0xff] %v564_v40 }
 0x13c PF: > { %s15_s17 = sadd.s32 1, %s817_s17   ;;  %s1085_s15 = smov %s813_s16 }
 0x13d   : > { %p12_p5 = scmp.ge.s32.totalorder %s15_s17, 4   ;;  %s1086_s16 = smov %s1088_s18 }
 0x13f   :  { %14 = sbr.rel (!%p12_p5) target bundleno = 2 (0x2), region = 87 }

</bundles_post_ra>
